<compile_context>
chip_gen: v7x
topology: tpu7x:2x2x1
jax: 0.10.0
libtpu: 0.0.40
codegen_flags: <defaults>
</compile_context>

<pallas_src>
import functools
import math

import jax
import jax.numpy as jnp
from jax import lax
from jax.experimental import pallas as pl
from jax.experimental.pallas import tpu as pltpu

BN_EPS = 1e-5
WPAD = 8   # sublane-aligned left/right padding for the 3x3-conv scratch


# ------------------------------ fused kernel ---------------------------------
def _bottle2neck_kernel(x_ref, w1_ref, b1_ref, w3_ref, b3_ref, wo_ref, bo_ref,
                        o_ref, pad_ref, *, H, W, width, scale):
    nums = scale - 1
    x = x_ref[...]                                   # (H, W, Cin)
    Cin = x.shape[-1]
    Cout = o_ref.shape[-1]
    xf = x.reshape(H * W, Cin)

    # conv1 (1x1, bias-free) with BN1 folded into the weights, + ReLU.
    # Computed one `width`-sized output chunk at a time (the chunking is done
    # on the weights in the wrapper), so the torch.split needs no unaligned
    # lane slicing inside the kernel.
    spx = []
    for i in range(scale):
        c = jnp.dot(xf, w1_ref[i], preferred_element_type=jnp.float32) + b1_ref[i]
        spx.append(jnp.maximum(c, 0.0))              # (H*W, width)

    # Zero the padded scratch once; only the interior gets rewritten below,
    # the halo stays zero (the 3x3 convs use padding=1).
    pad_ref[...] = jnp.zeros_like(pad_ref)

    acc = None                                       # conv3 accumulator (H*W, Cout)
    sp = None
    for i in range(nums):
        sp = spx[i] if i == 0 else sp + spx[i]
        # write the (H, W, width) feature map into the zero-padded scratch;
        # the sublane (W) offset is WPAD=8, so the store is tile-aligned.
        pad_ref[1:H + 1, WPAD:WPAD + W, :] = sp.reshape(H, W, width)

        # 3x3 conv (stride 1, pad 1, bias-free) with BN_i folded: 9 tap matmuls
        conv = jnp.zeros((H * W, width), jnp.float32)
        for ky in range(3):
            for kx in range(3):
                win = pad_ref[ky:ky + H, WPAD - 1 + kx:WPAD - 1 + kx + W, :]
                conv = conv + jnp.dot(win.reshape(H * W, width),
                                      w3_ref[i, ky * 3 + kx],
                                      preferred_element_type=jnp.float32)
        sp = jnp.maximum(conv + b3_ref[i], 0.0)      # BN_i bias + ReLU

        # conv3 (1x1, BN3 folded) applied chunk-by-chunk; this realizes the
        # torch.cat(...) -> conv3 step without any in-kernel concatenation.
        part = jnp.dot(sp, wo_ref[i], preferred_element_type=jnp.float32)
        acc = part if acc is None else acc + part

    # last split chunk is passed through unchanged (stype='normal', scale!=1)
    acc = acc + jnp.dot(spx[nums], wo_ref[nums], preferred_element_type=jnp.float32)

    y = acc + bo_ref[...]                            # BN3 bias
    y = jnp.maximum(y + xf, 0.0)                     # += residual, ReLU
    o_ref[...] = y.reshape(H, W, Cout)


def bottle2neck_forward(x_nhwc, params, *, width, scale):
    B, H, W, Cin = x_nhwc.shape
    Cout = params['wo'].shape[-1]
    nums = scale - 1
    kernel = functools.partial(_bottle2neck_kernel, H=H, W=W,
                               width=width, scale=scale)
    return pl.pallas_call(
        kernel,
        out_shape=jax.ShapeDtypeStruct((B, H, W, Cout), jnp.float32),
        grid=(B,),
        in_specs=[
            pl.BlockSpec((None, H, W, Cin), lambda b: (b, 0, 0, 0)),
            pl.BlockSpec((scale, Cin, width), lambda b: (0, 0, 0)),
            pl.BlockSpec((scale, 1, width), lambda b: (0, 0, 0)),
            pl.BlockSpec((nums, 9, width, width), lambda b: (0, 0, 0, 0)),
            pl.BlockSpec((nums, 1, width), lambda b: (0, 0, 0)),
            pl.BlockSpec((scale, width, Cout), lambda b: (0, 0, 0)),
            pl.BlockSpec((1, Cout), lambda b: (0, 0)),
        ],
        out_specs=pl.BlockSpec((None, H, W, Cout), lambda b: (b, 0, 0, 0)),
        scratch_shapes=[pltpu.VMEM((H + 2, W + 2 * WPAD, width), jnp.float32)],
        compiler_params=pltpu.CompilerParams(
            dimension_semantics=("parallel",)),       # megacore on v7x
    )(x_nhwc, params['w1'], params['b1'], params['w3'], params['b3'],
      params['wo'], params['bo'])


# ------------------------- parameters (torch layouts) -------------------------
def init_raw_params(key, inplanes, planes, width, scale):
    nums = scale - 1
    ws = width * scale
    cout = planes * 4
    ks = iter(jax.random.split(key, 6 + 3 * nums))

    def nrm(k, shape, s=0.1):
        return s * jax.random.normal(k, shape, jnp.float32)

    return {
        'conv1_w': nrm(next(ks), (ws, inplanes, 1, 1)),       # OIHW
        'bn1_g': 1.0 + nrm(next(ks), (ws,)),
        'bn1_b': nrm(next(ks), (ws,)),
        'convs_w': [nrm(next(ks), (width, width, 3, 3)) for _ in range(nums)],
        'bns_g': [1.0 + nrm(next(ks), (width,)) for _ in range(nums)],
        'bns_b': [nrm(next(ks), (width,)) for _ in range(nums)],
        'conv3_w': nrm(next(ks), (cout, ws, 1, 1)),           # OIHW
        'bn3_g': 1.0 + nrm(next(ks), (cout,)),
        'bn3_b': nrm(next(ks), (cout,)),
    }


def fold_params(raw, *, width, scale):
    """Fold eval-mode BatchNorm (mean=0, var=1) into conv weights and re-layout
    them for the kernel (matmul layout, chunked over the width splits)."""
    nums = scale - 1

    s1 = raw['bn1_g'] / jnp.sqrt(1.0 + BN_EPS)                    # (ws,)
    w1_mat = raw['conv1_w'][:, :, 0, 0].T * s1[None, :]           # (Cin, ws)
    cin = w1_mat.shape[0]
    w1 = w1_mat.reshape(cin, scale, width).transpose(1, 0, 2)     # (scale,Cin,width)
    b1 = raw['bn1_b'].reshape(scale, 1, width)

    w3 = jnp.stack([
        jnp.stack([raw['convs_w'][i][:, :, ky, kx].T
                   * (raw['bns_g'][i] / jnp.sqrt(1.0 + BN_EPS))[None, :]
                   for ky in range(3) for kx in range(3)], axis=0)
        for i in range(nums)], axis=0)                            # (nums,9,w,w)
    b3 = jnp.stack(raw['bns_b'], axis=0).reshape(nums, 1, width)

    s3 = raw['bn3_g'] / jnp.sqrt(1.0 + BN_EPS)                    # (cout,)
    wo_mat = raw['conv3_w'][:, :, 0, 0].T * s3[None, :]           # (ws, cout)
    cout = wo_mat.shape[1]
    wo = wo_mat.reshape(scale, width, cout)                       # chunk over inputs
    bo = raw['bn3_b'].reshape(1, cout)
    return dict(w1=w1, b1=b1, w3=w3, b3=b3, wo=wo, bo=bo)


# ------------------------ pure-JAX reference (cross-check) --------------------
def reference_forward(x, raw, *, width, scale):
    def bn(y, g, b):   # eval mode, running_mean=0, running_var=1
        return y * (g / jnp.sqrt(1.0 + BN_EPS)) + b

    def conv(y, w_oihw, pad):
        return lax.conv_general_dilated(
            y, jnp.transpose(w_oihw, (2, 3, 1, 0)), (1, 1),
            [(pad, pad), (pad, pad)],
            dimension_numbers=('NHWC', 'HWIO', 'NHWC'),
            precision=lax.Precision.HIGHEST)

    nums = scale - 1
    out = jax.nn.relu(bn(conv(x, raw['conv1_w'], 0), raw['bn1_g'], raw['bn1_b']))
    spx = [out[..., i * width:(i + 1) * width] for i in range(scale)]
    feats = []
    sp = None
    for i in range(nums):
        sp = spx[i] if i == 0 else sp + spx[i]
        sp = jax.nn.relu(bn(conv(sp, raw['convs_w'][i], 1),
                            raw['bns_g'][i], raw['bns_b'][i]))
        feats.append(sp)
    feats.append(spx[nums])
    cat = jnp.concatenate(feats, axis=-1)
    out = bn(conv(cat, raw['conv3_w'], 0), raw['bn3_g'], raw['bn3_b'])
    return jax.nn.relu(out + x)


# ----------------------------------- demo -------------------------------------
if __name__ == "__main__":
    planes, base_width, scale = 16, 26, 4
    width = int(math.floor(planes * (base_width / 64.0)))   # 6
    inplanes = planes * 4                                    # 64 (identity residual)
    B, H, W = 2, 16, 16

    key = jax.random.PRNGKey(0)
    kx, kp = jax.random.split(key)
    x = jax.random.normal(kx, (B, H, W, inplanes), jnp.float32)   # NHWC input

    raw = init_raw_params(kp, inplanes, planes, width, scale)
    params = fold_params(raw, width=width, scale=scale)

    fwd = jax.jit(functools.partial(bottle2neck_forward, width=width, scale=scale))
    out = jax.block_until_ready(fwd(x, params))

    assert out.shape == (B, H, W, inplanes)
    assert bool(jnp.all(jnp.isfinite(out)))

    ref = reference_forward(x, raw, width=width, scale=scale)
    err = float(jnp.max(jnp.abs(out - ref)))
    assert err < 5e-3, f"max abs err vs reference = {err}"

    print("KERNEL_OK")
</pallas_src>

<mosaic_0001>
module attributes {stable_mosaic.version = 11 : i64} {
  func.func @_bottle2neck_kernel(%arg0: i32, %arg1: memref<1x16x16x64xf32, #tpu.memory_space<vmem>>, %arg2: memref<4x64x6xf32, #tpu.memory_space<vmem>>, %arg3: memref<4x1x6xf32, #tpu.memory_space<vmem>>, %arg4: memref<3x9x6x6xf32, #tpu.memory_space<vmem>>, %arg5: memref<3x1x6xf32, #tpu.memory_space<vmem>>, %arg6: memref<4x6x64xf32, #tpu.memory_space<vmem>>, %arg7: memref<1x64xf32, #tpu.memory_space<vmem>>, %arg8: memref<1x16x16x64xf32, #tpu.memory_space<vmem>>, %arg9: memref<18x32x6xf32, #tpu.memory_space<vmem>>) attributes {dimension_semantics = [#tpu.dimension_semantics<parallel>], iteration_bounds = array<i64: 2>, scalar_prefetch = 0 : i64, scratch_operands = 1 : i64, tpu.core_type = #tpu.core_type<tc>, window_params = [{transform_indices = @transform_0, window_bounds = array<i64: 1, 16, 16, 64>}, {pipeline_mode = #tpu.pipeline_mode<synchronous>, transform_indices = @transform_1, window_bounds = array<i64: 4, 64, 6>}, {pipeline_mode = #tpu.pipeline_mode<synchronous>, transform_indices = @transform_2, window_bounds = array<i64: 4, 1, 6>}, {pipeline_mode = #tpu.pipeline_mode<synchronous>, transform_indices = @transform_3, window_bounds = array<i64: 3, 9, 6, 6>}, {pipeline_mode = #tpu.pipeline_mode<synchronous>, transform_indices = @transform_4, window_bounds = array<i64: 3, 1, 6>}, {pipeline_mode = #tpu.pipeline_mode<synchronous>, transform_indices = @transform_5, window_bounds = array<i64: 4, 6, 64>}, {pipeline_mode = #tpu.pipeline_mode<synchronous>, transform_indices = @transform_6, window_bounds = array<i64: 1, 64>}, {transform_indices = @transform_7, window_bounds = array<i64: 1, 16, 16, 64>}]} {
    %c0 = arith.constant 0 : index
    %c0_0 = arith.constant 0 : index
    %c0_1 = arith.constant 0 : index
    %c0_2 = arith.constant 0 : index
    %0 = vector.load %arg1[%c0, %c0_0, %c0_1, %c0_2] : memref<1x16x16x64xf32, #tpu.memory_space<vmem>>, vector<1x16x16x64xf32>
    %1 = vector.shape_cast %0 : vector<1x16x16x64xf32> to vector<16x16x64xf32>
    %2 = vector.shape_cast %1 : vector<16x16x64xf32> to vector<256x64xf32>
    %c0_3 = arith.constant 0 : index
    %c0_4 = arith.constant 0 : index
    %c0_5 = arith.constant 0 : index
    %3 = vector.load %arg2[%c0_3, %c0_4, %c0_5] : memref<4x64x6xf32, #tpu.memory_space<vmem>>, vector<1x64x6xf32>
    %4 = vector.shape_cast %3 : vector<1x64x6xf32> to vector<64x6xf32>
    %cst = arith.constant dense<0.000000e+00> : vector<256x6xf32>
    %5 = tpu.matmul %2, %4, %cst {dimension_numbers = #tpu.dot_dimension_numbers<[1], [0], [0], [1], [0, 0, 1, 1], [], []>} : vector<256x64xf32>, vector<64x6xf32>, vector<256x6xf32> -> vector<256x6xf32>
    %c0_6 = arith.constant 0 : index
    %c0_7 = arith.constant 0 : index
    %c0_8 = arith.constant 0 : index
    %6 = vector.load %arg3[%c0_6, %c0_7, %c0_8] : memref<4x1x6xf32, #tpu.memory_space<vmem>>, vector<1x1x6xf32>
    %7 = vector.shape_cast %6 : vector<1x1x6xf32> to vector<1x6xf32>
    %8 = vector.broadcast %7 : vector<1x6xf32> to vector<256x6xf32>
    %9 = arith.addf %5, %8 : vector<256x6xf32>
    %cst_9 = arith.constant 0.000000e+00 : f32
    %10 = vector.broadcast %cst_9 : f32 to vector<256x6xf32>
    %11 = arith.maximumf %9, %10 : vector<256x6xf32>
    %c1 = arith.constant 1 : index
    %c0_10 = arith.constant 0 : index
    %c0_11 = arith.constant 0 : index
    %12 = vector.load %arg2[%c1, %c0_10, %c0_11] : memref<4x64x6xf32, #tpu.memory_space<vmem>>, vector<1x64x6xf32>
    %13 = vector.shape_cast %12 : vector<1x64x6xf32> to vector<64x6xf32>
    %cst_12 = arith.constant dense<0.000000e+00> : vector<256x6xf32>
    %14 = tpu.matmul %2, %13, %cst_12 {dimension_numbers = #tpu.dot_dimension_numbers<[1], [0], [0], [1], [0, 0, 1, 1], [], []>} : vector<256x64xf32>, vector<64x6xf32>, vector<256x6xf32> -> vector<256x6xf32>
    %c1_13 = arith.constant 1 : index
    %c0_14 = arith.constant 0 : index
    %c0_15 = arith.constant 0 : index
    %15 = vector.load %arg3[%c1_13, %c0_14, %c0_15] : memref<4x1x6xf32, #tpu.memory_space<vmem>>, vector<1x1x6xf32>
    %16 = vector.shape_cast %15 : vector<1x1x6xf32> to vector<1x6xf32>
    %17 = vector.broadcast %16 : vector<1x6xf32> to vector<256x6xf32>
    %18 = arith.addf %14, %17 : vector<256x6xf32>
    %cst_16 = arith.constant 0.000000e+00 : f32
    %19 = vector.broadcast %cst_16 : f32 to vector<256x6xf32>
    %20 = arith.maximumf %18, %19 : vector<256x6xf32>
    %c2 = arith.constant 2 : index
    %c0_17 = arith.constant 0 : index
    %c0_18 = arith.constant 0 : index
    %21 = vector.load %arg2[%c2, %c0_17, %c0_18] : memref<4x64x6xf32, #tpu.memory_space<vmem>>, vector<1x64x6xf32>
    %22 = vector.shape_cast %21 : vector<1x64x6xf32> to vector<64x6xf32>
    %cst_19 = arith.constant dense<0.000000e+00> : vector<256x6xf32>
    %23 = tpu.matmul %2, %22, %cst_19 {dimension_numbers = #tpu.dot_dimension_numbers<[1], [0], [0], [1], [0, 0, 1, 1], [], []>} : vector<256x64xf32>, vector<64x6xf32>, vector<256x6xf32> -> vector<256x6xf32>
    %c2_20 = arith.constant 2 : index
    %c0_21 = arith.constant 0 : index
    %c0_22 = arith.constant 0 : index
    %24 = vector.load %arg3[%c2_20, %c0_21, %c0_22] : memref<4x1x6xf32, #tpu.memory_space<vmem>>, vector<1x1x6xf32>
    %25 = vector.shape_cast %24 : vector<1x1x6xf32> to vector<1x6xf32>
    %26 = vector.broadcast %25 : vector<1x6xf32> to vector<256x6xf32>
    %27 = arith.addf %23, %26 : vector<256x6xf32>
    %cst_23 = arith.constant 0.000000e+00 : f32
    %28 = vector.broadcast %cst_23 : f32 to vector<256x6xf32>
    %29 = arith.maximumf %27, %28 : vector<256x6xf32>
    %c3 = arith.constant 3 : index
    %c0_24 = arith.constant 0 : index
    %c0_25 = arith.constant 0 : index
    %30 = vector.load %arg2[%c3, %c0_24, %c0_25] : memref<4x64x6xf32, #tpu.memory_space<vmem>>, vector<1x64x6xf32>
    %31 = vector.shape_cast %30 : vector<1x64x6xf32> to vector<64x6xf32>
    %cst_26 = arith.constant dense<0.000000e+00> : vector<256x6xf32>
    %32 = tpu.matmul %2, %31, %cst_26 {dimension_numbers = #tpu.dot_dimension_numbers<[1], [0], [0], [1], [0, 0, 1, 1], [], []>} : vector<256x64xf32>, vector<64x6xf32>, vector<256x6xf32> -> vector<256x6xf32>
    %c3_27 = arith.constant 3 : index
    %c0_28 = arith.constant 0 : index
    %c0_29 = arith.constant 0 : index
    %33 = vector.load %arg3[%c3_27, %c0_28, %c0_29] : memref<4x1x6xf32, #tpu.memory_space<vmem>>, vector<1x1x6xf32>
    %34 = vector.shape_cast %33 : vector<1x1x6xf32> to vector<1x6xf32>
    %35 = vector.broadcast %34 : vector<1x6xf32> to vector<256x6xf32>
    %36 = arith.addf %32, %35 : vector<256x6xf32>
    %cst_30 = arith.constant 0.000000e+00 : f32
    %37 = vector.broadcast %cst_30 : f32 to vector<256x6xf32>
    %38 = arith.maximumf %36, %37 : vector<256x6xf32>
    %cst_31 = arith.constant 0.000000e+00 : f32
    %39 = vector.broadcast %cst_31 : f32 to vector<18x32x6xf32>
    %c0_32 = arith.constant 0 : index
    %c0_33 = arith.constant 0 : index
    %c0_34 = arith.constant 0 : index
    %40 = vector.load %arg9[%c0_32, %c0_33, %c0_34] : memref<18x32x6xf32, #tpu.memory_space<vmem>>, vector<18x32x6xf32>
    tpu.vector_store %arg9[%c0_32, %c0_33, %c0_34], %39 {strides = array<i32>} : memref<18x32x6xf32, #tpu.memory_space<vmem>>, vector<18x32x6xf32>,
    %41 = vector.shape_cast %11 : vector<256x6xf32> to vector<16x16x6xf32>
    %c1_35 = arith.constant 1 : index
    %c8 = arith.constant 8 : index
    %c0_36 = arith.constant 0 : index
    %42 = vector.load %arg9[%c1_35, %c8, %c0_36] : memref<18x32x6xf32, #tpu.memory_space<vmem>>, vector<16x16x6xf32>
    tpu.vector_store %arg9[%c1_35, %c8, %c0_36], %41 {strides = array<i32>} : memref<18x32x6xf32, #tpu.memory_space<vmem>>, vector<16x16x6xf32>,
    %cst_37 = arith.constant 0.000000e+00 : f32
    %43 = vector.broadcast %cst_37 : f32 to vector<256x6xf32>
    %c0_38 = arith.constant 0 : index
    %c7 = arith.constant 7 : index
    %c0_39 = arith.constant 0 : index
    %44 = vector.load %arg9[%c0_38, %c7, %c0_39] : memref<18x32x6xf32, #tpu.memory_space<vmem>>, vector<16x16x6xf32>
    %45 = vector.shape_cast %44 : vector<16x16x6xf32> to vector<256x6xf32>
    %c0_40 = arith.constant 0 : index
    %c0_41 = arith.constant 0 : index
    %c0_42 = arith.constant 0 : index
    %c0_43 = arith.constant 0 : index
    %46 = vector.load %arg4[%c0_40, %c0_41, %c0_42, %c0_43] : memref<3x9x6x6xf32, #tpu.memory_space<vmem>>, vector<1x1x6x6xf32>
    %47 = vector.shape_cast %46 : vector<1x1x6x6xf32> to vector<6x6xf32>
    %cst_44 = arith.constant dense<0.000000e+00> : vector<256x6xf32>
    %48 = tpu.matmul %45, %47, %cst_44 {dimension_numbers = #tpu.dot_dimension_numbers<[1], [0], [0], [1], [0, 0, 1, 1], [], []>} : vector<256x6xf32>, vector<6x6xf32>, vector<256x6xf32> -> vector<256x6xf32>
    %49 = arith.addf %43, %48 : vector<256x6xf32>
    %c0_45 = arith.constant 0 : index
    %c8_46 = arith.constant 8 : index
    %c0_47 = arith.constant 0 : index
    %50 = vector.load %arg9[%c0_45, %c8_46, %c0_47] : memref<18x32x6xf32, #tpu.memory_space<vmem>>, vector<16x16x6xf32>
    %51 = vector.shape_cast %50 : vector<16x16x6xf32> to vector<256x6xf32>
    %c0_48 = arith.constant 0 : index
    %c1_49 = arith.constant 1 : index
    %c0_50 = arith.constant 0 : index
    %c0_51 = arith.constant 0 : index
    %52 = vector.load %arg4[%c0_48, %c1_49, %c0_50, %c0_51] : memref<3x9x6x6xf32, #tpu.memory_space<vmem>>, vector<1x1x6x6xf32>
    %53 = vector.shape_cast %52 : vector<1x1x6x6xf32> to vector<6x6xf32>
    %cst_52 = arith.constant dense<0.000000e+00> : vector<256x6xf32>
    %54 = tpu.matmul %51, %53, %cst_52 {dimension_numbers = #tpu.dot_dimension_numbers<[1], [0], [0], [1], [0, 0, 1, 1], [], []>} : vector<256x6xf32>, vector<6x6xf32>, vector<256x6xf32> -> vector<256x6xf32>
    %55 = arith.addf %49, %54 : vector<256x6xf32>
    %c0_53 = arith.constant 0 : index
    %c9 = arith.constant 9 : index
    %c0_54 = arith.constant 0 : index
    %56 = vector.load %arg9[%c0_53, %c9, %c0_54] : memref<18x32x6xf32, #tpu.memory_space<vmem>>, vector<16x16x6xf32>
    %57 = vector.shape_cast %56 : vector<16x16x6xf32> to vector<256x6xf32>
    %c0_55 = arith.constant 0 : index
    %c2_56 = arith.constant 2 : index
    %c0_57 = arith.constant 0 : index
    %c0_58 = arith.constant 0 : index
    %58 = vector.load %arg4[%c0_55, %c2_56, %c0_57, %c0_58] : memref<3x9x6x6xf32, #tpu.memory_space<vmem>>, vector<1x1x6x6xf32>
    %59 = vector.shape_cast %58 : vector<1x1x6x6xf32> to vector<6x6xf32>
    %cst_59 = arith.constant dense<0.000000e+00> : vector<256x6xf32>
    %60 = tpu.matmul %57, %59, %cst_59 {dimension_numbers = #tpu.dot_dimension_numbers<[1], [0], [0], [1], [0, 0, 1, 1], [], []>} : vector<256x6xf32>, vector<6x6xf32>, vector<256x6xf32> -> vector<256x6xf32>
    %61 = arith.addf %55, %60 : vector<256x6xf32>
    %c1_60 = arith.constant 1 : index
    %c7_61 = arith.constant 7 : index
    %c0_62 = arith.constant 0 : index
    %62 = vector.load %arg9[%c1_60, %c7_61, %c0_62] : memref<18x32x6xf32, #tpu.memory_space<vmem>>, vector<16x16x6xf32>
    %63 = vector.shape_cast %62 : vector<16x16x6xf32> to vector<256x6xf32>
    %c0_63 = arith.constant 0 : index
    %c3_64 = arith.constant 3 : index
    %c0_65 = arith.constant 0 : index
    %c0_66 = arith.constant 0 : index
    %64 = vector.load %arg4[%c0_63, %c3_64, %c0_65, %c0_66] : memref<3x9x6x6xf32, #tpu.memory_space<vmem>>, vector<1x1x6x6xf32>
    %65 = vector.shape_cast %64 : vector<1x1x6x6xf32> to vector<6x6xf32>
    %cst_67 = arith.constant dense<0.000000e+00> : vector<256x6xf32>
    %66 = tpu.matmul %63, %65, %cst_67 {dimension_numbers = #tpu.dot_dimension_numbers<[1], [0], [0], [1], [0, 0, 1, 1], [], []>} : vector<256x6xf32>, vector<6x6xf32>, vector<256x6xf32> -> vector<256x6xf32>
    %67 = arith.addf %61, %66 : vector<256x6xf32>
    %c1_68 = arith.constant 1 : index
    %c8_69 = arith.constant 8 : index
    %c0_70 = arith.constant 0 : index
    %68 = vector.load %arg9[%c1_68, %c8_69, %c0_70] : memref<18x32x6xf32, #tpu.memory_space<vmem>>, vector<16x16x6xf32>
    %69 = vector.shape_cast %68 : vector<16x16x6xf32> to vector<256x6xf32>
    %c0_71 = arith.constant 0 : index
    %c4 = arith.constant 4 : index
    %c0_72 = arith.constant 0 : index
    %c0_73 = arith.constant 0 : index
    %70 = vector.load %arg4[%c0_71, %c4, %c0_72, %c0_73] : memref<3x9x6x6xf32, #tpu.memory_space<vmem>>, vector<1x1x6x6xf32>
    %71 = vector.shape_cast %70 : vector<1x1x6x6xf32> to vector<6x6xf32>
    %cst_74 = arith.constant dense<0.000000e+00> : vector<256x6xf32>
    %72 = tpu.matmul %69, %71, %cst_74 {dimension_numbers = #tpu.dot_dimension_numbers<[1], [0], [0], [1], [0, 0, 1, 1], [], []>} : vector<256x6xf32>, vector<6x6xf32>, vector<256x6xf32> -> vector<256x6xf32>
    %73 = arith.addf %67, %72 : vector<256x6xf32>
    %c1_75 = arith.constant 1 : index
    %c9_76 = arith.constant 9 : index
    %c0_77 = arith.constant 0 : index
    %74 = vector.load %arg9[%c1_75, %c9_76, %c0_77] : memref<18x32x6xf32, #tpu.memory_space<vmem>>, vector<16x16x6xf32>
    %75 = vector.shape_cast %74 : vector<16x16x6xf32> to vector<256x6xf32>
    %c0_78 = arith.constant 0 : index
    %c5 = arith.constant 5 : index
    %c0_79 = arith.constant 0 : index
    %c0_80 = arith.constant 0 : index
    %76 = vector.load %arg4[%c0_78, %c5, %c0_79, %c0_80] : memref<3x9x6x6xf32, #tpu.memory_space<vmem>>, vector<1x1x6x6xf32>
    %77 = vector.shape_cast %76 : vector<1x1x6x6xf32> to vector<6x6xf32>
    %cst_81 = arith.constant dense<0.000000e+00> : vector<256x6xf32>
    %78 = tpu.matmul %75, %77, %cst_81 {dimension_numbers = #tpu.dot_dimension_numbers<[1], [0], [0], [1], [0, 0, 1, 1], [], []>} : vector<256x6xf32>, vector<6x6xf32>, vector<256x6xf32> -> vector<256x6xf32>
    %79 = arith.addf %73, %78 : vector<256x6xf32>
    %c2_82 = arith.constant 2 : index
    %c7_83 = arith.constant 7 : index
    %c0_84 = arith.constant 0 : index
    %80 = vector.load %arg9[%c2_82, %c7_83, %c0_84] : memref<18x32x6xf32, #tpu.memory_space<vmem>>, vector<16x16x6xf32>
    %81 = vector.shape_cast %80 : vector<16x16x6xf32> to vector<256x6xf32>
    %c0_85 = arith.constant 0 : index
    %c6 = arith.constant 6 : index
    %c0_86 = arith.constant 0 : index
    %c0_87 = arith.constant 0 : index
    %82 = vector.load %arg4[%c0_85, %c6, %c0_86, %c0_87] : memref<3x9x6x6xf32, #tpu.memory_space<vmem>>, vector<1x1x6x6xf32>
    %83 = vector.shape_cast %82 : vector<1x1x6x6xf32> to vector<6x6xf32>
    %cst_88 = arith.constant dense<0.000000e+00> : vector<256x6xf32>
    %84 = tpu.matmul %81, %83, %cst_88 {dimension_numbers = #tpu.dot_dimension_numbers<[1], [0], [0], [1], [0, 0, 1, 1], [], []>} : vector<256x6xf32>, vector<6x6xf32>, vector<256x6xf32> -> vector<256x6xf32>
    %85 = arith.addf %79, %84 : vector<256x6xf32>
    %c2_89 = arith.constant 2 : index
    %c8_90 = arith.constant 8 : index
    %c0_91 = arith.constant 0 : index
    %86 = vector.load %arg9[%c2_89, %c8_90, %c0_91] : memref<18x32x6xf32, #tpu.memory_space<vmem>>, vector<16x16x6xf32>
    %87 = vector.shape_cast %86 : vector<16x16x6xf32> to vector<256x6xf32>
    %c0_92 = arith.constant 0 : index
    %c7_93 = arith.constant 7 : index
    %c0_94 = arith.constant 0 : index
    %c0_95 = arith.constant 0 : index
    %88 = vector.load %arg4[%c0_92, %c7_93, %c0_94, %c0_95] : memref<3x9x6x6xf32, #tpu.memory_space<vmem>>, vector<1x1x6x6xf32>
    %89 = vector.shape_cast %88 : vector<1x1x6x6xf32> to vector<6x6xf32>
    %cst_96 = arith.constant dense<0.000000e+00> : vector<256x6xf32>
    %90 = tpu.matmul %87, %89, %cst_96 {dimension_numbers = #tpu.dot_dimension_numbers<[1], [0], [0], [1], [0, 0, 1, 1], [], []>} : vector<256x6xf32>, vector<6x6xf32>, vector<256x6xf32> -> vector<256x6xf32>
    %91 = arith.addf %85, %90 : vector<256x6xf32>
    %c2_97 = arith.constant 2 : index
    %c9_98 = arith.constant 9 : index
    %c0_99 = arith.constant 0 : index
    %92 = vector.load %arg9[%c2_97, %c9_98, %c0_99] : memref<18x32x6xf32, #tpu.memory_space<vmem>>, vector<16x16x6xf32>
    %93 = vector.shape_cast %92 : vector<16x16x6xf32> to vector<256x6xf32>
    %c0_100 = arith.constant 0 : index
    %c8_101 = arith.constant 8 : index
    %c0_102 = arith.constant 0 : index
    %c0_103 = arith.constant 0 : index
    %94 = vector.load %arg4[%c0_100, %c8_101, %c0_102, %c0_103] : memref<3x9x6x6xf32, #tpu.memory_space<vmem>>, vector<1x1x6x6xf32>
    %95 = vector.shape_cast %94 : vector<1x1x6x6xf32> to vector<6x6xf32>
    %cst_104 = arith.constant dense<0.000000e+00> : vector<256x6xf32>
    %96 = tpu.matmul %93, %95, %cst_104 {dimension_numbers = #tpu.dot_dimension_numbers<[1], [0], [0], [1], [0, 0, 1, 1], [], []>} : vector<256x6xf32>, vector<6x6xf32>, vector<256x6xf32> -> vector<256x6xf32>
    %97 = arith.addf %91, %96 : vector<256x6xf32>
    %c0_105 = arith.constant 0 : index
    %c0_106 = arith.constant 0 : index
    %c0_107 = arith.constant 0 : index
    %98 = vector.load %arg5[%c0_105, %c0_106, %c0_107] : memref<3x1x6xf32, #tpu.memory_space<vmem>>, vector<1x1x6xf32>
    %99 = vector.shape_cast %98 : vector<1x1x6xf32> to vector<1x6xf32>
    %100 = vector.broadcast %99 : vector<1x6xf32> to vector<256x6xf32>
    %101 = arith.addf %97, %100 : vector<256x6xf32>
    %cst_108 = arith.constant 0.000000e+00 : f32
    %102 = vector.broadcast %cst_108 : f32 to vector<256x6xf32>
    %103 = arith.maximumf %101, %102 : vector<256x6xf32>
    %c0_109 = arith.constant 0 : index
    %c0_110 = arith.constant 0 : index
    %c0_111 = arith.constant 0 : index
    %104 = vector.load %arg6[%c0_109, %c0_110, %c0_111] : memref<4x6x64xf32, #tpu.memory_space<vmem>>, vector<1x6x64xf32>
    %105 = vector.shape_cast %104 : vector<1x6x64xf32> to vector<6x64xf32>
    %cst_112 = arith.constant dense<0.000000e+00> : vector<256x64xf32>
    %106 = tpu.matmul %103, %105, %cst_112 {dimension_numbers = #tpu.dot_dimension_numbers<[1], [0], [0], [1], [0, 0, 1, 1], [], []>} : vector<256x6xf32>, vector<6x64xf32>, vector<256x64xf32> -> vector<256x64xf32>
    %107 = arith.addf %103, %20 : vector<256x6xf32>
    %108 = vector.shape_cast %107 : vector<256x6xf32> to vector<16x16x6xf32>
    %c1_113 = arith.constant 1 : index
    %c8_114 = arith.constant 8 : index
    %c0_115 = arith.constant 0 : index
    %109 = vector.load %arg9[%c1_113, %c8_114, %c0_115] : memref<18x32x6xf32, #tpu.memory_space<vmem>>, vector<16x16x6xf32>
    tpu.vector_store %arg9[%c1_113, %c8_114, %c0_115], %108 {strides = array<i32>} : memref<18x32x6xf32, #tpu.memory_space<vmem>>, vector<16x16x6xf32>,
    %cst_116 = arith.constant 0.000000e+00 : f32
    %110 = vector.broadcast %cst_116 : f32 to vector<256x6xf32>
    %c0_117 = arith.constant 0 : index
    %c7_118 = arith.constant 7 : index
    %c0_119 = arith.constant 0 : index
    %111 = vector.load %arg9[%c0_117, %c7_118, %c0_119] : memref<18x32x6xf32, #tpu.memory_space<vmem>>, vector<16x16x6xf32>
    %112 = vector.shape_cast %111 : vector<16x16x6xf32> to vector<256x6xf32>
    %c1_120 = arith.constant 1 : index
    %c0_121 = arith.constant 0 : index
    %c0_122 = arith.constant 0 : index
    %c0_123 = arith.constant 0 : index
    %113 = vector.load %arg4[%c1_120, %c0_121, %c0_122, %c0_123] : memref<3x9x6x6xf32, #tpu.memory_space<vmem>>, vector<1x1x6x6xf32>
    %114 = vector.shape_cast %113 : vector<1x1x6x6xf32> to vector<6x6xf32>
    %cst_124 = arith.constant dense<0.000000e+00> : vector<256x6xf32>
    %115 = tpu.matmul %112, %114, %cst_124 {dimension_numbers = #tpu.dot_dimension_numbers<[1], [0], [0], [1], [0, 0, 1, 1], [], []>} : vector<256x6xf32>, vector<6x6xf32>, vector<256x6xf32> -> vector<256x6xf32>
    %116 = arith.addf %110, %115 : vector<256x6xf32>
    %c0_125 = arith.constant 0 : index
    %c8_126 = arith.constant 8 : index
    %c0_127 = arith.constant 0 : index
    %117 = vector.load %arg9[%c0_125, %c8_126, %c0_127] : memref<18x32x6xf32, #tpu.memory_space<vmem>>, vector<16x16x6xf32>
    %118 = vector.shape_cast %117 : vector<16x16x6xf32> to vector<256x6xf32>
    %c1_128 = arith.constant 1 : index
    %c1_129 = arith.constant 1 : index
    %c0_130 = arith.constant 0 : index
    %c0_131 = arith.constant 0 : index
    %119 = vector.load %arg4[%c1_128, %c1_129, %c0_130, %c0_131] : memref<3x9x6x6xf32, #tpu.memory_space<vmem>>, vector<1x1x6x6xf32>
    %120 = vector.shape_cast %119 : vector<1x1x6x6xf32> to vector<6x6xf32>
    %cst_132 = arith.constant dense<0.000000e+00> : vector<256x6xf32>
    %121 = tpu.matmul %118, %120, %cst_132 {dimension_numbers = #tpu.dot_dimension_numbers<[1], [0], [0], [1], [0, 0, 1, 1], [], []>} : vector<256x6xf32>, vector<6x6xf32>, vector<256x6xf32> -> vector<256x6xf32>
    %122 = arith.addf %116, %121 : vector<256x6xf32>
    %c0_133 = arith.constant 0 : index
    %c9_134 = arith.constant 9 : index
    %c0_135 = arith.constant 0 : index
    %123 = vector.load %arg9[%c0_133, %c9_134, %c0_135] : memref<18x32x6xf32, #tpu.memory_space<vmem>>, vector<16x16x6xf32>
    %124 = vector.shape_cast %123 : vector<16x16x6xf32> to vector<256x6xf32>
    %c1_136 = arith.constant 1 : index
    %c2_137 = arith.constant 2 : index
    %c0_138 = arith.constant 0 : index
    %c0_139 = arith.constant 0 : index
    %125 = vector.load %arg4[%c1_136, %c2_137, %c0_138, %c0_139] : memref<3x9x6x6xf32, #tpu.memory_space<vmem>>, vector<1x1x6x6xf32>
    %126 = vector.shape_cast %125 : vector<1x1x6x6xf32> to vector<6x6xf32>
    %cst_140 = arith.constant dense<0.000000e+00> : vector<256x6xf32>
    %127 = tpu.matmul %124, %126, %cst_140 {dimension_numbers = #tpu.dot_dimension_numbers<[1], [0], [0], [1], [0, 0, 1, 1], [], []>} : vector<256x6xf32>, vector<6x6xf32>, vector<256x6xf32> -> vector<256x6xf32>
    %128 = arith.addf %122, %127 : vector<256x6xf32>
    %c1_141 = arith.constant 1 : index
    %c7_142 = arith.constant 7 : index
    %c0_143 = arith.constant 0 : index
    %129 = vector.load %arg9[%c1_141, %c7_142, %c0_143] : memref<18x32x6xf32, #tpu.memory_space<vmem>>, vector<16x16x6xf32>
    %130 = vector.shape_cast %129 : vector<16x16x6xf32> to vector<256x6xf32>
    %c1_144 = arith.constant 1 : index
    %c3_145 = arith.constant 3 : index
    %c0_146 = arith.constant 0 : index
    %c0_147 = arith.constant 0 : index
    %131 = vector.load %arg4[%c1_144, %c3_145, %c0_146, %c0_147] : memref<3x9x6x6xf32, #tpu.memory_space<vmem>>, vector<1x1x6x6xf32>
    %132 = vector.shape_cast %131 : vector<1x1x6x6xf32> to vector<6x6xf32>
    %cst_148 = arith.constant dense<0.000000e+00> : vector<256x6xf32>
    %133 = tpu.matmul %130, %132, %cst_148 {dimension_numbers = #tpu.dot_dimension_numbers<[1], [0], [0], [1], [0, 0, 1, 1], [], []>} : vector<256x6xf32>, vector<6x6xf32>, vector<256x6xf32> -> vector<256x6xf32>
    %134 = arith.addf %128, %133 : vector<256x6xf32>
    %c1_149 = arith.constant 1 : index
    %c8_150 = arith.constant 8 : index
    %c0_151 = arith.constant 0 : index
    %135 = vector.load %arg9[%c1_149, %c8_150, %c0_151] : memref<18x32x6xf32, #tpu.memory_space<vmem>>, vector<16x16x6xf32>
    %136 = vector.shape_cast %135 : vector<16x16x6xf32> to vector<256x6xf32>
    %c1_152 = arith.constant 1 : index
    %c4_153 = arith.constant 4 : index
    %c0_154 = arith.constant 0 : index
    %c0_155 = arith.constant 0 : index
    %137 = vector.load %arg4[%c1_152, %c4_153, %c0_154, %c0_155] : memref<3x9x6x6xf32, #tpu.memory_space<vmem>>, vector<1x1x6x6xf32>
    %138 = vector.shape_cast %137 : vector<1x1x6x6xf32> to vector<6x6xf32>
    %cst_156 = arith.constant dense<0.000000e+00> : vector<256x6xf32>
    %139 = tpu.matmul %136, %138, %cst_156 {dimension_numbers = #tpu.dot_dimension_numbers<[1], [0], [0], [1], [0, 0, 1, 1], [], []>} : vector<256x6xf32>, vector<6x6xf32>, vector<256x6xf32> -> vector<256x6xf32>
    %140 = arith.addf %134, %139 : vector<256x6xf32>
    %c1_157 = arith.constant 1 : index
    %c9_158 = arith.constant 9 : index
    %c0_159 = arith.constant 0 : index
    %141 = vector.load %arg9[%c1_157, %c9_158, %c0_159] : memref<18x32x6xf32, #tpu.memory_space<vmem>>, vector<16x16x6xf32>
    %142 = vector.shape_cast %141 : vector<16x16x6xf32> to vector<256x6xf32>
    %c1_160 = arith.constant 1 : index
    %c5_161 = arith.constant 5 : index
    %c0_162 = arith.constant 0 : index
    %c0_163 = arith.constant 0 : index
    %143 = vector.load %arg4[%c1_160, %c5_161, %c0_162, %c0_163] : memref<3x9x6x6xf32, #tpu.memory_space<vmem>>, vector<1x1x6x6xf32>
    %144 = vector.shape_cast %143 : vector<1x1x6x6xf32> to vector<6x6xf32>
    %cst_164 = arith.constant dense<0.000000e+00> : vector<256x6xf32>
    %145 = tpu.matmul %142, %144, %cst_164 {dimension_numbers = #tpu.dot_dimension_numbers<[1], [0], [0], [1], [0, 0, 1, 1], [], []>} : vector<256x6xf32>, vector<6x6xf32>, vector<256x6xf32> -> vector<256x6xf32>
    %146 = arith.addf %140, %145 : vector<256x6xf32>
    %c2_165 = arith.constant 2 : index
    %c7_166 = arith.constant 7 : index
    %c0_167 = arith.constant 0 : index
    %147 = vector.load %arg9[%c2_165, %c7_166, %c0_167] : memref<18x32x6xf32, #tpu.memory_space<vmem>>, vector<16x16x6xf32>
    %148 = vector.shape_cast %147 : vector<16x16x6xf32> to vector<256x6xf32>
    %c1_168 = arith.constant 1 : index
    %c6_169 = arith.constant 6 : index
    %c0_170 = arith.constant 0 : index
    %c0_171 = arith.constant 0 : index
    %149 = vector.load %arg4[%c1_168, %c6_169, %c0_170, %c0_171] : memref<3x9x6x6xf32, #tpu.memory_space<vmem>>, vector<1x1x6x6xf32>
    %150 = vector.shape_cast %149 : vector<1x1x6x6xf32> to vector<6x6xf32>
    %cst_172 = arith.constant dense<0.000000e+00> : vector<256x6xf32>
    %151 = tpu.matmul %148, %150, %cst_172 {dimension_numbers = #tpu.dot_dimension_numbers<[1], [0], [0], [1], [0, 0, 1, 1], [], []>} : vector<256x6xf32>, vector<6x6xf32>, vector<256x6xf32> -> vector<256x6xf32>
    %152 = arith.addf %146, %151 : vector<256x6xf32>
    %c2_173 = arith.constant 2 : index
    %c8_174 = arith.constant 8 : index
    %c0_175 = arith.constant 0 : index
    %153 = vector.load %arg9[%c2_173, %c8_174, %c0_175] : memref<18x32x6xf32, #tpu.memory_space<vmem>>, vector<16x16x6xf32>
    %154 = vector.shape_cast %153 : vector<16x16x6xf32> to vector<256x6xf32>
    %c1_176 = arith.constant 1 : index
    %c7_177 = arith.constant 7 : index
    %c0_178 = arith.constant 0 : index
    %c0_179 = arith.constant 0 : index
    %155 = vector.load %arg4[%c1_176, %c7_177, %c0_178, %c0_179] : memref<3x9x6x6xf32, #tpu.memory_space<vmem>>, vector<1x1x6x6xf32>
    %156 = vector.shape_cast %155 : vector<1x1x6x6xf32> to vector<6x6xf32>
    %cst_180 = arith.constant dense<0.000000e+00> : vector<256x6xf32>
    %157 = tpu.matmul %154, %156, %cst_180 {dimension_numbers = #tpu.dot_dimension_numbers<[1], [0], [0], [1], [0, 0, 1, 1], [], []>} : vector<256x6xf32>, vector<6x6xf32>, vector<256x6xf32> -> vector<256x6xf32>
    %158 = arith.addf %152, %157 : vector<256x6xf32>
    %c2_181 = arith.constant 2 : index
    %c9_182 = arith.constant 9 : index
    %c0_183 = arith.constant 0 : index
    %159 = vector.load %arg9[%c2_181, %c9_182, %c0_183] : memref<18x32x6xf32, #tpu.memory_space<vmem>>, vector<16x16x6xf32>
    %160 = vector.shape_cast %159 : vector<16x16x6xf32> to vector<256x6xf32>
    %c1_184 = arith.constant 1 : index
    %c8_185 = arith.constant 8 : index
    %c0_186 = arith.constant 0 : index
    %c0_187 = arith.constant 0 : index
    %161 = vector.load %arg4[%c1_184, %c8_185, %c0_186, %c0_187] : memref<3x9x6x6xf32, #tpu.memory_space<vmem>>, vector<1x1x6x6xf32>
    %162 = vector.shape_cast %161 : vector<1x1x6x6xf32> to vector<6x6xf32>
    %cst_188 = arith.constant dense<0.000000e+00> : vector<256x6xf32>
    %163 = tpu.matmul %160, %162, %cst_188 {dimension_numbers = #tpu.dot_dimension_numbers<[1], [0], [0], [1], [0, 0, 1, 1], [], []>} : vector<256x6xf32>, vector<6x6xf32>, vector<256x6xf32> -> vector<256x6xf32>
    %164 = arith.addf %158, %163 : vector<256x6xf32>
    %c1_189 = arith.constant 1 : index
    %c0_190 = arith.constant 0 : index
    %c0_191 = arith.constant 0 : index
    %165 = vector.load %arg5[%c1_189, %c0_190, %c0_191] : memref<3x1x6xf32, #tpu.memory_space<vmem>>, vector<1x1x6xf32>
    %166 = vector.shape_cast %165 : vector<1x1x6xf32> to vector<1x6xf32>
    %167 = vector.broadcast %166 : vector<1x6xf32> to vector<256x6xf32>
    %168 = arith.addf %164, %167 : vector<256x6xf32>
    %cst_192 = arith.constant 0.000000e+00 : f32
    %169 = vector.broadcast %cst_192 : f32 to vector<256x6xf32>
    %170 = arith.maximumf %168, %169 : vector<256x6xf32>
    %c1_193 = arith.constant 1 : index
    %c0_194 = arith.constant 0 : index
    %c0_195 = arith.constant 0 : index
    %171 = vector.load %arg6[%c1_193, %c0_194, %c0_195] : memref<4x6x64xf32, #tpu.memory_space<vmem>>, vector<1x6x64xf32>
    %172 = vector.shape_cast %171 : vector<1x6x64xf32> to vector<6x64xf32>
    %cst_196 = arith.constant dense<0.000000e+00> : vector<256x64xf32>
    %173 = tpu.matmul %170, %172, %cst_196 {dimension_numbers = #tpu.dot_dimension_numbers<[1], [0], [0], [1], [0, 0, 1, 1], [], []>} : vector<256x6xf32>, vector<6x64xf32>, vector<256x64xf32> -> vector<256x64xf32>
    %174 = arith.addf %106, %173 : vector<256x64xf32>
    %175 = arith.addf %170, %29 : vector<256x6xf32>
    %176 = vector.shape_cast %175 : vector<256x6xf32> to vector<16x16x6xf32>
    %c1_197 = arith.constant 1 : index
    %c8_198 = arith.constant 8 : index
    %c0_199 = arith.constant 0 : index
    %177 = vector.load %arg9[%c1_197, %c8_198, %c0_199] : memref<18x32x6xf32, #tpu.memory_space<vmem>>, vector<16x16x6xf32>
    tpu.vector_store %arg9[%c1_197, %c8_198, %c0_199], %176 {strides = array<i32>} : memref<18x32x6xf32, #tpu.memory_space<vmem>>, vector<16x16x6xf32>,
    %cst_200 = arith.constant 0.000000e+00 : f32
    %178 = vector.broadcast %cst_200 : f32 to vector<256x6xf32>
    %c0_201 = arith.constant 0 : index
    %c7_202 = arith.constant 7 : index
    %c0_203 = arith.constant 0 : index
    %179 = vector.load %arg9[%c0_201, %c7_202, %c0_203] : memref<18x32x6xf32, #tpu.memory_space<vmem>>, vector<16x16x6xf32>
    %180 = vector.shape_cast %179 : vector<16x16x6xf32> to vector<256x6xf32>
    %c2_204 = arith.constant 2 : index
    %c0_205 = arith.constant 0 : index
    %c0_206 = arith.constant 0 : index
    %c0_207 = arith.constant 0 : index
    %181 = vector.load %arg4[%c2_204, %c0_205, %c0_206, %c0_207] : memref<3x9x6x6xf32, #tpu.memory_space<vmem>>, vector<1x1x6x6xf32>
    %182 = vector.shape_cast %181 : vector<1x1x6x6xf32> to vector<6x6xf32>
    %cst_208 = arith.constant dense<0.000000e+00> : vector<256x6xf32>
    %183 = tpu.matmul %180, %182, %cst_208 {dimension_numbers = #tpu.dot_dimension_numbers<[1], [0], [0], [1], [0, 0, 1, 1], [], []>} : vector<256x6xf32>, vector<6x6xf32>, vector<256x6xf32> -> vector<256x6xf32>
    %184 = arith.addf %178, %183 : vector<256x6xf32>
    %c0_209 = arith.constant 0 : index
    %c8_210 = arith.constant 8 : index
    %c0_211 = arith.constant 0 : index
    %185 = vector.load %arg9[%c0_209, %c8_210, %c0_211] : memref<18x32x6xf32, #tpu.memory_space<vmem>>, vector<16x16x6xf32>
    %186 = vector.shape_cast %185 : vector<16x16x6xf32> to vector<256x6xf32>
    %c2_212 = arith.constant 2 : index
    %c1_213 = arith.constant 1 : index
    %c0_214 = arith.constant 0 : index
    %c0_215 = arith.constant 0 : index
    %187 = vector.load %arg4[%c2_212, %c1_213, %c0_214, %c0_215] : memref<3x9x6x6xf32, #tpu.memory_space<vmem>>, vector<1x1x6x6xf32>
    %188 = vector.shape_cast %187 : vector<1x1x6x6xf32> to vector<6x6xf32>
    %cst_216 = arith.constant dense<0.000000e+00> : vector<256x6xf32>
    %189 = tpu.matmul %186, %188, %cst_216 {dimension_numbers = #tpu.dot_dimension_numbers<[1], [0], [0], [1], [0, 0, 1, 1], [], []>} : vector<256x6xf32>, vector<6x6xf32>, vector<256x6xf32> -> vector<256x6xf32>
    %190 = arith.addf %184, %189 : vector<256x6xf32>
    %c0_217 = arith.constant 0 : index
    %c9_218 = arith.constant 9 : index
    %c0_219 = arith.constant 0 : index
    %191 = vector.load %arg9[%c0_217, %c9_218, %c0_219] : memref<18x32x6xf32, #tpu.memory_space<vmem>>, vector<16x16x6xf32>
    %192 = vector.shape_cast %191 : vector<16x16x6xf32> to vector<256x6xf32>
    %c2_220 = arith.constant 2 : index
    %c2_221 = arith.constant 2 : index
    %c0_222 = arith.constant 0 : index
    %c0_223 = arith.constant 0 : index
    %193 = vector.load %arg4[%c2_220, %c2_221, %c0_222, %c0_223] : memref<3x9x6x6xf32, #tpu.memory_space<vmem>>, vector<1x1x6x6xf32>
    %194 = vector.shape_cast %193 : vector<1x1x6x6xf32> to vector<6x6xf32>
    %cst_224 = arith.constant dense<0.000000e+00> : vector<256x6xf32>
    %195 = tpu.matmul %192, %194, %cst_224 {dimension_numbers = #tpu.dot_dimension_numbers<[1], [0], [0], [1], [0, 0, 1, 1], [], []>} : vector<256x6xf32>, vector<6x6xf32>, vector<256x6xf32> -> vector<256x6xf32>
    %196 = arith.addf %190, %195 : vector<256x6xf32>
    %c1_225 = arith.constant 1 : index
    %c7_226 = arith.constant 7 : index
    %c0_227 = arith.constant 0 : index
    %197 = vector.load %arg9[%c1_225, %c7_226, %c0_227] : memref<18x32x6xf32, #tpu.memory_space<vmem>>, vector<16x16x6xf32>
    %198 = vector.shape_cast %197 : vector<16x16x6xf32> to vector<256x6xf32>
    %c2_228 = arith.constant 2 : index
    %c3_229 = arith.constant 3 : index
    %c0_230 = arith.constant 0 : index
    %c0_231 = arith.constant 0 : index
    %199 = vector.load %arg4[%c2_228, %c3_229, %c0_230, %c0_231] : memref<3x9x6x6xf32, #tpu.memory_space<vmem>>, vector<1x1x6x6xf32>
    %200 = vector.shape_cast %199 : vector<1x1x6x6xf32> to vector<6x6xf32>
    %cst_232 = arith.constant dense<0.000000e+00> : vector<256x6xf32>
    %201 = tpu.matmul %198, %200, %cst_232 {dimension_numbers = #tpu.dot_dimension_numbers<[1], [0], [0], [1], [0, 0, 1, 1], [], []>} : vector<256x6xf32>, vector<6x6xf32>, vector<256x6xf32> -> vector<256x6xf32>
    %202 = arith.addf %196, %201 : vector<256x6xf32>
    %c1_233 = arith.constant 1 : index
    %c8_234 = arith.constant 8 : index
    %c0_235 = arith.constant 0 : index
    %203 = vector.load %arg9[%c1_233, %c8_234, %c0_235] : memref<18x32x6xf32, #tpu.memory_space<vmem>>, vector<16x16x6xf32>
    %204 = vector.shape_cast %203 : vector<16x16x6xf32> to vector<256x6xf32>
    %c2_236 = arith.constant 2 : index
    %c4_237 = arith.constant 4 : index
    %c0_238 = arith.constant 0 : index
    %c0_239 = arith.constant 0 : index
    %205 = vector.load %arg4[%c2_236, %c4_237, %c0_238, %c0_239] : memref<3x9x6x6xf32, #tpu.memory_space<vmem>>, vector<1x1x6x6xf32>
    %206 = vector.shape_cast %205 : vector<1x1x6x6xf32> to vector<6x6xf32>
    %cst_240 = arith.constant dense<0.000000e+00> : vector<256x6xf32>
    %207 = tpu.matmul %204, %206, %cst_240 {dimension_numbers = #tpu.dot_dimension_numbers<[1], [0], [0], [1], [0, 0, 1, 1], [], []>} : vector<256x6xf32>, vector<6x6xf32>, vector<256x6xf32> -> vector<256x6xf32>
    %208 = arith.addf %202, %207 : vector<256x6xf32>
    %c1_241 = arith.constant 1 : index
    %c9_242 = arith.constant 9 : index
    %c0_243 = arith.constant 0 : index
    %209 = vector.load %arg9[%c1_241, %c9_242, %c0_243] : memref<18x32x6xf32, #tpu.memory_space<vmem>>, vector<16x16x6xf32>
    %210 = vector.shape_cast %209 : vector<16x16x6xf32> to vector<256x6xf32>
    %c2_244 = arith.constant 2 : index
    %c5_245 = arith.constant 5 : index
    %c0_246 = arith.constant 0 : index
    %c0_247 = arith.constant 0 : index
    %211 = vector.load %arg4[%c2_244, %c5_245, %c0_246, %c0_247] : memref<3x9x6x6xf32, #tpu.memory_space<vmem>>, vector<1x1x6x6xf32>
    %212 = vector.shape_cast %211 : vector<1x1x6x6xf32> to vector<6x6xf32>
    %cst_248 = arith.constant dense<0.000000e+00> : vector<256x6xf32>
    %213 = tpu.matmul %210, %212, %cst_248 {dimension_numbers = #tpu.dot_dimension_numbers<[1], [0], [0], [1], [0, 0, 1, 1], [], []>} : vector<256x6xf32>, vector<6x6xf32>, vector<256x6xf32> -> vector<256x6xf32>
    %214 = arith.addf %208, %213 : vector<256x6xf32>
    %c2_249 = arith.constant 2 : index
    %c7_250 = arith.constant 7 : index
    %c0_251 = arith.constant 0 : index
    %215 = vector.load %arg9[%c2_249, %c7_250, %c0_251] : memref<18x32x6xf32, #tpu.memory_space<vmem>>, vector<16x16x6xf32>
    %216 = vector.shape_cast %215 : vector<16x16x6xf32> to vector<256x6xf32>
    %c2_252 = arith.constant 2 : index
    %c6_253 = arith.constant 6 : index
    %c0_254 = arith.constant 0 : index
    %c0_255 = arith.constant 0 : index
    %217 = vector.load %arg4[%c2_252, %c6_253, %c0_254, %c0_255] : memref<3x9x6x6xf32, #tpu.memory_space<vmem>>, vector<1x1x6x6xf32>
    %218 = vector.shape_cast %217 : vector<1x1x6x6xf32> to vector<6x6xf32>
    %cst_256 = arith.constant dense<0.000000e+00> : vector<256x6xf32>
    %219 = tpu.matmul %216, %218, %cst_256 {dimension_numbers = #tpu.dot_dimension_numbers<[1], [0], [0], [1], [0, 0, 1, 1], [], []>} : vector<256x6xf32>, vector<6x6xf32>, vector<256x6xf32> -> vector<256x6xf32>
    %220 = arith.addf %214, %219 : vector<256x6xf32>
    %c2_257 = arith.constant 2 : index
    %c8_258 = arith.constant 8 : index
    %c0_259 = arith.constant 0 : index
    %221 = vector.load %arg9[%c2_257, %c8_258, %c0_259] : memref<18x32x6xf32, #tpu.memory_space<vmem>>, vector<16x16x6xf32>
    %222 = vector.shape_cast %221 : vector<16x16x6xf32> to vector<256x6xf32>
    %c2_260 = arith.constant 2 : index
    %c7_261 = arith.constant 7 : index
    %c0_262 = arith.constant 0 : index
    %c0_263 = arith.constant 0 : index
    %223 = vector.load %arg4[%c2_260, %c7_261, %c0_262, %c0_263] : memref<3x9x6x6xf32, #tpu.memory_space<vmem>>, vector<1x1x6x6xf32>
    %224 = vector.shape_cast %223 : vector<1x1x6x6xf32> to vector<6x6xf32>
    %cst_264 = arith.constant dense<0.000000e+00> : vector<256x6xf32>
    %225 = tpu.matmul %222, %224, %cst_264 {dimension_numbers = #tpu.dot_dimension_numbers<[1], [0], [0], [1], [0, 0, 1, 1], [], []>} : vector<256x6xf32>, vector<6x6xf32>, vector<256x6xf32> -> vector<256x6xf32>
    %226 = arith.addf %220, %225 : vector<256x6xf32>
    %c2_265 = arith.constant 2 : index
    %c9_266 = arith.constant 9 : index
    %c0_267 = arith.constant 0 : index
    %227 = vector.load %arg9[%c2_265, %c9_266, %c0_267] : memref<18x32x6xf32, #tpu.memory_space<vmem>>, vector<16x16x6xf32>
    %228 = vector.shape_cast %227 : vector<16x16x6xf32> to vector<256x6xf32>
    %c2_268 = arith.constant 2 : index
    %c8_269 = arith.constant 8 : index
    %c0_270 = arith.constant 0 : index
    %c0_271 = arith.constant 0 : index
    %229 = vector.load %arg4[%c2_268, %c8_269, %c0_270, %c0_271] : memref<3x9x6x6xf32, #tpu.memory_space<vmem>>, vector<1x1x6x6xf32>
    %230 = vector.shape_cast %229 : vector<1x1x6x6xf32> to vector<6x6xf32>
    %cst_272 = arith.constant dense<0.000000e+00> : vector<256x6xf32>
    %231 = tpu.matmul %228, %230, %cst_272 {dimension_numbers = #tpu.dot_dimension_numbers<[1], [0], [0], [1], [0, 0, 1, 1], [], []>} : vector<256x6xf32>, vector<6x6xf32>, vector<256x6xf32> -> vector<256x6xf32>
    %232 = arith.addf %226, %231 : vector<256x6xf32>
    %c2_273 = arith.constant 2 : index
    %c0_274 = arith.constant 0 : index
    %c0_275 = arith.constant 0 : index
    %233 = vector.load %arg5[%c2_273, %c0_274, %c0_275] : memref<3x1x6xf32, #tpu.memory_space<vmem>>, vector<1x1x6xf32>
    %234 = vector.shape_cast %233 : vector<1x1x6xf32> to vector<1x6xf32>
    %235 = vector.broadcast %234 : vector<1x6xf32> to vector<256x6xf32>
    %236 = arith.addf %232, %235 : vector<256x6xf32>
    %cst_276 = arith.constant 0.000000e+00 : f32
    %237 = vector.broadcast %cst_276 : f32 to vector<256x6xf32>
    %238 = arith.maximumf %236, %237 : vector<256x6xf32>
    %c2_277 = arith.constant 2 : index
    %c0_278 = arith.constant 0 : index
    %c0_279 = arith.constant 0 : index
    %239 = vector.load %arg6[%c2_277, %c0_278, %c0_279] : memref<4x6x64xf32, #tpu.memory_space<vmem>>, vector<1x6x64xf32>
    %240 = vector.shape_cast %239 : vector<1x6x64xf32> to vector<6x64xf32>
    %cst_280 = arith.constant dense<0.000000e+00> : vector<256x64xf32>
    %241 = tpu.matmul %238, %240, %cst_280 {dimension_numbers = #tpu.dot_dimension_numbers<[1], [0], [0], [1], [0, 0, 1, 1], [], []>} : vector<256x6xf32>, vector<6x64xf32>, vector<256x64xf32> -> vector<256x64xf32>
    %242 = arith.addf %174, %241 : vector<256x64xf32>
    %c3_281 = arith.constant 3 : index
    %c0_282 = arith.constant 0 : index
    %c0_283 = arith.constant 0 : index
    %243 = vector.load %arg6[%c3_281, %c0_282, %c0_283] : memref<4x6x64xf32, #tpu.memory_space<vmem>>, vector<1x6x64xf32>
    %244 = vector.shape_cast %243 : vector<1x6x64xf32> to vector<6x64xf32>
    %cst_284 = arith.constant dense<0.000000e+00> : vector<256x64xf32>
    %245 = tpu.matmul %38, %244, %cst_284 {dimension_numbers = #tpu.dot_dimension_numbers<[1], [0], [0], [1], [0, 0, 1, 1], [], []>} : vector<256x6xf32>, vector<6x64xf32>, vector<256x64xf32> -> vector<256x64xf32>
    %246 = arith.addf %242, %245 : vector<256x64xf32>
    %c0_285 = arith.constant 0 : index
    %c0_286 = arith.constant 0 : index
    %247 = vector.load %arg7[%c0_285, %c0_286] : memref<1x64xf32, #tpu.memory_space<vmem>>, vector<1x64xf32>
    %248 = vector.broadcast %247 : vector<1x64xf32> to vector<256x64xf32>
    %249 = arith.addf %246, %248 : vector<256x64xf32>
    %250 = arith.addf %249, %2 : vector<256x64xf32>
    %cst_287 = arith.constant 0.000000e+00 : f32
    %251 = vector.broadcast %cst_287 : f32 to vector<256x64xf32>
    %252 = arith.maximumf %250, %251 : vector<256x64xf32>
    %253 = vector.shape_cast %252 : vector<256x64xf32> to vector<16x16x64xf32>
    %c0_288 = arith.constant 0 : index
    %c0_289 = arith.constant 0 : index
    %c0_290 = arith.constant 0 : index
    %c0_291 = arith.constant 0 : index
    %254 = vector.load %arg8[%c0_288, %c0_289, %c0_290, %c0_291] : memref<1x16x16x64xf32, #tpu.memory_space<vmem>>, vector<1x16x16x64xf32>
    %255 = vector.shape_cast %254 : vector<1x16x16x64xf32> to vector<16x16x64xf32>
    %256 = vector.shape_cast %253 : vector<16x16x64xf32> to vector<1x16x16x64xf32>
    tpu.vector_store %arg8[%c0_288, %c0_289, %c0_290, %c0_291], %256 {strides = array<i32>} : memref<1x16x16x64xf32, #tpu.memory_space<vmem>>, vector<1x16x16x64xf32>,
    return
  }
  func.func @transform_0(%arg0: i32) -> (i32, i32, i32, i32) {
    %c0_i32 = arith.constant 0 : i32
    %c0_i32_0 = arith.constant 0 : i32
    %c0_i32_1 = arith.constant 0 : i32
    %c0_i32_2 = arith.constant 0 : i32
    return %arg0, %c0_i32, %c0_i32_0, %c0_i32_1 : i32, i32, i32, i32
  }
  func.func @transform_1(%arg0: i32) -> (i32, i32, i32) {
    %c0_i32 = arith.constant 0 : i32
    %c0_i32_0 = arith.constant 0 : i32
    %c0_i32_1 = arith.constant 0 : i32
    %c0_i32_2 = arith.constant 0 : i32
    return %c0_i32, %c0_i32_0, %c0_i32_1 : i32, i32, i32
  }
  func.func @transform_2(%arg0: i32) -> (i32, i32, i32) {
    %c0_i32 = arith.constant 0 : i32
    %c0_i32_0 = arith.constant 0 : i32
    %c0_i32_1 = arith.constant 0 : i32
    %c0_i32_2 = arith.constant 0 : i32
    return %c0_i32, %c0_i32_0, %c0_i32_1 : i32, i32, i32
  }
  func.func @transform_3(%arg0: i32) -> (i32, i32, i32, i32) {
    %c0_i32 = arith.constant 0 : i32
    %c0_i32_0 = arith.constant 0 : i32
    %c0_i32_1 = arith.constant 0 : i32
    %c0_i32_2 = arith.constant 0 : i32
    %c0_i32_3 = arith.constant 0 : i32
    return %c0_i32, %c0_i32_0, %c0_i32_1, %c0_i32_2 : i32, i32, i32, i32
  }
  func.func @transform_4(%arg0: i32) -> (i32, i32, i32) {
    %c0_i32 = arith.constant 0 : i32
    %c0_i32_0 = arith.constant 0 : i32
    %c0_i32_1 = arith.constant 0 : i32
    %c0_i32_2 = arith.constant 0 : i32
    return %c0_i32, %c0_i32_0, %c0_i32_1 : i32, i32, i32
  }
  func.func @transform_5(%arg0: i32) -> (i32, i32, i32) {
    %c0_i32 = arith.constant 0 : i32
    %c0_i32_0 = arith.constant 0 : i32
    %c0_i32_1 = arith.constant 0 : i32
    %c0_i32_2 = arith.constant 0 : i32
    return %c0_i32, %c0_i32_0, %c0_i32_1 : i32, i32, i32
  }
  func.func @transform_6(%arg0: i32) -> (i32, i32) {
    %c0_i32 = arith.constant 0 : i32
    %c0_i32_0 = arith.constant 0 : i32
    %c0_i32_1 = arith.constant 0 : i32
    return %c0_i32, %c0_i32_0 : i32, i32
  }
  func.func @transform_7(%arg0: i32) -> (i32, i32, i32, i32) {
    %c0_i32 = arith.constant 0 : i32
    %c0_i32_0 = arith.constant 0 : i32
    %c0_i32_1 = arith.constant 0 : i32
    %c0_i32_2 = arith.constant 0 : i32
    return %arg0, %c0_i32, %c0_i32_0, %c0_i32_1 : i32, i32, i32, i32
  }
}

</mosaic_0001>

<bundles_post_ra>
// kernel: bottle2neck_forward.1
= control target key start
LH: loop header
LB: loop body
LE: loop exit
PB: predicated region body
PF: predicated region fallthrough
CT: control target
= control target key end

     0   :  { %12 = vsyncpa [#allocation4], 0  ;;  %s23461_s0 = inlined_call_operand.vmem [shape: f32[2,16,16,64], index: 0, kind: input, shape index: {}]   ;;  %s23462_s1 = inlined_call_operand.vmem [shape: f32[4,64,6], index: 1, kind: input, shape index: {}]   ;;  %s23463_s2 = inlined_call_operand.vmem [shape: f32[4,1,6], index: 2, kind: input, shape index: {}]   ;;  %s23464_s3 = inlined_call_operand.vmem [shape: f32[3,9,6,6], index: 3, kind: input, shape index: {}]   ;;  %s23465_s4 = inlined_call_operand.vmem [shape: f32[3,1,6], index: 4, kind: input, shape index: {}]   ;;  %s23466_s5 = inlined_call_operand.vmem [shape: f32[4,6,64], index: 5, kind: input, shape index: {}]   ;;  %s23467_s6 = inlined_call_operand.vmem [shape: f32[1,64], index: 6, kind: input, shape index: {}]   ;;  %s23468_s7 = inlined_call_operand.hbm [shape: f32[2,16,16,64], index: 7, kind: output, shape index: {}]  }
   0x1   :  { %14 = vsyncpa [#allocation4 + $0x1], 0  ;;  %s19198_s24 = smov 0   ;;  %s19200_s25 = smov 0  }
   0x2   :  { %s19202_s26 = smov 0   ;;  %s19204_s27 = smov 0  }
   0x3 LB: > { %s19219_s28 = sadd.s32 4294967295, %s19152_s27   ;;  %s13866_s29 = sadd.s32 4294967294, %s19152_s27   ;;  %s19152_s27 = sphi %s19204_s27, %s24181_s27   ;;  %s19148_s26 = sphi %s19202_s26, %s24180_s26   ;;  %s19144_s25 = sphi %s19200_s25, %s24179_s25   ;;  %s19140_s24 = sphi %s19198_s24, %s24178_s24  }
   0x4   : > { %s19223_s30 = sadd.s32 1, %s19152_s27   ;;  %s179_s8 = sadd.s32 1, %s19148_s26 }
   0x5   : > { %s176_s9 = ssub.s32 %s19152_s27, %s19223_s30  ;;  %p189_p0 = scmp.ne.s32.totalorder %s19148_s26, %s19144_s25 }
   0x6   : > { %p177_p1 = scmp.eq.s32.totalorder %s176_s9, 0  ;;  %p190_p2 = scmp.eq.s32.totalorder %s19219_s28, 1 }
   0x7   : > { %p195_p3 = scmp.ne.s32.totalorder %s19144_s25, %s19140_s24  ;;  %p196_p4 = scmp.eq.s32.totalorder %s13866_s29, 1 }
   0x8   : > { %s19234_s10 = scalar_select %p177_p1, %s19148_s26, %s179_s8  }
   0x9   : > { %p19236_p5 = por %p190_p2, %p189_p0  ;;  %p19240_p6 = por %p196_p4, %p195_p3 }
   0xa   : > { %p13869_p7 = scmp.ge.s32.totalorder %s19152_s27, 1  ;;  %p240_p8 = scmp.lt.s32.totalorder %s19152_s27, 3 }
   0xc   : > { %p241_p9 = pnand %p13869_p7, %p240_p8 }
   0xe   : > { %244 = sbr.rel (%p241_p9) target bundleno = 2858 (0xb2a), region = 48 }
  0x15   : > { %v309_v0 = vld [vmem:[%s23462_s1] sm:$0xff]  ;;  %v310_v1 = vld [vmem:[%s23462_s1 + $0x8] sm:$0xff]  ;;  %v311_v2 = vld [vmem:[%s23462_s1 + $0x10] sm:$0xff]  ;;  %p272_p10 = scmp.lt.s32.totalorder %s19219_s28, 1  ;;  %vm324_vm0 = vcmask 523264   ;;  %vm1500_vm1 = vcmask 48128  }
  0x16   : > { %v18086_v3 = vpack.c.bf16 %v310_v1, %v309_v0  ;;  %v312_v4 = vld [vmem:[%s23462_s1 + $0x18] sm:$0xff]  ;;  %v313_v6 = vld [vmem:[%s23462_s1 + $0x20] sm:$0xff]  ;;  %v314_v7 = vld [vmem:[%s23462_s1 + $0x28] sm:$0xff]  ;;  %vm1769_vm2 = vcmask 1045504   ;;  %s269_s13 = sand.u32 1, %s19144_s25   ;;  %s15096_s19 = sshll.u32 %s19219_s28, 12 }
  0x17   : > { %v18090_v5 = vpack.c.bf16 %v312_v4, %v311_v2  ;;  %s273_s8 = scalar_select %p272_p10, %s19219_s28, 1  ;;  %v18094_v8 = vpack.c.bf16 %v314_v7, %v313_v6  ;;  %v315_v9 = vld [vmem:[%s23462_s1 + $0x30] sm:$0xff]  ;;  %v316_v10 = vld [vmem:[%s23462_s1 + $0x38] sm:$0xff]  ;;  %v13906_v13 = vld [vmem:[%s23462_s1 + $0x40] sm:$0xff]  ;;  %v19154_v7 = vmov 0.0  }
  0x18   : > { %18087 = vmatprep.subr.bf16.mxu0 %v18086_v3  ;;  %v18098_v12 = vpack.c.bf16 %v316_v10, %v315_v9  ;;  %v13907_v14 = vld [vmem:[%s23462_s1 + $0x48] sm:$0xff]  ;;  %v13908_v16 = vld [vmem:[%s23462_s1 + $0x50] sm:$0xff]  ;;  %v13909_v17 = vld [vmem:[%s23462_s1 + $0x58] sm:$0xff]  ;;  %1507 = vst.msk [vmem:[#allocation2 + $0x30] sm:$0xff] %vm1500_vm1, %v19154_v7  ;;  %s13870_s17 = sshll.u32 %s269_s13, 8  ;;  %s23410_s23 = scalar_lea.hbm %s23468_s7, %s15096_s19 }
  0x19   : > { %18089 = vmatpush3.bf16.msra.mxu0 %v18086_v3  ;;  %s15095_s9 = sshll.u32 %s273_s8, 8  ;;  %v18102_v15 = vpack.c.bf16 %v13907_v14, %v13906_v13  ;;  %v18106_v20 = vpack.c.bf16 %v13909_v17, %v13908_v16  ;;  %v13910_v21 = vld [vmem:[%s23462_s1 + $0x60] sm:$0xff]  ;;  %v13911_v22 = vld [vmem:[%s23462_s1 + $0x68] sm:$0xff]  ;;  %v13912_v26 = vld [vmem:[%s23462_s1 + $0x70] sm:$0xff]  ;;  %1501 = vst.msk [vmem:[#allocation2] sm:$0xff] %vm1500_vm1, %v19154_v7  ;;  %s23285_s18 = scalar_lea.vmem [#allocation3], %s13870_s17 }
  0x1a   : > { %18091 = vmatprep.subr.bf16.mxu0 %v18090_v5  ;;  %s19269_s15 = scalar_lea.vmem %s23461_s0, %s15095_s9  ;;  %v18110_v25 = vpack.c.bf16 %v13911_v22, %v13910_v21  ;;  %v13913_v27 = vld [vmem:[%s23462_s1 + $0x78] sm:$0xff]  ;;  %v13948_v31 = vld [vmem:[%s23462_s1 + $0x80] sm:$0xff]  ;;  %v13949_v32 = vld [vmem:[%s23462_s1 + $0x88] sm:$0xff]  ;;  %1502 = vst.msk [vmem:[#allocation2 + $0x8] sm:$0xff] %vm1500_vm1, %v19154_v7  ;;  %s13804_s20 = sshll.u32 %s23285_s18, 4  ;;  %s23412_s20 = int_to_ptr.vmem [resolvable:$true] %s13804_s20 }
  0x1b   : > { %v19278_v11 = vld [vmem:[%s19269_s15] sm:$0xff]  ;;  %v19295_v18 = vld [vmem:[%s19269_s15 + $0x8] sm:$0xff]  ;;  %v19298_v19 = vld [vmem:[%s19269_s15 + $0x10] sm:$0xff]  ;;  %v18114_v30 = vpack.c.bf16 %v13913_v27, %v13912_v26  ;;  %v18118_v35 = vpack.c.bf16 %v13949_v32, %v13948_v31  ;;  %1503 = vst.msk [vmem:[#allocation2 + $0x10] sm:$0xff] %vm1500_vm1, %v19154_v7  ;;  %s23420_s28 = scalar_lea.sflag [#allocation4], %s269_s13  ;;  %s19155_s29 = smov [#allocation3]  }
  0x1c   : > { %16296 = vmatprep.mubr.msk.f32.mxu0 %vm324_vm0, %v19278_v11  ;;  %v19311_v23 = vld [vmem:[%s19269_s15 + $0x18] sm:$0xff]  ;;  %v19314_v24 = vld [vmem:[%s19269_s15 + $0x20] sm:$0xff]  ;;  %v19327_v28 = vld [vmem:[%s19269_s15 + $0x28] sm:$0xff]  ;;  %1504 = vst.msk [vmem:[#allocation2 + $0x18] sm:$0xff] %vm1500_vm1, %v19154_v7  ;;  %s19094_s8 = sshll.u32 %s19155_s29, 4  ;;  %s19095_s8 = int_to_ptr.vmem [resolvable:$false] %s19094_s8 }
  0x1d   : > { %18093 = vmatpush3.bf16.msra.mxu0 %v18090_v5  ;;  %v19330_v29 = vld [vmem:[%s19269_s15 + $0x30] sm:$0xff]  ;;  %v19343_v33 = vld [vmem:[%s19269_s15 + $0x38] sm:$0xff]  ;;  %v19346_v34 = vld [vmem:[%s19269_s15 + $0x40] sm:$0xff]  ;;  %1505 = vst.msk [vmem:[#allocation2 + $0x20] sm:$0xff] %vm1500_vm1, %v19154_v7  ;;  %s19096_s9 = scalar_lea.vmem %s19095_s8, 8192  ;;  %p19097_p0 = scmp.lt.s32.totalorder %s23412_s20, %s19095_s8 }
  0x1e   : > { %18095 = vmatprep.subr.bf16.mxu0 %v18094_v8  ;;  %v19353_v36 = vld [vmem:[%s19269_s15 + $0x48] sm:$0xff]  ;;  %v19356_v37 = vld [vmem:[%s19269_s15 + $0x50] sm:$0xff]  ;;  %v19363_v38 = vld [vmem:[%s19269_s15 + $0x58] sm:$0xff]  ;;  %1506 = vst.msk [vmem:[#allocation2 + $0x28] sm:$0xff] %vm1500_vm1, %v19154_v7 }
  0x1f   : > { %v19366_v39 = vld [vmem:[%s19269_s15 + $0x60] sm:$0xff]  ;;  %v19373_v40 = vld [vmem:[%s19269_s15 + $0x68] sm:$0xff]  ;;  %v19376_v41 = vld [vmem:[%s19269_s15 + $0x70] sm:$0xff]  ;;  %1508 = vst.msk [vmem:[#allocation2 + $0x38] sm:$0xff] %vm1500_vm1, %v19154_v7 }
  0x20   : > { %v19383_v42 = vld [vmem:[%s19269_s15 + $0x78] sm:$0xff]  ;;  %v19386_v43 = vld [vmem:[%s19269_s15 + $0x80] sm:$0xff]  ;;  %v19393_v44 = vld [vmem:[%s19269_s15 + $0x88] sm:$0xff]  ;;  %1509 = vst.msk [vmem:[#allocation2 + $0x40] sm:$0xff] %vm1500_vm1, %v19154_v7 }
  0x21   : > { %18097 = vmatpush3.bf16.msra.mxu0 %v18094_v8  ;;  %v19396_v45 = vld [vmem:[%s19269_s15 + $0x90] sm:$0xff]  ;;  %v19403_v46 = vld [vmem:[%s19269_s15 + $0x98] sm:$0xff]  ;;  %v19406_v47 = vld [vmem:[%s19269_s15 + $0xa0] sm:$0xff]  ;;  %1510 = vst.msk [vmem:[#allocation2 + $0x48] sm:$0xff] %vm1500_vm1, %v19154_v7 }
  0x22   : > { %18099 = vmatprep.subr.bf16.mxu0 %v18098_v12  ;;  %v19413_v48 = vld [vmem:[%s19269_s15 + $0xa8] sm:$0xff]  ;;  %v19416_v49 = vld [vmem:[%s19269_s15 + $0xb0] sm:$0xff]  ;;  %v19423_v50 = vld [vmem:[%s19269_s15 + $0xb8] sm:$0xff]  ;;  %1511 = vst.msk [vmem:[#allocation2 + $0x50] sm:$0xff] %vm1500_vm1, %v19154_v7 }
  0x23   : > { %v19426_v51 = vld [vmem:[%s19269_s15 + $0xc0] sm:$0xff]  ;;  %v19433_v52 = vld [vmem:[%s19269_s15 + $0xc8] sm:$0xff]  ;;  %v19436_v53 = vld [vmem:[%s19269_s15 + $0xd0] sm:$0xff]  ;;  %1512 = vst.msk [vmem:[#allocation2 + $0x58] sm:$0xff] %vm1500_vm1, %v19154_v7 }
  0x24   : > { %v19443_v54 = vld [vmem:[%s19269_s15 + $0xd8] sm:$0xff]  ;;  %v19446_v55 = vld [vmem:[%s19269_s15 + $0xe0] sm:$0xff]  ;;  %v19453_v56 = vld [vmem:[%s19269_s15 + $0xe8] sm:$0xff]  ;;  %1513 = vst.msk [vmem:[#allocation2 + $0x60] sm:$0xff] %vm1500_vm1, %v19154_v7 }
  0x25   : > { %18101 = vmatpush3.bf16.msra.mxu0 %v18098_v12  ;;  %v19456_v57 = vld [vmem:[%s19269_s15 + $0xf0] sm:$0xff]  ;;  %v19463_v58 = vld [vmem:[%s19269_s15 + $0xf8] sm:$0xff]  ;;  %v13952_v62 = vld [vmem:[%s23462_s1 + $0xa0] sm:$0xff]  ;;  %1514 = vst.msk [vmem:[#allocation2 + $0x68] sm:$0xff] %vm1500_vm1, %v19154_v7 }
  0x26   : > { %18103 = vmatprep.subr.bf16.mxu0 %v18102_v15  ;;  %v13950_v59 = vld [vmem:[%s23462_s1 + $0x90] sm:$0xff]  ;;  %v13951_v60 = vld [vmem:[%s23462_s1 + $0x98] sm:$0xff]  ;;  %v13953_v63 = vld [vmem:[%s23462_s1 + $0xa8] sm:$0xff]  ;;  %1515 = vst.msk [vmem:[#allocation2 + $0x70] sm:$0xff] %vm1500_vm1, %v19154_v7 }
  0x27   : > { %v18122_v61 = vpack.c.bf16 %v13951_v60, %v13950_v59  ;;  %v18126_v0 = vpack.c.bf16 %v13953_v63, %v13952_v62  ;;  %v13954_v1 = vld [vmem:[%s23462_s1 + $0xb0] sm:$0xff]  ;;  %v13955_v2 = vld [vmem:[%s23462_s1 + $0xb8] sm:$0xff]  ;;  %v13990_v4 = vld [vmem:[%s23462_s1 + $0xc0] sm:$0xff]  ;;  %1516 = vst.msk [vmem:[#allocation2 + $0x78] sm:$0xff] %vm1500_vm1, %v19154_v7 }
  0x28   : > { %16297 = vmatmul.mubr.msk.f32.vlgmr.msra.gmra.mrb[0].mxu0 %vm324_vm0, %v19295_v18  ;;  %v18130_v3 = vpack.c.bf16 %v13955_v2, %v13954_v1  ;;  %v13991_v5 = vld [vmem:[%s23462_s1 + $0xc8] sm:$0xff]  ;;  %1517 = vst.msk [vmem:[#allocation2 + $0x80] sm:$0xff] %vm1500_vm1, %v19154_v7  ;;  %1518 = vst.msk [vmem:[#allocation2 + $0x88] sm:$0xff] %vm1500_vm1, %v19154_v7  ;;  %v13992_v8 = vld [vmem:[%s23462_s1 + $0xd0] sm:$0xff] }
  0x29   : > { %18105 = vmatpush3.bf16.msra.mxu0 %v18102_v15  ;;  %16299 = vmatprep.mubr.msk.f32.mxu0 %vm324_vm0, %v19298_v19  ;;  %v19505_v6 = vpack.c.bf16 %v13991_v5, %v13990_v4  ;;  %1519 = vst.msk [vmem:[#allocation2 + $0x90] sm:$0xff] %vm1500_vm1, %v19154_v7  ;;  %1520 = vst.msk [vmem:[#allocation2 + $0x98] sm:$0xff] %vm1500_vm1, %v19154_v7  ;;  %v13993_v9 = vld [vmem:[%s23462_s1 + $0xd8] sm:$0xff]  ;;  %v13994_v12 = vld [vmem:[%s23462_s1 + $0xe0] sm:$0xff] }
  0x2a   : > { %18107 = vmatprep.subr.bf16.mxu0 %v18106_v20  ;;  %1521 = vst.msk [vmem:[#allocation2 + $0xa0] sm:$0xff] %vm1500_vm1, %v19154_v7  ;;  %1522 = vst.msk [vmem:[#allocation2 + $0xa8] sm:$0xff] %vm1500_vm1, %v19154_v7  ;;  %v18138_v10 = vpack.c.bf16 %v13993_v9, %v13992_v8  ;;  %v13995_v13 = vld [vmem:[%s23462_s1 + $0xe8] sm:$0xff]  ;;  %v13996_v15 = vld [vmem:[%s23462_s1 + $0xf0] sm:$0xff] }
  0x2b   : > { %1523 = vst.msk [vmem:[#allocation2 + $0xb0] sm:$0xff] %vm1500_vm1, %v19154_v7  ;;  %1524 = vst.msk [vmem:[#allocation2 + $0xb8] sm:$0xff] %vm1500_vm1, %v19154_v7  ;;  %v18142_v14 = vpack.c.bf16 %v13995_v13, %v13994_v12  ;;  %v13997_v16 = vld [vmem:[%s23462_s1 + $0xf8] sm:$0xff]  ;;  %v19794_v21 = vld [vmem:[%s23464_s3] sm:$0x3f] }
  0x2c   : > { %16300 = vmatmul.mubr.msk.f32.gmra.mrb[2].mxu0 %vm324_vm0, %v19311_v23  ;;  %1525 = vst.msk [vmem:[#allocation2 + $0xc0] sm:$0xff] %vm1500_vm1, %v19154_v7  ;;  %1526 = vst.msk [vmem:[#allocation2 + $0xc8] sm:$0xff] %vm1500_vm1, %v19154_v7  ;;  %v18146_v17 = vpack.c.bf16 %v13997_v16, %v13996_v15 }
  0x2d   : > { %16302 = vmatprep.mubr.msk.f32.mxu0 %vm324_vm0, %v19314_v24  ;;  %18109 = vmatpush3.bf16.msra.mxu0 %v18106_v20  ;;  %1527 = vst.msk [vmem:[#allocation2 + $0xd0] sm:$0xff] %vm1500_vm1, %v19154_v7  ;;  %1528 = vst.msk [vmem:[#allocation2 + $0xd8] sm:$0xff] %vm1500_vm1, %v19154_v7  ;;  %v14032_v20 = vld [vmem:[%s23464_s3 + $0x8] sm:$0x3f] }
  0x2e   : > { %18111 = vmatprep.subr.bf16.mxu0 %v18110_v25  ;;  %1529 = vst.msk [vmem:[#allocation2 + $0xe0] sm:$0xff] %vm1500_vm1, %v19154_v7  ;;  %1530 = vst.msk [vmem:[#allocation2 + $0xe8] sm:$0xff] %vm1500_vm1, %v19154_v7 }
  0x2f   : > { %1531 = vst.msk [vmem:[#allocation2 + $0xf0] sm:$0xff] %vm1500_vm1, %v19154_v7  ;;  %1532 = vst.msk [vmem:[#allocation2 + $0xf8] sm:$0xff] %vm1500_vm1, %v19154_v7 }
  0x30   : > { %16303 = vmatmul.mubr.msk.f32.gmra.mrb[4].mxu0 %vm324_vm0, %v19327_v28  ;;  %1533 = vst.msk [vmem:[#allocation2 + $0x100] sm:$0xff] %vm1500_vm1, %v19154_v7  ;;  %1534 = vst.msk [vmem:[#allocation2 + $0x108] sm:$0xff] %vm1500_vm1, %v19154_v7 }
  0x31   : > { %16305 = vmatprep.mubr.msk.f32.mxu0 %vm324_vm0, %v19330_v29  ;;  %18113 = vmatpush3.bf16.msra.mxu0 %v18110_v25  ;;  %1535 = vst.msk [vmem:[#allocation2 + $0x110] sm:$0xff] %vm1500_vm1, %v19154_v7  ;;  %1536 = vst.msk [vmem:[#allocation2 + $0x118] sm:$0xff] %vm1500_vm1, %v19154_v7 }
  0x32   : > { %18115 = vmatprep.subr.bf16.mxu0 %v18114_v30  ;;  %1537 = vst.msk [vmem:[#allocation2 + $0x120] sm:$0xff] %vm1500_vm1, %v19154_v7  ;;  %1538 = vst.msk [vmem:[#allocation2 + $0x128] sm:$0xff] %vm1500_vm1, %v19154_v7 }
  0x33   : > { %1539 = vst.msk [vmem:[#allocation2 + $0x130] sm:$0xff] %vm1500_vm1, %v19154_v7  ;;  %1540 = vst.msk [vmem:[#allocation2 + $0x138] sm:$0xff] %vm1500_vm1, %v19154_v7 }
  0x34   : > { %16306 = vmatmul.mubr.msk.f32.gmra.mrb[6].mxu0 %vm324_vm0, %v19343_v33  ;;  %1541 = vst.msk [vmem:[#allocation2 + $0x140] sm:$0xff] %vm1500_vm1, %v19154_v7  ;;  %1542 = vst.msk [vmem:[#allocation2 + $0x148] sm:$0xff] %vm1500_vm1, %v19154_v7 }
  0x35   : > { %16308 = vmatprep.mubr.msk.f32.mxu0 %vm324_vm0, %v19346_v34  ;;  %18117 = vmatpush3.bf16.msra.mxu0 %v18114_v30  ;;  %1543 = vst.msk [vmem:[#allocation2 + $0x150] sm:$0xff] %vm1500_vm1, %v19154_v7  ;;  %1544 = vst.msk [vmem:[#allocation2 + $0x158] sm:$0xff] %vm1500_vm1, %v19154_v7 }
  0x36   : > { %18119 = vmatprep.subr.bf16.mxu0 %v18118_v35  ;;  %1545 = vst.msk [vmem:[#allocation2 + $0x160] sm:$0xff] %vm1500_vm1, %v19154_v7  ;;  %1546 = vst.msk [vmem:[#allocation2 + $0x168] sm:$0xff] %vm1500_vm1, %v19154_v7 }
  0x37   : > { %1547 = vst.msk [vmem:[#allocation2 + $0x170] sm:$0xff] %vm1500_vm1, %v19154_v7  ;;  %1548 = vst.msk [vmem:[#allocation2 + $0x178] sm:$0xff] %vm1500_vm1, %v19154_v7 }
  0x38   : > { %16309 = vmatmul.mubr.msk.f32.gmra.mrb[8].mxu0 %vm324_vm0, %v19353_v36  ;;  %1549 = vst.msk [vmem:[#allocation2 + $0x180] sm:$0xff] %vm1500_vm1, %v19154_v7  ;;  %1550 = vst.msk [vmem:[#allocation2 + $0x188] sm:$0xff] %vm1500_vm1, %v19154_v7 }
  0x39   : > { %16311 = vmatprep.mubr.msk.f32.mxu0 %vm324_vm0, %v19356_v37  ;;  %1551 = vst.msk [vmem:[#allocation2 + $0x190] sm:$0xff] %vm1500_vm1, %v19154_v7  ;;  %1552 = vst.msk [vmem:[#allocation2 + $0x198] sm:$0xff] %vm1500_vm1, %v19154_v7 }
  0x3a   : > { %1553 = vst.msk [vmem:[#allocation2 + $0x1a0] sm:$0xff] %vm1500_vm1, %v19154_v7  ;;  %1554 = vst.msk [vmem:[#allocation2 + $0x1a8] sm:$0xff] %vm1500_vm1, %v19154_v7 }
  0x3b   : > { %1555 = vst.msk [vmem:[#allocation2 + $0x1b0] sm:$0xff] %vm1500_vm1, %v19154_v7  ;;  %1556 = vst.msk [vmem:[#allocation2 + $0x1b8] sm:$0xff] %vm1500_vm1, %v19154_v7 }
  0x3c   : > { %16312 = vmatmul.mubr.msk.f32.gmra.mrb[10].mxu0 %vm324_vm0, %v19363_v38  ;;  %1557 = vst.msk [vmem:[#allocation2 + $0x1c0] sm:$0xff] %vm1500_vm1, %v19154_v7  ;;  %1558 = vst.msk [vmem:[#allocation2 + $0x1c8] sm:$0xff] %vm1500_vm1, %v19154_v7 }
  0x3d   : > { %16314 = vmatprep.mubr.msk.f32.mxu0 %vm324_vm0, %v19366_v39  ;;  %1559 = vst.msk [vmem:[#allocation2 + $0x1d0] sm:$0xff] %vm1500_vm1, %v19154_v7  ;;  %1560 = vst.msk [vmem:[#allocation2 + $0x1d8] sm:$0xff] %vm1500_vm1, %v19154_v7 }
  0x3e   : > { %1561 = vst.msk [vmem:[#allocation2 + $0x1e0] sm:$0xff] %vm1500_vm1, %v19154_v7  ;;  %1562 = vst.msk [vmem:[#allocation2 + $0x1e8] sm:$0xff] %vm1500_vm1, %v19154_v7 }
  0x3f   : > { %1563 = vst.msk [vmem:[#allocation2 + $0x1f0] sm:$0xff] %vm1500_vm1, %v19154_v7  ;;  %1564 = vst.msk [vmem:[#allocation2 + $0x1f8] sm:$0xff] %vm1500_vm1, %v19154_v7 }
  0x40   : > { %16315 = vmatmul.mubr.msk.f32.gmra.mrb[12].mxu0 %vm324_vm0, %v19373_v40  ;;  %1565 = vst.msk [vmem:[#allocation2 + $0x200] sm:$0xff] %vm1500_vm1, %v19154_v7  ;;  %1566 = vst.msk [vmem:[#allocation2 + $0x208] sm:$0xff] %vm1500_vm1, %v19154_v7 }
  0x41   : > { %16317 = vmatprep.mubr.msk.f32.mxu0 %vm324_vm0, %v19376_v41  ;;  %1567 = vst.msk [vmem:[#allocation2 + $0x210] sm:$0xff] %vm1500_vm1, %v19154_v7  ;;  %1568 = vst.msk [vmem:[#allocation2 + $0x218] sm:$0xff] %vm1500_vm1, %v19154_v7 }
  0x42   : > { %1569 = vst.msk [vmem:[#allocation2 + $0x220] sm:$0xff] %vm1500_vm1, %v19154_v7  ;;  %1570 = vst.msk [vmem:[#allocation2 + $0x228] sm:$0xff] %vm1500_vm1, %v19154_v7 }
  0x43   : > { %1571 = vst.msk [vmem:[#allocation2 + $0x230] sm:$0xff] %vm1500_vm1, %v19154_v7  ;;  %1572 = vst.msk [vmem:[#allocation2 + $0x238] sm:$0xff] %vm1500_vm1, %v19154_v7 }
  0x44   : > { %16318 = vmatmul.mubr.msk.f32.gmra.mrb[14].mxu0 %vm324_vm0, %v19383_v42 }
  0x45   : > { %16320 = vmatprep.mubr.msk.f32.mxu0 %vm324_vm0, %v19386_v43 }
  0x48   : > { %16321 = vmatmul.mubr.msk.f32.gmra.mrb[16].mxu0 %vm324_vm0, %v19393_v44 }
  0x49   : > { %16323 = vmatprep.mubr.msk.f32.mxu0 %vm324_vm0, %v19396_v45 }
  0x4c   : > { %16324 = vmatmul.mubr.msk.f32.gmra.mrb[18].mxu0 %vm324_vm0, %v19403_v46 }
  0x4d   : > { %16326 = vmatprep.mubr.msk.f32.mxu0 %vm324_vm0, %v19406_v47 }
  0x50   : > { %16327 = vmatmul.mubr.msk.f32.gmra.mrb[20].mxu0 %vm324_vm0, %v19413_v48 }
  0x51   : > { %16329 = vmatprep.mubr.msk.f32.mxu0 %vm324_vm0, %v19416_v49 }
  0x54   : > { %16330 = vmatmul.mubr.msk.f32.gmra.mrb[22].mxu0 %vm324_vm0, %v19423_v50 }
  0x55   : > { %16332 = vmatprep.mubr.msk.f32.mxu0 %vm324_vm0, %v19426_v51 }
  0x58   : > { %16333 = vmatmul.mubr.msk.f32.gmra.mrb[24].mxu0 %vm324_vm0, %v19433_v52 }
  0x59   : > { %16335 = vmatprep.mubr.msk.f32.mxu0 %vm324_vm0, %v19436_v53 }
  0x5c   : > { %16336 = vmatmul.mubr.msk.f32.gmra.mrb[26].mxu0 %vm324_vm0, %v19443_v54 }
  0x5d   : > { %16338 = vmatprep.mubr.msk.f32.mxu0 %vm324_vm0, %v19446_v55 }
  0x60   : > { %16339 = vmatmul.mubr.msk.f32.gmra.mrb[28].mxu0 %vm324_vm0, %v19453_v56 }
  0x61   : > { %16341 = vmatprep.mubr.msk.f32.mxu0 %vm324_vm0, %v19456_v57 }
  0x64   : > { %16342 = vmatmul.mubr.msk.f32.gmra.mrb[30].mxu0 %vm324_vm0, %v19463_v58 }
  0x65   : > { %16360 = vmatprep.mubr.msk.f32.mxu0 %vm324_vm0, %v19278_v11 }
  0x68   : > { %16361 = vmatmul.mubr.msk.f32.vlgmr.msra.gmra.mrb[32].mxu0 %vm324_vm0, %v19295_v18 }
  0x69   : > { %18121 = vmatpush3.bf16.msra.mxu0 %v18118_v35  ;;  %16363 = vmatprep.mubr.msk.f32.mxu0 %vm324_vm0, %v19298_v19 }
  0x6a   : > { %18123 = vmatprep.subr.bf16.mxu0 %v18122_v61 }
  0x6c   : > { %16364 = vmatmul.mubr.msk.f32.gmra.mrb[34].mxu0 %vm324_vm0, %v19311_v23 }
  0x6d   : > { %16366 = vmatprep.mubr.msk.f32.mxu0 %vm324_vm0, %v19314_v24  ;;  %18125 = vmatpush3.bf16.msra.mxu0 %v18122_v61 }
  0x6e   : > { %18127 = vmatprep.subr.bf16.mxu0 %v18126_v0 }
  0x70   : > { %16367 = vmatmul.mubr.msk.f32.gmra.mrb[36].mxu0 %vm324_vm0, %v19327_v28 }
  0x71   : > { %16369 = vmatprep.mubr.msk.f32.mxu0 %vm324_vm0, %v19330_v29  ;;  %18129 = vmatpush3.bf16.msra.mxu0 %v18126_v0 }
  0x72   : > { %18131 = vmatprep.subr.bf16.mxu0 %v18130_v3 }
  0x74   : > { %16370 = vmatmul.mubr.msk.f32.gmra.mrb[38].mxu0 %vm324_vm0, %v19343_v33 }
  0x75   : > { %16372 = vmatprep.mubr.msk.f32.mxu0 %vm324_vm0, %v19346_v34  ;;  %18133 = vmatpush3.bf16.msra.mxu0 %v18130_v3 }
  0x76   : > { %18135 = vmatprep.subr.bf16.mxu0 %v19505_v6 }
  0x78   : > { %16373 = vmatmul.mubr.msk.f32.gmra.mrb[40].mxu0 %vm324_vm0, %v19353_v36 }
  0x79   : > { %16375 = vmatprep.mubr.msk.f32.mxu0 %vm324_vm0, %v19356_v37 }
  0x7c   : > { %16376 = vmatmul.mubr.msk.f32.gmra.mrb[42].mxu0 %vm324_vm0, %v19363_v38 }
  0x7d   : > { %16378 = vmatprep.mubr.msk.f32.mxu0 %vm324_vm0, %v19366_v39 }
  0x80   : > { %16379 = vmatmul.mubr.msk.f32.gmra.mrb[44].mxu0 %vm324_vm0, %v19373_v40 }
  0x81   : > { %16381 = vmatprep.mubr.msk.f32.mxu0 %vm324_vm0, %v19376_v41 }
  0x84   : > { %16382 = vmatmul.mubr.msk.f32.gmra.mrb[46].mxu0 %vm324_vm0, %v19383_v42 }
  0x85   : > { %16384 = vmatprep.mubr.msk.f32.mxu0 %vm324_vm0, %v19386_v43 }
  0x88   : > { %16385 = vmatmul.mubr.msk.f32.gmra.mrb[48].mxu0 %vm324_vm0, %v19393_v44 }
  0x89   : > { %16387 = vmatprep.mubr.msk.f32.mxu0 %vm324_vm0, %v19396_v45 }
  0x8c   : > { %16388 = vmatmul.mubr.msk.f32.gmra.mrb[50].mxu0 %vm324_vm0, %v19403_v46 }
  0x8d   : > { %16390 = vmatprep.mubr.msk.f32.mxu0 %vm324_vm0, %v19406_v47 }
  0x90   : > { %16391 = vmatmul.mubr.msk.f32.gmra.mrb[52].mxu0 %vm324_vm0, %v19413_v48 }
  0x91   : > { %16393 = vmatprep.mubr.msk.f32.mxu0 %vm324_vm0, %v19416_v49 }
  0x94   : > { %16394 = vmatmul.mubr.msk.f32.gmra.mrb[54].mxu0 %vm324_vm0, %v19423_v50 }
  0x95   : > { %16396 = vmatprep.mubr.msk.f32.mxu0 %vm324_vm0, %v19426_v51 }
  0x98   : > { %16397 = vmatmul.mubr.msk.f32.gmra.mrb[56].mxu0 %vm324_vm0, %v19433_v52 }
  0x99   : > { %16399 = vmatprep.mubr.msk.f32.mxu0 %vm324_vm0, %v19436_v53 }
  0x9c   : > { %16400 = vmatmul.mubr.msk.f32.gmra.mrb[58].mxu0 %vm324_vm0, %v19443_v54 }
  0x9d   : > { %16402 = vmatprep.mubr.msk.f32.mxu0 %vm324_vm0, %v19446_v55 }
  0xa0   : > { %16403 = vmatmul.mubr.msk.f32.gmra.mrb[60].mxu0 %vm324_vm0, %v19453_v56 }
  0xa1   : > { %16405 = vmatprep.mubr.msk.f32.mxu0 %vm324_vm0, %v19456_v57 }
  0xa4   : > { %16406 = vmatmul.mubr.msk.f32.gmra.mrb[62].mxu0 %vm324_vm0, %v19463_v58 }
  0xa5   : > { %16424 = vmatprep.mubr.msk.f32.mxu0 %vm324_vm0, %v19278_v11 }
  0xa8   : > { %16425 = vmatmul.mubr.msk.f32.vlgmr.msra.gmra.mrb[64].mxu0 %vm324_vm0, %v19295_v18 }
  0xa9   : > { %18137 = vmatpush3.bf16.msra.mxu0 %v19505_v6  ;;  %16427 = vmatprep.mubr.msk.f32.mxu0 %vm324_vm0, %v19298_v19 }
  0xaa   : > { %18139 = vmatprep.subr.bf16.mxu0 %v18138_v10 }
  0xac   : > { %16428 = vmatmul.mubr.msk.f32.gmra.mrb[66].mxu0 %vm324_vm0, %v19311_v23 }
  0xad   : > { %16430 = vmatprep.mubr.msk.f32.mxu0 %vm324_vm0, %v19314_v24  ;;  %18141 = vmatpush3.bf16.msra.mxu0 %v18138_v10 }
  0xae   : > { %18143 = vmatprep.subr.bf16.mxu0 %v18142_v14 }
  0xb0   : > { %16431 = vmatmul.mubr.msk.f32.gmra.mrb[68].mxu0 %vm324_vm0, %v19327_v28 }
  0xb1   : > { %16433 = vmatprep.mubr.msk.f32.mxu0 %vm324_vm0, %v19330_v29  ;;  %18145 = vmatpush3.bf16.msra.mxu0 %v18142_v14 }
  0xb2   : > { %18147 = vmatprep.subr.bf16.mxu0 %v18146_v17 }
  0xb4   : > { %16434 = vmatmul.mubr.msk.f32.gmra.mrb[70].mxu0 %vm324_vm0, %v19343_v33 }
  0xb5   : > { %16436 = vmatprep.mubr.msk.f32.mxu0 %vm324_vm0, %v19346_v34  ;;  %18149 = vmatpush3.bf16.msra.mxu0 %v18146_v17 }
  0xb6   : > { %16536 = vmatprep.subr.msk.mxu0 %vm1769_vm2, %v14032_v20 }
  0xb8   : > { %16437 = vmatmul.mubr.msk.f32.gmra.mrb[72].mxu0 %vm324_vm0, %v19353_v36 }
  0xb9   : > { %16439 = vmatprep.mubr.msk.f32.mxu0 %vm324_vm0, %v19356_v37 }
  0xbc   : > { %16440 = vmatmul.mubr.msk.f32.gmra.mrb[74].mxu0 %vm324_vm0, %v19363_v38 }
  0xbd   : > { %16442 = vmatprep.mubr.msk.f32.mxu0 %vm324_vm0, %v19366_v39 }
  0xc0   : > { %16443 = vmatmul.mubr.msk.f32.gmra.mrb[76].mxu0 %vm324_vm0, %v19373_v40 }
  0xc1   : > { %16445 = vmatprep.mubr.msk.f32.mxu0 %vm324_vm0, %v19376_v41 }
  0xc4   : > { %16446 = vmatmul.mubr.msk.f32.gmra.mrb[78].mxu0 %vm324_vm0, %v19383_v42 }
  0xc5   : > { %16448 = vmatprep.mubr.msk.f32.mxu0 %vm324_vm0, %v19386_v43 }
  0xc8   : > { %16449 = vmatmul.mubr.msk.f32.gmra.mrb[80].mxu0 %vm324_vm0, %v19393_v44 }
  0xc9   : > { %16451 = vmatprep.mubr.msk.f32.mxu0 %vm324_vm0, %v19396_v45 }
  0xcc   : > { %16452 = vmatmul.mubr.msk.f32.gmra.mrb[82].mxu0 %vm324_vm0, %v19403_v46 }
  0xcd   : > { %16454 = vmatprep.mubr.msk.f32.mxu0 %vm324_vm0, %v19406_v47 }
  0xd0   : > { %16455 = vmatmul.mubr.msk.f32.gmra.mrb[84].mxu0 %vm324_vm0, %v19413_v48 }
  0xd1   : > { %16457 = vmatprep.mubr.msk.f32.mxu0 %vm324_vm0, %v19416_v49 }
  0xd4   : > { %16458 = vmatmul.mubr.msk.f32.gmra.mrb[86].mxu0 %vm324_vm0, %v19423_v50 }
  0xd5   : > { %16460 = vmatprep.mubr.msk.f32.mxu0 %vm324_vm0, %v19426_v51 }
  0xd8   : > { %16461 = vmatmul.mubr.msk.f32.gmra.mrb[88].mxu0 %vm324_vm0, %v19433_v52 }
  0xd9   : > { %16463 = vmatprep.mubr.msk.f32.mxu0 %vm324_vm0, %v19436_v53 }
  0xdc   : > { %16464 = vmatmul.mubr.msk.f32.gmra.mrb[90].mxu0 %vm324_vm0, %v19443_v54 }
  0xdd   : > { %16466 = vmatprep.mubr.msk.f32.mxu0 %vm324_vm0, %v19446_v55 }
  0xe0   : > { %16467 = vmatmul.mubr.msk.f32.gmra.mrb[92].mxu0 %vm324_vm0, %v19453_v56 }
  0xe1   : > { %16469 = vmatprep.mubr.msk.f32.mxu0 %vm324_vm0, %v19456_v57 }
  0xe4   : > { %16470 = vmatmul.mubr.msk.f32.gmra.mrb[94].mxu0 %vm324_vm0, %v19463_v58 }
  0xe5   : > { %16488 = vmatprep.mubr.msk.f32.mxu0 %vm324_vm0, %v19278_v11  ;;  %v19820_v11 = vld [vmem:[%s23463_s2] ss:$0 sm:$0xff] }
  0xe8   : > { %16489 = vmatmul.mubr.msk.f32.vlgmr.msra.gmra.mrb[96].mxu0 %vm324_vm0, %v19295_v18 }
  0xe9   : > { %16537 = vmatpush3.msk.msra.mxu0 %vm1769_vm2, %v14032_v20  ;;  %16491 = vmatprep.mubr.msk.f32.mxu0 %vm324_vm0, %v19298_v19 }
  0xea   : > { %16586 = vmatprep.subr.msk.mxu0 %vm1769_vm2, %v19794_v21 }
  0xec   : > { %16492 = vmatmul.mubr.msk.f32.gmra.mrb[98].mxu0 %vm324_vm0, %v19311_v23 }
  0xed   : > { %16494 = vmatprep.mubr.msk.f32.mxu0 %vm324_vm0, %v19314_v24 }
  0xf0   : > { %16495 = vmatmul.mubr.msk.f32.gmra.mrb[100].mxu0 %vm324_vm0, %v19327_v28 }
  0xf1   : > { %16497 = vmatprep.mubr.msk.f32.mxu0 %vm324_vm0, %v19330_v29 }
  0xf4   : > { %16498 = vmatmul.mubr.msk.f32.gmra.mrb[102].mxu0 %vm324_vm0, %v19343_v33 }
  0xf5   : > { %16500 = vmatprep.mubr.msk.f32.mxu0 %vm324_vm0, %v19346_v34 }
  0xf8   : > { %16501 = vmatmul.mubr.msk.f32.gmra.mrb[104].mxu0 %vm324_vm0, %v19353_v36 }
  0xf9   : > { %16503 = vmatprep.mubr.msk.f32.mxu0 %vm324_vm0, %v19356_v37 }
  0xfb   : > { %v16298_v18 = vpop.f32.mrb[0].mxu0 }
  0xfc   : > { %v493_v19 = vadd.f32 %v16298_v18, %v19820_v11  ;;  %v487_v22 = vpop.f32.mrb[1].mxu0  ;;  %16504 = vmatmul.mubr.msk.f32.gmra.mrb[106].mxu0 %vm324_vm0, %v19363_v38 }
  0xfd   : > { %v488_v23 = vadd.f32 %v19820_v11, %v487_v22  ;;  %16506 = vmatprep.mubr.msk.f32.mxu0 %vm324_vm0, %v19366_v39 }
  0xfe   : > { %v647_v24 = vmax.f32 %v493_v19, 0.0 }
  0xff   : > { %v646_v25 = vmax.f32 %v488_v23, 0.0  ;;  %v16301_v26 = vpop.f32.mrb[2].mxu0 }
 0x100   : > { %1575 = vst.msk [vmem:[#allocation2 + $0x30] sm:$0xff] %vm1500_vm1, %v647_v24  ;;  %v503_v27 = vadd.f32 %v16301_v26, %v19820_v11  ;;  %v497_v28 = vpop.f32.mrb[3].mxu0  ;;  %16507 = vmatmul.mubr.msk.f32.gmra.mrb[108].mxu0 %vm324_vm0, %v19373_v40 }
 0x101   : > { %1574 = vst.msk [vmem:[#allocation2 + $0x28] sm:$0xff] %vm1500_vm1, %v646_v25  ;;  %v498_v29 = vadd.f32 %v19820_v11, %v497_v28  ;;  %16509 = vmatprep.mubr.msk.f32.mxu0 %vm324_vm0, %v19376_v41  ;;  %v1640_v25 = vld [vmem:[#allocation2 + $0x10] sm:$0xff] }
 0x102   : > { %v649_v30 = vmax.f32 %v503_v27, 0.0  ;;  %v19912_v28 = vld [vmem:[%s23464_s3 + $0x10] sm:$0x3f] }
 0x103   : > { %v648_v31 = vmax.f32 %v498_v29, 0.0  ;;  %v16304_v32 = vpop.f32.mrb[4].mxu0 }
 0x104   : > { %1577 = vst.msk [vmem:[#allocation2 + $0x50] sm:$0xff] %vm1500_vm1, %v649_v30  ;;  %v513_v33 = vadd.f32 %v16304_v32, %v19820_v11  ;;  %v507_v34 = vpop.f32.mrb[5].mxu0  ;;  %16510 = vmatmul.mubr.msk.f32.gmra.mrb[110].mxu0 %vm324_vm0, %v19383_v42 }
 0x105   : > { %1576 = vst.msk [vmem:[#allocation2 + $0x48] sm:$0xff] %vm1500_vm1, %v648_v31  ;;  %v508_v35 = vadd.f32 %v19820_v11, %v507_v34  ;;  %16512 = vmatprep.mubr.msk.f32.mxu0 %vm324_vm0, %v19386_v43 }
 0x106   : > { %v651_v36 = vmax.f32 %v513_v33, 0.0 }
 0x107   : > { %v650_v37 = vmax.f32 %v508_v35, 0.0  ;;  %v16307_v38 = vpop.f32.mrb[6].mxu0  ;;  %v1642_v35 = vld [vmem:[#allocation2 + $0x30] sm:$0xff] }
 0x108   : > { %1579 = vst.msk [vmem:[#allocation2 + $0x70] sm:$0xff] %vm1500_vm1, %v651_v36  ;;  %v523_v39 = vadd.f32 %v16307_v38, %v19820_v11  ;;  %v517_v40 = vpop.f32.mrb[7].mxu0  ;;  %16513 = vmatmul.mubr.msk.f32.gmra.mrb[112].mxu0 %vm324_vm0, %v19393_v44  ;;  %v1641_v30 = vld [vmem:[#allocation2 + $0x28] sm:$0xff] }
 0x109   : > { %1578 = vst.msk [vmem:[#allocation2 + $0x68] sm:$0xff] %vm1500_vm1, %v650_v37  ;;  %v518_v41 = vadd.f32 %v19820_v11, %v517_v40  ;;  %16515 = vmatprep.mubr.msk.f32.mxu0 %vm324_vm0, %v19396_v45 }
 0x10a   : > { %v653_v42 = vmax.f32 %v523_v39, 0.0 }
 0x10b   : > { %v652_v43 = vmax.f32 %v518_v41, 0.0  ;;  %v16310_v59 = vpop.f32.mrb[8].mxu0 }
 0x10c   : > { %1581 = vst.msk [vmem:[#allocation2 + $0x90] sm:$0xff] %vm1500_vm1, %v653_v42  ;;  %v533_v60 = vadd.f32 %v16310_v59, %v19820_v11  ;;  %v527_v61 = vpop.f32.mrb[9].mxu0  ;;  %16516 = vmatmul.mubr.msk.f32.gmra.mrb[114].mxu0 %vm324_vm0, %v19403_v46  ;;  %v1643_v38 = vld [vmem:[#allocation2 + $0x48] sm:$0xff]  ;;  %v1644_v42 = vld [vmem:[#allocation2 + $0x50] sm:$0xff] }
 0x10d   : > { %1580 = vst.msk [vmem:[#allocation2 + $0x88] sm:$0xff] %vm1500_vm1, %v652_v43  ;;  %v528_v44 = vadd.f32 %v19820_v11, %v527_v61  ;;  %16518 = vmatprep.mubr.msk.f32.mxu0 %vm324_vm0, %v19406_v47 }
 0x10e   : > { %v655_v62 = vmax.f32 %v533_v60, 0.0 }
 0x10f   : > { %v654_v45 = vmax.f32 %v528_v44, 0.0  ;;  %v16313_v63 = vpop.f32.mrb[10].mxu0 }
 0x110   : > { %1583 = vst.msk [vmem:[#allocation2 + $0xb0] sm:$0xff] %vm1500_vm1, %v655_v62  ;;  %v543_v0 = vadd.f32 %v16313_v63, %v19820_v11  ;;  %v537_v1 = vpop.f32.mrb[11].mxu0  ;;  %16519 = vmatmul.mubr.msk.f32.gmra.mrb[116].mxu0 %vm324_vm0, %v19413_v48  ;;  %v1645_v60 = vld [vmem:[#allocation2 + $0x68] sm:$0xff]  ;;  %v1646_v63 = vld [vmem:[#allocation2 + $0x70] sm:$0xff] }
 0x111   : > { %1582 = vst.msk [vmem:[#allocation2 + $0xa8] sm:$0xff] %vm1500_vm1, %v654_v45  ;;  %v538_v46 = vadd.f32 %v19820_v11, %v537_v1  ;;  %16521 = vmatprep.mubr.msk.f32.mxu0 %vm324_vm0, %v19416_v49 }
 0x112   : > { %v657_v2 = vmax.f32 %v543_v0, 0.0 }
 0x113   : > { %v656_v47 = vmax.f32 %v538_v46, 0.0  ;;  %v16316_v3 = vpop.f32.mrb[12].mxu0 }
 0x114   : > { %1585 = vst.msk [vmem:[#allocation2 + $0xd0] sm:$0xff] %vm1500_vm1, %v657_v2  ;;  %v553_v4 = vadd.f32 %v16316_v3, %v19820_v11  ;;  %v547_v5 = vpop.f32.mrb[13].mxu0  ;;  %16522 = vmatmul.mubr.msk.f32.gmra.mrb[118].mxu0 %vm324_vm0, %v19423_v50  ;;  %v1647_v46 = vld [vmem:[#allocation2 + $0x88] sm:$0xff] }
 0x115   : > { %1584 = vst.msk [vmem:[#allocation2 + $0xc8] sm:$0xff] %vm1500_vm1, %v656_v47  ;;  %v548_v48 = vadd.f32 %v19820_v11, %v547_v5  ;;  %16524 = vmatprep.mubr.msk.f32.mxu0 %vm324_vm0, %v19426_v51  ;;  %v1648_v5 = vld [vmem:[#allocation2 + $0x90] sm:$0xff] }
 0x116   : > { %v659_v6 = vmax.f32 %v553_v4, 0.0 }
 0x117   : > { %v658_v49 = vmax.f32 %v548_v48, 0.0  ;;  %v16319_v7 = vpop.f32.mrb[14].mxu0 }
 0x118   : > { %1587 = vst.msk [vmem:[#allocation2 + $0xf0] sm:$0xff] %vm1500_vm1, %v659_v6  ;;  %v563_v8 = vadd.f32 %v16319_v7, %v19820_v11  ;;  %v557_v9 = vpop.f32.mrb[15].mxu0  ;;  %16525 = vmatmul.mubr.msk.f32.gmra.mrb[120].mxu0 %vm324_vm0, %v19433_v52 }
 0x119   : > { %1586 = vst.msk [vmem:[#allocation2 + $0xe8] sm:$0xff] %vm1500_vm1, %v658_v49  ;;  %v558_v50 = vadd.f32 %v19820_v11, %v557_v9  ;;  %16527 = vmatprep.mubr.msk.f32.mxu0 %vm324_vm0, %v19436_v53  ;;  %v1649_v49 = vld [vmem:[#allocation2 + $0xa8] sm:$0xff] }
 0x11a   : > { %v661_v10 = vmax.f32 %v563_v8, 0.0 }
 0x11b   : > { %v660_v51 = vmax.f32 %v558_v50, 0.0  ;;  %v16322_v12 = vpop.f32.mrb[16].mxu0 }
 0x11c   : > { %1589 = vst.msk [vmem:[#allocation2 + $0x110] sm:$0xff] %vm1500_vm1, %v661_v10  ;;  %v573_v13 = vadd.f32 %v16322_v12, %v19820_v11  ;;  %v567_v14 = vpop.f32.mrb[17].mxu0  ;;  %16528 = vmatmul.mubr.msk.f32.gmra.mrb[122].mxu0 %vm324_vm0, %v19443_v54  ;;  %v1650_v10 = vld [vmem:[#allocation2 + $0xb0] sm:$0xff]  ;;  %v1651_v12 = vld [vmem:[#allocation2 + $0xc8] sm:$0xff] }
 0x11d   : > { %1588 = vst.msk [vmem:[#allocation2 + $0x108] sm:$0xff] %vm1500_vm1, %v660_v51  ;;  %v568_v52 = vadd.f32 %v19820_v11, %v567_v14  ;;  %16530 = vmatprep.mubr.msk.f32.mxu0 %vm324_vm0, %v19446_v55  ;;  %v1639_v55 = vld [vmem:[#allocation2 + $0x8] sm:$0xff] }
 0x11e   : > { %v663_v15 = vmax.f32 %v573_v13, 0.0 }
 0x11f   : > { %v662_v53 = vmax.f32 %v568_v52, 0.0  ;;  %v16325_v16 = vpop.f32.mrb[18].mxu0 }
 0x120   : > { %1591 = vst.msk [vmem:[#allocation2 + $0x130] sm:$0xff] %vm1500_vm1, %v663_v15  ;;  %v583_v17 = vadd.f32 %v16325_v16, %v19820_v11  ;;  %v577_v20 = vpop.f32.mrb[19].mxu0  ;;  %16531 = vmatmul.mubr.msk.f32.gmra.mrb[124].mxu0 %vm324_vm0, %v19453_v56  ;;  %v1653_v52 = vld [vmem:[#allocation2 + $0xe8] sm:$0xff] }
 0x121   : > { %1590 = vst.msk [vmem:[#allocation2 + $0x128] sm:$0xff] %vm1500_vm1, %v662_v53  ;;  %v578_v54 = vadd.f32 %v19820_v11, %v577_v20  ;;  %16533 = vmatprep.mubr.msk.f32.mxu0 %vm324_vm0, %v19456_v57  ;;  %v1654_v53 = vld [vmem:[#allocation2 + $0xf0] sm:$0xff] }
 0x122   : > { %v665_v18 = vmax.f32 %v583_v17, 0.0 }
 0x123   : > { %v664_v19 = vmax.f32 %v578_v54, 0.0  ;;  %v16328_v22 = vpop.f32.mrb[20].mxu0  ;;  %v1656_v54 = vld [vmem:[#allocation2 + $0x110] sm:$0xff] }
 0x124   : > { %1593 = vst.msk [vmem:[#allocation2 + $0x150] sm:$0xff] %vm1500_vm1, %v665_v18  ;;  %v593_v23 = vadd.f32 %v16328_v22, %v19820_v11  ;;  %v587_v24 = vpop.f32.mrb[21].mxu0  ;;  %16534 = vmatmul.mubr.msk.f32.gmra.mrb[126].mxu0 %vm324_vm0, %v19463_v58  ;;  %v1655_v17 = vld [vmem:[#allocation2 + $0x108] sm:$0xff] }
 0x125   : > { %1592 = vst.msk [vmem:[#allocation2 + $0x148] sm:$0xff] %vm1500_vm1, %v664_v19  ;;  %v588_v56 = vadd.f32 %v19820_v11, %v587_v24  ;;  %16538 = vmatprep.mubr.msk.f32.mxu0 %vm1500_vm1, %v1639_v55 }
 0x126   : > { %v667_v57 = vmax.f32 %v593_v23, 0.0 }
 0x127   : > { %v666_v26 = vmax.f32 %v588_v56, 0.0  ;;  %v16331_v27 = vpop.f32.mrb[22].mxu0  ;;  %v1658_v22 = vld [vmem:[#allocation2 + $0x130] sm:$0xff] }
 0x128   : > { %1595 = vst.msk [vmem:[#allocation2 + $0x170] sm:$0xff] %vm1500_vm1, %v667_v57  ;;  %v603_v29 = vadd.f32 %v16331_v27, %v19820_v11  ;;  %v597_v58 = vpop.f32.mrb[23].mxu0  ;;  %16539 = vmatmul.mubr.msk.f32.vlgmr.msra.gmra.mrb[128].mxu0 %vm1500_vm1, %v1640_v25  ;;  %v1657_v55 = vld [vmem:[#allocation2 + $0x128] sm:$0xff] }
 0x129   : > { %1594 = vst.msk [vmem:[#allocation2 + $0x168] sm:$0xff] %vm1500_vm1, %v666_v26  ;;  %v598_v31 = vadd.f32 %v19820_v11, %v597_v58  ;;  %16541 = vmatprep.mubr.msk.f32.mxu0 %vm1500_vm1, %v1641_v30  ;;  %16587 = vmatpush3.msk.msra.mxu0 %vm1769_vm2, %v19794_v21 }
 0x12a   : > { %v669_v32 = vmax.f32 %v603_v29, 0.0  ;;  %16636 = vmatprep.subr.msk.mxu0 %vm1769_vm2, %v19912_v28 }
 0x12b   : > { %v668_v33 = vmax.f32 %v598_v31, 0.0  ;;  %v16334_v34 = vpop.f32.mrb[24].mxu0  ;;  %v1660_v25 = vld [vmem:[#allocation2 + $0x150] sm:$0xff] }
 0x12c   : > { %1597 = vst.msk [vmem:[#allocation2 + $0x190] sm:$0xff] %vm1500_vm1, %v669_v32  ;;  %v613_v36 = vadd.f32 %v16334_v34, %v19820_v11  ;;  %v607_v37 = vpop.f32.mrb[25].mxu0  ;;  %16542 = vmatmul.mubr.msk.f32.gmra.mrb[130].mxu0 %vm1500_vm1, %v1642_v35  ;;  %v1659_v24 = vld [vmem:[#allocation2 + $0x148] sm:$0xff] }
 0x12d   : > { %1596 = vst.msk [vmem:[#allocation2 + $0x188] sm:$0xff] %vm1500_vm1, %v668_v33  ;;  %v608_v39 = vadd.f32 %v19820_v11, %v607_v37  ;;  %16544 = vmatprep.mubr.msk.f32.mxu0 %vm1500_vm1, %v1643_v38 }
 0x12e   : > { %v671_v21 = vmax.f32 %v613_v36, 0.0 }
 0x12f   : > { %v670_v40 = vmax.f32 %v608_v39, 0.0  ;;  %v16337_v41 = vpop.f32.mrb[26].mxu0  ;;  %v19988_v29 = vld [vmem:[#allocation2 + $0x170] sm:$0xff] }
 0x130   : > { %1599 = vst.msk [vmem:[#allocation2 + $0x1b0] sm:$0xff] %vm1500_vm1, %v671_v21  ;;  %v623_v43 = vadd.f32 %v16337_v41, %v19820_v11  ;;  %v617_v59 = vpop.f32.mrb[27].mxu0  ;;  %16545 = vmatmul.mubr.msk.f32.gmra.mrb[132].mxu0 %vm1500_vm1, %v1644_v42  ;;  %v1661_v26 = vld [vmem:[#allocation2 + $0x168] sm:$0xff] }
 0x131   : > { %1598 = vst.msk [vmem:[#allocation2 + $0x1a8] sm:$0xff] %vm1500_vm1, %v670_v40  ;;  %v618_v61 = vadd.f32 %v19820_v11, %v617_v59  ;;  %16547 = vmatprep.mubr.msk.f32.mxu0 %vm1500_vm1, %v1645_v60  ;;  %v1606_v42 = vld [vmem:[#allocation2 + $0x7] sm:$0xff] }
 0x132   : > { %v673_v44 = vmax.f32 %v623_v43, 0.0 }
 0x133   : > { %v672_v62 = vmax.f32 %v618_v61, 0.0  ;;  %v16340_v45 = vpop.f32.mrb[28].mxu0  ;;  %v20000_v32 = vld [vmem:[#allocation2 + $0x190] sm:$0xff] }
 0x134   : > { %1601 = vst.msk [vmem:[#allocation2 + $0x1d0] sm:$0xff] %vm1500_vm1, %v673_v44  ;;  %v633_v0 = vadd.f32 %v16340_v45, %v19820_v11  ;;  %v627_v1 = vpop.f32.mrb[29].mxu0  ;;  %16548 = vmatmul.mubr.msk.f32.gmra.mrb[134].mxu0 %vm1500_vm1, %v1646_v63  ;;  %v19994_v30 = vld [vmem:[#allocation2 + $0x188] sm:$0xff] }
 0x135   : > { %1600 = vst.msk [vmem:[#allocation2 + $0x1c8] sm:$0xff] %vm1500_vm1, %v672_v62  ;;  %v628_v2 = vadd.f32 %v19820_v11, %v627_v1  ;;  %16550 = vmatprep.mubr.msk.f32.mxu0 %vm1500_vm1, %v1647_v46  ;;  %v1607_v61 = vld [vmem:[#allocation2 + $0xf] sm:$0xff]  ;;  %v20048_v62 = vld [vmem:[%s23464_s3 + $0x18] sm:$0x3f]  ;;  %v20053_v63 = vld [vmem:[#allocation2 + $0x27] sm:$0xff] }
 0x136   : > { %v675_v47 = vmax.f32 %v633_v0, 0.0  ;;  %v20063_v1 = vld [vmem:[#allocation2 + $0x2f] sm:$0xff] }
 0x137   : > { %v674_v3 = vmax.f32 %v628_v2, 0.0  ;;  %v16343_v4 = vpop.f32.mrb[30].mxu0  ;;  %v20012_v36 = vld [vmem:[#allocation2 + $0x1b0] sm:$0xff]  ;;  %v20069_v2 = vld [vmem:[#allocation2 + $0x47] sm:$0xff] }
 0x138   : > { %1603 = vst.msk [vmem:[#allocation2 + $0x1f0] sm:$0xff] %vm1500_vm1, %v675_v47  ;;  %v643_v48 = vadd.f32 %v16343_v4, %v19820_v11  ;;  %v637_v6 = vpop.f32.mrb[31].mxu0  ;;  %16551 = vmatmul.mubr.msk.f32.gmra.mrb[136].mxu0 %vm1500_vm1, %v1648_v5  ;;  %v20006_v34 = vld [vmem:[#allocation2 + $0x1a8] sm:$0xff] }
 0x139   : > { %1602 = vst.msk [vmem:[#allocation2 + $0x1e8] sm:$0xff] %vm1500_vm1, %v674_v3  ;;  %v638_v7 = vadd.f32 %v19820_v11, %v637_v6  ;;  %16553 = vmatprep.mubr.msk.f32.mxu0 %vm1500_vm1, %v1649_v49  ;;  %v1652_v11 = vld [vmem:[#allocation2 + $0xd0] sm:$0xff]  ;;  %v20081_v4 = vld [vmem:[#allocation2 + $0x67] sm:$0xff] }
 0x13a   : > { %v677_v8 = vmax.f32 %v643_v48, 0.0  ;;  %v20087_v48 = vld [vmem:[#allocation2 + $0x6f] sm:$0xff]  ;;  %v20093_v49 = vld [vmem:[#allocation2 + $0x87] sm:$0xff] }
 0x13b   : > { %v676_v9 = vmax.f32 %v638_v7, 0.0  ;;  %v19948_v50 = vpop.f32.mrb[32].mxu0  ;;  %v20024_v21 = vld [vmem:[#allocation2 + $0x1d0] sm:$0xff] }
 0x13c   : > { %23679 = vst [vmem:[#allocation6_spill] sm:$0xff] %v19948_v50  ;;  %1605 = vst.msk [vmem:[#allocation2 + $0x210] sm:$0xff] %vm1500_vm1, %v677_v8  ;;  %v19951_v51 = vpop.f32.mrb[33].mxu0  ;;  %16554 = vmatmul.mubr.msk.f32.gmra.mrb[138].mxu0 %vm1500_vm1, %v1650_v10  ;;  %v20018_v38 = vld [vmem:[#allocation2 + $0x1c8] sm:$0xff] }
 0x13d   : > { %23680 = vst [vmem:[#allocation7_spill] sm:$0xff] %v19951_v51  ;;  %1604 = vst.msk [vmem:[#allocation2 + $0x208] sm:$0xff] %vm1500_vm1, %v676_v9  ;;  %16556 = vmatprep.mubr.msk.f32.mxu0 %vm1500_vm1, %v1651_v12  ;;  %v20099_v8 = vld [vmem:[#allocation2 + $0x8f] sm:$0xff]  ;;  %v20105_v10 = vld [vmem:[#allocation2 + $0xa7] sm:$0xff] }
 0x13e   : > { %v20366_v51 = vld [vmem:[#allocation2 + $0x151] sm:$0xff] }
 0x13f   : > { %v19956_v13 = vpop.f32.mrb[34].mxu0  ;;  %v20036_v59 = vld [vmem:[#allocation2 + $0x1f0] sm:$0xff]  ;;  %23757 = vst [vmem:[#allocation84_spill] sm:$0xff] %v20366_v51 }
 0x140   : > { %23681 = vst [vmem:[#allocation8_spill] sm:$0xff] %v19956_v13  ;;  %v19958_v14 = vpop.f32.mrb[35].mxu0  ;;  %16557 = vmatmul.mubr.msk.f32.gmra.mrb[140].mxu0 %vm1500_vm1, %v1652_v11  ;;  %v20030_v41 = vld [vmem:[#allocation2 + $0x1e8] sm:$0xff] }
 0x141   : > { %23682 = vst [vmem:[#allocation9_spill] sm:$0xff] %v19958_v14  ;;  %16559 = vmatprep.mubr.msk.f32.mxu0 %vm1500_vm1, %v1653_v52  ;;  %v20111_v11 = vld [vmem:[#allocation2 + $0xaf] sm:$0xff] }
 0x142   : > { %v20354_v14 = vld [vmem:[#allocation2 + $0x131] sm:$0xff] }
 0x143   : > { %v19962_v15 = vpop.f32.mrb[36].mxu0  ;;  %23753 = vst [vmem:[#allocation80_spill] sm:$0xff] %v20354_v14 }
 0x144   : > { %23683 = vst [vmem:[#allocation10_spill] sm:$0xff] %v19962_v15  ;;  %v19964_v16 = vpop.f32.mrb[37].mxu0  ;;  %16560 = vmatmul.mubr.msk.f32.gmra.mrb[142].mxu0 %vm1500_vm1, %v1654_v53  ;;  %v20117_v53 = vld [vmem:[#allocation2 + $0xc7] sm:$0xff] }
 0x145   : > { %23684 = vst [vmem:[#allocation11_spill] sm:$0xff] %v19964_v16  ;;  %16562 = vmatprep.mubr.msk.f32.mxu0 %vm1500_vm1, %v1655_v17  ;;  %v20342_v16 = vld [vmem:[#allocation2 + $0x111] sm:$0xff] }
 0x147   : > { %v19968_v20 = vpop.f32.mrb[38].mxu0 }
 0x148   : > { %23685 = vst [vmem:[#allocation12_spill] sm:$0xff] %v19968_v20  ;;  %v19970_v18 = vpop.f32.mrb[39].mxu0  ;;  %16563 = vmatmul.mubr.msk.f32.gmra.mrb[144].mxu0 %vm1500_vm1, %v1656_v54  ;;  %v20123_v54 = vld [vmem:[#allocation2 + $0xcf] sm:$0xff] }
 0x149   : > { %23686 = vst [vmem:[#allocation13_spill] sm:$0xff] %v19970_v18  ;;  %16565 = vmatprep.mubr.msk.f32.mxu0 %vm1500_vm1, %v1657_v55  ;;  %v20330_v18 = vld [vmem:[#allocation2 + $0xf1] sm:$0xff] }
 0x14b   : > { %v19974_v19 = vpop.f32.mrb[40].mxu0 }
 0x14c   : > { %23687 = vst [vmem:[#allocation14_spill] sm:$0xff] %v19974_v19  ;;  %v19976_v23 = vpop.f32.mrb[41].mxu0  ;;  %16566 = vmatmul.mubr.msk.f32.gmra.mrb[146].mxu0 %vm1500_vm1, %v1658_v22  ;;  %v20129_v22 = vld [vmem:[#allocation2 + $0xe7] sm:$0xff] }
 0x14d   : > { %23688 = vst [vmem:[#allocation15_spill] sm:$0xff] %v19976_v23  ;;  %16568 = vmatprep.mubr.msk.f32.mxu0 %vm1500_vm1, %v1659_v24  ;;  %v20318_v23 = vld [vmem:[#allocation2 + $0xd1] sm:$0xff] }
 0x14f   : > { %v19980_v56 = vpop.f32.mrb[42].mxu0 }
 0x150   : > { %23689 = vst [vmem:[#allocation16_spill] sm:$0xff] %v19980_v56  ;;  %v19982_v57 = vpop.f32.mrb[43].mxu0  ;;  %16569 = vmatmul.mubr.msk.f32.gmra.mrb[148].mxu0 %vm1500_vm1, %v1660_v25  ;;  %v20135_v25 = vld [vmem:[#allocation2 + $0xef] sm:$0xff] }
 0x151   : > { %23690 = vst [vmem:[#allocation17_spill] sm:$0xff] %v19982_v57  ;;  %16571 = vmatprep.mubr.msk.f32.mxu0 %vm1500_vm1, %v1661_v26  ;;  %v20306_v57 = vld [vmem:[#allocation2 + $0xb1] sm:$0xff] }
 0x153   : > { %v19986_v27 = vpop.f32.mrb[44].mxu0 }
 0x154   : > { %23691 = vst [vmem:[#allocation18_spill] sm:$0xff] %v19986_v27  ;;  %v19990_v58 = vpop.f32.mrb[45].mxu0  ;;  %16572 = vmatmul.mubr.msk.f32.gmra.mrb[150].mxu0 %vm1500_vm1, %v19988_v29 }
 0x155   : > { %23692 = vst [vmem:[#allocation19_spill] sm:$0xff] %v19990_v58  ;;  %16574 = vmatprep.mubr.msk.f32.mxu0 %vm1500_vm1, %v19994_v30  ;;  %v20294_v58 = vld [vmem:[#allocation2 + $0x91] sm:$0xff] }
 0x157   : > { %v19998_v31 = vpop.f32.mrb[46].mxu0 }
 0x158   : > { %23693 = vst [vmem:[#allocation20_spill] sm:$0xff] %v19998_v31  ;;  %v20002_v33 = vpop.f32.mrb[47].mxu0  ;;  %16575 = vmatmul.mubr.msk.f32.gmra.mrb[152].mxu0 %vm1500_vm1, %v20000_v32 }
 0x159   : > { %23694 = vst [vmem:[#allocation21_spill] sm:$0xff] %v20002_v33  ;;  %16577 = vmatprep.mubr.msk.f32.mxu0 %vm1500_vm1, %v20006_v34  ;;  %v20282_v33 = vld [vmem:[#allocation2 + $0x71] sm:$0xff] }
 0x15b   : > { %v20010_v35 = vpop.f32.mrb[48].mxu0 }
 0x15c   : > { %23695 = vst [vmem:[#allocation22_spill] sm:$0xff] %v20010_v35  ;;  %v20014_v37 = vpop.f32.mrb[49].mxu0  ;;  %16578 = vmatmul.mubr.msk.f32.gmra.mrb[154].mxu0 %vm1500_vm1, %v20012_v36 }
 0x15d   : > { %23696 = vst [vmem:[#allocation23_spill] sm:$0xff] %v20014_v37  ;;  %16580 = vmatprep.mubr.msk.f32.mxu0 %vm1500_vm1, %v20018_v38 }
 0x15f   : > { %v20022_v39 = vpop.f32.mrb[50].mxu0 }
 0x160   : > { %23697 = vst [vmem:[#allocation24_spill] sm:$0xff] %v20022_v39  ;;  %v20026_v40 = vpop.f32.mrb[51].mxu0  ;;  %16581 = vmatmul.mubr.msk.f32.gmra.mrb[156].mxu0 %vm1500_vm1, %v20024_v21  ;;  %v20243_v39 = vld [vmem:[%s23464_s3 + $0x20] sm:$0x3f] }
 0x161   : > { %23698 = vst [vmem:[#allocation25_spill] sm:$0xff] %v20026_v40  ;;  %16583 = vmatprep.mubr.msk.f32.mxu0 %vm1500_vm1, %v20030_v41 }
 0x163   : > { %v20034_v43 = vpop.f32.mrb[52].mxu0 }
 0x164   : > { %23699 = vst [vmem:[#allocation26_spill] sm:$0xff] %v20034_v43  ;;  %v20038_v60 = vpop.f32.mrb[53].mxu0  ;;  %16584 = vmatmul.mubr.msk.f32.gmra.mrb[158].mxu0 %vm1500_vm1, %v20036_v59  ;;  %v20231_v43 = vld [vmem:[#allocation2 + $0x1ef] sm:$0xff] }
 0x165   : > { %23700 = vst [vmem:[#allocation27_spill] sm:$0xff] %v20038_v60  ;;  %16588 = vmatprep.mubr.msk.f32.mxu0 %vm1500_vm1, %v1606_v42  ;;  %v20141_v42 = vld [vmem:[#allocation2 + $0x107] sm:$0xff] }
 0x167   : > { %v20043_v44 = vpop.f32.mrb[54].mxu0 }
 0x168   : > { %23701 = vst [vmem:[#allocation28_spill] sm:$0xff] %v20043_v44  ;;  %v20050_v45 = vpop.f32.mrb[55].mxu0  ;;  %16589 = vmatmul.mubr.msk.f32.vlgmr.msra.gmra.mrb[128].mxu0 %vm1500_vm1, %v1607_v61 }
 0x169   : > { %23702 = vst [vmem:[#allocation29_spill] sm:$0xff] %v20050_v45  ;;  %16591 = vmatprep.mubr.msk.f32.mxu0 %vm1500_vm1, %v20053_v63  ;;  %16637 = vmatpush3.msk.msra.mxu0 %vm1769_vm2, %v19912_v28  ;;  %v20075_v28 = vld [vmem:[#allocation2 + $0x4f] sm:$0xff] }
 0x16a   : > { %16686 = vmatprep.subr.msk.mxu0 %vm1769_vm2, %v20048_v62  ;;  %v20219_v45 = vld [vmem:[#allocation2 + $0x1cf] sm:$0xff] }
 0x16b   : > { %v20061_v0 = vpop.f32.mrb[56].mxu0 }
 0x16c   : > { %23703 = vst [vmem:[#allocation30_spill] sm:$0xff] %v20061_v0  ;;  %v20065_v46 = vpop.f32.mrb[57].mxu0  ;;  %16592 = vmatmul.mubr.msk.f32.gmra.mrb[130].mxu0 %vm1500_vm1, %v20063_v1 }
 0x16d   : > { %23704 = vst [vmem:[#allocation31_spill] sm:$0xff] %v20065_v46  ;;  %16594 = vmatprep.mubr.msk.f32.mxu0 %vm1500_vm1, %v20069_v2  ;;  %v20207_v46 = vld [vmem:[#allocation2 + $0x1af] sm:$0xff] }
 0x16f   : > { %v20073_v47 = vpop.f32.mrb[58].mxu0 }
 0x170   : > { %23705 = vst [vmem:[#allocation32_spill] sm:$0xff] %v20073_v47  ;;  %v20077_v3 = vpop.f32.mrb[59].mxu0  ;;  %16595 = vmatmul.mubr.msk.f32.gmra.mrb[132].mxu0 %vm1500_vm1, %v20075_v28 }
 0x171   : > { %23706 = vst [vmem:[#allocation33_spill] sm:$0xff] %v20077_v3  ;;  %16597 = vmatprep.mubr.msk.f32.mxu0 %vm1500_vm1, %v20081_v4  ;;  %v20195_v3 = vld [vmem:[#allocation2 + $0x18f] sm:$0xff] }
 0x173   : > { %v20085_v5 = vpop.f32.mrb[60].mxu0 }
 0x174   : > { %23707 = vst [vmem:[#allocation34_spill] sm:$0xff] %v20085_v5  ;;  %v20089_v6 = vpop.f32.mrb[61].mxu0  ;;  %16598 = vmatmul.mubr.msk.f32.gmra.mrb[134].mxu0 %vm1500_vm1, %v20087_v48 }
 0x175   : > { %23708 = vst [vmem:[#allocation35_spill] sm:$0xff] %v20089_v6  ;;  %16600 = vmatprep.mubr.msk.f32.mxu0 %vm1500_vm1, %v20093_v49  ;;  %v20183_v6 = vld [vmem:[#allocation2 + $0x16f] sm:$0xff] }
 0x177   : > { %v20097_v7 = vpop.f32.mrb[62].mxu0 }
 0x178   : > { %23709 = vst [vmem:[#allocation36_spill] sm:$0xff] %v20097_v7  ;;  %v20101_v9 = vpop.f32.mrb[63].mxu0  ;;  %16601 = vmatmul.mubr.msk.f32.gmra.mrb[136].mxu0 %vm1500_vm1, %v20099_v8 }
 0x179   : > { %23710 = vst [vmem:[#allocation37_spill] sm:$0xff] %v20101_v9  ;;  %16603 = vmatprep.mubr.msk.f32.mxu0 %vm1500_vm1, %v20105_v10  ;;  %v20171_v9 = vld [vmem:[#allocation2 + $0x14f] sm:$0xff] }
 0x17b   : > { %v20109_v12 = vpop.f32.mrb[64].mxu0 }
 0x17c   : > { %23711 = vst [vmem:[#allocation38_spill] sm:$0xff] %v20109_v12  ;;  %v20113_v52 = vpop.f32.mrb[65].mxu0  ;;  %16604 = vmatmul.mubr.msk.f32.gmra.mrb[138].mxu0 %vm1500_vm1, %v20111_v11 }
 0x17d   : > { %23712 = vst [vmem:[#allocation39_spill] sm:$0xff] %v20113_v52  ;;  %16606 = vmatprep.mubr.msk.f32.mxu0 %vm1500_vm1, %v20117_v53  ;;  %v20159_v52 = vld [vmem:[#allocation2 + $0x12f] sm:$0xff] }
 0x17f   : > { %v20121_v17 = vpop.f32.mrb[66].mxu0 }
 0x180   : > { %23713 = vst [vmem:[#allocation40_spill] sm:$0xff] %v20121_v17  ;;  %v20125_v55 = vpop.f32.mrb[67].mxu0  ;;  %16607 = vmatmul.mubr.msk.f32.gmra.mrb[140].mxu0 %vm1500_vm1, %v20123_v54 }
 0x181   : > { %23714 = vst [vmem:[#allocation41_spill] sm:$0xff] %v20125_v55  ;;  %16609 = vmatprep.mubr.msk.f32.mxu0 %vm1500_vm1, %v20129_v22  ;;  %v20147_v55 = vld [vmem:[#allocation2 + $0x10f] sm:$0xff] }
 0x183   : > { %v20133_v24 = vpop.f32.mrb[68].mxu0 }
 0x184   : > { %23715 = vst [vmem:[#allocation42_spill] sm:$0xff] %v20133_v24  ;;  %v20137_v26 = vpop.f32.mrb[69].mxu0  ;;  %16610 = vmatmul.mubr.msk.f32.gmra.mrb[142].mxu0 %vm1500_vm1, %v20135_v25  ;;  %v20153_v24 = vld [vmem:[#allocation2 + $0x127] sm:$0xff] }
 0x185   : > { %23716 = vst [vmem:[#allocation43_spill] sm:$0xff] %v20137_v26  ;;  %16612 = vmatprep.mubr.msk.f32.mxu0 %vm1500_vm1, %v20141_v42 }
 0x187   : > { %v20145_v61 = vpop.f32.mrb[70].mxu0 }
 0x188   : > { %23717 = vst [vmem:[#allocation44_spill] sm:$0xff] %v20145_v61  ;;  %v20149_v17 = vpop.f32.mrb[71].mxu0  ;;  %16613 = vmatmul.mubr.msk.f32.gmra.mrb[144].mxu0 %vm1500_vm1, %v20147_v55  ;;  %v20165_v61 = vld [vmem:[#allocation2 + $0x147] sm:$0xff] }
 0x189   : > { %23718 = vst [vmem:[#allocation45_spill] sm:$0xff] %v20149_v17  ;;  %16615 = vmatprep.mubr.msk.f32.mxu0 %vm1500_vm1, %v20153_v24 }
 0x18b   : > { %v20157_v26 = vpop.f32.mrb[72].mxu0 }
 0x18c   : > { %23719 = vst [vmem:[#allocation46_spill] sm:$0xff] %v20157_v26  ;;  %v20161_v12 = vpop.f32.mrb[73].mxu0  ;;  %16616 = vmatmul.mubr.msk.f32.gmra.mrb[146].mxu0 %vm1500_vm1, %v20159_v52  ;;  %v20177_v26 = vld [vmem:[#allocation2 + $0x167] sm:$0xff] }
 0x18d   : > { %23720 = vst [vmem:[#allocation47_spill] sm:$0xff] %v20161_v12  ;;  %16618 = vmatprep.mubr.msk.f32.mxu0 %vm1500_vm1, %v20165_v61 }
 0x18f   : > { %v20169_v17 = vpop.f32.mrb[74].mxu0 }
 0x190   : > { %23721 = vst [vmem:[#allocation48_spill] sm:$0xff] %v20169_v17  ;;  %v20173_v7 = vpop.f32.mrb[75].mxu0  ;;  %16619 = vmatmul.mubr.msk.f32.gmra.mrb[148].mxu0 %vm1500_vm1, %v20171_v9  ;;  %v20189_v17 = vld [vmem:[#allocation2 + $0x187] sm:$0xff] }
 0x191   : > { %23722 = vst [vmem:[#allocation49_spill] sm:$0xff] %v20173_v7  ;;  %16621 = vmatprep.mubr.msk.f32.mxu0 %vm1500_vm1, %v20177_v26 }
 0x193   : > { %v20181_v12 = vpop.f32.mrb[76].mxu0 }
 0x194   : > { %23723 = vst [vmem:[#allocation50_spill] sm:$0xff] %v20181_v12  ;;  %v20185_v5 = vpop.f32.mrb[77].mxu0  ;;  %16622 = vmatmul.mubr.msk.f32.gmra.mrb[150].mxu0 %vm1500_vm1, %v20183_v6  ;;  %v20201_v12 = vld [vmem:[#allocation2 + $0x1a7] sm:$0xff] }
 0x195   : > { %23724 = vst [vmem:[#allocation51_spill] sm:$0xff] %v20185_v5  ;;  %16624 = vmatprep.mubr.msk.f32.mxu0 %vm1500_vm1, %v20189_v17 }
 0x197   : > { %v20193_v7 = vpop.f32.mrb[78].mxu0 }
 0x198   : > { %23725 = vst [vmem:[#allocation52_spill] sm:$0xff] %v20193_v7  ;;  %v20197_v47 = vpop.f32.mrb[79].mxu0  ;;  %16625 = vmatmul.mubr.msk.f32.gmra.mrb[152].mxu0 %vm1500_vm1, %v20195_v3  ;;  %v20213_v7 = vld [vmem:[#allocation2 + $0x1c7] sm:$0xff] }
 0x199   : > { %23726 = vst [vmem:[#allocation53_spill] sm:$0xff] %v20197_v47  ;;  %16627 = vmatprep.mubr.msk.f32.mxu0 %vm1500_vm1, %v20201_v12 }
 0x19b   : > { %v20205_v5 = vpop.f32.mrb[80].mxu0 }
 0x19c   : > { %23727 = vst [vmem:[#allocation54_spill] sm:$0xff] %v20205_v5  ;;  %v20209_v0 = vpop.f32.mrb[81].mxu0  ;;  %16628 = vmatmul.mubr.msk.f32.gmra.mrb[154].mxu0 %vm1500_vm1, %v20207_v46  ;;  %v20225_v5 = vld [vmem:[#allocation2 + $0x1e7] sm:$0xff] }
 0x19d   : > { %23728 = vst [vmem:[#allocation55_spill] sm:$0xff] %v20209_v0  ;;  %16630 = vmatprep.mubr.msk.f32.mxu0 %vm1500_vm1, %v20213_v7  ;;  %v2322_v0 = vld [vmem:[#allocation2 + $0x9] sm:$0xff] }
 0x19f   : > { %v20217_v47 = vpop.f32.mrb[82].mxu0 }
 0x1a0   : > { %23729 = vst [vmem:[#allocation56_spill] sm:$0xff] %v20217_v47  ;;  %v20221_v44 = vpop.f32.mrb[83].mxu0  ;;  %16631 = vmatmul.mubr.msk.f32.gmra.mrb[156].mxu0 %vm1500_vm1, %v20219_v45 }
 0x1a1   : > { %23730 = vst [vmem:[#allocation57_spill] sm:$0xff] %v20221_v44  ;;  %16633 = vmatprep.mubr.msk.f32.mxu0 %vm1500_vm1, %v20225_v5  ;;  %v2323_v44 = vld [vmem:[#allocation2 + $0x11] sm:$0xff] }
 0x1a3   : > { %v20229_v60 = vpop.f32.mrb[84].mxu0 }
 0x1a4   : > { %23731 = vst [vmem:[#allocation58_spill] sm:$0xff] %v20229_v60  ;;  %v20233_v40 = vpop.f32.mrb[85].mxu0  ;;  %16634 = vmatmul.mubr.msk.f32.gmra.mrb[158].mxu0 %vm1500_vm1, %v20231_v43  ;;  %v20248_v60 = vld [vmem:[#allocation2 + $0x29] sm:$0xff] }
 0x1a5   : > { %23732 = vst [vmem:[#allocation59_spill] sm:$0xff] %v20233_v40  ;;  %16638 = vmatprep.mubr.msk.f32.mxu0 %vm1500_vm1, %v2322_v0 }
 0x1a7   : > { %v20238_v47 = vpop.f32.mrb[86].mxu0 }
 0x1a8   : > { %23733 = vst [vmem:[#allocation60_spill] sm:$0xff] %v20238_v47  ;;  %v20245_v37 = vpop.f32.mrb[87].mxu0  ;;  %16639 = vmatmul.mubr.msk.f32.vlgmr.msra.gmra.mrb[128].mxu0 %vm1500_vm1, %v2323_v44  ;;  %v20258_v47 = vld [vmem:[#allocation2 + $0x31] sm:$0xff]  ;;  %v20264_v44 = vld [vmem:[#allocation2 + $0x49] sm:$0xff] }
 0x1a9   : > { %23734 = vst [vmem:[#allocation61_spill] sm:$0xff] %v20245_v37  ;;  %16641 = vmatprep.mubr.msk.f32.mxu0 %vm1500_vm1, %v20248_v60  ;;  %16687 = vmatpush3.msk.msra.mxu0 %vm1769_vm2, %v20048_v62  ;;  %v20270_v62 = vld [vmem:[#allocation2 + $0x51] sm:$0xff] }
 0x1aa   : > { %16736 = vmatprep.subr.msk.mxu0 %vm1769_vm2, %v20243_v39 }
 0x1ab   : > { %v20256_v0 = vpop.f32.mrb[88].mxu0 }
 0x1ac   : > { %23735 = vst [vmem:[#allocation62_spill] sm:$0xff] %v20256_v0  ;;  %v20260_v40 = vpop.f32.mrb[89].mxu0  ;;  %16642 = vmatmul.mubr.msk.f32.gmra.mrb[130].mxu0 %vm1500_vm1, %v20258_v47  ;;  %v20276_v0 = vld [vmem:[#allocation2 + $0x69] sm:$0xff] }
 0x1ad   : > { %23736 = vst [vmem:[#allocation63_spill] sm:$0xff] %v20260_v40  ;;  %16644 = vmatprep.mubr.msk.f32.mxu0 %vm1500_vm1, %v20264_v44 }
 0x1af   : > { %v20268_v37 = vpop.f32.mrb[90].mxu0 }
 0x1b0   : > { %23737 = vst [vmem:[#allocation64_spill] sm:$0xff] %v20268_v37  ;;  %v20272_v35 = vpop.f32.mrb[91].mxu0  ;;  %16645 = vmatmul.mubr.msk.f32.gmra.mrb[132].mxu0 %vm1500_vm1, %v20270_v62  ;;  %v20288_v37 = vld [vmem:[#allocation2 + $0x89] sm:$0xff] }
 0x1b1   : > { %23738 = vst [vmem:[#allocation65_spill] sm:$0xff] %v20272_v35  ;;  %16647 = vmatprep.mubr.msk.f32.mxu0 %vm1500_vm1, %v20276_v0 }
 0x1b3   : > { %v20280_v40 = vpop.f32.mrb[92].mxu0 }
 0x1b4   : > { %23739 = vst [vmem:[#allocation66_spill] sm:$0xff] %v20280_v40  ;;  %v20284_v31 = vpop.f32.mrb[93].mxu0  ;;  %16648 = vmatmul.mubr.msk.f32.gmra.mrb[134].mxu0 %vm1500_vm1, %v20282_v33  ;;  %v20300_v40 = vld [vmem:[#allocation2 + $0xa9] sm:$0xff] }
 0x1b5   : > { %23740 = vst [vmem:[#allocation67_spill] sm:$0xff] %v20284_v31  ;;  %16650 = vmatprep.mubr.msk.f32.mxu0 %vm1500_vm1, %v20288_v37 }
 0x1b7   : > { %v20292_v35 = vpop.f32.mrb[94].mxu0 }
 0x1b8   : > { %23741 = vst [vmem:[#allocation68_spill] sm:$0xff] %v20292_v35  ;;  %v20296_v27 = vpop.f32.mrb[95].mxu0  ;;  %16651 = vmatmul.mubr.msk.f32.gmra.mrb[136].mxu0 %vm1500_vm1, %v20294_v58  ;;  %v20312_v35 = vld [vmem:[#allocation2 + $0xc9] sm:$0xff] }
 0x1b9   : > { %23742 = vst [vmem:[#allocation69_spill] sm:$0xff] %v20296_v27  ;;  %16653 = vmatprep.mubr.msk.f32.mxu0 %vm1500_vm1, %v20300_v40 }
 0x1bb   : > { %v20304_v31 = vpop.f32.mrb[96].mxu0 }
 0x1bc   : > { %23743 = vst [vmem:[#allocation70_spill] sm:$0xff] %v20304_v31  ;;  %v20308_v56 = vpop.f32.mrb[97].mxu0  ;;  %16654 = vmatmul.mubr.msk.f32.gmra.mrb[138].mxu0 %vm1500_vm1, %v20306_v57  ;;  %v20324_v31 = vld [vmem:[#allocation2 + $0xe9] sm:$0xff] }
 0x1bd   : > { %23744 = vst [vmem:[#allocation71_spill] sm:$0xff] %v20308_v56  ;;  %16656 = vmatprep.mubr.msk.f32.mxu0 %vm1500_vm1, %v20312_v35 }
 0x1bf   : > { %v20316_v27 = vpop.f32.mrb[98].mxu0 }
 0x1c0   : > { %23745 = vst [vmem:[#allocation72_spill] sm:$0xff] %v20316_v27  ;;  %v20320_v19 = vpop.f32.mrb[99].mxu0  ;;  %16657 = vmatmul.mubr.msk.f32.gmra.mrb[140].mxu0 %vm1500_vm1, %v20318_v23  ;;  %v20336_v27 = vld [vmem:[#allocation2 + $0x109] sm:$0xff] }
 0x1c1   : > { %23746 = vst [vmem:[#allocation73_spill] sm:$0xff] %v20320_v19  ;;  %16659 = vmatprep.mubr.msk.f32.mxu0 %vm1500_vm1, %v20324_v31 }
 0x1c3   : > { %v20328_v56 = vpop.f32.mrb[100].mxu0 }
 0x1c4   : > { %23747 = vst [vmem:[#allocation74_spill] sm:$0xff] %v20328_v56  ;;  %v20332_v20 = vpop.f32.mrb[101].mxu0  ;;  %16660 = vmatmul.mubr.msk.f32.gmra.mrb[142].mxu0 %vm1500_vm1, %v20330_v18  ;;  %v20348_v56 = vld [vmem:[#allocation2 + $0x129] sm:$0xff] }
 0x1c5   : > { %23748 = vst [vmem:[#allocation75_spill] sm:$0xff] %v20332_v20  ;;  %16662 = vmatprep.mubr.msk.f32.mxu0 %vm1500_vm1, %v20336_v27  ;;  %23751 = vst [vmem:[#allocation78_spill] sm:$0xff] %v20348_v56 }
 0x1c7   : > { %v20340_v19 = vpop.f32.mrb[102].mxu0 }
 0x1c8   : > { %23749 = vst [vmem:[#allocation76_spill] sm:$0xff] %v20340_v19  ;;  %v20344_v15 = vpop.f32.mrb[103].mxu0  ;;  %16663 = vmatmul.mubr.msk.f32.gmra.mrb[144].mxu0 %vm1500_vm1, %v20342_v16  ;;  %v20360_v19 = vld [vmem:[#allocation2 + $0x149] sm:$0xff] }
 0x1c9   : > { %23750 = vst [vmem:[#allocation77_spill] sm:$0xff] %v20344_v15  ;;  %16665 = vmatprep.mubr.msk.f32.mxu0 %vm1500_vm1, %v20348_v56  ;;  %23755 = vst [vmem:[#allocation82_spill] sm:$0xff] %v20360_v19 }
 0x1cb   : > { %v20352_v20 = vpop.f32.mrb[104].mxu0 }
 0x1cc   : > { %23752 = vst [vmem:[#allocation79_spill] sm:$0xff] %v20352_v20  ;;  %v20356_v13 = vpop.f32.mrb[105].mxu0  ;;  %16666 = vmatmul.mubr.msk.f32.gmra.mrb[146].mxu0 %vm1500_vm1, %v20354_v14  ;;  %v20372_v20 = vld [vmem:[#allocation2 + $0x169] sm:$0xff]  ;;  %v20378_v14 = vld [vmem:[#allocation2 + $0x171] sm:$0xff] }
 0x1cd   : > { %23754 = vst [vmem:[#allocation81_spill] sm:$0xff] %v20356_v13  ;;  %16668 = vmatprep.mubr.msk.f32.mxu0 %vm1500_vm1, %v20360_v19  ;;  %23759 = vst [vmem:[#allocation86_spill] sm:$0xff] %v20372_v20 }
 0x1ce   : > { %23761 = vst [vmem:[#allocation88_spill] sm:$0xff] %v20378_v14 }
 0x1cf   : > { %v20364_v15 = vpop.f32.mrb[106].mxu0 }
 0x1d0   : > { %23756 = vst [vmem:[#allocation83_spill] sm:$0xff] %v20364_v15  ;;  %v20368_v50 = vpop.f32.mrb[107].mxu0  ;;  %16669 = vmatmul.mubr.msk.f32.gmra.mrb[148].mxu0 %vm1500_vm1, %v20366_v51  ;;  %v20384_v15 = vld [vmem:[#allocation2 + $0x189] sm:$0xff]  ;;  %v20390_v51 = vld [vmem:[#allocation2 + $0x191] sm:$0xff] }
 0x1d1   : > { %23758 = vst [vmem:[#allocation85_spill] sm:$0xff] %v20368_v50  ;;  %16671 = vmatprep.mubr.msk.f32.mxu0 %vm1500_vm1, %v20372_v20  ;;  %23763 = vst [vmem:[#allocation90_spill] sm:$0xff] %v20384_v15 }
 0x1d2   : > { %23765 = vst [vmem:[#allocation92_spill] sm:$0xff] %v20390_v51 }
 0x1d3   : > { %v20376_v13 = vpop.f32.mrb[108].mxu0 }
 0x1d4   : > { %23760 = vst [vmem:[#allocation87_spill] sm:$0xff] %v20376_v13  ;;  %v20380_v56 = vpop.f32.mrb[109].mxu0  ;;  %16672 = vmatmul.mubr.msk.f32.gmra.mrb[150].mxu0 %vm1500_vm1, %v20378_v14  ;;  %v20396_v13 = vld [vmem:[#allocation2 + $0x1a9] sm:$0xff]  ;;  %v20402_v14 = vld [vmem:[#allocation2 + $0x1b1] sm:$0xff] }
 0x1d5   : > { %23762 = vst [vmem:[#allocation89_spill] sm:$0xff] %v20380_v56  ;;  %16674 = vmatprep.mubr.msk.f32.mxu0 %vm1500_vm1, %v20384_v15  ;;  %23767 = vst [vmem:[#allocation94_spill] sm:$0xff] %v20396_v13 }
 0x1d6   : > { %23769 = vst [vmem:[#allocation96_spill] sm:$0xff] %v20402_v14 }
 0x1d7   : > { %v20388_v50 = vpop.f32.mrb[110].mxu0 }
 0x1d8   : > { %23764 = vst [vmem:[#allocation91_spill] sm:$0xff] %v20388_v50  ;;  %v20392_v19 = vpop.f32.mrb[111].mxu0  ;;  %16675 = vmatmul.mubr.msk.f32.gmra.mrb[152].mxu0 %vm1500_vm1, %v20390_v51  ;;  %v20408_v50 = vld [vmem:[#allocation2 + $0x1c9] sm:$0xff]  ;;  %v20414_v51 = vld [vmem:[#allocation2 + $0x1d1] sm:$0xff] }
 0x1d9   : > { %23766 = vst [vmem:[#allocation93_spill] sm:$0xff] %v20392_v19  ;;  %16677 = vmatprep.mubr.msk.f32.mxu0 %vm1500_vm1, %v20396_v13  ;;  %23771 = vst [vmem:[#allocation98_spill] sm:$0xff] %v20408_v50 }
 0x1da   : > { %23773 = vst [vmem:[#allocation100_spill] sm:$0xff] %v20414_v51 }
 0x1db   : > { %v20400_v56 = vpop.f32.mrb[112].mxu0 }
 0x1dc   : > { %23768 = vst [vmem:[#allocation95_spill] sm:$0xff] %v20400_v56  ;;  %v20404_v20 = vpop.f32.mrb[113].mxu0  ;;  %16678 = vmatmul.mubr.msk.f32.gmra.mrb[154].mxu0 %vm1500_vm1, %v20402_v14  ;;  %v20420_v56 = vld [vmem:[#allocation2 + $0x1e9] sm:$0xff]  ;;  %v20426_v14 = vld [vmem:[#allocation2 + $0x1f1] sm:$0xff] }
 0x1dd   : > { %23770 = vst [vmem:[#allocation97_spill] sm:$0xff] %v20404_v20  ;;  %16680 = vmatprep.mubr.msk.f32.mxu0 %vm1500_vm1, %v20408_v50  ;;  %23775 = vst [vmem:[#allocation102_spill] sm:$0xff] %v20420_v56 }
 0x1de   : > { %23777 = vst [vmem:[#allocation104_spill] sm:$0xff] %v20426_v14 }
 0x1df   : > { %v20412_v19 = vpop.f32.mrb[114].mxu0 }
 0x1e0   : > { %23772 = vst [vmem:[#allocation99_spill] sm:$0xff] %v20412_v19  ;;  %v20416_v15 = vpop.f32.mrb[115].mxu0  ;;  %16681 = vmatmul.mubr.msk.f32.gmra.mrb[156].mxu0 %vm1500_vm1, %v20414_v51 }
 0x1e1   : > { %23774 = vst [vmem:[#allocation101_spill] sm:$0xff] %v20416_v15  ;;  %16683 = vmatprep.mubr.msk.f32.mxu0 %vm1500_vm1, %v20420_v56  ;;  %v14201_v15 = vld [vmem:[%s23464_s3 + $0x28] sm:$0x3f] }
 0x1e3   : > { %v20424_v20 = vpop.f32.mrb[116].mxu0 }
 0x1e4   : > { %23776 = vst [vmem:[#allocation103_spill] sm:$0xff] %v20424_v20  ;;  %v20428_v13 = vpop.f32.mrb[117].mxu0  ;;  %16684 = vmatmul.mubr.msk.f32.gmra.mrb[158].mxu0 %vm1500_vm1, %v20426_v14  ;;  %v20581_v20 = vld [vmem:[#allocation2 + $0x108] sm:$0xff] }
 0x1e5   : > { %23778 = vst [vmem:[#allocation105_spill] sm:$0xff] %v20428_v13  ;;  %16688 = vmatprep.mubr.msk.f32.mxu0 %vm1500_vm1, %v20053_v63  ;;  %23792 = vst [vmem:[#allocation119_spill] sm:$0xff] %v20581_v20  ;;  %v20585_v13 = vld [vmem:[#allocation2 + $0x110] sm:$0xff] }
 0x1e6   : > { %23793 = vst [vmem:[#allocation120_spill] sm:$0xff] %v20585_v13 }
 0x1e7   : > { %v20434_v19 = vpop.f32.mrb[118].mxu0 }
 0x1e8   : > { %23779 = vst [vmem:[#allocation106_spill] sm:$0xff] %v20434_v19  ;;  %v20439_v51 = vpop.f32.mrb[119].mxu0  ;;  %16689 = vmatmul.mubr.msk.f32.vlgmr.msra.gmra.mrb[128].mxu0 %vm1500_vm1, %v20063_v1 }
 0x1e9   : > { %23780 = vst [vmem:[#allocation107_spill] sm:$0xff] %v20439_v51  ;;  %16691 = vmatprep.mubr.msk.f32.mxu0 %vm1500_vm1, %v20069_v2  ;;  %16737 = vmatpush3.msk.msra.mxu0 %vm1769_vm2, %v20243_v39 }
 0x1ea   : > { %16786 = vmatprep.subr.msk.mxu0 %vm1769_vm2, %v14201_v15 }
 0x1eb   : > { %v20448_v63 = vpop.f32.mrb[120].mxu0 }
 0x1ec   : > { %23781 = vst [vmem:[#allocation108_spill] sm:$0xff] %v20448_v63  ;;  %v20450_v19 = vpop.f32.mrb[121].mxu0  ;;  %16692 = vmatmul.mubr.msk.f32.gmra.mrb[130].mxu0 %vm1500_vm1, %v20075_v28  ;;  %v20573_v63 = vld [vmem:[#allocation2 + $0xe8] sm:$0xff] }
 0x1ed   : > { %23782 = vst [vmem:[#allocation109_spill] sm:$0xff] %v20450_v19  ;;  %16694 = vmatprep.mubr.msk.f32.mxu0 %vm1500_vm1, %v20081_v4  ;;  %23790 = vst [vmem:[#allocation117_spill] sm:$0xff] %v20573_v63  ;;  %v20577_v19 = vld [vmem:[#allocation2 + $0xf0] sm:$0xff] }
 0x1ee   : > { %23791 = vst [vmem:[#allocation118_spill] sm:$0xff] %v20577_v19 }
 0x1ef   : > { %v20456_v51 = vpop.f32.mrb[122].mxu0 }
 0x1f0   : > { %23783 = vst [vmem:[#allocation110_spill] sm:$0xff] %v20456_v51  ;;  %v20458_v1 = vpop.f32.mrb[123].mxu0  ;;  %16695 = vmatmul.mubr.msk.f32.gmra.mrb[132].mxu0 %vm1500_vm1, %v20087_v48  ;;  %v20518_v48 = vld [vmem:[#allocation2 + $0x207] sm:$0xff] }
 0x1f1   : > { %23784 = vst [vmem:[#allocation111_spill] sm:$0xff] %v20458_v1  ;;  %16697 = vmatprep.mubr.msk.f32.mxu0 %vm1500_vm1, %v20093_v49  ;;  %v20522_v49 = vld [vmem:[#allocation2 + $0x20f] sm:$0xff] }
 0x1f2   : > { %v20565_v51 = vld [vmem:[#allocation2 + $0xc8] sm:$0xff]  ;;  %v20569_v1 = vld [vmem:[#allocation2 + $0xd0] sm:$0xff] }
 0x1f3   : > { %v20464_v39 = vpop.f32.mrb[124].mxu0  ;;  %23789 = vst [vmem:[#allocation116_spill] sm:$0xff] %v20569_v1 }
 0x1f4   : > { %23785 = vst [vmem:[#allocation112_spill] sm:$0xff] %v20464_v39  ;;  %v20466_v2 = vpop.f32.mrb[125].mxu0  ;;  %16698 = vmatmul.mubr.msk.f32.gmra.mrb[134].mxu0 %vm1500_vm1, %v20099_v8  ;;  %v3102_v8 = vld [vmem:[#allocation2 + $0x28] sm:$0xff] }
 0x1f5   : > { %23786 = vst [vmem:[#allocation113_spill] sm:$0xff] %v20466_v2  ;;  %16700 = vmatprep.mubr.msk.f32.mxu0 %vm1500_vm1, %v20105_v10  ;;  %v3103_v10 = vld [vmem:[#allocation2 + $0x30] sm:$0xff]  ;;  %v20557_v39 = vld [vmem:[#allocation2 + $0xa8] sm:$0xff] }
 0x1f6   : > { %v20561_v2 = vld [vmem:[#allocation2 + $0xb0] sm:$0xff] }
 0x1f7   : > { %v20472_v28 = vpop.f32.mrb[126].mxu0 }
 0x1f8   : > { %23787 = vst [vmem:[#allocation114_spill] sm:$0xff] %v20472_v28  ;;  %v20474_v4 = vpop.f32.mrb[127].mxu0  ;;  %16701 = vmatmul.mubr.msk.f32.gmra.mrb[136].mxu0 %vm1500_vm1, %v20111_v11  ;;  %v14235_v11 = vld [vmem:[%s23464_s3 + $0x30] sm:$0x3f] }
 0x1f9   : > { %23788 = vst [vmem:[#allocation115_spill] sm:$0xff] %v20474_v4  ;;  %16703 = vmatprep.mubr.msk.f32.mxu0 %vm1500_vm1, %v20117_v53  ;;  %v20531_v53 = vld [vmem:[#allocation2 + $0x48] sm:$0xff]  ;;  %v20537_v28 = vld [vmem:[#allocation2 + $0x50] sm:$0xff] }
 0x1fa   : > { %v20549_v4 = vld [vmem:[#allocation2 + $0x88] sm:$0xff] }
 0x1fc   : > { %16704 = vmatmul.mubr.msk.f32.gmra.mrb[138].mxu0 %vm1500_vm1, %v20123_v54 }
 0x1fd   : > { %16706 = vmatprep.mubr.msk.f32.mxu0 %vm1500_vm1, %v20129_v22 }
 0x200   : > { %16707 = vmatmul.mubr.msk.f32.gmra.mrb[140].mxu0 %vm1500_vm1, %v20135_v25 }
 0x201   : > { %16709 = vmatprep.mubr.msk.f32.mxu0 %vm1500_vm1, %v20141_v42 }
 0x204   : > { %16710 = vmatmul.mubr.msk.f32.gmra.mrb[142].mxu0 %vm1500_vm1, %v20147_v55 }
 0x205   : > { %16712 = vmatprep.mubr.msk.f32.mxu0 %vm1500_vm1, %v20153_v24 }
 0x208   : > { %16713 = vmatmul.mubr.msk.f32.gmra.mrb[144].mxu0 %vm1500_vm1, %v20159_v52 }
 0x209   : > { %16715 = vmatprep.mubr.msk.f32.mxu0 %vm1500_vm1, %v20165_v61 }
 0x20c   : > { %16716 = vmatmul.mubr.msk.f32.gmra.mrb[146].mxu0 %vm1500_vm1, %v20171_v9 }
 0x20d   : > { %16718 = vmatprep.mubr.msk.f32.mxu0 %vm1500_vm1, %v20177_v26 }
 0x210   : > { %16719 = vmatmul.mubr.msk.f32.gmra.mrb[148].mxu0 %vm1500_vm1, %v20183_v6 }
 0x211   : > { %16721 = vmatprep.mubr.msk.f32.mxu0 %vm1500_vm1, %v20189_v17 }
 0x214   : > { %16722 = vmatmul.mubr.msk.f32.gmra.mrb[150].mxu0 %vm1500_vm1, %v20195_v3 }
 0x215   : > { %16724 = vmatprep.mubr.msk.f32.mxu0 %vm1500_vm1, %v20201_v12 }
 0x218   : > { %16725 = vmatmul.mubr.msk.f32.gmra.mrb[152].mxu0 %vm1500_vm1, %v20207_v46 }
 0x219   : > { %16727 = vmatprep.mubr.msk.f32.mxu0 %vm1500_vm1, %v20213_v7 }
 0x21c   : > { %16728 = vmatmul.mubr.msk.f32.gmra.mrb[154].mxu0 %vm1500_vm1, %v20219_v45 }
 0x21d   : > { %16730 = vmatprep.mubr.msk.f32.mxu0 %vm1500_vm1, %v20225_v5 }
 0x220   : > { %16731 = vmatmul.mubr.msk.f32.gmra.mrb[156].mxu0 %vm1500_vm1, %v20231_v43 }
 0x221   : > { %16733 = vmatprep.mubr.msk.f32.mxu0 %vm1500_vm1, %v20518_v48 }
 0x224   : > { %16734 = vmatmul.mubr.msk.f32.gmra.mrb[158].mxu0 %vm1500_vm1, %v20522_v49 }
 0x225   : > { %16738 = vmatprep.mubr.msk.f32.mxu0 %vm1500_vm1, %v3102_v8  ;;  %v20541_v8 = vld [vmem:[#allocation2 + $0x68] sm:$0xff] }
 0x228   : > { %16739 = vmatmul.mubr.msk.f32.vlgmr.msra.gmra.mrb[128].mxu0 %vm1500_vm1, %v3103_v10  ;;  %v20545_v10 = vld [vmem:[#allocation2 + $0x70] sm:$0xff] }
 0x229   : > { %16741 = vmatprep.mubr.msk.f32.mxu0 %vm1500_vm1, %v20531_v53  ;;  %16787 = vmatpush3.msk.msra.mxu0 %vm1769_vm2, %v14201_v15  ;;  %v20553_v15 = vld [vmem:[#allocation2 + $0x90] sm:$0xff] }
 0x22a   : > { %16836 = vmatprep.subr.msk.mxu0 %vm1769_vm2, %v14235_v11 }
 0x22c   : > { %16742 = vmatmul.mubr.msk.f32.gmra.mrb[130].mxu0 %vm1500_vm1, %v20537_v28 }
 0x22d   : > { %16744 = vmatprep.mubr.msk.f32.mxu0 %vm1500_vm1, %v20541_v8 }
 0x230   : > { %16745 = vmatmul.mubr.msk.f32.gmra.mrb[132].mxu0 %vm1500_vm1, %v20545_v10 }
 0x231   : > { %16747 = vmatprep.mubr.msk.f32.mxu0 %vm1500_vm1, %v20549_v4 }
 0x234   : > { %16748 = vmatmul.mubr.msk.f32.gmra.mrb[134].mxu0 %vm1500_vm1, %v20553_v15 }
 0x235   : > { %16750 = vmatprep.mubr.msk.f32.mxu0 %vm1500_vm1, %v20557_v39 }
 0x238   : > { %16751 = vmatmul.mubr.msk.f32.gmra.mrb[136].mxu0 %vm1500_vm1, %v20561_v2 }
 0x239   : > { %16753 = vmatprep.mubr.msk.f32.mxu0 %vm1500_vm1, %v20565_v51 }
 0x23c   : > { %16754 = vmatmul.mubr.msk.f32.gmra.mrb[138].mxu0 %vm1500_vm1, %v20569_v1  ;;  %v20589_v1 = vld [vmem:[#allocation2 + $0x128] sm:$0xff] }
 0x23d   : > { %16756 = vmatprep.mubr.msk.f32.mxu0 %vm1500_vm1, %v20573_v63  ;;  %v20593_v63 = vld [vmem:[#allocation2 + $0x130] sm:$0xff] }
 0x240   : > { %16757 = vmatmul.mubr.msk.f32.gmra.mrb[140].mxu0 %vm1500_vm1, %v20577_v19  ;;  %v20597_v19 = vld [vmem:[#allocation2 + $0x148] sm:$0xff] }
 0x241   : > { %16759 = vmatprep.mubr.msk.f32.mxu0 %vm1500_vm1, %v20581_v20  ;;  %v20601_v20 = vld [vmem:[#allocation2 + $0x150] sm:$0xff] }
 0x244   : > { %16760 = vmatmul.mubr.msk.f32.gmra.mrb[142].mxu0 %vm1500_vm1, %v20585_v13  ;;  %v20605_v13 = vld [vmem:[#allocation2 + $0x168] sm:$0xff] }
 0x245   : > { %16762 = vmatprep.mubr.msk.f32.mxu0 %vm1500_vm1, %v20589_v1 }
 0x248   : > { %16763 = vmatmul.mubr.msk.f32.gmra.mrb[144].mxu0 %vm1500_vm1, %v20593_v63 }
 0x249   : > { %16765 = vmatprep.mubr.msk.f32.mxu0 %vm1500_vm1, %v20597_v19 }
 0x24c   : > { %16766 = vmatmul.mubr.msk.f32.gmra.mrb[146].mxu0 %vm1500_vm1, %v20601_v20 }
 0x24d   : > { %16768 = vmatprep.mubr.msk.f32.mxu0 %vm1500_vm1, %v20605_v13 }
 0x250   : > { %16769 = vmatmul.mubr.msk.f32.gmra.mrb[148].mxu0 %vm1500_vm1, %v19988_v29  ;;  %v20627_v29 = vld [vmem:[#allocation2 + $0x208] sm:$0xff] }
 0x251   : > { %16771 = vmatprep.mubr.msk.f32.mxu0 %vm1500_vm1, %v19994_v30  ;;  %v20631_v30 = vld [vmem:[#allocation2 + $0x210] sm:$0xff] }
 0x254   : > { %16772 = vmatmul.mubr.msk.f32.gmra.mrb[150].mxu0 %vm1500_vm1, %v20000_v32  ;;  %v14269_v32 = vld [vmem:[%s23464_s3 + $0x38] sm:$0x3f] }
 0x255   : > { %16774 = vmatprep.mubr.msk.f32.mxu0 %vm1500_vm1, %v20006_v34  ;;  %v23794_v34 = vld [vmem:[#allocation78_spill] sm:$0xff] }
 0x258   : > { %16775 = vmatmul.mubr.msk.f32.gmra.mrb[152].mxu0 %vm1500_vm1, %v20012_v36  ;;  %v23795_v36 = vld [vmem:[#allocation80_spill] sm:$0xff] }
 0x259   : > { %16777 = vmatprep.mubr.msk.f32.mxu0 %vm1500_vm1, %v20018_v38  ;;  %v23796_v38 = vld [vmem:[#allocation82_spill] sm:$0xff] }
 0x25c   : > { %16778 = vmatmul.mubr.msk.f32.gmra.mrb[154].mxu0 %vm1500_vm1, %v20024_v21  ;;  %v23797_v21 = vld [vmem:[#allocation84_spill] sm:$0xff] }
 0x25d   : > { %16780 = vmatprep.mubr.msk.f32.mxu0 %vm1500_vm1, %v20030_v41  ;;  %v23798_v41 = vld [vmem:[#allocation86_spill] sm:$0xff] }
 0x260   : > { %16781 = vmatmul.mubr.msk.f32.gmra.mrb[156].mxu0 %vm1500_vm1, %v20036_v59  ;;  %v23799_v59 = vld [vmem:[#allocation88_spill] sm:$0xff] }
 0x261   : > { %16783 = vmatprep.mubr.msk.f32.mxu0 %vm1500_vm1, %v20627_v29 }
 0x264   : > { %16784 = vmatmul.mubr.msk.f32.gmra.mrb[158].mxu0 %vm1500_vm1, %v20631_v30 }
 0x265   : > { %16788 = vmatprep.mubr.msk.f32.mxu0 %vm1500_vm1, %v20248_v60  ;;  %v23800_v60 = vld [vmem:[#allocation90_spill] sm:$0xff] }
 0x268   : > { %16789 = vmatmul.mubr.msk.f32.vlgmr.msra.gmra.mrb[128].mxu0 %vm1500_vm1, %v20258_v47  ;;  %v23801_v47 = vld [vmem:[#allocation92_spill] sm:$0xff] }
 0x269   : > { %16791 = vmatprep.mubr.msk.f32.mxu0 %vm1500_vm1, %v20264_v44  ;;  %16837 = vmatpush3.msk.msra.mxu0 %vm1769_vm2, %v14235_v11  ;;  %v23802_v11 = vld [vmem:[#allocation94_spill] sm:$0xff] }
 0x26a   : > { %16886 = vmatprep.subr.msk.mxu0 %vm1769_vm2, %v14269_v32 }
 0x26c   : > { %16792 = vmatmul.mubr.msk.f32.gmra.mrb[130].mxu0 %vm1500_vm1, %v20270_v62 }
 0x26d   : > { %16794 = vmatprep.mubr.msk.f32.mxu0 %vm1500_vm1, %v20276_v0 }
 0x270   : > { %16795 = vmatmul.mubr.msk.f32.gmra.mrb[132].mxu0 %vm1500_vm1, %v20282_v33 }
 0x271   : > { %16797 = vmatprep.mubr.msk.f32.mxu0 %vm1500_vm1, %v20288_v37 }
 0x274   : > { %16798 = vmatmul.mubr.msk.f32.gmra.mrb[134].mxu0 %vm1500_vm1, %v20294_v58 }
 0x275   : > { %16800 = vmatprep.mubr.msk.f32.mxu0 %vm1500_vm1, %v20300_v40 }
 0x278   : > { %16801 = vmatmul.mubr.msk.f32.gmra.mrb[136].mxu0 %vm1500_vm1, %v20306_v57 }
 0x279   : > { %16803 = vmatprep.mubr.msk.f32.mxu0 %vm1500_vm1, %v20312_v35 }
 0x27c   : > { %16804 = vmatmul.mubr.msk.f32.gmra.mrb[138].mxu0 %vm1500_vm1, %v20318_v23 }
 0x27d   : > { %16806 = vmatprep.mubr.msk.f32.mxu0 %vm1500_vm1, %v20324_v31 }
 0x280   : > { %16807 = vmatmul.mubr.msk.f32.gmra.mrb[140].mxu0 %vm1500_vm1, %v20330_v18 }
 0x281   : > { %16809 = vmatprep.mubr.msk.f32.mxu0 %vm1500_vm1, %v20336_v27 }
 0x284   : > { %16810 = vmatmul.mubr.msk.f32.gmra.mrb[142].mxu0 %vm1500_vm1, %v20342_v16 }
 0x285   : > { %16812 = vmatprep.mubr.msk.f32.mxu0 %vm1500_vm1, %v23794_v34 }
 0x288   : > { %16813 = vmatmul.mubr.msk.f32.gmra.mrb[144].mxu0 %vm1500_vm1, %v23795_v36  ;;  %v23803_v36 = vld [vmem:[#allocation96_spill] sm:$0xff] }
 0x289   : > { %16815 = vmatprep.mubr.msk.f32.mxu0 %vm1500_vm1, %v23796_v38 }
 0x28c   : > { %16816 = vmatmul.mubr.msk.f32.gmra.mrb[146].mxu0 %vm1500_vm1, %v23797_v21  ;;  %v23804_v21 = vld [vmem:[#allocation100_spill] sm:$0xff] }
 0x28d   : > { %16818 = vmatprep.mubr.msk.f32.mxu0 %vm1500_vm1, %v23798_v41 }
 0x290   : > { %16819 = vmatmul.mubr.msk.f32.gmra.mrb[148].mxu0 %vm1500_vm1, %v23799_v59 }
 0x291   : > { %16821 = vmatprep.mubr.msk.f32.mxu0 %vm1500_vm1, %v23800_v60  ;;  %v20700_v60 = vld [vmem:[#allocation2 + $0x209] sm:$0xff] }
 0x292   : > { %23805 = vst [vmem:[#allocation78_spill] sm:$0xff] %v20700_v60 }
 0x294   : > { %16822 = vmatmul.mubr.msk.f32.gmra.mrb[150].mxu0 %vm1500_vm1, %v23801_v47 }
 0x295   : > { %16824 = vmatprep.mubr.msk.f32.mxu0 %vm1500_vm1, %v23802_v11  ;;  %v20704_v11 = vld [vmem:[#allocation2 + $0x211] sm:$0xff] }
 0x296   : > { %23806 = vst [vmem:[#allocation82_spill] sm:$0xff] %v20704_v11 }
 0x298   : > { %16825 = vmatmul.mubr.msk.f32.gmra.mrb[152].mxu0 %vm1500_vm1, %v23803_v36  ;;  %v3889_v36 = vld [vmem:[#allocation2 + $0xa7] sm:$0xff] }
 0x299   : > { %16827 = vmatprep.mubr.msk.f32.mxu0 %vm1500_vm1, %v20408_v50  ;;  %v3883_v50 = vld [vmem:[#allocation2 + $0x47] sm:$0xff] }
 0x29c   : > { %16828 = vmatmul.mubr.msk.f32.gmra.mrb[154].mxu0 %vm1500_vm1, %v23804_v21  ;;  %v3884_v21 = vld [vmem:[#allocation2 + $0x4f] sm:$0xff] }
 0x29d   : > { %16830 = vmatprep.mubr.msk.f32.mxu0 %vm1500_vm1, %v20420_v56  ;;  %v14303_v56 = vld [vmem:[%s23464_s3 + $0x40] sm:$0x3f] }
 0x2a0   : > { %16831 = vmatmul.mubr.msk.f32.gmra.mrb[156].mxu0 %vm1500_vm1, %v20426_v14  ;;  %v3885_v14 = vld [vmem:[#allocation2 + $0x67] sm:$0xff] }
 0x2a1   : > { %16833 = vmatprep.mubr.msk.f32.mxu0 %vm1500_vm1, %v20700_v60  ;;  %v3886_v60 = vld [vmem:[#allocation2 + $0x6f] sm:$0xff] }
 0x2a4   : > { %16834 = vmatmul.mubr.msk.f32.gmra.mrb[158].mxu0 %vm1500_vm1, %v20704_v11  ;;  %v3887_v11 = vld [vmem:[#allocation2 + $0x87] sm:$0xff] }
 0x2a5   : > { %16838 = vmatprep.mubr.msk.f32.mxu0 %vm1500_vm1, %v3883_v50  ;;  %v3888_v50 = vld [vmem:[#allocation2 + $0x8f] sm:$0xff] }
 0x2a8   : > { %16839 = vmatmul.mubr.msk.f32.vlgmr.msra.gmra.mrb[128].mxu0 %vm1500_vm1, %v3884_v21  ;;  %v3890_v21 = vld [vmem:[#allocation2 + $0xaf] sm:$0xff] }
 0x2a9   : > { %16841 = vmatprep.mubr.msk.f32.mxu0 %vm1500_vm1, %v3885_v14  ;;  %16887 = vmatpush3.msk.msra.mxu0 %vm1769_vm2, %v14269_v32  ;;  %v3891_v14 = vld [vmem:[#allocation2 + $0xc7] sm:$0xff] }
 0x2aa   : > { %16936 = vmatprep.subr.msk.mxu0 %vm1769_vm2, %v14303_v56 }
 0x2ac   : > { %16842 = vmatmul.mubr.msk.f32.gmra.mrb[130].mxu0 %vm1500_vm1, %v3886_v60 }
 0x2ad   : > { %16844 = vmatprep.mubr.msk.f32.mxu0 %vm1500_vm1, %v3887_v11  ;;  %v23831_v11 = vld [vmem:[#allocation10_spill] sm:$0xff] }
 0x2b0   : > { %16845 = vmatmul.mubr.msk.f32.gmra.mrb[132].mxu0 %vm1500_vm1, %v3888_v50 }
 0x2b1   : > { %16847 = vmatprep.mubr.msk.f32.mxu0 %vm1500_vm1, %v3889_v36 }
 0x2b4   : > { %16848 = vmatmul.mubr.msk.f32.gmra.mrb[134].mxu0 %vm1500_vm1, %v3890_v21 }
 0x2b5   : > { %16850 = vmatprep.mubr.msk.f32.mxu0 %vm1500_vm1, %v3891_v14 }
 0x2b8   : > { %16851 = vmatmul.mubr.msk.f32.gmra.mrb[136].mxu0 %vm1500_vm1, %v20123_v54  ;;  %v4303_v54 = vld [vmem:[#allocation2 + $0x228] sm:$0xff] }
 0x2b9   : > { %16853 = vmatprep.mubr.msk.f32.mxu0 %vm1500_vm1, %v20129_v22  ;;  %v23822_v22 = vld [vmem:[#allocation82_spill] sm:$0xff] }
 0x2bc   : > { %16854 = vmatmul.mubr.msk.f32.gmra.mrb[138].mxu0 %vm1500_vm1, %v20135_v25  ;;  %v14339_v25 = vld [vmem:[%s23464_s3 + $0x50] sm:$0x3f] }
 0x2bd   : > { %16856 = vmatprep.mubr.msk.f32.mxu0 %vm1500_vm1, %v20141_v42  ;;  %18150 = vmatprep.subr.msk.mxu1 %vm1769_vm2, %v14339_v25  ;;  %v5224_v42 = vld [vmem:[#allocation2 + $0x10] sm:$0xff] }
 0x2be   : > { %18151 = vmatpush3.msk.msra.mxu1 %vm1769_vm2, %v14339_v25 }
 0x2c0   : > { %16857 = vmatmul.mubr.msk.f32.gmra.mrb[140].mxu0 %vm1500_vm1, %v20147_v55  ;;  %v4304_v55 = vld [vmem:[#allocation2 + $0x230] sm:$0xff] }
 0x2c1   : > { %16859 = vmatprep.mubr.msk.f32.mxu0 %vm1500_vm1, %v20153_v24  ;;  %v4694_v24 = vld [vmem:[#allocation2 + $0x231] sm:$0xff] }
 0x2c4   : > { %16860 = vmatmul.mubr.msk.f32.gmra.mrb[142].mxu0 %vm1500_vm1, %v20159_v52  ;;  %v4296_v52 = vld [vmem:[#allocation2 + $0x1b0] sm:$0xff] }
 0x2c5   : > { %16862 = vmatprep.mubr.msk.f32.mxu0 %vm1500_vm1, %v20165_v61  ;;  %v20894_v61 = vld [vmem:[%s23464_s3 + $0x48] sm:$0x3f] }
 0x2c6   : > { %17036 = vmatprep.subr.msk.mxu1 %vm1769_vm2, %v20894_v61 }
 0x2c8   : > { %16863 = vmatmul.mubr.msk.f32.gmra.mrb[144].mxu0 %vm1500_vm1, %v20171_v9  ;;  %v4294_v9 = vld [vmem:[#allocation2 + $0x190] sm:$0xff] }
 0x2c9   : > { %16865 = vmatprep.mubr.msk.f32.mxu0 %vm1500_vm1, %v20177_v26  ;;  %v5223_v26 = vld [vmem:[#allocation2 + $0x8] sm:$0xff] }
 0x2cc   : > { %16866 = vmatmul.mubr.msk.f32.gmra.mrb[146].mxu0 %vm1500_vm1, %v20183_v6  ;;  %v23811_v6 = vld [vmem:[#allocation120_spill] sm:$0xff] }
 0x2cd   : > { %16868 = vmatprep.mubr.msk.f32.mxu0 %vm1500_vm1, %v20189_v17  ;;  %v4300_v17 = vld [vmem:[#allocation2 + $0x1f0] sm:$0xff] }
 0x2d0   : > { %16869 = vmatmul.mubr.msk.f32.gmra.mrb[148].mxu0 %vm1500_vm1, %v20195_v3  ;;  %v3913_v3 = vld [vmem:[#allocation2 + $0x227] sm:$0xff] }
 0x2d1   : > { %16871 = vmatprep.mubr.msk.f32.mxu0 %vm1500_vm1, %v20201_v12  ;;  %v4295_v12 = vld [vmem:[#allocation2 + $0x1a8] sm:$0xff] }
 0x2d4   : > { %16872 = vmatmul.mubr.msk.f32.gmra.mrb[150].mxu0 %vm1500_vm1, %v20207_v46  ;;  %v3914_v46 = vld [vmem:[#allocation2 + $0x22f] sm:$0xff] }
 0x2d5   : > { %16874 = vmatprep.mubr.msk.f32.mxu0 %vm1500_vm1, %v20213_v7  ;;  %v4293_v7 = vld [vmem:[#allocation2 + $0x188] sm:$0xff] }
 0x2d8   : > { %16875 = vmatmul.mubr.msk.f32.gmra.mrb[152].mxu0 %vm1500_vm1, %v20219_v45  ;;  %v23809_v45 = vld [vmem:[#allocation118_spill] sm:$0xff] }
 0x2d9   : > { %16877 = vmatprep.mubr.msk.f32.mxu0 %vm1500_vm1, %v20225_v5  ;;  %v23810_v5 = vld [vmem:[#allocation119_spill] sm:$0xff] }
 0x2dc   : > { %16878 = vmatmul.mubr.msk.f32.gmra.mrb[154].mxu0 %vm1500_vm1, %v20231_v43  ;;  %v23807_v43 = vld [vmem:[#allocation116_spill] sm:$0xff] }
 0x2dd   : > { %16880 = vmatprep.mubr.msk.f32.mxu0 %vm1500_vm1, %v20518_v48 }
 0x2e0   : > { %16881 = vmatmul.mubr.msk.f32.gmra.mrb[156].mxu0 %vm1500_vm1, %v20522_v49 }
 0x2e1   : > { %16883 = vmatprep.mubr.msk.f32.mxu0 %vm1500_vm1, %v3913_v3  ;;  %v23832_v3 = vld [vmem:[#allocation11_spill] sm:$0xff] }
 0x2e4   : > { %16884 = vmatmul.mubr.msk.f32.gmra.mrb[158].mxu0 %vm1500_vm1, %v3914_v46 }
 0x2e5   : > { %16888 = vmatprep.mubr.msk.f32.mxu0 %vm1500_vm1, %v20531_v53  ;;  %v23827_v53 = vld [vmem:[#allocation8_spill] sm:$0xff] }
 0x2e8   : > { %16889 = vmatmul.mubr.msk.f32.vlgmr.msra.gmra.mrb[128].mxu0 %vm1500_vm1, %v20537_v28 }
 0x2e9   : > { %16891 = vmatprep.mubr.msk.f32.mxu0 %vm1500_vm1, %v20541_v8  ;;  %16937 = vmatpush3.msk.msra.mxu0 %vm1769_vm2, %v14303_v56  ;;  %v23808_v56 = vld [vmem:[#allocation117_spill] sm:$0xff] }
 0x2ea   : > { %16986 = vmatprep.subr.msk.mxu0 %vm1769_vm2, %v14339_v25 }
 0x2ec   : > { %16892 = vmatmul.mubr.msk.f32.gmra.mrb[130].mxu0 %vm1500_vm1, %v20545_v10 }
 0x2ed   : > { %16894 = vmatprep.mubr.msk.f32.mxu0 %vm1500_vm1, %v20549_v4 }
 0x2f0   : > { %16895 = vmatmul.mubr.msk.f32.gmra.mrb[132].mxu0 %vm1500_vm1, %v20553_v15 }
 0x2f1   : > { %16897 = vmatprep.mubr.msk.f32.mxu0 %vm1500_vm1, %v20557_v39 }
 0x2f4   : > { %16898 = vmatmul.mubr.msk.f32.gmra.mrb[134].mxu0 %vm1500_vm1, %v20561_v2 }
 0x2f5   : > { %16900 = vmatprep.mubr.msk.f32.mxu0 %vm1500_vm1, %v20565_v51  ;;  %v4292_v51 = vld [vmem:[#allocation2 + $0x170] sm:$0xff] }
 0x2f8   : > { %16901 = vmatmul.mubr.msk.f32.gmra.mrb[136].mxu0 %vm1500_vm1, %v23807_v43 }
 0x2f9   : > { %16903 = vmatprep.mubr.msk.f32.mxu0 %vm1500_vm1, %v23808_v56 }
 0x2fc   : > { %16904 = vmatmul.mubr.msk.f32.gmra.mrb[138].mxu0 %vm1500_vm1, %v23809_v45 }
 0x2fd   : > { %16906 = vmatprep.mubr.msk.f32.mxu0 %vm1500_vm1, %v23810_v5 }
 0x300   : > { %16907 = vmatmul.mubr.msk.f32.gmra.mrb[140].mxu0 %vm1500_vm1, %v23811_v6 }
 0x301   : > { %16909 = vmatprep.mubr.msk.f32.mxu0 %vm1500_vm1, %v20589_v1  ;;  %v23824_v1 = vld [vmem:[#allocation7_spill] sm:$0xff] }
 0x304   : > { %16910 = vmatmul.mubr.msk.f32.gmra.mrb[142].mxu0 %vm1500_vm1, %v20593_v63 }
 0x305   : > { %16912 = vmatprep.mubr.msk.f32.mxu0 %vm1500_vm1, %v20597_v19  ;;  %v4297_v19 = vld [vmem:[#allocation2 + $0x1c8] sm:$0xff] }
 0x308   : > { %16913 = vmatmul.mubr.msk.f32.gmra.mrb[144].mxu0 %vm1500_vm1, %v20601_v20  ;;  %v4298_v20 = vld [vmem:[#allocation2 + $0x1d0] sm:$0xff] }
 0x309   : > { %16915 = vmatprep.mubr.msk.f32.mxu0 %vm1500_vm1, %v20605_v13  ;;  %v4299_v13 = vld [vmem:[#allocation2 + $0x1e8] sm:$0xff] }
 0x30c   : > { %16916 = vmatmul.mubr.msk.f32.gmra.mrb[146].mxu0 %vm1500_vm1, %v4292_v51 }
 0x30d   : > { %16918 = vmatprep.mubr.msk.f32.mxu0 %vm1500_vm1, %v4293_v7 }
 0x310   : > { %16919 = vmatmul.mubr.msk.f32.gmra.mrb[148].mxu0 %vm1500_vm1, %v4294_v9 }
 0x311   : > { %16921 = vmatprep.mubr.msk.f32.mxu0 %vm1500_vm1, %v4295_v12  ;;  %v23835_v12 = vld [vmem:[#allocation12_spill] sm:$0xff] }
 0x314   : > { %16922 = vmatmul.mubr.msk.f32.gmra.mrb[150].mxu0 %vm1500_vm1, %v4296_v52 }
 0x315   : > { %16924 = vmatprep.mubr.msk.f32.mxu0 %vm1500_vm1, %v4297_v19 }
 0x318   : > { %16925 = vmatmul.mubr.msk.f32.gmra.mrb[152].mxu0 %vm1500_vm1, %v4298_v20 }
 0x319   : > { %16927 = vmatprep.mubr.msk.f32.mxu0 %vm1500_vm1, %v4299_v13  ;;  %v23836_v13 = vld [vmem:[#allocation13_spill] sm:$0xff] }
 0x31c   : > { %16928 = vmatmul.mubr.msk.f32.gmra.mrb[154].mxu0 %vm1500_vm1, %v4300_v17 }
 0x31d   : > { %16930 = vmatprep.mubr.msk.f32.mxu0 %vm1500_vm1, %v20627_v29  ;;  %v23828_v29 = vld [vmem:[#allocation9_spill] sm:$0xff] }
 0x320   : > { %16931 = vmatmul.mubr.msk.f32.gmra.mrb[156].mxu0 %vm1500_vm1, %v20631_v30 }
 0x321   : > { %16933 = vmatprep.mubr.msk.f32.mxu0 %vm1500_vm1, %v4303_v54 }
 0x324   : > { %16934 = vmatmul.mubr.msk.f32.gmra.mrb[158].mxu0 %vm1500_vm1, %v4304_v55 }
 0x325   : > { %16938 = vmatprep.mubr.msk.f32.mxu0 %vm1500_vm1, %v20264_v44  ;;  %v20906_v44 = vld [vmem:[%s23465_s4] ss:$0 sm:$0xff] }
 0x328   : > { %16939 = vmatmul.mubr.msk.f32.vlgmr.msra.gmra.mrb[128].mxu0 %vm1500_vm1, %v20270_v62  ;;  %v23823_v62 = vld [vmem:[#allocation6_spill] sm:$0xff] }
 0x329   : > { %16941 = vmatprep.mubr.msk.f32.mxu0 %vm1500_vm1, %v20276_v0  ;;  %16987 = vmatpush3.msk.msra.mxu0 %vm1769_vm2, %v14339_v25  ;;  %v20901_v0 = vld [vmem:[%s23463_s2 + $0x1] ss:$0 sm:$0xff] }
 0x32a   : > { %v767_v63 = vadd.f32 %v23823_v62, %v20901_v0  ;;  %v762_v39 = vadd.f32 %v20901_v0, %v23824_v1  ;;  %v777_v8 = vadd.f32 %v23827_v53, %v20901_v0  ;;  %v772_v30 = vadd.f32 %v20901_v0, %v23828_v29 }
 0x32b   : > { %v787_v50 = vadd.f32 %v23831_v11, %v20901_v0  ;;  %v782_v46 = vadd.f32 %v20901_v0, %v23832_v3  ;;  %v797_v52 = vadd.f32 %v23835_v12, %v20901_v0  ;;  %v792_v17 = vadd.f32 %v20901_v0, %v23836_v13  ;;  %v23848_v12 = vld [vmem:[#allocation19_spill] sm:$0xff] }
 0x32c   : > { %16942 = vmatmul.mubr.msk.f32.gmra.mrb[130].mxu0 %vm1500_vm1, %v20282_v33  ;;  %v23819_v33 = vld [vmem:[#allocation102_spill] sm:$0xff]  ;;  %v921_v49 = vmax.f32 %v767_v63, 0.0  ;;  %v920_v15 = vmax.f32 %v762_v39, 0.0  ;;  %v922_v14 = vmax.f32 %v772_v30, 0.0  ;;  %v23844_v30 = vld [vmem:[#allocation17_spill] sm:$0xff] }
 0x32d   : > { %16944 = vmatprep.mubr.msk.f32.mxu0 %vm1500_vm1, %v20288_v37  ;;  %v23821_v37 = vld [vmem:[#allocation78_spill] sm:$0xff]  ;;  %v925_v9 = vmax.f32 %v787_v50, 0.0  ;;  %v924_v20 = vmax.f32 %v782_v46, 0.0 }
 0x330   : > { %16945 = vmatmul.mubr.msk.f32.gmra.mrb[132].mxu0 %vm1500_vm1, %v20294_v58  ;;  %v23817_v58 = vld [vmem:[#allocation98_spill] sm:$0xff] }
 0x331   : > { %16947 = vmatprep.mubr.msk.f32.mxu0 %vm1500_vm1, %v20300_v40  ;;  %v4693_v40 = vld [vmem:[#allocation2 + $0x229] sm:$0xff] }
 0x334   : > { %16948 = vmatmul.mubr.msk.f32.gmra.mrb[134].mxu0 %vm1500_vm1, %v20306_v57  ;;  %v23812_v57 = vld [vmem:[#allocation80_spill] sm:$0xff] }
 0x335   : > { %16950 = vmatprep.mubr.msk.f32.mxu0 %vm1500_vm1, %v20312_v35  ;;  %v23820_v35 = vld [vmem:[#allocation104_spill] sm:$0xff] }
 0x338   : > { %16951 = vmatmul.mubr.msk.f32.gmra.mrb[136].mxu0 %vm1500_vm1, %v20318_v23  ;;  %v23813_v23 = vld [vmem:[#allocation84_spill] sm:$0xff] }
 0x339   : > { %16953 = vmatprep.mubr.msk.f32.mxu0 %vm1500_vm1, %v20324_v31  ;;  %v23818_v31 = vld [vmem:[#allocation100_spill] sm:$0xff] }
 0x33c   : > { %16954 = vmatmul.mubr.msk.f32.gmra.mrb[138].mxu0 %vm1500_vm1, %v20330_v18  ;;  %v23814_v18 = vld [vmem:[#allocation90_spill] sm:$0xff] }
 0x33d   : > { %16956 = vmatprep.mubr.msk.f32.mxu0 %vm1500_vm1, %v20336_v27  ;;  %v23816_v27 = vld [vmem:[#allocation96_spill] sm:$0xff] }
 0x340   : > { %16957 = vmatmul.mubr.msk.f32.gmra.mrb[140].mxu0 %vm1500_vm1, %v20342_v16  ;;  %v23815_v16 = vld [vmem:[#allocation94_spill] sm:$0xff] }
 0x341   : > { %16959 = vmatprep.mubr.msk.f32.mxu0 %vm1500_vm1, %v23794_v34 }
 0x344   : > { %16960 = vmatmul.mubr.msk.f32.gmra.mrb[142].mxu0 %vm1500_vm1, %v23812_v57 }
 0x345   : > { %16962 = vmatprep.mubr.msk.f32.mxu0 %vm1500_vm1, %v23796_v38 }
 0x348   : > { %16963 = vmatmul.mubr.msk.f32.gmra.mrb[144].mxu0 %vm1500_vm1, %v23813_v23 }
 0x349   : > { %16965 = vmatprep.mubr.msk.f32.mxu0 %vm1500_vm1, %v23798_v41 }
 0x34c   : > { %16966 = vmatmul.mubr.msk.f32.gmra.mrb[146].mxu0 %vm1500_vm1, %v23799_v59 }
 0x34d   : > { %16968 = vmatprep.mubr.msk.f32.mxu0 %vm1500_vm1, %v23814_v18 }
 0x350   : > { %16969 = vmatmul.mubr.msk.f32.gmra.mrb[148].mxu0 %vm1500_vm1, %v23801_v47  ;;  %v923_v47 = vmax.f32 %v777_v8, 0.0 }
 0x351   : > { %16971 = vmatprep.mubr.msk.f32.mxu0 %vm1500_vm1, %v23815_v16 }
 0x354   : > { %16972 = vmatmul.mubr.msk.f32.gmra.mrb[150].mxu0 %vm1500_vm1, %v23816_v27 }
 0x355   : > { %16974 = vmatprep.mubr.msk.f32.mxu0 %vm1500_vm1, %v23817_v58  ;;  %v927_v58 = vmax.f32 %v797_v52, 0.0  ;;  %v822_v52 = vadd.f32 %v20901_v0, %v23848_v12 }
 0x358   : > { %16975 = vmatmul.mubr.msk.f32.gmra.mrb[152].mxu0 %vm1500_vm1, %v23818_v31  ;;  %v23839_v31 = vld [vmem:[#allocation14_spill] sm:$0xff] }
 0x359   : > { %16977 = vmatprep.mubr.msk.f32.mxu0 %vm1500_vm1, %v23819_v33  ;;  %v807_v33 = vadd.f32 %v23839_v31, %v20901_v0 }
 0x35c   : > { %16978 = vmatmul.mubr.msk.f32.gmra.mrb[154].mxu0 %vm1500_vm1, %v23820_v35 }
 0x35d   : > { %16980 = vmatprep.mubr.msk.f32.mxu0 %vm1500_vm1, %v23821_v37 }
 0x360   : > { %16981 = vmatmul.mubr.msk.f32.gmra.mrb[156].mxu0 %vm1500_vm1, %v23822_v22  ;;  %v23840_v22 = vld [vmem:[#allocation15_spill] sm:$0xff] }
 0x361   : > { %16983 = vmatprep.mubr.msk.f32.mxu0 %vm1500_vm1, %v4693_v40  ;;  %v926_v40 = vmax.f32 %v792_v17, 0.0 }
 0x364   : > { %16984 = vmatmul.mubr.msk.f32.gmra.mrb[158].mxu0 %vm1500_vm1, %v4694_v24  ;;  %v802_v24 = vadd.f32 %v20901_v0, %v23840_v22 }
 0x365   : > { %16988 = vmatprep.mubr.msk.f32.mxu0 %vm1500_vm1, %v5223_v26 }
 0x366   : > { %v928_v29 = vmax.f32 %v802_v24, 0.0 }
 0x368   : > { %16989 = vmatmul.mubr.msk.f32.vlgmr.msra.gmra.mrb[160].mxu0 %vm1500_vm1, %v5224_v42 }
 0x3fb   : > { %v16940_v2 = vpop.f32.mrb[128].mxu0 }
 0x3fc   : > { %v20913_v28 = vadd.f32 %v16940_v2, %v20906_v44  ;;  %v4862_v4 = vpop.f32.mrb[129].mxu0 }
 0x3fd   : > { %v20916_v48 = vadd.f32 %v20906_v44, %v4862_v4  ;;  %v929_v4 = vmax.f32 %v807_v33, 0.0  ;;  %v23851_v33 = vld [vmem:[#allocation20_spill] sm:$0xff] }
 0x3fe   : > { %23825 = vst [vmem:[#allocation86_spill] sm:$0xff] %v20913_v28  ;;  %v23523_v10 = vmax.f32 %v20913_v28, 0.0  ;;  %v5905_v28 = vld [vmem:[#allocation2 + $0x9] sm:$0xff] }
 0x3ff   : > { %23826 = vst [vmem:[#allocation88_spill] sm:$0xff] %v20916_v48  ;;  %v23524_v32 = vmax.f32 %v20916_v48, 0.0  ;;  %v16943_v34 = vpop.f32.mrb[130].mxu0 }
 0x400   : > { %v5126_v36 = vadd.f32 %v23523_v10, %v921_v49  ;;  %v20927_v38 = vadd.f32 %v16943_v34, %v20906_v44  ;;  %v4872_v41 = vpop.f32.mrb[131].mxu0  ;;  %v23843_v49 = vld [vmem:[#allocation16_spill] sm:$0xff]  ;;  %v812_v34 = vadd.f32 %v20901_v0, %v23844_v30  ;;  %v23879_v10 = vld [vmem:[#allocation34_spill] sm:$0xff] }
 0x401   : > { %v5125_v59 = vadd.f32 %v23524_v32, %v920_v15  ;;  %v20932_v60 = vadd.f32 %v20906_v44, %v4872_v41  ;;  %v817_v53 = vadd.f32 %v23843_v49, %v20901_v0  ;;  %v907_v32 = vadd.f32 %v23879_v10, %v20901_v0 }
 0x402   : > { %23829 = vst [vmem:[#allocation92_spill] sm:$0xff] %v20927_v38  ;;  %5158 = vst.msk [vmem:[#allocation2 + $0x30] sm:$0xff] %vm1500_vm1, %v5126_v36  ;;  %v23520_v21 = vmax.f32 %v20927_v38, 0.0 }
 0x403   : > { %23830 = vst [vmem:[#allocation116_spill] sm:$0xff] %v20932_v60  ;;  %5157 = vst.msk [vmem:[#allocation2 + $0x28] sm:$0xff] %vm1500_vm1, %v5125_v59  ;;  %v23521_v43 = vmax.f32 %v20932_v60, 0.0  ;;  %v16946_v56 = vpop.f32.mrb[132].mxu0  ;;  %v931_v46 = vmax.f32 %v817_v53, 0.0 }
 0x404   : > { %v5128_v45 = vadd.f32 %v23520_v21, %v923_v47  ;;  %v20945_v5 = vadd.f32 %v16946_v56, %v20906_v44  ;;  %v4882_v6 = vpop.f32.mrb[133].mxu0  ;;  %v23847_v56 = vld [vmem:[#allocation18_spill] sm:$0xff]  ;;  %v23876_v21 = vld [vmem:[#allocation33_spill] sm:$0xff] }
 0x405   : > { %v5127_v51 = vadd.f32 %v23521_v43, %v922_v14  ;;  %v20950_v7 = vadd.f32 %v20906_v44, %v4882_v6  ;;  %v892_v43 = vadd.f32 %v20901_v0, %v23876_v21 }
 0x406   : > { %23833 = vst [vmem:[#allocation117_spill] sm:$0xff] %v20945_v5  ;;  %5160 = vst.msk [vmem:[#allocation2 + $0x50] sm:$0xff] %vm1500_vm1, %v5128_v45  ;;  %v23517_v19 = vmax.f32 %v20945_v5, 0.0  ;;  %v827_v45 = vadd.f32 %v23847_v56, %v20901_v0 }
 0x407   : > { %23834 = vst [vmem:[#allocation118_spill] sm:$0xff] %v20950_v7  ;;  %5159 = vst.msk [vmem:[#allocation2 + $0x48] sm:$0xff] %vm1500_vm1, %v5127_v51  ;;  %v23518_v54 = vmax.f32 %v20950_v7, 0.0  ;;  %v16949_v55 = vpop.f32.mrb[134].mxu0 }
 0x408   : > { %v5130_v57 = vadd.f32 %v23517_v19, %v925_v9  ;;  %v20963_v23 = vadd.f32 %v16949_v55, %v20906_v44  ;;  %v4892_v18 = vpop.f32.mrb[135].mxu0  ;;  %v930_v9 = vmax.f32 %v812_v34, 0.0  ;;  %v933_v31 = vmax.f32 %v827_v45, 0.0  ;;  %v23875_v19 = vld [vmem:[#allocation32_spill] sm:$0xff] }
 0x409   : > { %v5129_v16 = vadd.f32 %v23518_v54, %v924_v20  ;;  %v20968_v27 = vadd.f32 %v20906_v44, %v4892_v18  ;;  %v20982_v42 = vld [vmem:[#allocation2 + $0x30] sm:$0xff]  ;;  %v897_v54 = vadd.f32 %v23875_v19, %v20901_v0 }
 0x40a   : > { %23837 = vst [vmem:[#allocation119_spill] sm:$0xff] %v20963_v23  ;;  %5162 = vst.msk [vmem:[#allocation2 + $0x70] sm:$0xff] %vm1500_vm1, %v5130_v57  ;;  %v23514_v35 = vmax.f32 %v20963_v23, 0.0  ;;  %v20974_v37 = vld [vmem:[#allocation2 + $0x28] sm:$0xff] }
 0x40b   : > { %23838 = vst [vmem:[#allocation120_spill] sm:$0xff] %v20968_v27  ;;  %5161 = vst.msk [vmem:[#allocation2 + $0x68] sm:$0xff] %vm1500_vm1, %v5129_v16  ;;  %v23515_v25 = vmax.f32 %v20968_v27, 0.0  ;;  %v16952_v26 = vpop.f32.mrb[136].mxu0  ;;  %16991 = vmatprep.mubr.msk.f32.mxu0 %vm1500_vm1, %v20974_v37 }
 0x40c   : > { %v5132_v62 = vadd.f32 %v23514_v35, %v927_v58  ;;  %v20987_v63 = vadd.f32 %v16952_v26, %v20906_v44  ;;  %v4902_v1 = vpop.f32.mrb[137].mxu0  ;;  %16992 = vmatmul.mubr.msk.f32.gmra.mrb[162].mxu0 %vm1500_vm1, %v20982_v42  ;;  %v932_v26 = vmax.f32 %v822_v52, 0.0  ;;  %v23872_v35 = vld [vmem:[#allocation31_spill] sm:$0xff] }
 0x40d   : > { %v5131_v39 = vadd.f32 %v23515_v25, %v926_v40  ;;  %v20994_v2 = vadd.f32 %v20906_v44, %v4902_v1  ;;  %v21008_v59 = vld [vmem:[#allocation2 + $0x50] sm:$0xff]  ;;  %v837_v40 = vadd.f32 %v23851_v33, %v20901_v0  ;;  %v882_v25 = vadd.f32 %v20901_v0, %v23872_v35 }
 0x40e   : > { %23841 = vst [vmem:[#allocation80_spill] sm:$0xff] %v20987_v63  ;;  %5164 = vst.msk [vmem:[#allocation2 + $0x90] sm:$0xff] %vm1500_vm1, %v5132_v62  ;;  %v23511_v8 = vmax.f32 %v20987_v63, 0.0  ;;  %v21000_v15 = vld [vmem:[#allocation2 + $0x48] sm:$0xff]  ;;  %v23852_v62 = vld [vmem:[#allocation21_spill] sm:$0xff] }
 0x40f   : > { %23842 = vst [vmem:[#allocation84_spill] sm:$0xff] %v20994_v2  ;;  %5163 = vst.msk [vmem:[#allocation2 + $0x88] sm:$0xff] %vm1500_vm1, %v5131_v39  ;;  %v23512_v36 = vmax.f32 %v20994_v2, 0.0  ;;  %v16955_v41 = vpop.f32.mrb[138].mxu0  ;;  %16994 = vmatprep.mubr.msk.f32.mxu0 %vm1500_vm1, %v21000_v15  ;;  %v832_v1 = vadd.f32 %v20901_v0, %v23852_v62  ;;  %v23859_v62 = vld [vmem:[#allocation24_spill] sm:$0xff] }
 0x410   : > { %v5134_v47 = vadd.f32 %v23511_v8, %v929_v4  ;;  %v21013_v11 = vadd.f32 %v16955_v41, %v20906_v44  ;;  %v4912_v50 = vpop.f32.mrb[139].mxu0  ;;  %16995 = vmatmul.mubr.msk.f32.gmra.mrb[164].mxu0 %vm1500_vm1, %v21008_v59  ;;  %v23871_v8 = vld [vmem:[#allocation30_spill] sm:$0xff] }
 0x411   : > { %v5133_v14 = vadd.f32 %v23512_v36, %v928_v29  ;;  %v21020_v3 = vadd.f32 %v20906_v44, %v4912_v50  ;;  %v21034_v17 = vld [vmem:[#allocation2 + $0x70] sm:$0xff]  ;;  %v23855_v50 = vld [vmem:[#allocation22_spill] sm:$0xff]  ;;  %v934_v45 = vmax.f32 %v832_v1, 0.0  ;;  %v857_v1 = vadd.f32 %v23859_v62, %v20901_v0 }
 0x412   : > { %23845 = vst [vmem:[#allocation90_spill] sm:$0xff] %v21013_v11  ;;  %5166 = vst.msk [vmem:[#allocation2 + $0xb0] sm:$0xff] %vm1500_vm1, %v5134_v47  ;;  %v23508_v6 = vmax.f32 %v21013_v11, 0.0  ;;  %v21026_v51 = vld [vmem:[#allocation2 + $0x68] sm:$0xff]  ;;  %v935_v47 = vmax.f32 %v837_v40, 0.0  ;;  %v887_v36 = vadd.f32 %v23871_v8, %v20901_v0 }
 0x413   : > { %23846 = vst [vmem:[#allocation94_spill] sm:$0xff] %v21020_v3  ;;  %5165 = vst.msk [vmem:[#allocation2 + $0xa8] sm:$0xff] %vm1500_vm1, %v5133_v14  ;;  %v23509_v20 = vmax.f32 %v21020_v3, 0.0  ;;  %v16958_v13 = vpop.f32.mrb[140].mxu0  ;;  %16997 = vmatprep.mubr.msk.f32.mxu0 %vm1500_vm1, %v21026_v51  ;;  %v847_v14 = vadd.f32 %v23855_v50, %v20901_v0  ;;  %v939_v62 = vmax.f32 %v857_v1, 0.0 }
 0x414   : > { %v5136_v55 = vadd.f32 %v23508_v6, %v931_v46  ;;  %v21039_v57 = vadd.f32 %v16958_v13, %v20906_v44  ;;  %v4922_v18 = vpop.f32.mrb[141].mxu0  ;;  %16998 = vmatmul.mubr.msk.f32.gmra.mrb[166].mxu0 %vm1500_vm1, %v21034_v17  ;;  %v23868_v6 = vld [vmem:[#allocation29_spill] sm:$0xff] }
 0x415   : > { %v5135_v16 = vadd.f32 %v23509_v20, %v930_v9  ;;  %v21046_v58 = vadd.f32 %v20906_v44, %v4922_v18  ;;  %v21060_v49 = vld [vmem:[#allocation2 + $0x90] sm:$0xff]  ;;  %v23856_v9 = vld [vmem:[#allocation23_spill] sm:$0xff]  ;;  %v872_v20 = vadd.f32 %v20901_v0, %v23868_v6 }
 0x416   : > { %23849 = vst [vmem:[#allocation96_spill] sm:$0xff] %v21039_v57  ;;  %5168 = vst.msk [vmem:[#allocation2 + $0xd0] sm:$0xff] %vm1500_vm1, %v5136_v55  ;;  %v23505_v22 = vmax.f32 %v21039_v57, 0.0  ;;  %v21052_v24 = vld [vmem:[#allocation2 + $0x88] sm:$0xff]  ;;  %v842_v12 = vadd.f32 %v20901_v0, %v23856_v9  ;;  %v21117_v9 = vld [vmem:[%s23464_s3 + $0x58] sm:$0x3f] }
 0x417   : > { %23850 = vst [vmem:[#allocation98_spill] sm:$0xff] %v21046_v58  ;;  %5167 = vst.msk [vmem:[#allocation2 + $0xc8] sm:$0xff] %vm1500_vm1, %v5135_v16  ;;  %v23506_v39 = vmax.f32 %v21046_v58, 0.0  ;;  %v16961_v4 = vpop.f32.mrb[142].mxu0  ;;  %17000 = vmatprep.mubr.msk.f32.mxu0 %vm1500_vm1, %v21052_v24 }
 0x418   : > { %v5138_v53 = vadd.f32 %v23505_v22, %v933_v31  ;;  %v21065_v29 = vadd.f32 %v16961_v4, %v20906_v44  ;;  %v4932_v30 = vpop.f32.mrb[143].mxu0  ;;  %17001 = vmatmul.mubr.msk.f32.gmra.mrb[168].mxu0 %vm1500_vm1, %v21060_v49  ;;  %v23867_v22 = vld [vmem:[#allocation28_spill] sm:$0xff] }
 0x419   : > { %v5137_v34 = vadd.f32 %v23506_v39, %v932_v26  ;;  %v21072_v41 = vadd.f32 %v20906_v44, %v4932_v30  ;;  %v21086_v55 = vld [vmem:[#allocation2 + $0xb0] sm:$0xff]  ;;  %v937_v26 = vmax.f32 %v847_v14, 0.0  ;;  %v936_v30 = vmax.f32 %v842_v12, 0.0 }
 0x41a   : > { %23853 = vst [vmem:[#allocation100_spill] sm:$0xff] %v21065_v29  ;;  %5170 = vst.msk [vmem:[#allocation2 + $0xf0] sm:$0xff] %vm1500_vm1, %v5138_v53  ;;  %v23503_v46 = vmax.f32 %v21065_v29, 0.0  ;;  %v21078_v56 = vld [vmem:[#allocation2 + $0xa8] sm:$0xff]  ;;  %v877_v39 = vadd.f32 %v23867_v22, %v20901_v0 }
 0x41b   : > { %23854 = vst [vmem:[#allocation102_spill] sm:$0xff] %v21072_v41  ;;  %5169 = vst.msk [vmem:[#allocation2 + $0xe8] sm:$0xff] %vm1500_vm1, %v5137_v34  ;;  %v23504_v52 = vmax.f32 %v21072_v41, 0.0  ;;  %v16964_v13 = vpop.f32.mrb[144].mxu0  ;;  %17003 = vmatprep.mubr.msk.f32.mxu0 %vm1500_vm1, %v21078_v56  ;;  %v23860_v34 = vld [vmem:[#allocation25_spill] sm:$0xff] }
 0x41c   : > { %v5140_v18 = vadd.f32 %v23503_v46, %v935_v47  ;;  %v21091_v16 = vadd.f32 %v16964_v13, %v20906_v44  ;;  %v4942_v31 = vpop.f32.mrb[145].mxu0  ;;  %17004 = vmatmul.mubr.msk.f32.gmra.mrb[170].mxu0 %vm1500_vm1, %v21086_v55  ;;  %v852_v47 = vadd.f32 %v20901_v0, %v23860_v34  ;;  %v23863_v34 = vld [vmem:[#allocation26_spill] sm:$0xff] }
 0x41d   : > { %v5139_v33 = vadd.f32 %v23504_v52, %v934_v45  ;;  %v21098_v40 = vadd.f32 %v20906_v44, %v4942_v31  ;;  %v21112_v14 = vld [vmem:[#allocation2 + $0xd0] sm:$0xff] }
 0x41e   : > { %23857 = vst [vmem:[#allocation104_spill] sm:$0xff] %v21091_v16  ;;  %5172 = vst.msk [vmem:[#allocation2 + $0x110] sm:$0xff] %vm1500_vm1, %v5140_v18  ;;  %v23501_v4 = vmax.f32 %v21091_v16, 0.0  ;;  %v21104_v53 = vld [vmem:[#allocation2 + $0xc8] sm:$0xff] }
 0x41f   : > { %23858 = vst [vmem:[#allocation78_spill] sm:$0xff] %v21098_v40  ;;  %5171 = vst.msk [vmem:[#allocation2 + $0x108] sm:$0xff] %vm1500_vm1, %v5139_v33  ;;  %v23502_v50 = vmax.f32 %v21098_v40, 0.0  ;;  %v16967_v45 = vpop.f32.mrb[146].mxu0  ;;  %17006 = vmatprep.mubr.msk.f32.mxu1 %vm1500_vm1, %v21104_v53 }
 0x420   : > { %v5142_v12 = vadd.f32 %v23501_v4, %v937_v26  ;;  %v21122_v13 = vadd.f32 %v16967_v45, %v20906_v44  ;;  %v4952_v18 = vpop.f32.mrb[147].mxu0  ;;  %17007 = vmatmul.mubr.msk.f32.vlgmr.msra.gmra.mrb[0].mxu1 %vm1500_vm1, %v21112_v14  ;;  %v867_v26 = vadd.f32 %v23863_v34, %v20901_v0 }
 0x421   : > { %v5141_v31 = vadd.f32 %v23502_v50, %v936_v30  ;;  %v21129_v33 = vadd.f32 %v20906_v44, %v4952_v18  ;;  %17037 = vmatpush3.msk.msra.mxu1 %vm1769_vm2, %v20894_v61  ;;  %v938_v30 = vmax.f32 %v852_v47, 0.0  ;;  %v23864_v50 = vld [vmem:[#allocation27_spill] sm:$0xff] }
 0x422   : > { %23861 = vst [vmem:[#allocation82_spill] sm:$0xff] %v21122_v13  ;;  %5174 = vst.msk [vmem:[#allocation2 + $0x130] sm:$0xff] %vm1500_vm1, %v5142_v12  ;;  %v23507_v45 = vmax.f32 %v21122_v13, 0.0  ;;  %v21137_v4 = vld [vmem:[#allocation2 + $0xe8] sm:$0xff]  ;;  %17086 = vmatprep.subr.msk.mxu1 %vm1769_vm2, %v21117_v9  ;;  %v862_v18 = vadd.f32 %v20901_v0, %v23864_v50  ;;  %v21147_v12 = vld [vmem:[#allocation2 + $0xf0] sm:$0xff]  ;;  %v941_v52 = vmax.f32 %v867_v26, 0.0 }
 0x423   : > { %23862 = vst [vmem:[#allocation6_spill] sm:$0xff] %v21129_v33  ;;  %5173 = vst.msk [vmem:[#allocation2 + $0x128] sm:$0xff] %vm1500_vm1, %v5141_v31  ;;  %v23510_v61 = vmax.f32 %v21129_v33, 0.0  ;;  %v16970_v1 = vpop.f32.mrb[148].mxu0  ;;  %17009 = vmatprep.mubr.msk.f32.mxu1 %vm1500_vm1, %v21137_v4  ;;  %v21384_v13 = vld [vmem:[#allocation2 + $0xcf] sm:$0xff]  ;;  %v21388_v33 = vld [vmem:[#allocation2 + $0xe7] sm:$0xff] }
 0x424   : > { %v5144_v34 = vadd.f32 %v23507_v45, %v939_v62  ;;  %v21152_v46 = vadd.f32 %v16970_v1, %v20906_v44  ;;  %v4962_v47 = vpop.f32.mrb[149].mxu0  ;;  %17010 = vmatmul.mubr.msk.f32.gmra.mrb[2].mxu1 %vm1500_vm1, %v21147_v12  ;;  %v940_v45 = vmax.f32 %v862_v18, 0.0  ;;  %23892 = vst [vmem:[#allocation24_spill] sm:$0xff] %v21388_v33  ;;  %v21392_v16 = vld [vmem:[#allocation2 + $0xef] sm:$0xff] }
 0x425   : > { %v5143_v50 = vadd.f32 %v23510_v61, %v938_v30  ;;  %v21159_v31 = vadd.f32 %v20906_v44, %v4962_v47  ;;  %v21173_v26 = vld [vmem:[#allocation2 + $0x110] sm:$0xff]  ;;  %v943_v61 = vmax.f32 %v877_v39, 0.0 }
 0x426   : > { %23865 = vst [vmem:[#allocation7_spill] sm:$0xff] %v21152_v46  ;;  %5176 = vst.msk [vmem:[#allocation2 + $0x150] sm:$0xff] %vm1500_vm1, %v5144_v34  ;;  %v23513_v62 = vmax.f32 %v21152_v46, 0.0  ;;  %v21165_v1 = vld [vmem:[#allocation2 + $0x108] sm:$0xff] }
 0x427   : > { %23866 = vst [vmem:[#allocation8_spill] sm:$0xff] %v21159_v31  ;;  %5175 = vst.msk [vmem:[#allocation2 + $0x148] sm:$0xff] %vm1500_vm1, %v5143_v50  ;;  %v23516_v30 = vmax.f32 %v21159_v31, 0.0  ;;  %v16973_v47 = vpop.f32.mrb[150].mxu0  ;;  %17012 = vmatprep.mubr.msk.f32.mxu1 %vm1500_vm1, %v21165_v1  ;;  %v21396_v40 = vld [vmem:[#allocation2 + $0x107] sm:$0xff]  ;;  %v21400_v29 = vld [vmem:[#allocation2 + $0x10f] sm:$0xff] }
 0x428   : > { %v5146_v22 = vadd.f32 %v23513_v62, %v941_v52  ;;  %v21178_v34 = vadd.f32 %v16973_v47, %v20906_v44  ;;  %v4972_v18 = vpop.f32.mrb[151].mxu0  ;;  %17013 = vmatmul.mubr.msk.f32.gmra.mrb[4].mxu1 %vm1500_vm1, %v21173_v26  ;;  %v942_v62 = vmax.f32 %v872_v20, 0.0 }
 0x429   : > { %v5145_v6 = vadd.f32 %v23516_v30, %v940_v45  ;;  %v21185_v50 = vadd.f32 %v20906_v44, %v4972_v18  ;;  %v21199_v39 = vld [vmem:[#allocation2 + $0x130] sm:$0xff]  ;;  %v945_v30 = vmax.f32 %v887_v36, 0.0 }
 0x42a   : > { %23869 = vst [vmem:[#allocation9_spill] sm:$0xff] %v21178_v34  ;;  %5178 = vst.msk [vmem:[#allocation2 + $0x170] sm:$0xff] %vm1500_vm1, %v5146_v22  ;;  %v23519_v52 = vmax.f32 %v21178_v34, 0.0  ;;  %v21191_v47 = vld [vmem:[#allocation2 + $0x128] sm:$0xff] }
 0x42b   : > { %23870 = vst [vmem:[#allocation10_spill] sm:$0xff] %v21185_v50  ;;  %5177 = vst.msk [vmem:[#allocation2 + $0x168] sm:$0xff] %vm1500_vm1, %v5145_v6  ;;  %v23522_v45 = vmax.f32 %v21185_v50, 0.0  ;;  %v16976_v18 = vpop.f32.mrb[152].mxu0  ;;  %17015 = vmatprep.mubr.msk.f32.mxu1 %vm1500_vm1, %v21191_v47  ;;  %v21404_v41 = vld [vmem:[#allocation2 + $0x127] sm:$0xff]  ;;  %v21408_v57 = vld [vmem:[#allocation2 + $0x12f] sm:$0xff] }
 0x42c   : > { %v5148_v8 = vadd.f32 %v23519_v52, %v943_v61  ;;  %v21204_v22 = vadd.f32 %v16976_v18, %v20906_v44  ;;  %v4982_v20 = vpop.f32.mrb[153].mxu0  ;;  %17016 = vmatmul.mubr.msk.f32.gmra.mrb[6].mxu1 %vm1500_vm1, %v21199_v39  ;;  %v944_v52 = vmax.f32 %v882_v25, 0.0 }
 0x42d   : > { %v5147_v35 = vadd.f32 %v23522_v45, %v942_v62  ;;  %v21211_v6 = vadd.f32 %v20906_v44, %v4982_v20  ;;  %v21225_v36 = vld [vmem:[#allocation2 + $0x150] sm:$0xff]  ;;  %v947_v45 = vmax.f32 %v897_v54, 0.0 }
 0x42e   : > { %23873 = vst [vmem:[#allocation11_spill] sm:$0xff] %v21204_v22  ;;  %5180 = vst.msk [vmem:[#allocation2 + $0x190] sm:$0xff] %vm1500_vm1, %v5148_v8  ;;  %v23525_v61 = vmax.f32 %v21204_v22, 0.0  ;;  %v21217_v18 = vld [vmem:[#allocation2 + $0x148] sm:$0xff] }
 0x42f   : > { %23874 = vst [vmem:[#allocation12_spill] sm:$0xff] %v21211_v6  ;;  %5179 = vst.msk [vmem:[#allocation2 + $0x188] sm:$0xff] %vm1500_vm1, %v5147_v35  ;;  %v23528_v62 = vmax.f32 %v21211_v6, 0.0  ;;  %v16979_v20 = vpop.f32.mrb[154].mxu0  ;;  %17018 = vmatprep.mubr.msk.f32.mxu1 %vm1500_vm1, %v21217_v18  ;;  %v23880_v22 = vld [vmem:[#allocation35_spill] sm:$0xff]  ;;  %v23883_v6 = vld [vmem:[#allocation36_spill] sm:$0xff] }
 0x430   : > { %v5150_v19 = vadd.f32 %v23525_v61, %v945_v30  ;;  %v21230_v8 = vadd.f32 %v16979_v20, %v20906_v44  ;;  %v4992_v25 = vpop.f32.mrb[155].mxu0  ;;  %17019 = vmatmul.mubr.msk.f32.gmra.mrb[8].mxu1 %vm1500_vm1, %v21225_v36  ;;  %v946_v61 = vmax.f32 %v892_v43, 0.0  ;;  %v902_v34 = vadd.f32 %v20901_v0, %v23880_v22  ;;  %v21412_v58 = vld [vmem:[#allocation2 + $0x147] sm:$0xff]  ;;  %v21416_v11 = vld [vmem:[#allocation2 + $0x14f] sm:$0xff] }
 0x431   : > { %v5149_v21 = vadd.f32 %v23528_v62, %v944_v52  ;;  %v21237_v35 = vadd.f32 %v20906_v44, %v4992_v25  ;;  %v21251_v54 = vld [vmem:[#allocation2 + $0x170] sm:$0xff]  ;;  %v949_v62 = vmax.f32 %v907_v32, 0.0  ;;  %v917_v50 = vadd.f32 %v23883_v6, %v20901_v0 }
 0x432   : > { %23877 = vst [vmem:[#allocation13_spill] sm:$0xff] %v21230_v8  ;;  %5182 = vst.msk [vmem:[#allocation2 + $0x1b0] sm:$0xff] %vm1500_vm1, %v5150_v19  ;;  %v23531_v30 = vmax.f32 %v21230_v8, 0.0  ;;  %v21243_v20 = vld [vmem:[#allocation2 + $0x168] sm:$0xff]  ;;  %v23884_v8 = vld [vmem:[#allocation37_spill] sm:$0xff] }
 0x433   : > { %23878 = vst [vmem:[#allocation14_spill] sm:$0xff] %v21237_v35  ;;  %5181 = vst.msk [vmem:[#allocation2 + $0x1a8] sm:$0xff] %vm1500_vm1, %v5149_v21  ;;  %v23534_v52 = vmax.f32 %v21237_v35, 0.0  ;;  %v16982_v25 = vpop.f32.mrb[156].mxu0  ;;  %17021 = vmatprep.mubr.msk.f32.mxu1 %vm1500_vm1, %v21243_v20  ;;  %v912_v46 = vadd.f32 %v20901_v0, %v23884_v8  ;;  %v21420_v3 = vld [vmem:[#allocation2 + $0x167] sm:$0xff]  ;;  %v21424_v63 = vld [vmem:[#allocation2 + $0x16f] sm:$0xff] }
 0x434   : > { %v5152_v10 = vadd.f32 %v23531_v30, %v947_v45  ;;  %v21256_v19 = vadd.f32 %v16982_v25, %v20906_v44  ;;  %v5002_v43 = vpop.f32.mrb[157].mxu0  ;;  %17022 = vmatmul.mubr.msk.f32.gmra.mrb[10].mxu1 %vm1500_vm1, %v21251_v54  ;;  %v948_v30 = vmax.f32 %v902_v34, 0.0 }
 0x435   : > { %v5151_v22 = vadd.f32 %v23534_v52, %v946_v61  ;;  %v21263_v21 = vadd.f32 %v20906_v44, %v5002_v43  ;;  %v21277_v32 = vld [vmem:[#allocation2 + $0x190] sm:$0xff] }
 0x436   : > { %23881 = vst [vmem:[#allocation15_spill] sm:$0xff] %v21256_v19  ;;  %5184 = vst.msk [vmem:[#allocation2 + $0x1d0] sm:$0xff] %vm1500_vm1, %v5152_v10  ;;  %v23536_v45 = vmax.f32 %v21256_v19, 0.0  ;;  %v21269_v25 = vld [vmem:[#allocation2 + $0x188] sm:$0xff] }
 0x437   : > { %23882 = vst [vmem:[#allocation16_spill] sm:$0xff] %v21263_v21  ;;  %5183 = vst.msk [vmem:[#allocation2 + $0x1c8] sm:$0xff] %vm1500_vm1, %v5151_v22  ;;  %v23539_v61 = vmax.f32 %v21263_v21, 0.0  ;;  %v16985_v43 = vpop.f32.mrb[158].mxu0  ;;  %17024 = vmatprep.mubr.msk.f32.mxu1 %vm1500_vm1, %v21269_v25  ;;  %v951_v22 = vmax.f32 %v917_v50, 0.0  ;;  %v21376_v21 = vld [vmem:[#allocation2 + $0xc7] sm:$0xff] }
 0x438   : > { %v5154_v6 = vadd.f32 %v23536_v45, %v949_v62  ;;  %v21282_v10 = vadd.f32 %v16985_v43, %v20906_v44  ;;  %v5012_v34 = vpop.f32.mrb[159].mxu0  ;;  %17025 = vmatmul.mubr.msk.f32.gmra.mrb[12].mxu1 %vm1500_vm1, %v21277_v32  ;;  %v950_v62 = vmax.f32 %v912_v46, 0.0  ;;  %v21428_v2 = vld [vmem:[#allocation2 + $0x187] sm:$0xff]  ;;  %v21432_v23 = vld [vmem:[#allocation2 + $0x18f] sm:$0xff] }
 0x439   : > { %v5153_v0 = vadd.f32 %v23539_v61, %v948_v30  ;;  %v21289_v8 = vadd.f32 %v20906_v44, %v5012_v34  ;;  %v21299_v45 = vld [vmem:[#allocation2 + $0x1b0] sm:$0xff]  ;;  %v5189_v34 = vld [vmem:[#allocation2 + $0x7] sm:$0xff] }
 0x43a   : > { %23885 = vst [vmem:[#allocation17_spill] sm:$0xff] %v21282_v10  ;;  %5186 = vst.msk [vmem:[#allocation2 + $0x1f0] sm:$0xff] %vm1500_vm1, %v5154_v6  ;;  %v23537_v52 = vmax.f32 %v21282_v10, 0.0  ;;  %v21293_v19 = vld [vmem:[#allocation2 + $0x1a8] sm:$0xff] }
 0x43b   : > { %23886 = vst [vmem:[#allocation18_spill] sm:$0xff] %v21289_v8  ;;  %5185 = vst.msk [vmem:[#allocation2 + $0x1e8] sm:$0xff] %vm1500_vm1, %v5153_v0  ;;  %v23538_v43 = vmax.f32 %v21289_v8, 0.0  ;;  %17027 = vmatprep.mubr.msk.f32.mxu1 %vm1500_vm1, %v21293_v19  ;;  %v21364_v61 = vld [vmem:[#allocation2 + $0x8f] sm:$0xff]  ;;  %v21368_v10 = vld [vmem:[#allocation2 + $0xa7] sm:$0xff]  ;;  %v21380_v35 = vpop.f32.mrb[160].mxu0 }
 0x43c   : > { %v5156_v44 = vadd.f32 %v23537_v52, %v951_v22  ;;  %17028 = vmatmul.mubr.msk.f32.gmra.mrb[14].mxu1 %vm1500_vm1, %v21299_v45  ;;  %v5190_v22 = vld [vmem:[#allocation2 + $0xf] sm:$0xff]  ;;  %v21352_v52 = vld [vmem:[#allocation2 + $0x67] sm:$0xff]  ;;  %23890 = vst [vmem:[#allocation22_spill] sm:$0xff] %v21380_v35  ;;  %v21382_v31 = vpop.f32.mrb[161].mxu0 }
 0x43d   : > { %v5155_v50 = vadd.f32 %v23538_v43, %v950_v62  ;;  %v21313_v30 = vld [vmem:[#allocation2 + $0x1d0] sm:$0xff]  ;;  %v21329_v62 = vld [vmem:[%s23464_s3 + $0x60] sm:$0x3f]  ;;  %v21360_v43 = vld [vmem:[#allocation2 + $0x87] sm:$0xff]  ;;  %23891 = vst [vmem:[#allocation23_spill] sm:$0xff] %v21382_v31 }
 0x43e   : > { %5188 = vst.msk [vmem:[#allocation2 + $0x210] sm:$0xff] %vm1500_vm1, %v5156_v44  ;;  %v21308_v46 = vld [vmem:[#allocation2 + $0x1c8] sm:$0xff]  ;;  %v5906_v31 = vld [vmem:[#allocation2 + $0x11] sm:$0xff] }
 0x43f   : > { %5187 = vst.msk [vmem:[#allocation2 + $0x208] sm:$0xff] %vm1500_vm1, %v5155_v50  ;;  %17030 = vmatprep.mubr.msk.f32.mxu1 %vm1500_vm1, %v21308_v46  ;;  %v21332_v44 = vld [vmem:[#allocation2 + $0x27] sm:$0xff]  ;;  %v21340_v50 = vld [vmem:[#allocation2 + $0x2f] sm:$0xff] }
 0x440   : > { %17031 = vmatmul.mubr.msk.f32.gmra.mrb[16].mxu1 %vm1500_vm1, %v21313_v30  ;;  %v21372_v8 = vld [vmem:[#allocation2 + $0xaf] sm:$0xff]  ;;  %v21436_v27 = vld [vmem:[#allocation2 + $0x1a7] sm:$0xff] }
 0x441   : > { %v21321_v0 = vld [vmem:[#allocation2 + $0x1f0] sm:$0xff]  ;;  %23889 = vst [vmem:[#allocation21_spill] sm:$0xff] %v21372_v8  ;;  %v21444_v7 = vld [vmem:[#allocation2 + $0x1c7] sm:$0xff] }
 0x442   : > { %v21317_v6 = vld [vmem:[#allocation2 + $0x1e8] sm:$0xff]  ;;  %23888 = vst [vmem:[#allocation20_spill] sm:$0xff] %v21321_v0 }
 0x443   : > { %23887 = vst [vmem:[#allocation19_spill] sm:$0xff] %v21317_v6  ;;  %17033 = vmatprep.mubr.msk.f32.mxu1 %vm1500_vm1, %v21317_v6  ;;  %v21440_v5 = vld [vmem:[#allocation2 + $0x1af] sm:$0xff]  ;;  %v21452_v60 = vld [vmem:[#allocation2 + $0x1e7] sm:$0xff] }
 0x444   : > { %17034 = vmatmul.mubr.msk.f32.gmra.mrb[18].mxu1 %vm1500_vm1, %v21321_v0  ;;  %v21448_v38 = vld [vmem:[#allocation2 + $0x1cf] sm:$0xff]  ;;  %v21464_v35 = vld [vmem:[%s23464_s3 + $0x68] sm:$0x3f] }
 0x445   : > { %17038 = vmatprep.mubr.msk.f32.mxu1 %vm1500_vm1, %v5189_v34  ;;  %v21344_v34 = vld [vmem:[#allocation2 + $0x47] sm:$0xff]  ;;  %v21456_v48 = vld [vmem:[#allocation2 + $0x1ef] sm:$0xff] }
 0x446   : > { %v21467_v0 = vld [vmem:[#allocation2 + $0x29] sm:$0xff] }
 0x447   : > { %23893 = vst [vmem:[#allocation25_spill] sm:$0xff] %v21467_v0  ;;  %v21479_v6 = vld [vmem:[#allocation2 + $0x49] sm:$0xff] }
 0x448   : > { %17039 = vmatmul.mubr.msk.f32.vlgmr.msra.gmra.mrb[20].mxu1 %vm1500_vm1, %v5190_v22  ;;  %v21348_v22 = vld [vmem:[#allocation2 + $0x4f] sm:$0xff]  ;;  %23895 = vst [vmem:[#allocation27_spill] sm:$0xff] %v21479_v6 }
 0x449   : > { %17041 = vmatprep.mubr.msk.f32.mxu1 %vm1500_vm1, %v21332_v44  ;;  %17087 = vmatpush3.msk.msra.mxu1 %vm1769_vm2, %v21117_v9  ;;  %v21356_v9 = vld [vmem:[#allocation2 + $0x6f] sm:$0xff] }
 0x44a   : > { %17136 = vmatprep.subr.msk.mxu1 %vm1769_vm2, %v21329_v62 }
 0x44c   : > { %17042 = vmatmul.mubr.msk.f32.gmra.mrb[22].mxu1 %vm1500_vm1, %v21340_v50 }
 0x44d   : > { %17044 = vmatprep.mubr.msk.f32.mxu1 %vm1500_vm1, %v21344_v34 }
 0x450   : > { %17045 = vmatmul.mubr.msk.f32.gmra.mrb[24].mxu1 %vm1500_vm1, %v21348_v22 }
 0x451   : > { %17047 = vmatprep.mubr.msk.f32.mxu1 %vm1500_vm1, %v21352_v52 }
 0x454   : > { %17048 = vmatmul.mubr.msk.f32.gmra.mrb[26].mxu1 %vm1500_vm1, %v21356_v9 }
 0x455   : > { %17050 = vmatprep.mubr.msk.f32.mxu1 %vm1500_vm1, %v21360_v43 }
 0x458   : > { %17051 = vmatmul.mubr.msk.f32.gmra.mrb[28].mxu1 %vm1500_vm1, %v21364_v61 }
 0x459   : > { %17053 = vmatprep.mubr.msk.f32.mxu1 %vm1500_vm1, %v21368_v10 }
 0x45c   : > { %17054 = vmatmul.mubr.msk.f32.gmra.mrb[30].mxu1 %vm1500_vm1, %v21372_v8 }
 0x45d   : > { %17056 = vmatprep.mubr.msk.f32.mxu1 %vm1500_vm1, %v21376_v21 }
 0x460   : > { %17057 = vmatmul.mubr.msk.f32.gmra.mrb[0].mxu1 %vm1500_vm1, %v21384_v13 }
 0x461   : > { %17059 = vmatprep.mubr.msk.f32.mxu1 %vm1500_vm1, %v21388_v33 }
 0x464   : > { %17060 = vmatmul.mubr.msk.f32.gmra.mrb[2].mxu1 %vm1500_vm1, %v21392_v16 }
 0x465   : > { %17062 = vmatprep.mubr.msk.f32.mxu1 %vm1500_vm1, %v21396_v40 }
 0x468   : > { %17063 = vmatmul.mubr.msk.f32.gmra.mrb[4].mxu1 %vm1500_vm1, %v21400_v29 }
 0x469   : > { %17065 = vmatprep.mubr.msk.f32.mxu1 %vm1500_vm1, %v21404_v41 }
 0x46c   : > { %17066 = vmatmul.mubr.msk.f32.gmra.mrb[6].mxu1 %vm1500_vm1, %v21408_v57 }
 0x46d   : > { %17068 = vmatprep.mubr.msk.f32.mxu1 %vm1500_vm1, %v21412_v58 }
 0x470   : > { %17069 = vmatmul.mubr.msk.f32.gmra.mrb[8].mxu1 %vm1500_vm1, %v21416_v11 }
 0x471   : > { %17071 = vmatprep.mubr.msk.f32.mxu1 %vm1500_vm1, %v21420_v3 }
 0x474   : > { %17072 = vmatmul.mubr.msk.f32.gmra.mrb[10].mxu1 %vm1500_vm1, %v21424_v63 }
 0x475   : > { %17074 = vmatprep.mubr.msk.f32.mxu1 %vm1500_vm1, %v21428_v2 }
 0x478   : > { %17075 = vmatmul.mubr.msk.f32.gmra.mrb[12].mxu1 %vm1500_vm1, %v21432_v23 }
 0x479   : > { %17077 = vmatprep.mubr.msk.f32.mxu1 %vm1500_vm1, %v21436_v27 }
 0x47c   : > { %17078 = vmatmul.mubr.msk.f32.gmra.mrb[14].mxu1 %vm1500_vm1, %v21440_v5 }
 0x47d   : > { %17080 = vmatprep.mubr.msk.f32.mxu1 %vm1500_vm1, %v21444_v7 }
 0x480   : > { %17081 = vmatmul.mubr.msk.f32.gmra.mrb[16].mxu1 %vm1500_vm1, %v21448_v38 }
 0x481   : > { %17083 = vmatprep.mubr.msk.f32.mxu1 %vm1500_vm1, %v21452_v60 }
 0x484   : > { %17084 = vmatmul.mubr.msk.f32.gmra.mrb[18].mxu1 %vm1500_vm1, %v21456_v48 }
 0x485   : > { %17088 = vmatprep.mubr.msk.f32.mxu1 %vm1500_vm1, %v5905_v28  ;;  %v21475_v28 = vld [vmem:[#allocation2 + $0x31] sm:$0xff] }
 0x486   : > { %23894 = vst [vmem:[#allocation26_spill] sm:$0xff] %v21475_v28 }
 0x488   : > { %17089 = vmatmul.mubr.msk.f32.vlgmr.msra.gmra.mrb[20].mxu1 %vm1500_vm1, %v5906_v31  ;;  %v21483_v31 = vld [vmem:[#allocation2 + $0x51] sm:$0xff] }
 0x489   : > { %17091 = vmatprep.mubr.msk.f32.mxu1 %vm1500_vm1, %v21467_v0  ;;  %17137 = vmatpush3.msk.msra.mxu1 %vm1769_vm2, %v21329_v62  ;;  %23896 = vst [vmem:[#allocation28_spill] sm:$0xff] %v21483_v31  ;;  %v21487_v0 = vld [vmem:[#allocation2 + $0x69] sm:$0xff]  ;;  %v21491_v62 = vld [vmem:[#allocation2 + $0x71] sm:$0xff] }
 0x48a   : > { %17186 = vmatprep.subr.msk.mxu1 %vm1769_vm2, %v21464_v35  ;;  %23897 = vst [vmem:[#allocation29_spill] sm:$0xff] %v21487_v0  ;;  %23898 = vst [vmem:[#allocation30_spill] sm:$0xff] %v21491_v62 }
 0x48c   : > { %17092 = vmatmul.mubr.msk.f32.gmra.mrb[22].mxu1 %vm1500_vm1, %v21475_v28  ;;  %v21495_v28 = vld [vmem:[#allocation2 + $0x89] sm:$0xff] }
 0x48d   : > { %17094 = vmatprep.mubr.msk.f32.mxu1 %vm1500_vm1, %v21479_v6  ;;  %23899 = vst [vmem:[#allocation31_spill] sm:$0xff] %v21495_v28  ;;  %v21499_v6 = vld [vmem:[#allocation2 + $0x91] sm:$0xff] }
 0x48e   : > { %23900 = vst [vmem:[#allocation32_spill] sm:$0xff] %v21499_v6 }
 0x490   : > { %17095 = vmatmul.mubr.msk.f32.gmra.mrb[24].mxu1 %vm1500_vm1, %v21483_v31  ;;  %v21503_v31 = vld [vmem:[#allocation2 + $0xa9] sm:$0xff] }
 0x491   : > { %17097 = vmatprep.mubr.msk.f32.mxu1 %vm1500_vm1, %v21487_v0  ;;  %23901 = vst [vmem:[#allocation33_spill] sm:$0xff] %v21503_v31  ;;  %v21507_v0 = vld [vmem:[#allocation2 + $0xb1] sm:$0xff] }
 0x492   : > { %23902 = vst [vmem:[#allocation34_spill] sm:$0xff] %v21507_v0 }
 0x494   : > { %17098 = vmatmul.mubr.msk.f32.gmra.mrb[26].mxu1 %vm1500_vm1, %v21491_v62  ;;  %v21511_v62 = vld [vmem:[#allocation2 + $0xc9] sm:$0xff] }
 0x495   : > { %17100 = vmatprep.mubr.msk.f32.mxu1 %vm1500_vm1, %v21495_v28  ;;  %23903 = vst [vmem:[#allocation35_spill] sm:$0xff] %v21511_v62  ;;  %v21515_v28 = vld [vmem:[#allocation2 + $0xd1] sm:$0xff] }
 0x496   : > { %23904 = vst [vmem:[#allocation36_spill] sm:$0xff] %v21515_v28 }
 0x498   : > { %17101 = vmatmul.mubr.msk.f32.gmra.mrb[28].mxu1 %vm1500_vm1, %v21499_v6  ;;  %v21519_v6 = vld [vmem:[#allocation2 + $0xe9] sm:$0xff] }
 0x499   : > { %17103 = vmatprep.mubr.msk.f32.mxu1 %vm1500_vm1, %v21503_v31  ;;  %23905 = vst [vmem:[#allocation37_spill] sm:$0xff] %v21519_v6  ;;  %v21523_v31 = vld [vmem:[#allocation2 + $0xf1] sm:$0xff] }
 0x49a   : > { %23906 = vst [vmem:[#allocation121_spill] sm:$0xff] %v21523_v31 }
 0x49c   : > { %17104 = vmatmul.mubr.msk.f32.gmra.mrb[30].mxu1 %vm1500_vm1, %v21507_v0  ;;  %v21527_v0 = vld [vmem:[#allocation2 + $0x109] sm:$0xff] }
 0x49d   : > { %17106 = vmatprep.mubr.msk.f32.mxu1 %vm1500_vm1, %v21511_v62  ;;  %23907 = vst [vmem:[#allocation122_spill] sm:$0xff] %v21527_v0  ;;  %v21531_v62 = vld [vmem:[#allocation2 + $0x111] sm:$0xff] }
 0x49e   : > { %23908 = vst [vmem:[#allocation123_spill] sm:$0xff] %v21531_v62 }
 0x4a0   : > { %17107 = vmatmul.mubr.msk.f32.gmra.mrb[0].mxu1 %vm1500_vm1, %v21515_v28  ;;  %v21535_v28 = vld [vmem:[#allocation2 + $0x129] sm:$0xff] }
 0x4a1   : > { %17109 = vmatprep.mubr.msk.f32.mxu1 %vm1500_vm1, %v21519_v6  ;;  %23909 = vst [vmem:[#allocation124_spill] sm:$0xff] %v21535_v28  ;;  %v21539_v6 = vld [vmem:[#allocation2 + $0x131] sm:$0xff] }
 0x4a2   : > { %23910 = vst [vmem:[#allocation125_spill] sm:$0xff] %v21539_v6 }
 0x4a4   : > { %17110 = vmatmul.mubr.msk.f32.gmra.mrb[2].mxu1 %vm1500_vm1, %v21523_v31  ;;  %v21543_v31 = vld [vmem:[#allocation2 + $0x149] sm:$0xff] }
 0x4a5   : > { %17112 = vmatprep.mubr.msk.f32.mxu1 %vm1500_vm1, %v21527_v0  ;;  %23911 = vst [vmem:[#allocation126_spill] sm:$0xff] %v21543_v31  ;;  %v21547_v0 = vld [vmem:[#allocation2 + $0x151] sm:$0xff] }
 0x4a6   : > { %23912 = vst [vmem:[#allocation127_spill] sm:$0xff] %v21547_v0 }
 0x4a8   : > { %17113 = vmatmul.mubr.msk.f32.gmra.mrb[4].mxu1 %vm1500_vm1, %v21531_v62  ;;  %v21551_v62 = vld [vmem:[#allocation2 + $0x169] sm:$0xff] }
 0x4a9   : > { %17115 = vmatprep.mubr.msk.f32.mxu1 %vm1500_vm1, %v21535_v28  ;;  %23913 = vst [vmem:[#allocation128_spill] sm:$0xff] %v21551_v62  ;;  %v21555_v28 = vld [vmem:[#allocation2 + $0x171] sm:$0xff] }
 0x4aa   : > { %23914 = vst [vmem:[#allocation129_spill] sm:$0xff] %v21555_v28 }
 0x4ac   : > { %17116 = vmatmul.mubr.msk.f32.gmra.mrb[6].mxu1 %vm1500_vm1, %v21539_v6  ;;  %v21559_v6 = vld [vmem:[#allocation2 + $0x189] sm:$0xff] }
 0x4ad   : > { %17118 = vmatprep.mubr.msk.f32.mxu1 %vm1500_vm1, %v21543_v31  ;;  %23915 = vst [vmem:[#allocation130_spill] sm:$0xff] %v21559_v6  ;;  %v21563_v31 = vld [vmem:[#allocation2 + $0x191] sm:$0xff] }
 0x4ae   : > { %23916 = vst [vmem:[#allocation131_spill] sm:$0xff] %v21563_v31 }
 0x4b0   : > { %17119 = vmatmul.mubr.msk.f32.gmra.mrb[8].mxu1 %vm1500_vm1, %v21547_v0  ;;  %v21567_v0 = vld [vmem:[#allocation2 + $0x1a9] sm:$0xff] }
 0x4b1   : > { %17121 = vmatprep.mubr.msk.f32.mxu1 %vm1500_vm1, %v21551_v62  ;;  %23917 = vst [vmem:[#allocation132_spill] sm:$0xff] %v21567_v0  ;;  %v21571_v62 = vld [vmem:[#allocation2 + $0x1b1] sm:$0xff] }
 0x4b4   : > { %17122 = vmatmul.mubr.msk.f32.gmra.mrb[10].mxu1 %vm1500_vm1, %v21555_v28  ;;  %v21575_v28 = vld [vmem:[#allocation2 + $0x1c9] sm:$0xff] }
 0x4b5   : > { %17124 = vmatprep.mubr.msk.f32.mxu1 %vm1500_vm1, %v21559_v6  ;;  %23918 = vst [vmem:[#allocation133_spill] sm:$0xff] %v21575_v28  ;;  %v21579_v6 = vld [vmem:[#allocation2 + $0x1d1] sm:$0xff] }
 0x4b8   : > { %17125 = vmatmul.mubr.msk.f32.gmra.mrb[12].mxu1 %vm1500_vm1, %v21563_v31  ;;  %v21583_v31 = vld [vmem:[#allocation2 + $0x1e9] sm:$0xff] }
 0x4b9   : > { %17127 = vmatprep.mubr.msk.f32.mxu1 %vm1500_vm1, %v21567_v0  ;;  %23919 = vst [vmem:[#allocation134_spill] sm:$0xff] %v21583_v31  ;;  %v21587_v0 = vld [vmem:[#allocation2 + $0x1f1] sm:$0xff] }
 0x4bc   : > { %17128 = vmatmul.mubr.msk.f32.gmra.mrb[14].mxu1 %vm1500_vm1, %v21571_v62 }
 0x4bd   : > { %17130 = vmatprep.mubr.msk.f32.mxu1 %vm1500_vm1, %v21575_v28  ;;  %v14508_v28 = vld [vmem:[%s23464_s3 + $0x70] sm:$0x3f] }
 0x4c0   : > { %17131 = vmatmul.mubr.msk.f32.gmra.mrb[16].mxu1 %vm1500_vm1, %v21579_v6 }
 0x4c1   : > { %17133 = vmatprep.mubr.msk.f32.mxu1 %vm1500_vm1, %v21583_v31 }
 0x4c4   : > { %17134 = vmatmul.mubr.msk.f32.gmra.mrb[18].mxu1 %vm1500_vm1, %v21587_v0 }
 0x4c5   : > { %17138 = vmatprep.mubr.msk.f32.mxu1 %vm1500_vm1, %v21332_v44 }
 0x4c8   : > { %17139 = vmatmul.mubr.msk.f32.vlgmr.msra.gmra.mrb[20].mxu1 %vm1500_vm1, %v21340_v50 }
 0x4c9   : > { %17141 = vmatprep.mubr.msk.f32.mxu1 %vm1500_vm1, %v21344_v34  ;;  %17187 = vmatpush3.msk.msra.mxu1 %vm1769_vm2, %v21464_v35 }
 0x4ca   : > { %17236 = vmatprep.subr.msk.mxu1 %vm1769_vm2, %v14508_v28 }
 0x4cc   : > { %17142 = vmatmul.mubr.msk.f32.gmra.mrb[22].mxu1 %vm1500_vm1, %v21348_v22 }
 0x4cd   : > { %17144 = vmatprep.mubr.msk.f32.mxu1 %vm1500_vm1, %v21352_v52 }
 0x4d0   : > { %17145 = vmatmul.mubr.msk.f32.gmra.mrb[24].mxu1 %vm1500_vm1, %v21356_v9 }
 0x4d1   : > { %17147 = vmatprep.mubr.msk.f32.mxu1 %vm1500_vm1, %v21360_v43 }
 0x4d4   : > { %17148 = vmatmul.mubr.msk.f32.gmra.mrb[26].mxu1 %vm1500_vm1, %v21364_v61 }
 0x4d5   : > { %17150 = vmatprep.mubr.msk.f32.mxu1 %vm1500_vm1, %v21368_v10 }
 0x4d8   : > { %17151 = vmatmul.mubr.msk.f32.gmra.mrb[28].mxu1 %vm1500_vm1, %v21372_v8 }
 0x4d9   : > { %17153 = vmatprep.mubr.msk.f32.mxu1 %vm1500_vm1, %v21376_v21 }
 0x4dc   : > { %17154 = vmatmul.mubr.msk.f32.gmra.mrb[30].mxu1 %vm1500_vm1, %v21384_v13 }
 0x4dd   : > { %17156 = vmatprep.mubr.msk.f32.mxu1 %vm1500_vm1, %v21388_v33 }
 0x4df   : > { %v21623_v35 = vpop.f32.mrb[162].mxu0 }
 0x4e0   : > { %23920 = vst [vmem:[#allocation135_spill] sm:$0xff] %v21623_v35  ;;  %v21625_v44 = vpop.f32.mrb[163].mxu0  ;;  %17157 = vmatmul.mubr.msk.f32.gmra.mrb[0].mxu1 %vm1500_vm1, %v21392_v16 }
 0x4e1   : > { %23921 = vst [vmem:[#allocation136_spill] sm:$0xff] %v21625_v44  ;;  %17159 = vmatprep.mubr.msk.f32.mxu1 %vm1500_vm1, %v21396_v40 }
 0x4e3   : > { %v21631_v50 = vpop.f32.mrb[164].mxu0 }
 0x4e4   : > { %23922 = vst [vmem:[#allocation137_spill] sm:$0xff] %v21631_v50  ;;  %v21633_v8 = vpop.f32.mrb[165].mxu0  ;;  %17160 = vmatmul.mubr.msk.f32.gmra.mrb[2].mxu1 %vm1500_vm1, %v21400_v29 }
 0x4e5   : > { %23923 = vst [vmem:[#allocation138_spill] sm:$0xff] %v21633_v8  ;;  %17162 = vmatprep.mubr.msk.f32.mxu1 %vm1500_vm1, %v21404_v41 }
 0x4e7   : > { %v21639_v33 = vpop.f32.mrb[166].mxu0 }
 0x4e8   : > { %23924 = vst [vmem:[#allocation139_spill] sm:$0xff] %v21639_v33  ;;  %v21641_v35 = vpop.f32.mrb[167].mxu0  ;;  %17163 = vmatmul.mubr.msk.f32.gmra.mrb[4].mxu1 %vm1500_vm1, %v21408_v57 }
 0x4e9   : > { %23925 = vst [vmem:[#allocation140_spill] sm:$0xff] %v21641_v35  ;;  %17165 = vmatprep.mubr.msk.f32.mxu1 %vm1500_vm1, %v21412_v58  ;;  %v23948_v35 = vld [vmem:[#allocation124_spill] sm:$0xff] }
 0x4eb   : > { %v21647_v44 = vpop.f32.mrb[168].mxu0 }
 0x4ec   : > { %23926 = vst [vmem:[#allocation141_spill] sm:$0xff] %v21647_v44  ;;  %v21649_v50 = vpop.f32.mrb[169].mxu0  ;;  %17166 = vmatmul.mubr.msk.f32.gmra.mrb[6].mxu1 %vm1500_vm1, %v21416_v11  ;;  %v23947_v44 = vld [vmem:[#allocation123_spill] sm:$0xff] }
 0x4ed   : > { %23927 = vst [vmem:[#allocation142_spill] sm:$0xff] %v21649_v50  ;;  %17168 = vmatprep.mubr.msk.f32.mxu1 %vm1500_vm1, %v21420_v3  ;;  %v14542_v50 = vld [vmem:[%s23464_s3 + $0x78] sm:$0x3f] }
 0x4ef   : > { %v21655_v8 = vpop.f32.mrb[170].mxu0 }
 0x4f0   : > { %23928 = vst [vmem:[#allocation143_spill] sm:$0xff] %v21655_v8  ;;  %v21657_v33 = vpop.f32.mrb[171].mxu0  ;;  %17169 = vmatmul.mubr.msk.f32.gmra.mrb[8].mxu1 %vm1500_vm1, %v21424_v63  ;;  %v21681_v8 = vld [vmem:[#allocation2 + $0x20f] sm:$0xff] }
 0x4f1   : > { %23929 = vst [vmem:[#allocation144_spill] sm:$0xff] %v21657_v33  ;;  %17171 = vmatprep.mubr.msk.f32.mxu1 %vm1500_vm1, %v21428_v2  ;;  %v21677_v33 = vld [vmem:[#allocation2 + $0x207] sm:$0xff] }
 0x4f4   : > { %17172 = vmatmul.mubr.msk.f32.gmra.mrb[10].mxu1 %vm1500_vm1, %v21432_v23 }
 0x4f5   : > { %17174 = vmatprep.mubr.msk.f32.mxu1 %vm1500_vm1, %v21436_v27 }
 0x4f8   : > { %17175 = vmatmul.mubr.msk.f32.gmra.mrb[12].mxu1 %vm1500_vm1, %v21440_v5 }
 0x4f9   : > { %17177 = vmatprep.mubr.msk.f32.mxu1 %vm1500_vm1, %v21444_v7 }
 0x4fc   : > { %17178 = vmatmul.mubr.msk.f32.gmra.mrb[14].mxu1 %vm1500_vm1, %v21448_v38 }
 0x4fd   : > { %17180 = vmatprep.mubr.msk.f32.mxu1 %vm1500_vm1, %v21452_v60 }
 0x500   : > { %17181 = vmatmul.mubr.msk.f32.gmra.mrb[16].mxu1 %vm1500_vm1, %v21456_v48 }
 0x501   : > { %17183 = vmatprep.mubr.msk.f32.mxu1 %vm1500_vm1, %v21677_v33 }
 0x504   : > { %17184 = vmatmul.mubr.msk.f32.gmra.mrb[18].mxu1 %vm1500_vm1, %v21681_v8 }
 0x505   : > { %17188 = vmatprep.mubr.msk.f32.mxu1 %vm1500_vm1, %v20974_v37  ;;  %v23930_v37 = vld [vmem:[#allocation19_spill] sm:$0xff] }
 0x508   : > { %17189 = vmatmul.mubr.msk.f32.vlgmr.msra.gmra.mrb[20].mxu1 %vm1500_vm1, %v20982_v42  ;;  %v23931_v42 = vld [vmem:[#allocation20_spill] sm:$0xff] }
 0x509   : > { %17191 = vmatprep.mubr.msk.f32.mxu1 %vm1500_vm1, %v21000_v15  ;;  %17237 = vmatpush3.msk.msra.mxu1 %vm1769_vm2, %v14508_v28  ;;  %v21750_v15 = vld [vmem:[#allocation2 + $0x208] sm:$0xff]  ;;  %v23943_v28 = vld [vmem:[#allocation36_spill] sm:$0xff] }
 0x50a   : > { %17286 = vmatprep.subr.msk.mxu1 %vm1769_vm2, %v14542_v50 }
 0x50c   : > { %17192 = vmatmul.mubr.msk.f32.gmra.mrb[22].mxu1 %vm1500_vm1, %v21008_v59  ;;  %v21754_v59 = vld [vmem:[#allocation2 + $0x210] sm:$0xff] }
 0x50d   : > { %17194 = vmatprep.mubr.msk.f32.mxu1 %vm1500_vm1, %v21026_v51  ;;  %v23932_v51 = vld [vmem:[#allocation25_spill] sm:$0xff] }
 0x510   : > { %17195 = vmatmul.mubr.msk.f32.gmra.mrb[24].mxu1 %vm1500_vm1, %v21034_v17  ;;  %v14576_v17 = vld [vmem:[%s23464_s3 + $0x80] sm:$0x3f] }
 0x511   : > { %17197 = vmatprep.mubr.msk.f32.mxu1 %vm1500_vm1, %v21052_v24  ;;  %v23933_v24 = vld [vmem:[#allocation26_spill] sm:$0xff] }
 0x514   : > { %17198 = vmatmul.mubr.msk.f32.gmra.mrb[26].mxu1 %vm1500_vm1, %v21060_v49  ;;  %v23934_v49 = vld [vmem:[#allocation27_spill] sm:$0xff] }
 0x515   : > { %17200 = vmatprep.mubr.msk.f32.mxu1 %vm1500_vm1, %v21078_v56  ;;  %v23935_v56 = vld [vmem:[#allocation28_spill] sm:$0xff] }
 0x518   : > { %17201 = vmatmul.mubr.msk.f32.gmra.mrb[28].mxu1 %vm1500_vm1, %v21086_v55  ;;  %v23936_v55 = vld [vmem:[#allocation29_spill] sm:$0xff] }
 0x519   : > { %17203 = vmatprep.mubr.msk.f32.mxu1 %vm1500_vm1, %v21104_v53  ;;  %v23938_v53 = vld [vmem:[#allocation31_spill] sm:$0xff] }
 0x51c   : > { %17204 = vmatmul.mubr.msk.f32.gmra.mrb[30].mxu1 %vm1500_vm1, %v21112_v14  ;;  %v23939_v14 = vld [vmem:[#allocation32_spill] sm:$0xff] }
 0x51d   : > { %17206 = vmatprep.mubr.msk.f32.mxu1 %vm1500_vm1, %v21137_v4  ;;  %v23937_v4 = vld [vmem:[#allocation30_spill] sm:$0xff] }
 0x520   : > { %17207 = vmatmul.mubr.msk.f32.gmra.mrb[0].mxu1 %vm1500_vm1, %v21147_v12  ;;  %v23940_v12 = vld [vmem:[#allocation33_spill] sm:$0xff] }
 0x521   : > { %17209 = vmatprep.mubr.msk.f32.mxu1 %vm1500_vm1, %v21165_v1  ;;  %v23941_v1 = vld [vmem:[#allocation34_spill] sm:$0xff] }
 0x524   : > { %17210 = vmatmul.mubr.msk.f32.gmra.mrb[2].mxu1 %vm1500_vm1, %v21173_v26  ;;  %v23942_v26 = vld [vmem:[#allocation35_spill] sm:$0xff] }
 0x525   : > { %17212 = vmatprep.mubr.msk.f32.mxu1 %vm1500_vm1, %v21191_v47 }
 0x528   : > { %17213 = vmatmul.mubr.msk.f32.gmra.mrb[4].mxu1 %vm1500_vm1, %v21199_v39 }
 0x529   : > { %17215 = vmatprep.mubr.msk.f32.mxu1 %vm1500_vm1, %v21217_v18 }
 0x52c   : > { %17216 = vmatmul.mubr.msk.f32.gmra.mrb[6].mxu1 %vm1500_vm1, %v21225_v36 }
 0x52d   : > { %17218 = vmatprep.mubr.msk.f32.mxu1 %vm1500_vm1, %v21243_v20 }
 0x530   : > { %17219 = vmatmul.mubr.msk.f32.gmra.mrb[8].mxu1 %vm1500_vm1, %v21251_v54 }
 0x531   : > { %17221 = vmatprep.mubr.msk.f32.mxu1 %vm1500_vm1, %v21269_v25 }
 0x534   : > { %17222 = vmatmul.mubr.msk.f32.gmra.mrb[10].mxu1 %vm1500_vm1, %v21277_v32 }
 0x535   : > { %17224 = vmatprep.mubr.msk.f32.mxu1 %vm1500_vm1, %v21293_v19 }
 0x538   : > { %17225 = vmatmul.mubr.msk.f32.gmra.mrb[12].mxu1 %vm1500_vm1, %v21299_v45 }
 0x539   : > { %17227 = vmatprep.mubr.msk.f32.mxu1 %vm1500_vm1, %v21308_v46 }
 0x53c   : > { %17228 = vmatmul.mubr.msk.f32.gmra.mrb[14].mxu1 %vm1500_vm1, %v21313_v30 }
 0x53d   : > { %17230 = vmatprep.mubr.msk.f32.mxu1 %vm1500_vm1, %v23930_v37 }
 0x540   : > { %17231 = vmatmul.mubr.msk.f32.gmra.mrb[16].mxu1 %vm1500_vm1, %v23931_v42 }
 0x541   : > { %17233 = vmatprep.mubr.msk.f32.mxu1 %vm1500_vm1, %v21750_v15 }
 0x544   : > { %17234 = vmatmul.mubr.msk.f32.gmra.mrb[18].mxu1 %vm1500_vm1, %v21754_v59 }
 0x545   : > { %17238 = vmatprep.mubr.msk.f32.mxu1 %vm1500_vm1, %v23932_v51  ;;  %v23945_v51 = vld [vmem:[#allocation121_spill] sm:$0xff] }
 0x548   : > { %17239 = vmatmul.mubr.msk.f32.vlgmr.msra.gmra.mrb[20].mxu1 %vm1500_vm1, %v23933_v24  ;;  %v23946_v24 = vld [vmem:[#allocation122_spill] sm:$0xff] }
 0x549   : > { %17241 = vmatprep.mubr.msk.f32.mxu1 %vm1500_vm1, %v23934_v49  ;;  %17287 = vmatpush3.msk.msra.mxu1 %vm1769_vm2, %v14542_v50  ;;  %v23944_v50 = vld [vmem:[#allocation37_spill] sm:$0xff] }
 0x54a   : > { %17336 = vmatprep.subr.msk.mxu1 %vm1769_vm2, %v14576_v17 }
 0x54c   : > { %17242 = vmatmul.mubr.msk.f32.gmra.mrb[22].mxu1 %vm1500_vm1, %v23935_v56 }
 0x54d   : > { %17244 = vmatprep.mubr.msk.f32.mxu1 %vm1500_vm1, %v23936_v55 }
 0x550   : > { %17245 = vmatmul.mubr.msk.f32.gmra.mrb[24].mxu1 %vm1500_vm1, %v23937_v4 }
 0x551   : > { %17247 = vmatprep.mubr.msk.f32.mxu1 %vm1500_vm1, %v23938_v53 }
 0x554   : > { %17248 = vmatmul.mubr.msk.f32.gmra.mrb[26].mxu1 %vm1500_vm1, %v23939_v14 }
 0x555   : > { %17250 = vmatprep.mubr.msk.f32.mxu1 %vm1500_vm1, %v23940_v12 }
 0x558   : > { %17251 = vmatmul.mubr.msk.f32.gmra.mrb[28].mxu1 %vm1500_vm1, %v23941_v1  ;;  %v23949_v1 = vld [vmem:[#allocation125_spill] sm:$0xff] }
 0x559   : > { %17253 = vmatprep.mubr.msk.f32.mxu1 %vm1500_vm1, %v23942_v26  ;;  %v23950_v26 = vld [vmem:[#allocation126_spill] sm:$0xff] }
 0x55c   : > { %17254 = vmatmul.mubr.msk.f32.gmra.mrb[30].mxu1 %vm1500_vm1, %v23943_v28  ;;  %v23951_v28 = vld [vmem:[#allocation127_spill] sm:$0xff] }
 0x55d   : > { %17256 = vmatprep.mubr.msk.f32.mxu1 %vm1500_vm1, %v23944_v50  ;;  %v23952_v50 = vld [vmem:[#allocation128_spill] sm:$0xff] }
 0x560   : > { %17257 = vmatmul.mubr.msk.f32.gmra.mrb[0].mxu1 %vm1500_vm1, %v23945_v51  ;;  %v23953_v51 = vld [vmem:[#allocation129_spill] sm:$0xff] }
 0x561   : > { %17259 = vmatprep.mubr.msk.f32.mxu1 %vm1500_vm1, %v23946_v24  ;;  %v23954_v24 = vld [vmem:[#allocation130_spill] sm:$0xff] }
 0x564   : > { %17260 = vmatmul.mubr.msk.f32.gmra.mrb[2].mxu1 %vm1500_vm1, %v23947_v44  ;;  %v23955_v44 = vld [vmem:[#allocation131_spill] sm:$0xff] }
 0x565   : > { %17262 = vmatprep.mubr.msk.f32.mxu1 %vm1500_vm1, %v23948_v35  ;;  %v23956_v35 = vld [vmem:[#allocation132_spill] sm:$0xff] }
 0x568   : > { %17263 = vmatmul.mubr.msk.f32.gmra.mrb[4].mxu1 %vm1500_vm1, %v23949_v1 }
 0x569   : > { %17265 = vmatprep.mubr.msk.f32.mxu1 %vm1500_vm1, %v23950_v26  ;;  %v23957_v26 = vld [vmem:[#allocation133_spill] sm:$0xff] }
 0x56c   : > { %17266 = vmatmul.mubr.msk.f32.gmra.mrb[6].mxu1 %vm1500_vm1, %v23951_v28 }
 0x56d   : > { %17268 = vmatprep.mubr.msk.f32.mxu1 %vm1500_vm1, %v23952_v50 }
 0x570   : > { %17269 = vmatmul.mubr.msk.f32.gmra.mrb[8].mxu1 %vm1500_vm1, %v23953_v51 }
 0x571   : > { %17271 = vmatprep.mubr.msk.f32.mxu1 %vm1500_vm1, %v23954_v24  ;;  %v21823_v24 = vld [vmem:[#allocation2 + $0x209] sm:$0xff] }
 0x574   : > { %17272 = vmatmul.mubr.msk.f32.gmra.mrb[10].mxu1 %vm1500_vm1, %v23955_v44 }
 0x575   : > { %17274 = vmatprep.mubr.msk.f32.mxu1 %vm1500_vm1, %v23956_v35  ;;  %v21827_v35 = vld [vmem:[#allocation2 + $0x211] sm:$0xff] }
 0x578   : > { %17275 = vmatmul.mubr.msk.f32.gmra.mrb[12].mxu1 %vm1500_vm1, %v21571_v62 }
 0x579   : > { %17277 = vmatprep.mubr.msk.f32.mxu1 %vm1500_vm1, %v23957_v26 }
 0x57c   : > { %17278 = vmatmul.mubr.msk.f32.gmra.mrb[14].mxu1 %vm1500_vm1, %v21579_v6 }
 0x57d   : > { %17280 = vmatprep.mubr.msk.f32.mxu1 %vm1500_vm1, %v21583_v31  ;;  %v14610_v31 = vld [vmem:[%s23464_s3 + $0x88] sm:$0x3f] }
 0x580   : > { %17281 = vmatmul.mubr.msk.f32.gmra.mrb[16].mxu1 %vm1500_vm1, %v21587_v0 }
 0x581   : > { %17283 = vmatprep.mubr.msk.f32.mxu1 %vm1500_vm1, %v21823_v24 }
 0x584   : > { %17284 = vmatmul.mubr.msk.f32.gmra.mrb[18].mxu1 %vm1500_vm1, %v21827_v35 }
 0x585   : > { %17288 = vmatprep.mubr.msk.f32.mxu1 %vm1500_vm1, %v21344_v34  ;;  %v23958_v34 = vld [vmem:[#allocation21_spill] sm:$0xff] }
 0x588   : > { %17289 = vmatmul.mubr.msk.f32.vlgmr.msra.gmra.mrb[20].mxu1 %vm1500_vm1, %v21348_v22  ;;  %v22033_v22 = vld [vmem:[%s23464_s3 + $0xa0] sm:$0x3f] }
 0x589   : > { %17291 = vmatprep.mubr.msk.f32.mxu1 %vm1500_vm1, %v21352_v52  ;;  %17337 = vmatpush3.msk.msra.mxu1 %vm1769_vm2, %v14576_v17  ;;  %v23959_v52 = vld [vmem:[#allocation24_spill] sm:$0xff] }
 0x58a   : > { %17386 = vmatprep.subr.msk.mxu1 %vm1769_vm2, %v14610_v31 }
 0x58c   : > { %17292 = vmatmul.mubr.msk.f32.gmra.mrb[22].mxu1 %vm1500_vm1, %v21356_v9  ;;  %v22040_v9 = vld [vmem:[%s23463_s2 + $0x2] ss:$0 sm:$0xff] }
 0x58d   : > { %17294 = vmatprep.mubr.msk.f32.mxu1 %vm1500_vm1, %v21360_v43  ;;  %v14646_v43 = vld [vmem:[%s23466_s5 + $0x8] sm:$0x3f] }
 0x58e   : > { %17436 = vmatprep.subr.msk.mxu0 %vm1769_vm2, %v14646_v43 }
 0x58f   : > { %17437 = vmatpush3.msk.msra.mxu0 %vm1769_vm2, %v14646_v43 }
 0x590   : > { %17295 = vmatmul.mubr.msk.f32.gmra.mrb[24].mxu1 %vm1500_vm1, %v21364_v61  ;;  %v23970_v61 = vld [vmem:[#allocation132_spill] sm:$0xff] }
 0x591   : > { %17297 = vmatprep.mubr.msk.f32.mxu1 %vm1500_vm1, %v21368_v10  ;;  %v8275_v10 = vld [vmem:[#allocation2 + $0x229] sm:$0xff] }
 0x594   : > { %17298 = vmatmul.mubr.msk.f32.gmra.mrb[26].mxu1 %vm1500_vm1, %v23958_v34  ;;  %v23978_v34 = vld [vmem:[#allocation41_spill] sm:$0xff] }
 0x595   : > { %17300 = vmatprep.mubr.msk.f32.mxu1 %vm1500_vm1, %v21376_v21  ;;  %v23967_v21 = vld [vmem:[#allocation124_spill] sm:$0xff] }
 0x598   : > { %17301 = vmatmul.mubr.msk.f32.gmra.mrb[28].mxu1 %vm1500_vm1, %v21384_v13  ;;  %v7885_v13 = vld [vmem:[#allocation2 + $0x228] sm:$0xff] }
 0x599   : > { %17303 = vmatprep.mubr.msk.f32.mxu1 %vm1500_vm1, %v23959_v52  ;;  %v1046_v52 = vadd.f32 %v22040_v9, %v23978_v34 }
 0x59c   : > { %17304 = vmatmul.mubr.msk.f32.gmra.mrb[30].mxu1 %vm1500_vm1, %v21392_v16  ;;  %v7867_v16 = vld [vmem:[#allocation2 + $0x108] sm:$0xff] }
 0x59d   : > { %17306 = vmatprep.mubr.msk.f32.mxu1 %vm1500_vm1, %v21396_v40  ;;  %v7868_v40 = vld [vmem:[#allocation2 + $0x110] sm:$0xff] }
 0x5a0   : > { %17307 = vmatmul.mubr.msk.f32.gmra.mrb[0].mxu1 %vm1500_vm1, %v21400_v29  ;;  %v7865_v29 = vld [vmem:[#allocation2 + $0xe8] sm:$0xff] }
 0x5a1   : > { %17309 = vmatprep.mubr.msk.f32.mxu1 %vm1500_vm1, %v21404_v41  ;;  %v7866_v41 = vld [vmem:[#allocation2 + $0xf0] sm:$0xff] }
 0x5a4   : > { %17310 = vmatmul.mubr.msk.f32.gmra.mrb[2].mxu1 %vm1500_vm1, %v21408_v57  ;;  %v7863_v57 = vld [vmem:[#allocation2 + $0xc8] sm:$0xff] }
 0x5a5   : > { %17312 = vmatprep.mubr.msk.f32.mxu1 %vm1500_vm1, %v21412_v58  ;;  %v7864_v58 = vld [vmem:[#allocation2 + $0xd0] sm:$0xff] }
 0x5a8   : > { %17313 = vmatmul.mubr.msk.f32.gmra.mrb[4].mxu1 %vm1500_vm1, %v21416_v11  ;;  %v7861_v11 = vld [vmem:[#allocation2 + $0xa8] sm:$0xff] }
 0x5a9   : > { %17315 = vmatprep.mubr.msk.f32.mxu1 %vm1500_vm1, %v21420_v3  ;;  %v7862_v3 = vld [vmem:[#allocation2 + $0xb0] sm:$0xff] }
 0x5ac   : > { %17316 = vmatmul.mubr.msk.f32.gmra.mrb[6].mxu1 %vm1500_vm1, %v21424_v63  ;;  %v7859_v63 = vld [vmem:[#allocation2 + $0x88] sm:$0xff] }
 0x5ad   : > { %17318 = vmatprep.mubr.msk.f32.mxu1 %vm1500_vm1, %v21428_v2  ;;  %v7860_v2 = vld [vmem:[#allocation2 + $0x90] sm:$0xff] }
 0x5b0   : > { %17319 = vmatmul.mubr.msk.f32.gmra.mrb[8].mxu1 %vm1500_vm1, %v21432_v23  ;;  %v7495_v23 = vld [vmem:[#allocation2 + $0x227] sm:$0xff] }
 0x5b1   : > { %17321 = vmatprep.mubr.msk.f32.mxu1 %vm1500_vm1, %v21436_v27  ;;  %v7858_v27 = vld [vmem:[#allocation2 + $0x70] sm:$0xff] }
 0x5b4   : > { %17322 = vmatmul.mubr.msk.f32.gmra.mrb[10].mxu1 %vm1500_vm1, %v21440_v5  ;;  %v7496_v5 = vld [vmem:[#allocation2 + $0x22f] sm:$0xff] }
 0x5b5   : > { %17324 = vmatprep.mubr.msk.f32.mxu1 %vm1500_vm1, %v21444_v7  ;;  %v7855_v7 = vld [vmem:[#allocation2 + $0x48] sm:$0xff] }
 0x5b8   : > { %17325 = vmatmul.mubr.msk.f32.gmra.mrb[12].mxu1 %vm1500_vm1, %v21448_v38  ;;  %v7856_v38 = vld [vmem:[#allocation2 + $0x50] sm:$0xff] }
 0x5b9   : > { %17327 = vmatprep.mubr.msk.f32.mxu1 %vm1500_vm1, %v21452_v60  ;;  %v7857_v60 = vld [vmem:[#allocation2 + $0x68] sm:$0xff] }
 0x5bc   : > { %17328 = vmatmul.mubr.msk.f32.gmra.mrb[14].mxu1 %vm1500_vm1, %v21456_v48  ;;  %v14714_v48 = vld [vmem:[%s23464_s3 + $0x98] sm:$0x3f] }
 0x5bd   : > { %17330 = vmatprep.mubr.msk.f32.mxu1 %vm1500_vm1, %v21677_v33  ;;  %v7886_v33 = vld [vmem:[#allocation2 + $0x230] sm:$0xff] }
 0x5c0   : > { %17331 = vmatmul.mubr.msk.f32.gmra.mrb[16].mxu1 %vm1500_vm1, %v21681_v8  ;;  %v8276_v8 = vld [vmem:[#allocation2 + $0x231] sm:$0xff] }
 0x5c1   : > { %17333 = vmatprep.mubr.msk.f32.mxu1 %vm1500_vm1, %v7495_v23 }
 0x5c4   : > { %17334 = vmatmul.mubr.msk.f32.gmra.mrb[18].mxu1 %vm1500_vm1, %v7496_v5  ;;  %v23979_v5 = vld [vmem:[#allocation136_spill] sm:$0xff] }
 0x5c5   : > { %17338 = vmatprep.mubr.msk.f32.mxu1 %vm1500_vm1, %v7855_v7 }
 0x5c8   : > { %17339 = vmatmul.mubr.msk.f32.vlgmr.msra.gmra.mrb[20].mxu1 %vm1500_vm1, %v7856_v38 }
 0x5c9   : > { %17341 = vmatprep.mubr.msk.f32.mxu1 %vm1500_vm1, %v7857_v60  ;;  %17387 = vmatpush3.msk.msra.mxu1 %vm1769_vm2, %v14610_v31 }
 0x5ca   : > { %17536 = vmatprep.subr.msk.mxu1 %vm1769_vm2, %v14714_v48 }
 0x5cc   : > { %17342 = vmatmul.mubr.msk.f32.gmra.mrb[22].mxu1 %vm1500_vm1, %v7858_v27 }
 0x5cd   : > { %17344 = vmatprep.mubr.msk.f32.mxu1 %vm1500_vm1, %v7859_v63 }
 0x5d0   : > { %17345 = vmatmul.mubr.msk.f32.gmra.mrb[24].mxu1 %vm1500_vm1, %v7860_v2 }
 0x5d1   : > { %17347 = vmatprep.mubr.msk.f32.mxu1 %vm1500_vm1, %v7861_v11  ;;  %v23980_v11 = vld [vmem:[#allocation42_spill] sm:$0xff] }
 0x5d4   : > { %17348 = vmatmul.mubr.msk.f32.gmra.mrb[26].mxu1 %vm1500_vm1, %v7862_v3  ;;  %v1061_v3 = vadd.f32 %v23980_v11, %v22040_v9 }
 0x5d5   : > { %17350 = vmatprep.mubr.msk.f32.mxu1 %vm1500_vm1, %v7863_v57 }
 0x5d8   : > { %17351 = vmatmul.mubr.msk.f32.gmra.mrb[28].mxu1 %vm1500_vm1, %v7864_v58  ;;  %v23981_v58 = vld [vmem:[#allocation137_spill] sm:$0xff] }
 0x5d9   : > { %17353 = vmatprep.mubr.msk.f32.mxu1 %vm1500_vm1, %v7865_v29 }
 0x5dc   : > { %17354 = vmatmul.mubr.msk.f32.gmra.mrb[30].mxu1 %vm1500_vm1, %v7866_v41 }
 0x5dd   : > { %17356 = vmatprep.mubr.msk.f32.mxu1 %vm1500_vm1, %v7867_v16  ;;  %v1196_v16 = vmax.f32 %v1046_v52, 0.0 }
 0x5e0   : > { %17357 = vmatmul.mubr.msk.f32.gmra.mrb[0].mxu1 %vm1500_vm1, %v7868_v40  ;;  %v23982_v40 = vld [vmem:[#allocation43_spill] sm:$0xff] }
 0x5e1   : > { %17359 = vmatprep.mubr.msk.f32.mxu1 %vm1500_vm1, %v21191_v47  ;;  %v23960_v47 = vld [vmem:[#allocation34_spill] sm:$0xff] }
 0x5e4   : > { %17360 = vmatmul.mubr.msk.f32.gmra.mrb[2].mxu1 %vm1500_vm1, %v21199_v39  ;;  %v23961_v39 = vld [vmem:[#allocation35_spill] sm:$0xff] }
 0x5e5   : > { %17362 = vmatprep.mubr.msk.f32.mxu1 %vm1500_vm1, %v21217_v18  ;;  %v23962_v18 = vld [vmem:[#allocation36_spill] sm:$0xff] }
 0x5e8   : > { %17363 = vmatmul.mubr.msk.f32.gmra.mrb[4].mxu1 %vm1500_vm1, %v21225_v36  ;;  %v23963_v36 = vld [vmem:[#allocation37_spill] sm:$0xff] }
 0x5e9   : > { %17365 = vmatprep.mubr.msk.f32.mxu1 %vm1500_vm1, %v21243_v20  ;;  %v23964_v20 = vld [vmem:[#allocation121_spill] sm:$0xff] }
 0x5ec   : > { %17366 = vmatmul.mubr.msk.f32.gmra.mrb[6].mxu1 %vm1500_vm1, %v21251_v54  ;;  %v23965_v54 = vld [vmem:[#allocation122_spill] sm:$0xff] }
 0x5ed   : > { %17368 = vmatprep.mubr.msk.f32.mxu1 %vm1500_vm1, %v21269_v25  ;;  %v23969_v25 = vld [vmem:[#allocation130_spill] sm:$0xff] }
 0x5f0   : > { %17369 = vmatmul.mubr.msk.f32.gmra.mrb[8].mxu1 %vm1500_vm1, %v21277_v32  ;;  %v23971_v32 = vld [vmem:[#allocation134_spill] sm:$0xff] }
 0x5f1   : > { %17371 = vmatprep.mubr.msk.f32.mxu1 %vm1500_vm1, %v21293_v19  ;;  %v23966_v19 = vld [vmem:[#allocation123_spill] sm:$0xff] }
 0x5f4   : > { %17372 = vmatmul.mubr.msk.f32.gmra.mrb[10].mxu1 %vm1500_vm1, %v21299_v45  ;;  %v23968_v45 = vld [vmem:[#allocation126_spill] sm:$0xff] }
 0x5f5   : > { %17374 = vmatprep.mubr.msk.f32.mxu1 %vm1500_vm1, %v21308_v46  ;;  %v9455_v46 = vld [vmem:[#allocation2 + $0x8] sm:$0xff] }
 0x5f8   : > { %17375 = vmatmul.mubr.msk.f32.gmra.mrb[12].mxu1 %vm1500_vm1, %v21313_v30  ;;  %v9456_v30 = vld [vmem:[#allocation2 + $0x10] sm:$0xff] }
 0x5f9   : > { %17377 = vmatprep.mubr.msk.f32.mxu1 %vm1500_vm1, %v23930_v37  ;;  %v23973_v37 = vld [vmem:[#allocation22_spill] sm:$0xff] }
 0x5fc   : > { %17378 = vmatmul.mubr.msk.f32.gmra.mrb[14].mxu1 %vm1500_vm1, %v23931_v42 }
 0x5fd   : > { %17380 = vmatprep.mubr.msk.f32.mxu1 %vm1500_vm1, %v21750_v15 }
 0x600   : > { %17381 = vmatmul.mubr.msk.f32.gmra.mrb[16].mxu1 %vm1500_vm1, %v21754_v59  ;;  %v23974_v59 = vld [vmem:[#allocation39_spill] sm:$0xff] }
 0x601   : > { %17383 = vmatprep.mubr.msk.f32.mxu1 %vm1500_vm1, %v7885_v13  ;;  %v1036_v17 = vadd.f32 %v22040_v9, %v23974_v59  ;;  %v1056_v13 = vadd.f32 %v22040_v9, %v23982_v40 }
 0x603   : > { %v1198_v43 = vmax.f32 %v1056_v13, 0.0 }
 0x604   : > { %17384 = vmatmul.mubr.msk.f32.gmra.mrb[18].mxu1 %vm1500_vm1, %v7886_v33 }
 0x605   : > { %17388 = vmatprep.mubr.msk.f32.mxu1 %vm1500_vm1, %v23934_v49  ;;  %v23975_v49 = vld [vmem:[#allocation23_spill] sm:$0xff] }
 0x608   : > { %17389 = vmatmul.mubr.msk.f32.vlgmr.msra.gmra.mrb[20].mxu1 %vm1500_vm1, %v23935_v56 }
 0x609   : > { %17391 = vmatprep.mubr.msk.f32.mxu1 %vm1500_vm1, %v23936_v55  ;;  %17537 = vmatpush3.msk.msra.mxu1 %vm1769_vm2, %v14714_v48 }
 0x60c   : > { %17392 = vmatmul.mubr.msk.f32.gmra.mrb[22].mxu1 %vm1500_vm1, %v23937_v4 }
 0x60d   : > { %17394 = vmatprep.mubr.msk.f32.mxu1 %vm1500_vm1, %v23938_v53 }
 0x610   : > { %17395 = vmatmul.mubr.msk.f32.gmra.mrb[24].mxu1 %vm1500_vm1, %v23939_v14 }
 0x611   : > { %17397 = vmatprep.mubr.msk.f32.mxu1 %vm1500_vm1, %v23940_v12  ;;  %v23976_v12 = vld [vmem:[#allocation40_spill] sm:$0xff] }
 0x614   : > { %17398 = vmatmul.mubr.msk.f32.gmra.mrb[26].mxu1 %vm1500_vm1, %v23960_v47  ;;  %v23983_v47 = vld [vmem:[#allocation138_spill] sm:$0xff] }
 0x615   : > { %17400 = vmatprep.mubr.msk.f32.mxu1 %vm1500_vm1, %v23961_v39 }
 0x618   : > { %17401 = vmatmul.mubr.msk.f32.gmra.mrb[28].mxu1 %vm1500_vm1, %v23962_v18 }
 0x619   : > { %17403 = vmatprep.mubr.msk.f32.mxu1 %vm1500_vm1, %v23963_v36 }
 0x61c   : > { %17404 = vmatmul.mubr.msk.f32.gmra.mrb[30].mxu1 %vm1500_vm1, %v23964_v20 }
 0x61d   : > { %17406 = vmatprep.mubr.msk.f32.mxu1 %vm1500_vm1, %v23965_v54 }
 0x620   : > { %17407 = vmatmul.mubr.msk.f32.gmra.mrb[0].mxu1 %vm1500_vm1, %v23966_v19 }
 0x621   : > { %17409 = vmatprep.mubr.msk.f32.mxu1 %vm1500_vm1, %v23967_v21  ;;  %v1199_v21 = vmax.f32 %v1061_v3, 0.0 }
 0x624   : > { %17410 = vmatmul.mubr.msk.f32.gmra.mrb[2].mxu1 %vm1500_vm1, %v23949_v1  ;;  %v1051_v1 = vadd.f32 %v23976_v12, %v22040_v9 }
 0x625   : > { %17412 = vmatprep.mubr.msk.f32.mxu1 %vm1500_vm1, %v23968_v45  ;;  %v23984_v45 = vld [vmem:[#allocation44_spill] sm:$0xff] }
 0x626   : > { %v1197_v2 = vmax.f32 %v1051_v1, 0.0  ;;  %v23990_v1 = vld [vmem:[#allocation47_spill] sm:$0xff] }
 0x628   : > { %17413 = vmatmul.mubr.msk.f32.gmra.mrb[4].mxu1 %vm1500_vm1, %v23951_v28  ;;  %v23977_v28 = vld [vmem:[#allocation135_spill] sm:$0xff] }
 0x629   : > { %17415 = vmatprep.mubr.msk.f32.mxu1 %vm1500_vm1, %v23952_v50 }
 0x62c   : > { %17416 = vmatmul.mubr.msk.f32.gmra.mrb[6].mxu1 %vm1500_vm1, %v23953_v51 }
 0x62d   : > { %17418 = vmatprep.mubr.msk.f32.mxu1 %vm1500_vm1, %v23969_v25  ;;  %v1071_v25 = vadd.f32 %v23984_v45, %v22040_v9 }
 0x62f   : > { %v1201_v59 = vmax.f32 %v1071_v25, 0.0 }
 0x630   : > { %17419 = vmatmul.mubr.msk.f32.gmra.mrb[8].mxu1 %vm1500_vm1, %v23955_v44 }
 0x631   : > { %17421 = vmatprep.mubr.msk.f32.mxu1 %vm1500_vm1, %v23970_v61 }
 0x634   : > { %17422 = vmatmul.mubr.msk.f32.gmra.mrb[10].mxu1 %vm1500_vm1, %v21571_v62  ;;  %v22045_v62 = vld [vmem:[%s23465_s4 + $0x1] ss:$0 sm:$0xff] }
 0x635   : > { %17424 = vmatprep.mubr.msk.f32.mxu1 %vm1500_vm1, %v23957_v26 }
 0x638   : > { %17425 = vmatmul.mubr.msk.f32.gmra.mrb[12].mxu1 %vm1500_vm1, %v21579_v6  ;;  %v14713_v6 = vld [vmem:[%s23464_s3 + $0x90] sm:$0x3f] }
 0x639   : > { %17427 = vmatprep.mubr.msk.f32.mxu1 %vm1500_vm1, %v23971_v32  ;;  %17586 = vmatprep.subr.msk.mxu1 %vm1769_vm2, %v14713_v6  ;;  %v23985_v32 = vld [vmem:[#allocation139_spill] sm:$0xff] }
 0x63c   : > { %17428 = vmatmul.mubr.msk.f32.gmra.mrb[14].mxu1 %vm1500_vm1, %v21587_v0  ;;  %v5124_v0 = vld [vmem:[%s23466_s5] sm:$0x3f] }
 0x63d   : > { %17430 = vmatprep.mubr.msk.f32.mxu1 %vm1500_vm1, %v21823_v24  ;;  %17486 = vmatprep.subr.msk.mxu0 %vm1769_vm2, %v5124_v0  ;;  %v1194_v24 = vmax.f32 %v1036_v17, 0.0  ;;  %v23988_v17 = vld [vmem:[#allocation46_spill] sm:$0xff] }
 0x640   : > { %17431 = vmatmul.mubr.msk.f32.gmra.mrb[16].mxu1 %vm1500_vm1, %v21827_v35  ;;  %v23972_v35 = vld [vmem:[#allocation38_spill] sm:$0xff] }
 0x641   : > { %17433 = vmatprep.mubr.msk.f32.mxu1 %vm1500_vm1, %v8275_v10  ;;  %v1041_v44 = vadd.f32 %v23972_v35, %v22040_v9 }
 0x643   : > { %v1195_v14 = vmax.f32 %v1041_v44, 0.0 }
 0x644   : > { %17434 = vmatmul.mubr.msk.f32.gmra.mrb[18].mxu1 %vm1500_vm1, %v8276_v8 }
 0x645   : > { %17538 = vmatprep.mubr.msk.f32.mxu1 %vm1500_vm1, %v9455_v46  ;;  %v23986_v46 = vld [vmem:[#allocation45_spill] sm:$0xff] }
 0x648   : > { %17539 = vmatmul.mubr.msk.f32.vlgmr.msra.gmra.mrb[32].mxu1 %vm1500_vm1, %v9456_v30  ;;  %v1066_v30 = vadd.f32 %v22040_v9, %v23986_v46 }
 0x649   : > { %17587 = vmatpush3.msk.msra.mxu1 %vm1769_vm2, %v14713_v6 }
 0x64a   : > { %17636 = vmatprep.subr.msk.mxu1 %vm1769_vm2, %v22033_v22  ;;  %v1200_v12 = vmax.f32 %v1066_v30, 0.0 }
 0x6db   : > { %v17390_v31 = vpop.f32.mrb[20].mxu1 }
 0x6dc   : > { %v18152_v42 = vadd.f32 %v17390_v31, %v23973_v37  ;;  %v8444_v15 = vpop.f32.mrb[21].mxu1 }
 0x6dd   : > { %v18153_v56 = vadd.f32 %v8444_v15, %v23975_v49  ;;  %v1081_v49 = vadd.f32 %v23988_v17, %v22040_v9 }
 0x6de   : > { %v8644_v55 = vadd.f32 %v18152_v42, %v22045_v62 }
 0x6df   : > { %v8643_v4 = vadd.f32 %v18153_v56, %v22045_v62  ;;  %v17393_v53 = vpop.f32.mrb[22].mxu1 }
 0x6e0   : > { %v8676_v26 = vmax.f32 %v8644_v55, 0.0  ;;  %v18154_v50 = vadd.f32 %v17393_v53, %v23977_v28  ;;  %v8454_v51 = vpop.f32.mrb[23].mxu1  ;;  %v23989_v55 = vld [vmem:[#allocation141_spill] sm:$0xff] }
 0x6e1   : > { %v8675_v23 = vmax.f32 %v8643_v4, 0.0  ;;  %v18155_v7 = vadd.f32 %v8454_v51, %v23979_v5 }
 0x6e2   : > { %v9358_v38 = vadd.f32 %v8676_v26, %v1195_v14  ;;  %v8646_v48 = vadd.f32 %v18154_v50, %v22045_v62  ;;  %v23991_v50 = vld [vmem:[#allocation142_spill] sm:$0xff] }
 0x6e3   : > { %v9357_v60 = vadd.f32 %v8675_v23, %v1194_v24  ;;  %v8645_v27 = vadd.f32 %v18155_v7, %v22045_v62  ;;  %v17396_v63 = vpop.f32.mrb[24].mxu1  ;;  %17438 = vmatprep.mubr.msk.f32.mxu0 %vm1500_vm1, %v8675_v23 }
 0x6e4   : > { %9390 = vst.msk [vmem:[#allocation2 + $0x30] sm:$0xff] %vm1500_vm1, %v9358_v38  ;;  %v8678_v57 = vmax.f32 %v8646_v48, 0.0  ;;  %v18156_v29 = vadd.f32 %v17396_v63, %v23981_v58  ;;  %v8464_v41 = vpop.f32.mrb[25].mxu1  ;;  %17439 = vmatmul.mubr.msk.f32.vlgmr.msra.gmra.mrb[172].mxu0 %vm1500_vm1, %v8676_v26  ;;  %v1076_v26 = vadd.f32 %v22040_v9, %v23990_v1  ;;  %v1203_v38 = vmax.f32 %v1081_v49, 0.0  ;;  %v23992_v48 = vld [vmem:[#allocation48_spill] sm:$0xff]  ;;  %v23993_v63 = vld [vmem:[#allocation143_spill] sm:$0xff] }
 0x6e5   : > { %9389 = vst.msk [vmem:[#allocation2 + $0x28] sm:$0xff] %vm1500_vm1, %v9357_v60  ;;  %v8677_v33 = vmax.f32 %v8645_v27, 0.0  ;;  %v18157_v39 = vadd.f32 %v8464_v41, %v23983_v47  ;;  %17487 = vmatpush3.msk.msra.mxu0 %vm1769_vm2, %v5124_v0  ;;  %v23987_v0 = vld [vmem:[#allocation140_spill] sm:$0xff]  ;;  %v1091_v60 = vadd.f32 %v23992_v48, %v22040_v9  ;;  %v23994_v58 = vld [vmem:[#allocation49_spill] sm:$0xff] }
 0x6e6   : > { %v9360_v18 = vadd.f32 %v8678_v57, %v1197_v2  ;;  %v8648_v36 = vadd.f32 %v18156_v29, %v22045_v62  ;;  %v1086_v29 = vadd.f32 %v22040_v9, %v23994_v58 }
 0x6e7   : > { %v9359_v20 = vadd.f32 %v8677_v33, %v1196_v16  ;;  %v8647_v54 = vadd.f32 %v18157_v39, %v22045_v62  ;;  %v17399_v19 = vpop.f32.mrb[26].mxu1  ;;  %17441 = vmatprep.mubr.msk.f32.mxu0 %vm1500_vm1, %v8677_v33  ;;  %v23995_v16 = vld [vmem:[#allocation144_spill] sm:$0xff]  ;;  %v23996_v33 = vld [vmem:[#allocation50_spill] sm:$0xff]  ;;  %v1205_v45 = vmax.f32 %v1091_v60, 0.0 }
 0x6e8   : > { %9392 = vst.msk [vmem:[#allocation2 + $0x50] sm:$0xff] %vm1500_vm1, %v9360_v18  ;;  %v8680_v61 = vmax.f32 %v8648_v36, 0.0  ;;  %v18158_v10 = vadd.f32 %v17399_v19, %v23985_v32  ;;  %v8474_v8 = vpop.f32.mrb[27].mxu1  ;;  %17442 = vmatmul.mubr.msk.f32.gmra.mrb[174].mxu0 %vm1500_vm1, %v8678_v57  ;;  %v1202_v57 = vmax.f32 %v1076_v26, 0.0  ;;  %v1101_v47 = vadd.f32 %v23996_v33, %v22040_v9  ;;  %v23997_v36 = vld [vmem:[#allocation51_spill] sm:$0xff]  ;;  %v24003_v33 = vld [vmem:[#allocation57_spill] sm:$0xff] }
 0x6e9   : > { %9391 = vst.msk [vmem:[#allocation2 + $0x48] sm:$0xff] %vm1500_vm1, %v9359_v20  ;;  %v8679_v6 = vmax.f32 %v8647_v54, 0.0  ;;  %v18159_v31 = vadd.f32 %v8474_v8, %v23987_v0  ;;  %v1096_v20 = vadd.f32 %v22040_v9, %v23997_v36  ;;  %v1204_v8 = vmax.f32 %v1086_v29, 0.0  ;;  %v23998_v0 = vld [vmem:[#allocation52_spill] sm:$0xff] }
 0x6ea   : > { %v9362_v35 = vadd.f32 %v8680_v61, %v1199_v21  ;;  %v8650_v44 = vadd.f32 %v18158_v10, %v22045_v62  ;;  %v24002_v29 = vld [vmem:[#allocation56_spill] sm:$0xff] }
 0x6eb   : > { %v9361_v37 = vadd.f32 %v8679_v6, %v1198_v43  ;;  %v8649_v42 = vadd.f32 %v18159_v31, %v22045_v62  ;;  %v17402_v15 = vpop.f32.mrb[28].mxu1  ;;  %17444 = vmatprep.mubr.msk.f32.mxu0 %vm1500_vm1, %v8679_v6  ;;  %v22102_v24 = vld [vmem:[#allocation2 + $0x30] sm:$0xff]  ;;  %v1207_v6 = vmax.f32 %v1101_v47, 0.0  ;;  %v1111_v31 = vadd.f32 %v23998_v0, %v22040_v9  ;;  %v24005_v0 = vld [vmem:[#allocation59_spill] sm:$0xff] }
 0x6ec   : > { %9394 = vst.msk [vmem:[#allocation2 + $0x70] sm:$0xff] %vm1500_vm1, %v9362_v35  ;;  %v8682_v56 = vmax.f32 %v8650_v44, 0.0  ;;  %v18160_v4 = vadd.f32 %v17402_v15, %v23989_v55  ;;  %v8484_v53 = vpop.f32.mrb[29].mxu1  ;;  %17445 = vmatmul.mubr.msk.f32.gmra.mrb[176].mxu0 %vm1500_vm1, %v8680_v61  ;;  %v22094_v14 = vld [vmem:[#allocation2 + $0x28] sm:$0xff]  ;;  %v1126_v47 = vadd.f32 %v22040_v9, %v24003_v33 }
 0x6ed   : > { %9393 = vst.msk [vmem:[#allocation2 + $0x68] sm:$0xff] %vm1500_vm1, %v9361_v37  ;;  %v8681_v28 = vmax.f32 %v8649_v42, 0.0  ;;  %v18161_v51 = vadd.f32 %v8484_v53, %v23991_v50  ;;  %17541 = vmatprep.mubr.msk.f32.mxu1 %vm1500_vm1, %v22094_v14  ;;  %v1206_v37 = vmax.f32 %v1096_v20, 0.0  ;;  %v23999_v42 = vld [vmem:[#allocation53_spill] sm:$0xff]  ;;  %v24000_v50 = vld [vmem:[#allocation54_spill] sm:$0xff] }
 0x6ee   : > { %v9364_v34 = vadd.f32 %v8682_v56, %v1201_v59  ;;  %v8652_v52 = vadd.f32 %v18160_v4, %v22045_v62  ;;  %17542 = vmatmul.mubr.msk.f32.gmra.mrb[34].mxu1 %vm1500_vm1, %v22102_v24  ;;  %v1106_v15 = vadd.f32 %v22040_v9, %v23999_v42 }
 0x6ef   : > { %v9363_v23 = vadd.f32 %v8681_v28, %v1200_v12  ;;  %v8651_v5 = vadd.f32 %v18161_v51, %v22045_v62  ;;  %v17405_v7 = vpop.f32.mrb[30].mxu1  ;;  %17447 = vmatprep.mubr.msk.f32.mxu0 %vm1500_vm1, %v8681_v28  ;;  %v22122_v13 = vld [vmem:[#allocation2 + $0x50] sm:$0xff]  ;;  %v1209_v28 = vmax.f32 %v1111_v31, 0.0  ;;  %v1121_v51 = vadd.f32 %v24000_v50, %v22040_v9  ;;  %v24007_v50 = vld [vmem:[#allocation61_spill] sm:$0xff] }
 0x6f0   : > { %9396 = vst.msk [vmem:[#allocation2 + $0x90] sm:$0xff] %vm1500_vm1, %v9364_v34  ;;  %v8684_v27 = vmax.f32 %v8652_v52, 0.0  ;;  %v18162_v2 = vadd.f32 %v17405_v7, %v23993_v63  ;;  %v8494_v11 = vpop.f32.mrb[31].mxu1  ;;  %17448 = vmatmul.mubr.msk.f32.gmra.mrb[178].mxu0 %vm1500_vm1, %v8682_v56  ;;  %v22114_v3 = vld [vmem:[#allocation2 + $0x48] sm:$0xff]  ;;  %v1208_v52 = vmax.f32 %v1106_v15, 0.0  ;;  %v1136_v31 = vadd.f32 %v22040_v9, %v24005_v0  ;;  %v24011_v0 = vld [vmem:[#allocation65_spill] sm:$0xff] }
 0x6f1   : > { %9395 = vst.msk [vmem:[#allocation2 + $0x88] sm:$0xff] %vm1500_vm1, %v9363_v23  ;;  %v8683_v41 = vmax.f32 %v8651_v5, 0.0  ;;  %v18163_v40 = vadd.f32 %v8494_v11, %v23995_v16  ;;  %17544 = vmatprep.mubr.msk.f32.mxu1 %vm1500_vm1, %v22114_v3  ;;  %v24001_v23 = vld [vmem:[#allocation55_spill] sm:$0xff]  ;;  %v1211_v58 = vmax.f32 %v1121_v51, 0.0  ;;  %v1146_v51 = vadd.f32 %v22040_v9, %v24007_v50 }
 0x6f2   : > { %v9366_v39 = vadd.f32 %v8684_v27, %v1203_v38  ;;  %v8654_v18 = vadd.f32 %v18162_v2, %v22045_v62  ;;  %17545 = vmatmul.mubr.msk.f32.gmra.mrb[36].mxu1 %vm1500_vm1, %v22122_v13  ;;  %v1116_v5 = vadd.f32 %v22040_v9, %v24001_v23 }
 0x6f3   : > { %v9365_v54 = vadd.f32 %v8683_v41, %v1202_v57  ;;  %v8653_v19 = vadd.f32 %v18163_v40, %v22045_v62  ;;  %v17408_v21 = vpop.f32.mrb[0].mxu1  ;;  %17450 = vmatprep.mubr.msk.f32.mxu0 %vm1500_vm1, %v8683_v41  ;;  %v22142_v30 = vld [vmem:[#allocation2 + $0x70] sm:$0xff]  ;;  %v1131_v41 = vadd.f32 %v24002_v29, %v22040_v9 }
 0x6f4   : > { %9398 = vst.msk [vmem:[#allocation2 + $0xb0] sm:$0xff] %vm1500_vm1, %v9366_v39  ;;  %v8686_v25 = vmax.f32 %v8654_v18, 0.0  ;;  %v8656_v61 = vadd.f32 %v17408_v21, %v22045_v62  ;;  %v8504_v32 = vpop.f32.mrb[1].mxu1  ;;  %17451 = vmatmul.mubr.msk.f32.gmra.mrb[180].mxu0 %vm1500_vm1, %v8684_v27  ;;  %v22136_v10 = vld [vmem:[#allocation2 + $0x68] sm:$0xff]  ;;  %v1210_v40 = vmax.f32 %v1116_v5, 0.0 }
 0x6f5   : > { %9397 = vst.msk [vmem:[#allocation2 + $0xa8] sm:$0xff] %vm1500_vm1, %v9365_v54  ;;  %v8685_v43 = vmax.f32 %v8653_v19, 0.0  ;;  %v8655_v46 = vadd.f32 %v22045_v62, %v8504_v32  ;;  %17547 = vmatprep.mubr.msk.f32.mxu1 %vm1500_vm1, %v22136_v10  ;;  %v24004_v32 = vld [vmem:[#allocation58_spill] sm:$0xff] }
 0x6f6   : > { %v9368_v35 = vadd.f32 %v8686_v25, %v1205_v45  ;;  %v8688_v44 = vmax.f32 %v8656_v61, 0.0  ;;  %17548 = vmatmul.mubr.msk.f32.gmra.mrb[38].mxu1 %vm1500_vm1, %v22142_v30  ;;  %v1213_v61 = vmax.f32 %v1131_v41, 0.0  ;;  %v1216_v41 = vmax.f32 %v1146_v51, 0.0 }
 0x6f7   : > { %v9367_v59 = vadd.f32 %v8685_v43, %v1204_v8  ;;  %v8687_v17 = vmax.f32 %v8655_v46, 0.0  ;;  %v17411_v49 = vpop.f32.mrb[2].mxu1  ;;  %17453 = vmatprep.mubr.msk.f32.mxu0 %vm1500_vm1, %v8685_v43  ;;  %v22161_v26 = vld [vmem:[#allocation2 + $0x90] sm:$0xff]  ;;  %v1141_v8 = vadd.f32 %v24004_v32, %v22040_v9 }
 0x6f8   : > { %9400 = vst.msk [vmem:[#allocation2 + $0xd0] sm:$0xff] %vm1500_vm1, %v9368_v35  ;;  %v9370_v56 = vadd.f32 %v8688_v44, %v1207_v6  ;;  %v8658_v55 = vadd.f32 %v17411_v49, %v22045_v62  ;;  %v8514_v4 = vpop.f32.mrb[3].mxu1  ;;  %17454 = vmatmul.mubr.msk.f32.gmra.mrb[182].mxu0 %vm1500_vm1, %v8686_v25  ;;  %v22154_v53 = vld [vmem:[#allocation2 + $0x88] sm:$0xff]  ;;  %v1212_v6 = vmax.f32 %v1126_v47, 0.0 }
 0x6f9   : > { %9399 = vst.msk [vmem:[#allocation2 + $0xc8] sm:$0xff] %vm1500_vm1, %v9367_v59  ;;  %v9369_v12 = vadd.f32 %v8687_v17, %v1206_v37  ;;  %v8657_v1 = vadd.f32 %v22045_v62, %v8514_v4  ;;  %17456 = vmatprep.mubr.msk.f32.mxu0 %vm1500_vm1, %v8687_v17  ;;  %17550 = vmatprep.mubr.msk.f32.mxu1 %vm1500_vm1, %v22154_v53 }
 0x6fa   : > { %9402 = vst.msk [vmem:[#allocation2 + $0xf0] sm:$0xff] %vm1500_vm1, %v9370_v56  ;;  %v8690_v34 = vmax.f32 %v8658_v55, 0.0  ;;  %17551 = vmatmul.mubr.msk.f32.gmra.mrb[40].mxu1 %vm1500_vm1, %v22161_v26  ;;  %v1215_v56 = vmax.f32 %v1141_v8, 0.0  ;;  %v24006_v55 = vld [vmem:[#allocation60_spill] sm:$0xff] }
 0x6fb   : > { %9401 = vst.msk [vmem:[#allocation2 + $0xe8] sm:$0xff] %vm1500_vm1, %v9369_v12  ;;  %v8689_v7 = vmax.f32 %v8657_v1, 0.0  ;;  %v17414_v38 = vpop.f32.mrb[4].mxu1  ;;  %v22179_v57 = vld [vmem:[#allocation2 + $0xb0] sm:$0xff]  ;;  %v1151_v4 = vadd.f32 %v24006_v55, %v22040_v9 }
 0x6fc   : > { %v9372_v48 = vadd.f32 %v8690_v34, %v1209_v28  ;;  %v8660_v60 = vadd.f32 %v17414_v38, %v22045_v62  ;;  %v8524_v27 = vpop.f32.mrb[5].mxu1  ;;  %17457 = vmatmul.mubr.msk.f32.gmra.mrb[184].mxu0 %vm1500_vm1, %v8688_v44  ;;  %v22173_v63 = vld [vmem:[#allocation2 + $0xa8] sm:$0xff]  ;;  %v1214_v28 = vmax.f32 %v1136_v31, 0.0  ;;  %v1166_v31 = vadd.f32 %v22040_v9, %v24011_v0 }
 0x6fd   : > { %v9371_v2 = vadd.f32 %v8689_v7, %v1208_v52  ;;  %v8659_v11 = vadd.f32 %v22045_v62, %v8524_v27  ;;  %17459 = vmatprep.mubr.msk.f32.mxu0 %vm1500_vm1, %v8689_v7  ;;  %17553 = vmatprep.mubr.msk.f32.mxu1 %vm1500_vm1, %v22173_v63  ;;  %v1217_v27 = vmax.f32 %v1151_v4, 0.0  ;;  %v24012_v4 = vld [vmem:[#allocation66_spill] sm:$0xff] }
 0x6fe   : > { %9404 = vst.msk [vmem:[#allocation2 + $0x110] sm:$0xff] %vm1500_vm1, %v9372_v48  ;;  %v8692_v16 = vmax.f32 %v8660_v60, 0.0  ;;  %17554 = vmatmul.mubr.msk.f32.gmra.mrb[42].mxu1 %vm1500_vm1, %v22179_v57  ;;  %v1220_v51 = vmax.f32 %v1166_v31, 0.0 }
 0x6ff   : > { %9403 = vst.msk [vmem:[#allocation2 + $0x108] sm:$0xff] %vm1500_vm1, %v9371_v2  ;;  %v8691_v39 = vmax.f32 %v8659_v11, 0.0  ;;  %v17417_v18 = vpop.f32.mrb[6].mxu1  ;;  %v22197_v25 = vld [vmem:[#allocation2 + $0xd0] sm:$0xff]  ;;  %v24008_v2 = vld [vmem:[#allocation62_spill] sm:$0xff] }
 0x700   : > { %v9374_v36 = vadd.f32 %v8692_v16, %v1211_v58  ;;  %v8662_v20 = vadd.f32 %v17417_v18, %v22045_v62  ;;  %v8534_v54 = vpop.f32.mrb[7].mxu1  ;;  %17460 = vmatmul.mubr.msk.f32.gmra.mrb[186].mxu0 %vm1500_vm1, %v8690_v34  ;;  %v22191_v19 = vld [vmem:[#allocation2 + $0xc8] sm:$0xff]  ;;  %v1161_v11 = vadd.f32 %v24008_v2, %v22040_v9 }
 0x701   : > { %v9373_v21 = vadd.f32 %v8691_v39, %v1210_v40  ;;  %v8661_v45 = vadd.f32 %v22045_v62, %v8534_v54  ;;  %17462 = vmatprep.mubr.msk.f32.mxu0 %vm1500_vm1, %v8691_v39  ;;  %17556 = vmatprep.mubr.msk.f32.mxu1 %vm1500_vm1, %v22191_v19  ;;  %v22215_v49 = vld [vmem:[#allocation2 + $0xf0] sm:$0xff] }
 0x702   : > { %9406 = vst.msk [vmem:[#allocation2 + $0x130] sm:$0xff] %vm1500_vm1, %v9374_v36  ;;  %v8694_v43 = vmax.f32 %v8662_v20, 0.0  ;;  %17557 = vmatmul.mubr.msk.f32.gmra.mrb[44].mxu1 %vm1500_vm1, %v22197_v25  ;;  %v22204_v46 = vld [vmem:[#allocation2 + $0xe8] sm:$0xff] }
 0x703   : > { %9405 = vst.msk [vmem:[#allocation2 + $0x128] sm:$0xff] %vm1500_vm1, %v9373_v21  ;;  %v8693_v35 = vmax.f32 %v8661_v45, 0.0  ;;  %v17420_v44 = vpop.f32.mrb[8].mxu1  ;;  %17559 = vmatprep.mubr.msk.f32.mxu1 %vm1500_vm1, %v22204_v46  ;;  %v1219_v45 = vmax.f32 %v1161_v11, 0.0 }
 0x704   : > { %v9376_v37 = vadd.f32 %v8694_v43, %v1213_v61  ;;  %v8664_v42 = vadd.f32 %v17420_v44, %v22045_v62  ;;  %v8544_v15 = vpop.f32.mrb[9].mxu1  ;;  %17463 = vmatmul.mubr.msk.f32.gmra.mrb[188].mxu0 %vm1500_vm1, %v8692_v16  ;;  %v24009_v16 = vld [vmem:[#allocation63_spill] sm:$0xff]  ;;  %v24010_v61 = vld [vmem:[#allocation64_spill] sm:$0xff] }
 0x705   : > { %v9375_v59 = vadd.f32 %v8693_v35, %v1212_v6  ;;  %v8663_v17 = vadd.f32 %v22045_v62, %v8544_v15  ;;  %17465 = vmatprep.mubr.msk.f32.mxu0 %vm1500_vm1, %v8693_v35  ;;  %v22233_v60 = vld [vmem:[#allocation2 + $0x110] sm:$0xff]  ;;  %v1156_v40 = vadd.f32 %v22040_v9, %v24009_v16  ;;  %v1171_v32 = vadd.f32 %v24010_v61, %v22040_v9 }
 0x706   : > { %9408 = vst.msk [vmem:[#allocation2 + $0x150] sm:$0xff] %vm1500_vm1, %v9376_v37  ;;  %v8696_v12 = vmax.f32 %v8664_v42, 0.0  ;;  %17560 = vmatmul.mubr.msk.f32.gmra.mrb[46].mxu1 %vm1500_vm1, %v22215_v49  ;;  %v22222_v1 = vld [vmem:[#allocation2 + $0x108] sm:$0xff] }
 0x707   : > { %9407 = vst.msk [vmem:[#allocation2 + $0x148] sm:$0xff] %vm1500_vm1, %v9375_v59  ;;  %v8695_v34 = vmax.f32 %v8663_v17, 0.0  ;;  %v17423_v52 = vpop.f32.mrb[10].mxu1  ;;  %17562 = vmatprep.mubr.msk.f32.mxu1 %vm1500_vm1, %v22222_v1  ;;  %v1218_v6 = vmax.f32 %v1156_v40, 0.0  ;;  %v1221_v55 = vmax.f32 %v1171_v32, 0.0 }
 0x708   : > { %v9378_v23 = vadd.f32 %v8696_v12, %v1215_v56  ;;  %v8666_v5 = vadd.f32 %v17423_v52, %v22045_v62  ;;  %v8554_v7 = vpop.f32.mrb[11].mxu1  ;;  %17466 = vmatmul.mubr.msk.f32.gmra.mrb[190].mxu0 %vm1500_vm1, %v8694_v43 }
 0x709   : > { %v9377_v38 = vadd.f32 %v8695_v34, %v1214_v28  ;;  %v8665_v48 = vadd.f32 %v22045_v62, %v8554_v7  ;;  %17468 = vmatprep.mubr.msk.f32.mxu0 %vm1500_vm1, %v8695_v34  ;;  %v22251_v21 = vld [vmem:[#allocation2 + $0x130] sm:$0xff]  ;;  %v24013_v34 = vld [vmem:[#allocation67_spill] sm:$0xff] }
 0x70a   : > { %9410 = vst.msk [vmem:[#allocation2 + $0x170] sm:$0xff] %vm1500_vm1, %v9378_v23  ;;  %v8698_v58 = vmax.f32 %v8666_v5, 0.0  ;;  %17563 = vmatmul.mubr.msk.f32.gmra.mrb[48].mxu1 %vm1500_vm1, %v22233_v60  ;;  %v22240_v29 = vld [vmem:[#allocation2 + $0x128] sm:$0xff]  ;;  %v1176_v52 = vadd.f32 %v22040_v9, %v24013_v34  ;;  %v24021_v34 = vld [vmem:[#allocation116_spill] sm:$0xff] }
 0x70b   : > { %9409 = vst.msk [vmem:[#allocation2 + $0x168] sm:$0xff] %vm1500_vm1, %v9377_v38  ;;  %v8697_v33 = vmax.f32 %v8665_v48, 0.0  ;;  %v17426_v47 = vpop.f32.mrb[12].mxu1  ;;  %17565 = vmatprep.mubr.msk.f32.mxu1 %vm1500_vm1, %v22240_v29 }
 0x70c   : > { %v9380_v39 = vadd.f32 %v8698_v58, %v1217_v27  ;;  %v8668_v18 = vadd.f32 %v17426_v47, %v22045_v62  ;;  %v8564_v36 = vpop.f32.mrb[13].mxu1  ;;  %17469 = vmatmul.mubr.msk.f32.gmra.mrb[192].mxu0 %vm1500_vm1, %v8696_v12  ;;  %v1181_v12 = vadd.f32 %v24012_v4, %v22040_v9  ;;  %v1222_v47 = vmax.f32 %v1176_v52, 0.0 }
 0x70d   : > { %v9379_v20 = vadd.f32 %v8697_v33, %v1216_v41  ;;  %v8667_v54 = vadd.f32 %v22045_v62, %v8564_v36  ;;  %17471 = vmatprep.mubr.msk.f32.mxu0 %vm1500_vm1, %v8697_v33  ;;  %v22269_v56 = vld [vmem:[#allocation2 + $0x150] sm:$0xff]  ;;  %v24022_v52 = vmax.f32 %v24021_v34, 0.0 }
 0x70e   : > { %9412 = vst.msk [vmem:[#allocation2 + $0x190] sm:$0xff] %vm1500_vm1, %v9380_v39  ;;  %v8700_v8 = vmax.f32 %v8668_v18, 0.0  ;;  %17566 = vmatmul.mubr.msk.f32.gmra.mrb[50].mxu1 %vm1500_vm1, %v22251_v21  ;;  %v22258_v43 = vld [vmem:[#allocation2 + $0x148] sm:$0xff]  ;;  %v24014_v41 = vld [vmem:[#allocation68_spill] sm:$0xff]  ;;  %v24015_v39 = vld [vmem:[#allocation69_spill] sm:$0xff] }
 0x70f   : > { %9411 = vst.msk [vmem:[#allocation2 + $0x188] sm:$0xff] %vm1500_vm1, %v9379_v20  ;;  %v8699_v35 = vmax.f32 %v8667_v54, 0.0  ;;  %v17429_v44 = vpop.f32.mrb[14].mxu1  ;;  %17568 = vmatprep.mubr.msk.f32.mxu1 %vm1500_vm1, %v22258_v43  ;;  %v1191_v16 = vadd.f32 %v24014_v41, %v22040_v9  ;;  %v1186_v18 = vadd.f32 %v22040_v9, %v24015_v39  ;;  %v24028_v41 = vld [vmem:[#allocation117_spill] sm:$0xff]  ;;  %v22376_v39 = vld [vmem:[#allocation2 + $0x2f] sm:$0xff] }
 0x710   : > { %v9382_v37 = vadd.f32 %v8700_v8, %v1219_v45  ;;  %v8670_v42 = vadd.f32 %v17429_v44, %v22045_v62  ;;  %v8574_v15 = vpop.f32.mrb[15].mxu1  ;;  %17472 = vmatmul.mubr.msk.f32.gmra.mrb[194].mxu0 %vm1500_vm1, %v8698_v58  ;;  %v1223_v58 = vmax.f32 %v1181_v12, 0.0  ;;  %v24019_v12 = vld [vmem:[#allocation86_spill] sm:$0xff] }
 0x711   : > { %v9381_v59 = vadd.f32 %v8699_v35, %v1218_v6  ;;  %v8669_v17 = vadd.f32 %v22045_v62, %v8574_v15  ;;  %17474 = vmatprep.mubr.msk.f32.mxu0 %vm1500_vm1, %v8699_v35  ;;  %v22287_v11 = vld [vmem:[#allocation2 + $0x170] sm:$0xff]  ;;  %v1225_v9 = vmax.f32 %v1191_v16, 0.0  ;;  %v1224_v35 = vmax.f32 %v1186_v18, 0.0  ;;  %v22380_v18 = vld [vmem:[#allocation2 + $0x47] sm:$0xff] }
 0x712   : > { %9414 = vst.msk [vmem:[#allocation2 + $0x1b0] sm:$0xff] %vm1500_vm1, %v9382_v37  ;;  %v8702_v28 = vmax.f32 %v8670_v42, 0.0  ;;  %17569 = vmatmul.mubr.msk.f32.gmra.mrb[52].mxu1 %vm1500_vm1, %v22269_v56  ;;  %v22276_v50 = vld [vmem:[#allocation2 + $0x168] sm:$0xff]  ;;  %v24029_v16 = vmax.f32 %v24028_v41, 0.0  ;;  %v24050_v41 = vld [vmem:[#allocation78_spill] sm:$0xff] }
 0x713   : > { %9413 = vst.msk [vmem:[#allocation2 + $0x1a8] sm:$0xff] %vm1500_vm1, %v9381_v59  ;;  %v8701_v23 = vmax.f32 %v8669_v17, 0.0  ;;  %v17432_v5 = vpop.f32.mrb[16].mxu1  ;;  %17571 = vmatprep.mubr.msk.f32.mxu1 %vm1500_vm1, %v22276_v50  ;;  %v24016_v59 = vld [vmem:[#allocation88_spill] sm:$0xff] }
 0x714   : > { %v9384_v7 = vadd.f32 %v8702_v28, %v1221_v55  ;;  %v8672_v38 = vadd.f32 %v17432_v5, %v22045_v62  ;;  %v8584_v48 = vpop.f32.mrb[17].mxu1  ;;  %17475 = vmatmul.mubr.msk.f32.gmra.mrb[196].mxu0 %vm1500_vm1, %v8700_v8  ;;  %v24017_v17 = vmax.f32 %v24016_v59, 0.0  ;;  %v9422_v5 = vld [vmem:[#allocation2 + $0xf] sm:$0xff]  ;;  %v24042_v59 = vld [vmem:[#allocation98_spill] sm:$0xff] }
 0x715   : > { %v9383_v27 = vadd.f32 %v8701_v23, %v1220_v51  ;;  %v8671_v2 = vadd.f32 %v22045_v62, %v8584_v48  ;;  %17477 = vmatprep.mubr.msk.f32.mxu0 %vm1500_vm1, %v8701_v23  ;;  %v22305_v6 = vld [vmem:[#allocation2 + $0x190] sm:$0xff]  ;;  %v9421_v51 = vld [vmem:[#allocation2 + $0x7] sm:$0xff] }
 0x716   : > { %9416 = vst.msk [vmem:[#allocation2 + $0x1d0] sm:$0xff] %vm1500_vm1, %v9384_v7  ;;  %v8704_v40 = vmax.f32 %v8672_v38, 0.0  ;;  %17572 = vmatmul.mubr.msk.f32.gmra.mrb[54].mxu1 %vm1500_vm1, %v22287_v11  ;;  %v22294_v33 = vld [vmem:[#allocation2 + $0x188] sm:$0xff]  ;;  %v24024_v7 = vld [vmem:[#allocation92_spill] sm:$0xff]  ;;  %v24026_v48 = vld [vmem:[#allocation118_spill] sm:$0xff] }
 0x717   : > { %9415 = vst.msk [vmem:[#allocation2 + $0x1c8] sm:$0xff] %vm1500_vm1, %v9383_v27  ;;  %v8703_v36 = vmax.f32 %v8671_v2, 0.0  ;;  %v17435_v20 = vpop.f32.mrb[18].mxu1  ;;  %17574 = vmatprep.mubr.msk.f32.mxu1 %vm1500_vm1, %v22294_v33  ;;  %v24025_v38 = vmax.f32 %v24024_v7, 0.0  ;;  %v24027_v27 = vmax.f32 %v24026_v48, 0.0  ;;  %v22432_v7 = vld [vmem:[#allocation2 + $0xaf] sm:$0xff] }
 0x718   : > { %v9386_v54 = vadd.f32 %v8704_v40, %v1223_v58  ;;  %v8674_v45 = vadd.f32 %v17435_v20, %v22045_v62  ;;  %v8594_v61 = vpop.f32.mrb[19].mxu1  ;;  %17478 = vmatmul.mubr.msk.f32.gmra.mrb[198].mxu0 %vm1500_vm1, %v8702_v28  ;;  %v24020_v28 = vmax.f32 %v24019_v12, 0.0  ;;  %v22359_v2 = vld [vmem:[%s23464_s3 + $0xa8] sm:$0x3f]  ;;  %v24034_v20 = vld [vmem:[#allocation84_spill] sm:$0xff] }
 0x719   : > { %v9385_v32 = vadd.f32 %v8703_v36, %v1222_v47  ;;  %v8673_v8 = vadd.f32 %v22045_v62, %v8594_v61  ;;  %17480 = vmatprep.mubr.msk.f32.mxu0 %vm1500_vm1, %v8703_v36  ;;  %v22317_v42 = vld [vmem:[#allocation2 + $0x1b0] sm:$0xff]  ;;  %v22362_v58 = vld [vmem:[#allocation2 + $0x27] sm:$0xff] }
 0x71a   : > { %9418 = vst.msk [vmem:[#allocation2 + $0x1f0] sm:$0xff] %vm1500_vm1, %v9386_v54  ;;  %v8706_v0 = vmax.f32 %v8674_v45, 0.0  ;;  %17575 = vmatmul.mubr.msk.f32.gmra.mrb[56].mxu1 %vm1500_vm1, %v22305_v6  ;;  %v22310_v31 = vld [vmem:[#allocation2 + $0x1a8] sm:$0xff]  ;;  %v24035_v54 = vmax.f32 %v24034_v20, 0.0  ;;  %v24048_v48 = vld [vmem:[#allocation100_spill] sm:$0xff]  ;;  %v24054_v20 = vld [vmem:[#allocation6_spill] sm:$0xff] }
 0x71b   : > { %9417 = vst.msk [vmem:[#allocation2 + $0x1e8] sm:$0xff] %vm1500_vm1, %v9385_v32  ;;  %v8705_v44 = vmax.f32 %v8673_v8, 0.0  ;;  %17577 = vmatprep.mubr.msk.f32.mxu1 %vm1500_vm1, %v22310_v31  ;;  %v22390_v45 = vld [vmem:[#allocation2 + $0x4f] sm:$0xff]  ;;  %v22394_v61 = vld [vmem:[#allocation2 + $0x67] sm:$0xff] }
 0x71c   : > { %v9388_v62 = vadd.f32 %v8706_v0, %v1225_v9  ;;  %17481 = vmatmul.mubr.msk.f32.gmra.mrb[200].mxu0 %vm1500_vm1, %v8704_v40  ;;  %v24030_v40 = vld [vmem:[#allocation120_spill] sm:$0xff]  ;;  %v24038_v9 = vld [vmem:[#allocation94_spill] sm:$0xff] }
 0x71d   : > { %v9387_v37 = vadd.f32 %v8705_v44, %v1224_v35  ;;  %17483 = vmatprep.mubr.msk.f32.mxu0 %vm1500_vm1, %v8705_v44  ;;  %v22331_v55 = vld [vmem:[#allocation2 + $0x1d0] sm:$0xff]  ;;  %v24031_v47 = vmax.f32 %v24030_v40, 0.0  ;;  %v22408_v44 = vld [vmem:[#allocation2 + $0x87] sm:$0xff] }
 0x71e   : > { %9420 = vst.msk [vmem:[#allocation2 + $0x210] sm:$0xff] %vm1500_vm1, %v9388_v62  ;;  %17578 = vmatmul.mubr.msk.f32.gmra.mrb[58].mxu1 %vm1500_vm1, %v22317_v42  ;;  %v22322_v15 = vld [vmem:[#allocation2 + $0x1c8] sm:$0xff]  ;;  %v24036_v32 = vld [vmem:[#allocation80_spill] sm:$0xff]  ;;  %v24040_v62 = vld [vmem:[#allocation90_spill] sm:$0xff] }
 0x71f   : > { %9419 = vst.msk [vmem:[#allocation2 + $0x208] sm:$0xff] %vm1500_vm1, %v9387_v37  ;;  %17580 = vmatprep.mubr.msk.f32.mxu1 %vm1500_vm1, %v22322_v15  ;;  %v24037_v8 = vmax.f32 %v24036_v32, 0.0  ;;  %v22404_v35 = vld [vmem:[#allocation2 + $0x6f] sm:$0xff]  ;;  %v24041_v37 = vmax.f32 %v24040_v62, 0.0 }
 0x720   : > { %17484 = vmatmul.mubr.msk.f32.gmra.mrb[202].mxu0 %vm1500_vm1, %v8706_v0  ;;  %v24039_v0 = vmax.f32 %v24038_v9, 0.0  ;;  %v22418_v12 = vld [vmem:[#allocation2 + $0x8f] sm:$0xff]  ;;  %v24056_v9 = vld [vmem:[#allocation82_spill] sm:$0xff] }
 0x721   : > { %17488 = vmatprep.mubr.msk.f32.mxu0 %vm1500_vm1, %v24017_v17  ;;  %v22345_v23 = vld [vmem:[#allocation2 + $0x1f0] sm:$0xff]  ;;  %v24043_v17 = vmax.f32 %v24042_v59, 0.0 }
 0x722   : > { %17581 = vmatmul.mubr.msk.f32.gmra.mrb[60].mxu1 %vm1500_vm1, %v22331_v55  ;;  %v22335_v4 = vld [vmem:[#allocation2 + $0x1e8] sm:$0xff]  ;;  %24023 = vst [vmem:[#allocation20_spill] sm:$0xff] %v22345_v23  ;;  %v24058_v62 = vld [vmem:[#allocation8_spill] sm:$0xff] }
 0x723   : > { %24018 = vst [vmem:[#allocation19_spill] sm:$0xff] %v22335_v4  ;;  %17583 = vmatprep.mubr.msk.f32.mxu1 %vm1500_vm1, %v22335_v4  ;;  %v22446_v40 = vld [vmem:[#allocation2 + $0xcf] sm:$0xff] }
 0x724   : > { %17489 = vmatmul.mubr.msk.f32.vlgmr.msra.gmra.mrb[172].mxu0 %vm1500_vm1, %v24020_v28  ;;  %v22422_v28 = vld [vmem:[#allocation2 + $0xa7] sm:$0xff]  ;;  %v22460_v32 = vld [vmem:[#allocation2 + $0xef] sm:$0xff] }
 0x725   : > { %17491 = vmatprep.mubr.msk.f32.mxu0 %vm1500_vm1, %v24022_v52  ;;  %v24046_v52 = vld [vmem:[#allocation102_spill] sm:$0xff]  ;;  %v22474_v59 = vld [vmem:[#allocation2 + $0x10f] sm:$0xff] }
 0x726   : > { %17584 = vmatmul.mubr.msk.f32.gmra.mrb[62].mxu1 %vm1500_vm1, %v22345_v23  ;;  %v22574_v23 = vld [vmem:[#allocation2 + $0x29] sm:$0xff] }
 0x727   : > { %17588 = vmatprep.mubr.msk.f32.mxu1 %vm1500_vm1, %v9421_v51  ;;  %v24044_v51 = vld [vmem:[#allocation96_spill] sm:$0xff]  ;;  %24082 = vst [vmem:[#allocation25_spill] sm:$0xff] %v22574_v23 }
 0x728   : > { %17492 = vmatmul.mubr.msk.f32.gmra.mrb[174].mxu0 %vm1500_vm1, %v24025_v38  ;;  %v24045_v34 = vmax.f32 %v24044_v51, 0.0  ;;  %v22436_v38 = vld [vmem:[#allocation2 + $0xc7] sm:$0xff] }
 0x729   : > { %17494 = vmatprep.mubr.msk.f32.mxu0 %vm1500_vm1, %v24027_v27  ;;  %v24049_v27 = vmax.f32 %v24048_v48, 0.0  ;;  %v24060_v51 = vld [vmem:[#allocation7_spill] sm:$0xff] }
 0x72a   : > { %17589 = vmatmul.mubr.msk.f32.vlgmr.msra.gmra.mrb[32].mxu1 %vm1500_vm1, %v9422_v5  ;;  %v24047_v5 = vmax.f32 %v24046_v52, 0.0  ;;  %v24062_v52 = vld [vmem:[#allocation10_spill] sm:$0xff]  ;;  %v22488_v48 = vld [vmem:[#allocation2 + $0x12f] sm:$0xff] }
 0x72b   : > { %17591 = vmatprep.mubr.msk.f32.mxu1 %vm1500_vm1, %v22362_v58  ;;  %17637 = vmatpush3.msk.msra.mxu1 %vm1769_vm2, %v22033_v22  ;;  %v24032_v22 = vld [vmem:[#allocation119_spill] sm:$0xff] }
 0x72c   : > { %17495 = vmatmul.mubr.msk.f32.gmra.mrb[176].mxu0 %vm1500_vm1, %v24029_v16  ;;  %17686 = vmatprep.subr.msk.mxu1 %vm1769_vm2, %v22359_v2  ;;  %v24033_v36 = vmax.f32 %v24032_v22, 0.0  ;;  %v24051_v16 = vmax.f32 %v24050_v41, 0.0  ;;  %v24052_v22 = vld [vmem:[#allocation104_spill] sm:$0xff]  ;;  %v24064_v41 = vld [vmem:[#allocation9_spill] sm:$0xff] }
 0x72d   : > { %17497 = vmatprep.mubr.msk.f32.mxu0 %vm1500_vm1, %v24031_v47  ;;  %v22450_v47 = vld [vmem:[#allocation2 + $0xe7] sm:$0xff] }
 0x72e   : > { %17592 = vmatmul.mubr.msk.f32.gmra.mrb[34].mxu1 %vm1500_vm1, %v22376_v39  ;;  %v22586_v4 = vld [vmem:[#allocation2 + $0x49] sm:$0xff] }
 0x72f   : > { %17594 = vmatprep.mubr.msk.f32.mxu1 %vm1500_vm1, %v22380_v18  ;;  %24084 = vst [vmem:[#allocation27_spill] sm:$0xff] %v22586_v4 }
 0x730   : > { %17498 = vmatmul.mubr.msk.f32.gmra.mrb[178].mxu0 %vm1500_vm1, %v24033_v36  ;;  %v24053_v36 = vmax.f32 %v24052_v22, 0.0  ;;  %v24066_v22 = vld [vmem:[#allocation12_spill] sm:$0xff] }
 0x731   : > { %17500 = vmatprep.mubr.msk.f32.mxu0 %vm1500_vm1, %v24035_v54  ;;  %v24055_v54 = vmax.f32 %v24054_v20, 0.0  ;;  %v22502_v20 = vld [vmem:[#allocation2 + $0x14f] sm:$0xff] }
 0x732   : > { %17595 = vmatmul.mubr.msk.f32.gmra.mrb[36].mxu1 %vm1500_vm1, %v22390_v45 }
 0x733   : > { %17597 = vmatprep.mubr.msk.f32.mxu1 %vm1500_vm1, %v22394_v61 }
 0x734   : > { %17501 = vmatmul.mubr.msk.f32.gmra.mrb[180].mxu0 %vm1500_vm1, %v24037_v8  ;;  %v22464_v8 = vld [vmem:[#allocation2 + $0x107] sm:$0xff] }
 0x735   : > { %17503 = vmatprep.mubr.msk.f32.mxu0 %vm1500_vm1, %v24039_v0  ;;  %v24057_v0 = vmax.f32 %v24056_v9, 0.0  ;;  %v24068_v9 = vld [vmem:[#allocation11_spill] sm:$0xff] }
 0x736   : > { %17598 = vmatmul.mubr.msk.f32.gmra.mrb[38].mxu1 %vm1500_vm1, %v22404_v35 }
 0x737   : > { %17600 = vmatprep.mubr.msk.f32.mxu1 %vm1500_vm1, %v22408_v44 }
 0x738   : > { %17504 = vmatmul.mubr.msk.f32.gmra.mrb[182].mxu0 %vm1500_vm1, %v24041_v37  ;;  %v24059_v37 = vmax.f32 %v24058_v62, 0.0  ;;  %v24070_v62 = vld [vmem:[#allocation14_spill] sm:$0xff] }
 0x739   : > { %17506 = vmatprep.mubr.msk.f32.mxu0 %vm1500_vm1, %v24043_v17  ;;  %v22478_v17 = vld [vmem:[#allocation2 + $0x127] sm:$0xff] }
 0x73a   : > { %17601 = vmatmul.mubr.msk.f32.gmra.mrb[40].mxu1 %vm1500_vm1, %v22418_v12 }
 0x73b   : > { %17603 = vmatprep.mubr.msk.f32.mxu1 %vm1500_vm1, %v22422_v28 }
 0x73c   : > { %17507 = vmatmul.mubr.msk.f32.gmra.mrb[184].mxu0 %vm1500_vm1, %v24045_v34  ;;  %v24061_v34 = vmax.f32 %v24060_v51, 0.0  ;;  %v22516_v51 = vld [vmem:[#allocation2 + $0x16f] sm:$0xff] }
 0x73d   : > { %17509 = vmatprep.mubr.msk.f32.mxu0 %vm1500_vm1, %v24047_v5  ;;  %v24063_v5 = vmax.f32 %v24062_v52, 0.0  ;;  %v24072_v52 = vld [vmem:[#allocation13_spill] sm:$0xff] }
 0x73e   : > { %17604 = vmatmul.mubr.msk.f32.gmra.mrb[42].mxu1 %vm1500_vm1, %v22432_v7 }
 0x73f   : > { %17606 = vmatprep.mubr.msk.f32.mxu1 %vm1500_vm1, %v22436_v38 }
 0x740   : > { %17510 = vmatmul.mubr.msk.f32.gmra.mrb[186].mxu0 %vm1500_vm1, %v24049_v27  ;;  %v22492_v27 = vld [vmem:[#allocation2 + $0x147] sm:$0xff] }
 0x741   : > { %17512 = vmatprep.mubr.msk.f32.mxu0 %vm1500_vm1, %v24051_v16  ;;  %v24065_v16 = vmax.f32 %v24064_v41, 0.0  ;;  %v24074_v41 = vld [vmem:[#allocation16_spill] sm:$0xff] }
 0x742   : > { %17607 = vmatmul.mubr.msk.f32.gmra.mrb[44].mxu1 %vm1500_vm1, %v22446_v40 }
 0x743   : > { %17609 = vmatprep.mubr.msk.f32.mxu1 %vm1500_vm1, %v22450_v47 }
 0x744   : > { %17513 = vmatmul.mubr.msk.f32.gmra.mrb[188].mxu0 %vm1500_vm1, %v24053_v36  ;;  %v24067_v36 = vmax.f32 %v24066_v22, 0.0  ;;  %v22530_v22 = vld [vmem:[#allocation2 + $0x18f] sm:$0xff] }
 0x745   : > { %17515 = vmatprep.mubr.msk.f32.mxu0 %vm1500_vm1, %v24055_v54  ;;  %v22506_v54 = vld [vmem:[#allocation2 + $0x167] sm:$0xff] }
 0x746   : > { %17610 = vmatmul.mubr.msk.f32.gmra.mrb[46].mxu1 %vm1500_vm1, %v22460_v32 }
 0x747   : > { %17612 = vmatprep.mubr.msk.f32.mxu1 %vm1500_vm1, %v22464_v8 }
 0x748   : > { %17516 = vmatmul.mubr.msk.f32.gmra.mrb[190].mxu0 %vm1500_vm1, %v24057_v0  ;;  %v24069_v0 = vmax.f32 %v24068_v9, 0.0  ;;  %v24076_v9 = vld [vmem:[#allocation15_spill] sm:$0xff] }
 0x749   : > { %17518 = vmatprep.mubr.msk.f32.mxu0 %vm1500_vm1, %v24059_v37  ;;  %v24071_v37 = vmax.f32 %v24070_v62, 0.0  ;;  %v24078_v62 = vld [vmem:[#allocation18_spill] sm:$0xff] }
 0x74a   : > { %17613 = vmatmul.mubr.msk.f32.gmra.mrb[48].mxu1 %vm1500_vm1, %v22474_v59 }
 0x74b   : > { %17615 = vmatprep.mubr.msk.f32.mxu1 %vm1500_vm1, %v22478_v17 }
 0x74c   : > { %17519 = vmatmul.mubr.msk.f32.gmra.mrb[192].mxu0 %vm1500_vm1, %v24061_v34  ;;  %v22520_v34 = vld [vmem:[#allocation2 + $0x187] sm:$0xff] }
 0x74d   : > { %17521 = vmatprep.mubr.msk.f32.mxu0 %vm1500_vm1, %v24063_v5  ;;  %v24073_v5 = vmax.f32 %v24072_v52, 0.0  ;;  %v22544_v52 = vld [vmem:[#allocation2 + $0x1af] sm:$0xff] }
 0x74e   : > { %17616 = vmatmul.mubr.msk.f32.gmra.mrb[50].mxu1 %vm1500_vm1, %v22488_v48 }
 0x74f   : > { %17618 = vmatprep.mubr.msk.f32.mxu1 %vm1500_vm1, %v22492_v27 }
 0x750   : > { %17522 = vmatmul.mubr.msk.f32.gmra.mrb[194].mxu0 %vm1500_vm1, %v24065_v16  ;;  %v24075_v16 = vmax.f32 %v24074_v41, 0.0  ;;  %v24080_v41 = vld [vmem:[#allocation17_spill] sm:$0xff] }
 0x751   : > { %17524 = vmatprep.mubr.msk.f32.mxu0 %vm1500_vm1, %v24067_v36  ;;  %v22534_v36 = vld [vmem:[#allocation2 + $0x1a7] sm:$0xff] }
 0x752   : > { %17619 = vmatmul.mubr.msk.f32.gmra.mrb[52].mxu1 %vm1500_vm1, %v22502_v20 }
 0x753   : > { %17621 = vmatprep.mubr.msk.f32.mxu1 %vm1500_vm1, %v22506_v54 }
 0x754   : > { %17525 = vmatmul.mubr.msk.f32.gmra.mrb[196].mxu0 %vm1500_vm1, %v24069_v0  ;;  %v24077_v0 = vmax.f32 %v24076_v9, 0.0  ;;  %v22555_v9 = vld [vmem:[#allocation2 + $0x1cf] sm:$0xff] }
 0x755   : > { %17527 = vmatprep.mubr.msk.f32.mxu0 %vm1500_vm1, %v24071_v37  ;;  %v24079_v37 = vmax.f32 %v24078_v62, 0.0  ;;  %v10137_v62 = vld [vmem:[#allocation2 + $0x9] sm:$0xff] }
 0x756   : > { %17622 = vmatmul.mubr.msk.f32.gmra.mrb[54].mxu1 %vm1500_vm1, %v22516_v51 }
 0x757   : > { %17624 = vmatprep.mubr.msk.f32.mxu1 %vm1500_vm1, %v22520_v34 }
 0x758   : > { %17528 = vmatmul.mubr.msk.f32.gmra.mrb[198].mxu0 %vm1500_vm1, %v24073_v5  ;;  %v22548_v5 = vld [vmem:[#allocation2 + $0x1c7] sm:$0xff] }
 0x759   : > { %17530 = vmatprep.mubr.msk.f32.mxu0 %vm1500_vm1, %v24075_v16  ;;  %v24081_v16 = vmax.f32 %v24080_v41, 0.0  ;;  %v10138_v41 = vld [vmem:[#allocation2 + $0x11] sm:$0xff] }
 0x75a   : > { %17625 = vmatmul.mubr.msk.f32.gmra.mrb[56].mxu1 %vm1500_vm1, %v22530_v22 }
 0x75b   : > { %17627 = vmatprep.mubr.msk.f32.mxu1 %vm1500_vm1, %v22534_v36 }
 0x75c   : > { %17531 = vmatmul.mubr.msk.f32.gmra.mrb[200].mxu0 %vm1500_vm1, %v24077_v0  ;;  %v22559_v0 = vld [vmem:[#allocation2 + $0x1e7] sm:$0xff] }
 0x75d   : > { %17533 = vmatprep.mubr.msk.f32.mxu0 %vm1500_vm1, %v24079_v37  ;;  %v22563_v37 = vld [vmem:[#allocation2 + $0x1ef] sm:$0xff] }
 0x75e   : > { %17628 = vmatmul.mubr.msk.f32.gmra.mrb[58].mxu1 %vm1500_vm1, %v22544_v52 }
 0x75f   : > { %17630 = vmatprep.mubr.msk.f32.mxu1 %vm1500_vm1, %v22548_v5 }
 0x760   : > { %17534 = vmatmul.mubr.msk.f32.gmra.mrb[202].mxu0 %vm1500_vm1, %v24081_v16  ;;  %v22571_v16 = vld [vmem:[%s23464_s3 + $0xb0] sm:$0x3f] }
 0x762   : > { %17631 = vmatmul.mubr.msk.f32.gmra.mrb[60].mxu1 %vm1500_vm1, %v22555_v9 }
 0x763   : > { %17633 = vmatprep.mubr.msk.f32.mxu1 %vm1500_vm1, %v22559_v0 }
 0x766   : > { %17634 = vmatmul.mubr.msk.f32.gmra.mrb[62].mxu1 %vm1500_vm1, %v22563_v37 }
 0x767   : > { %17638 = vmatprep.mubr.msk.f32.mxu1 %vm1500_vm1, %v10137_v62  ;;  %v22582_v62 = vld [vmem:[#allocation2 + $0x31] sm:$0xff] }
 0x768   : > { %24083 = vst [vmem:[#allocation26_spill] sm:$0xff] %v22582_v62 }
 0x76a   : > { %17639 = vmatmul.mubr.msk.f32.vlgmr.msra.gmra.mrb[32].mxu1 %vm1500_vm1, %v10138_v41  ;;  %v22590_v41 = vld [vmem:[#allocation2 + $0x51] sm:$0xff] }
 0x76b   : > { %17641 = vmatprep.mubr.msk.f32.mxu1 %vm1500_vm1, %v22574_v23  ;;  %17687 = vmatpush3.msk.msra.mxu1 %vm1769_vm2, %v22359_v2  ;;  %24085 = vst [vmem:[#allocation28_spill] sm:$0xff] %v22590_v41  ;;  %v22594_v23 = vld [vmem:[#allocation2 + $0x69] sm:$0xff]  ;;  %v22598_v2 = vld [vmem:[#allocation2 + $0x71] sm:$0xff] }
 0x76c   : > { %17736 = vmatprep.subr.msk.mxu1 %vm1769_vm2, %v22571_v16  ;;  %24086 = vst [vmem:[#allocation29_spill] sm:$0xff] %v22594_v23  ;;  %24087 = vst [vmem:[#allocation30_spill] sm:$0xff] %v22598_v2 }
 0x76e   : > { %17642 = vmatmul.mubr.msk.f32.gmra.mrb[34].mxu1 %vm1500_vm1, %v22582_v62  ;;  %v22602_v62 = vld [vmem:[#allocation2 + $0x89] sm:$0xff] }
 0x76f   : > { %17644 = vmatprep.mubr.msk.f32.mxu1 %vm1500_vm1, %v22586_v4  ;;  %24088 = vst [vmem:[#allocation31_spill] sm:$0xff] %v22602_v62  ;;  %v22606_v4 = vld [vmem:[#allocation2 + $0x91] sm:$0xff] }
 0x770   : > { %24089 = vst [vmem:[#allocation32_spill] sm:$0xff] %v22606_v4 }
 0x772   : > { %17645 = vmatmul.mubr.msk.f32.gmra.mrb[36].mxu1 %vm1500_vm1, %v22590_v41  ;;  %v22610_v41 = vld [vmem:[#allocation2 + $0xa9] sm:$0xff] }
 0x773   : > { %17647 = vmatprep.mubr.msk.f32.mxu1 %vm1500_vm1, %v22594_v23  ;;  %24090 = vst [vmem:[#allocation33_spill] sm:$0xff] %v22610_v41  ;;  %v22614_v23 = vld [vmem:[#allocation2 + $0xb1] sm:$0xff] }
 0x774   : > { %24091 = vst [vmem:[#allocation125_spill] sm:$0xff] %v22614_v23 }
 0x776   : > { %17648 = vmatmul.mubr.msk.f32.gmra.mrb[38].mxu1 %vm1500_vm1, %v22598_v2  ;;  %v22618_v2 = vld [vmem:[#allocation2 + $0xc9] sm:$0xff] }
 0x777   : > { %17650 = vmatprep.mubr.msk.f32.mxu1 %vm1500_vm1, %v22602_v62  ;;  %24092 = vst [vmem:[#allocation127_spill] sm:$0xff] %v22618_v2  ;;  %v22622_v62 = vld [vmem:[#allocation2 + $0xd1] sm:$0xff] }
 0x778   : > { %24093 = vst [vmem:[#allocation128_spill] sm:$0xff] %v22622_v62 }
 0x77a   : > { %17651 = vmatmul.mubr.msk.f32.gmra.mrb[40].mxu1 %vm1500_vm1, %v22606_v4  ;;  %v22626_v4 = vld [vmem:[#allocation2 + $0xe9] sm:$0xff] }
 0x77b   : > { %17653 = vmatprep.mubr.msk.f32.mxu1 %vm1500_vm1, %v22610_v41  ;;  %24094 = vst [vmem:[#allocation129_spill] sm:$0xff] %v22626_v4  ;;  %v22630_v41 = vld [vmem:[#allocation2 + $0xf1] sm:$0xff] }
 0x77c   : > { %24095 = vst [vmem:[#allocation131_spill] sm:$0xff] %v22630_v41 }
 0x77e   : > { %17654 = vmatmul.mubr.msk.f32.gmra.mrb[42].mxu1 %vm1500_vm1, %v22614_v23  ;;  %v22634_v23 = vld [vmem:[#allocation2 + $0x109] sm:$0xff] }
 0x77f   : > { %17656 = vmatprep.mubr.msk.f32.mxu1 %vm1500_vm1, %v22618_v2  ;;  %24096 = vst [vmem:[#allocation133_spill] sm:$0xff] %v22634_v23  ;;  %v22638_v2 = vld [vmem:[#allocation2 + $0x111] sm:$0xff] }
 0x780   : > { %24097 = vst [vmem:[#allocation21_spill] sm:$0xff] %v22638_v2 }
 0x782   : > { %17657 = vmatmul.mubr.msk.f32.gmra.mrb[44].mxu1 %vm1500_vm1, %v22622_v62  ;;  %v22642_v62 = vld [vmem:[#allocation2 + $0x129] sm:$0xff] }
 0x783   : > { %17659 = vmatprep.mubr.msk.f32.mxu1 %vm1500_vm1, %v22626_v4  ;;  %24098 = vst [vmem:[#allocation24_spill] sm:$0xff] %v22642_v62  ;;  %v22646_v4 = vld [vmem:[#allocation2 + $0x131] sm:$0xff] }
 0x784   : > { %24099 = vst [vmem:[#allocation34_spill] sm:$0xff] %v22646_v4 }
 0x786   : > { %17660 = vmatmul.mubr.msk.f32.gmra.mrb[46].mxu1 %vm1500_vm1, %v22630_v41  ;;  %v22650_v41 = vld [vmem:[#allocation2 + $0x149] sm:$0xff] }
 0x787   : > { %17662 = vmatprep.mubr.msk.f32.mxu1 %vm1500_vm1, %v22634_v23  ;;  %24100 = vst [vmem:[#allocation35_spill] sm:$0xff] %v22650_v41  ;;  %v22654_v23 = vld [vmem:[#allocation2 + $0x151] sm:$0xff] }
 0x788   : > { %24101 = vst [vmem:[#allocation36_spill] sm:$0xff] %v22654_v23 }
 0x78a   : > { %17663 = vmatmul.mubr.msk.f32.gmra.mrb[48].mxu1 %vm1500_vm1, %v22638_v2  ;;  %v22658_v2 = vld [vmem:[#allocation2 + $0x169] sm:$0xff] }
 0x78b   : > { %17665 = vmatprep.mubr.msk.f32.mxu1 %vm1500_vm1, %v22642_v62  ;;  %24102 = vst [vmem:[#allocation37_spill] sm:$0xff] %v22658_v2  ;;  %v22662_v62 = vld [vmem:[#allocation2 + $0x171] sm:$0xff] }
 0x78c   : > { %24103 = vst [vmem:[#allocation121_spill] sm:$0xff] %v22662_v62 }
 0x78e   : > { %17666 = vmatmul.mubr.msk.f32.gmra.mrb[50].mxu1 %vm1500_vm1, %v22646_v4  ;;  %v22666_v4 = vld [vmem:[#allocation2 + $0x189] sm:$0xff] }
 0x78f   : > { %17668 = vmatprep.mubr.msk.f32.mxu1 %vm1500_vm1, %v22650_v41  ;;  %24104 = vst [vmem:[#allocation122_spill] sm:$0xff] %v22666_v4  ;;  %v22670_v41 = vld [vmem:[#allocation2 + $0x191] sm:$0xff] }
 0x790   : > { %24105 = vst [vmem:[#allocation123_spill] sm:$0xff] %v22670_v41 }
 0x792   : > { %17669 = vmatmul.mubr.msk.f32.gmra.mrb[52].mxu1 %vm1500_vm1, %v22654_v23  ;;  %v22674_v23 = vld [vmem:[#allocation2 + $0x1a9] sm:$0xff] }
 0x793   : > { %17671 = vmatprep.mubr.msk.f32.mxu1 %vm1500_vm1, %v22658_v2  ;;  %24106 = vst [vmem:[#allocation124_spill] sm:$0xff] %v22674_v23  ;;  %v22678_v2 = vld [vmem:[#allocation2 + $0x1b1] sm:$0xff] }
 0x796   : > { %17672 = vmatmul.mubr.msk.f32.gmra.mrb[54].mxu1 %vm1500_vm1, %v22662_v62  ;;  %v22682_v62 = vld [vmem:[#allocation2 + $0x1c9] sm:$0xff] }
 0x797   : > { %17674 = vmatprep.mubr.msk.f32.mxu1 %vm1500_vm1, %v22666_v4  ;;  %24107 = vst [vmem:[#allocation126_spill] sm:$0xff] %v22682_v62  ;;  %v22686_v4 = vld [vmem:[#allocation2 + $0x1d1] sm:$0xff] }
 0x79a   : > { %17675 = vmatmul.mubr.msk.f32.gmra.mrb[56].mxu1 %vm1500_vm1, %v22670_v41  ;;  %v22690_v41 = vld [vmem:[#allocation2 + $0x1e9] sm:$0xff] }
 0x79b   : > { %17677 = vmatprep.mubr.msk.f32.mxu1 %vm1500_vm1, %v22674_v23  ;;  %24108 = vst [vmem:[#allocation130_spill] sm:$0xff] %v22690_v41  ;;  %v22694_v23 = vld [vmem:[#allocation2 + $0x1f1] sm:$0xff] }
 0x79e   : > { %17678 = vmatmul.mubr.msk.f32.gmra.mrb[58].mxu1 %vm1500_vm1, %v22678_v2 }
 0x79f   : > { %17680 = vmatprep.mubr.msk.f32.mxu1 %vm1500_vm1, %v22682_v62  ;;  %v14883_v62 = vld [vmem:[%s23464_s3 + $0xb8] sm:$0x3f] }
 0x7a2   : > { %17681 = vmatmul.mubr.msk.f32.gmra.mrb[60].mxu1 %vm1500_vm1, %v22686_v4 }
 0x7a3   : > { %17683 = vmatprep.mubr.msk.f32.mxu1 %vm1500_vm1, %v22690_v41 }
 0x7a6   : > { %17684 = vmatmul.mubr.msk.f32.gmra.mrb[62].mxu1 %vm1500_vm1, %v22694_v23 }
 0x7a7   : > { %17688 = vmatprep.mubr.msk.f32.mxu1 %vm1500_vm1, %v22362_v58  ;;  %v22764_v58 = vld [vmem:[#allocation2 + $0x207] sm:$0xff] }
 0x7aa   : > { %17689 = vmatmul.mubr.msk.f32.vlgmr.msra.gmra.mrb[32].mxu1 %vm1500_vm1, %v22376_v39  ;;  %v22768_v39 = vld [vmem:[#allocation2 + $0x20f] sm:$0xff] }
 0x7ab   : > { %17691 = vmatprep.mubr.msk.f32.mxu1 %vm1500_vm1, %v22380_v18  ;;  %17737 = vmatpush3.msk.msra.mxu1 %vm1769_vm2, %v22571_v16  ;;  %v14917_v16 = vld [vmem:[%s23464_s3 + $0xc0] sm:$0x3f] }
 0x7ac   : > { %17786 = vmatprep.subr.msk.mxu1 %vm1769_vm2, %v14883_v62 }
 0x7ae   : > { %17692 = vmatmul.mubr.msk.f32.gmra.mrb[34].mxu1 %vm1500_vm1, %v22390_v45 }
 0x7af   : > { %17694 = vmatprep.mubr.msk.f32.mxu1 %vm1500_vm1, %v22394_v61 }
 0x7b2   : > { %17695 = vmatmul.mubr.msk.f32.gmra.mrb[36].mxu1 %vm1500_vm1, %v22404_v35 }
 0x7b3   : > { %17697 = vmatprep.mubr.msk.f32.mxu1 %vm1500_vm1, %v22408_v44 }
 0x7b6   : > { %17698 = vmatmul.mubr.msk.f32.gmra.mrb[38].mxu1 %vm1500_vm1, %v22418_v12 }
 0x7b7   : > { %17700 = vmatprep.mubr.msk.f32.mxu1 %vm1500_vm1, %v22422_v28 }
 0x7ba   : > { %17701 = vmatmul.mubr.msk.f32.gmra.mrb[40].mxu1 %vm1500_vm1, %v22432_v7 }
 0x7bb   : > { %17703 = vmatprep.mubr.msk.f32.mxu1 %vm1500_vm1, %v22436_v38 }
 0x7be   : > { %17704 = vmatmul.mubr.msk.f32.gmra.mrb[42].mxu1 %vm1500_vm1, %v22446_v40 }
 0x7bf   : > { %17706 = vmatprep.mubr.msk.f32.mxu1 %vm1500_vm1, %v22450_v47 }
 0x7c2   : > { %17707 = vmatmul.mubr.msk.f32.gmra.mrb[44].mxu1 %vm1500_vm1, %v22460_v32 }
 0x7c3   : > { %17709 = vmatprep.mubr.msk.f32.mxu1 %vm1500_vm1, %v22464_v8 }
 0x7c6   : > { %17710 = vmatmul.mubr.msk.f32.gmra.mrb[46].mxu1 %vm1500_vm1, %v22474_v59 }
 0x7c7   : > { %17712 = vmatprep.mubr.msk.f32.mxu1 %vm1500_vm1, %v22478_v17 }
 0x7ca   : > { %17713 = vmatmul.mubr.msk.f32.gmra.mrb[48].mxu1 %vm1500_vm1, %v22488_v48 }
 0x7cb   : > { %17715 = vmatprep.mubr.msk.f32.mxu1 %vm1500_vm1, %v22492_v27 }
 0x7ce   : > { %17716 = vmatmul.mubr.msk.f32.gmra.mrb[50].mxu1 %vm1500_vm1, %v22502_v20 }
 0x7cf   : > { %17718 = vmatprep.mubr.msk.f32.mxu1 %vm1500_vm1, %v22506_v54 }
 0x7d2   : > { %17719 = vmatmul.mubr.msk.f32.gmra.mrb[52].mxu1 %vm1500_vm1, %v22516_v51 }
 0x7d3   : > { %17721 = vmatprep.mubr.msk.f32.mxu1 %vm1500_vm1, %v22520_v34 }
 0x7d6   : > { %17722 = vmatmul.mubr.msk.f32.gmra.mrb[54].mxu1 %vm1500_vm1, %v22530_v22 }
 0x7d7   : > { %17724 = vmatprep.mubr.msk.f32.mxu1 %vm1500_vm1, %v22534_v36 }
 0x7da   : > { %17725 = vmatmul.mubr.msk.f32.gmra.mrb[56].mxu1 %vm1500_vm1, %v22544_v52 }
 0x7db   : > { %17727 = vmatprep.mubr.msk.f32.mxu1 %vm1500_vm1, %v22548_v5 }
 0x7de   : > { %17728 = vmatmul.mubr.msk.f32.gmra.mrb[58].mxu1 %vm1500_vm1, %v22555_v9 }
 0x7df   : > { %17730 = vmatprep.mubr.msk.f32.mxu1 %vm1500_vm1, %v22559_v0 }
 0x7e2   : > { %17731 = vmatmul.mubr.msk.f32.gmra.mrb[60].mxu1 %vm1500_vm1, %v22563_v37 }
 0x7e3   : > { %17733 = vmatprep.mubr.msk.f32.mxu1 %vm1500_vm1, %v22764_v58 }
 0x7e6   : > { %17734 = vmatmul.mubr.msk.f32.gmra.mrb[62].mxu1 %vm1500_vm1, %v22768_v39 }
 0x7e7   : > { %17738 = vmatprep.mubr.msk.f32.mxu1 %vm1500_vm1, %v22094_v14  ;;  %v24109_v14 = vld [vmem:[#allocation19_spill] sm:$0xff] }
 0x7ea   : > { %17739 = vmatmul.mubr.msk.f32.vlgmr.msra.gmra.mrb[32].mxu1 %vm1500_vm1, %v22102_v24  ;;  %v24110_v24 = vld [vmem:[#allocation20_spill] sm:$0xff] }
 0x7eb   : > { %17741 = vmatprep.mubr.msk.f32.mxu1 %vm1500_vm1, %v22114_v3  ;;  %17787 = vmatpush3.msk.msra.mxu1 %vm1769_vm2, %v14883_v62  ;;  %v22837_v3 = vld [vmem:[#allocation2 + $0x208] sm:$0xff]  ;;  %v24127_v62 = vld [vmem:[#allocation24_spill] sm:$0xff] }
 0x7ec   : > { %17836 = vmatprep.subr.msk.mxu1 %vm1769_vm2, %v14917_v16 }
 0x7ee   : > { %17742 = vmatmul.mubr.msk.f32.gmra.mrb[34].mxu1 %vm1500_vm1, %v22122_v13  ;;  %v22841_v13 = vld [vmem:[#allocation2 + $0x210] sm:$0xff] }
 0x7ef   : > { %17744 = vmatprep.mubr.msk.f32.mxu1 %vm1500_vm1, %v22136_v10  ;;  %v24111_v10 = vld [vmem:[#allocation25_spill] sm:$0xff] }
 0x7f2   : > { %17745 = vmatmul.mubr.msk.f32.gmra.mrb[36].mxu1 %vm1500_vm1, %v22142_v30  ;;  %v14951_v30 = vld [vmem:[%s23464_s3 + $0xc8] sm:$0x3f] }
 0x7f3   : > { %17747 = vmatprep.mubr.msk.f32.mxu1 %vm1500_vm1, %v22154_v53  ;;  %v24112_v53 = vld [vmem:[#allocation26_spill] sm:$0xff] }
 0x7f6   : > { %17748 = vmatmul.mubr.msk.f32.gmra.mrb[38].mxu1 %vm1500_vm1, %v22161_v26  ;;  %v24113_v26 = vld [vmem:[#allocation27_spill] sm:$0xff] }
 0x7f7   : > { %17750 = vmatprep.mubr.msk.f32.mxu1 %vm1500_vm1, %v22173_v63  ;;  %v24114_v63 = vld [vmem:[#allocation28_spill] sm:$0xff] }
 0x7fa   : > { %17751 = vmatmul.mubr.msk.f32.gmra.mrb[40].mxu1 %vm1500_vm1, %v22179_v57  ;;  %v24115_v57 = vld [vmem:[#allocation29_spill] sm:$0xff] }
 0x7fb   : > { %17753 = vmatprep.mubr.msk.f32.mxu1 %vm1500_vm1, %v22191_v19  ;;  %v24116_v19 = vld [vmem:[#allocation30_spill] sm:$0xff] }
 0x7fe   : > { %17754 = vmatmul.mubr.msk.f32.gmra.mrb[42].mxu1 %vm1500_vm1, %v22197_v25  ;;  %v24117_v25 = vld [vmem:[#allocation31_spill] sm:$0xff] }
 0x7ff   : > { %17756 = vmatprep.mubr.msk.f32.mxu1 %vm1500_vm1, %v22204_v46  ;;  %v24118_v46 = vld [vmem:[#allocation32_spill] sm:$0xff] }
 0x802   : > { %17757 = vmatmul.mubr.msk.f32.gmra.mrb[44].mxu1 %vm1500_vm1, %v22215_v49  ;;  %v24119_v49 = vld [vmem:[#allocation33_spill] sm:$0xff] }
 0x803   : > { %17759 = vmatprep.mubr.msk.f32.mxu1 %vm1500_vm1, %v22222_v1  ;;  %v24120_v1 = vld [vmem:[#allocation125_spill] sm:$0xff] }
 0x806   : > { %17760 = vmatmul.mubr.msk.f32.gmra.mrb[46].mxu1 %vm1500_vm1, %v22233_v60  ;;  %v24121_v60 = vld [vmem:[#allocation127_spill] sm:$0xff] }
 0x807   : > { %17762 = vmatprep.mubr.msk.f32.mxu1 %vm1500_vm1, %v22240_v29  ;;  %v24122_v29 = vld [vmem:[#allocation128_spill] sm:$0xff] }
 0x80a   : > { %17763 = vmatmul.mubr.msk.f32.gmra.mrb[48].mxu1 %vm1500_vm1, %v22251_v21  ;;  %v24123_v21 = vld [vmem:[#allocation129_spill] sm:$0xff] }
 0x80b   : > { %17765 = vmatprep.mubr.msk.f32.mxu1 %vm1500_vm1, %v22258_v43  ;;  %v24124_v43 = vld [vmem:[#allocation131_spill] sm:$0xff] }
 0x80e   : > { %17766 = vmatmul.mubr.msk.f32.gmra.mrb[50].mxu1 %vm1500_vm1, %v22269_v56  ;;  %v24125_v56 = vld [vmem:[#allocation133_spill] sm:$0xff] }
 0x80f   : > { %17768 = vmatprep.mubr.msk.f32.mxu1 %vm1500_vm1, %v22276_v50  ;;  %v24126_v50 = vld [vmem:[#allocation21_spill] sm:$0xff] }
 0x812   : > { %17769 = vmatmul.mubr.msk.f32.gmra.mrb[52].mxu1 %vm1500_vm1, %v22287_v11 }
 0x813   : > { %17771 = vmatprep.mubr.msk.f32.mxu1 %vm1500_vm1, %v22294_v33 }
 0x816   : > { %17772 = vmatmul.mubr.msk.f32.gmra.mrb[54].mxu1 %vm1500_vm1, %v22305_v6 }
 0x817   : > { %17774 = vmatprep.mubr.msk.f32.mxu1 %vm1500_vm1, %v22310_v31 }
 0x81a   : > { %17775 = vmatmul.mubr.msk.f32.gmra.mrb[56].mxu1 %vm1500_vm1, %v22317_v42 }
 0x81b   : > { %17777 = vmatprep.mubr.msk.f32.mxu1 %vm1500_vm1, %v22322_v15 }
 0x81e   : > { %17778 = vmatmul.mubr.msk.f32.gmra.mrb[58].mxu1 %vm1500_vm1, %v22331_v55 }
 0x81f   : > { %17780 = vmatprep.mubr.msk.f32.mxu1 %vm1500_vm1, %v24109_v14 }
 0x822   : > { %17781 = vmatmul.mubr.msk.f32.gmra.mrb[60].mxu1 %vm1500_vm1, %v24110_v24 }
 0x823   : > { %17783 = vmatprep.mubr.msk.f32.mxu1 %vm1500_vm1, %v22837_v3 }
 0x826   : > { %17784 = vmatmul.mubr.msk.f32.gmra.mrb[62].mxu1 %vm1500_vm1, %v22841_v13 }
 0x827   : > { %17788 = vmatprep.mubr.msk.f32.mxu1 %vm1500_vm1, %v24111_v10  ;;  %v24129_v10 = vld [vmem:[#allocation35_spill] sm:$0xff] }
 0x82a   : > { %17789 = vmatmul.mubr.msk.f32.vlgmr.msra.gmra.mrb[32].mxu1 %vm1500_vm1, %v24112_v53  ;;  %v24130_v53 = vld [vmem:[#allocation36_spill] sm:$0xff] }
 0x82b   : > { %17791 = vmatprep.mubr.msk.f32.mxu1 %vm1500_vm1, %v24113_v26  ;;  %17837 = vmatpush3.msk.msra.mxu1 %vm1769_vm2, %v14917_v16  ;;  %v24128_v16 = vld [vmem:[#allocation34_spill] sm:$0xff] }
 0x82c   : > { %17886 = vmatprep.subr.msk.mxu1 %vm1769_vm2, %v14951_v30 }
 0x82e   : > { %17792 = vmatmul.mubr.msk.f32.gmra.mrb[34].mxu1 %vm1500_vm1, %v24114_v63 }
 0x82f   : > { %17794 = vmatprep.mubr.msk.f32.mxu1 %vm1500_vm1, %v24115_v57 }
 0x832   : > { %17795 = vmatmul.mubr.msk.f32.gmra.mrb[36].mxu1 %vm1500_vm1, %v24116_v19 }
 0x833   : > { %17797 = vmatprep.mubr.msk.f32.mxu1 %vm1500_vm1, %v24117_v25 }
 0x836   : > { %17798 = vmatmul.mubr.msk.f32.gmra.mrb[38].mxu1 %vm1500_vm1, %v24118_v46 }
 0x837   : > { %17800 = vmatprep.mubr.msk.f32.mxu1 %vm1500_vm1, %v24119_v49 }
 0x83a   : > { %17801 = vmatmul.mubr.msk.f32.gmra.mrb[40].mxu1 %vm1500_vm1, %v24120_v1 }
 0x83b   : > { %17803 = vmatprep.mubr.msk.f32.mxu1 %vm1500_vm1, %v24121_v60 }
 0x83e   : > { %17804 = vmatmul.mubr.msk.f32.gmra.mrb[42].mxu1 %vm1500_vm1, %v24122_v29 }
 0x83f   : > { %17806 = vmatprep.mubr.msk.f32.mxu1 %vm1500_vm1, %v24123_v21  ;;  %v24131_v21 = vld [vmem:[#allocation37_spill] sm:$0xff] }
 0x842   : > { %17807 = vmatmul.mubr.msk.f32.gmra.mrb[44].mxu1 %vm1500_vm1, %v24124_v43  ;;  %v24132_v43 = vld [vmem:[#allocation121_spill] sm:$0xff] }
 0x843   : > { %17809 = vmatprep.mubr.msk.f32.mxu1 %vm1500_vm1, %v24125_v56  ;;  %v24133_v56 = vld [vmem:[#allocation122_spill] sm:$0xff] }
 0x846   : > { %17810 = vmatmul.mubr.msk.f32.gmra.mrb[46].mxu1 %vm1500_vm1, %v24126_v50  ;;  %v24134_v50 = vld [vmem:[#allocation123_spill] sm:$0xff] }
 0x847   : > { %17812 = vmatprep.mubr.msk.f32.mxu1 %vm1500_vm1, %v24127_v62  ;;  %v24135_v62 = vld [vmem:[#allocation124_spill] sm:$0xff] }
 0x84a   : > { %17813 = vmatmul.mubr.msk.f32.gmra.mrb[48].mxu1 %vm1500_vm1, %v24128_v16 }
 0x84b   : > { %17815 = vmatprep.mubr.msk.f32.mxu1 %vm1500_vm1, %v24129_v10  ;;  %v24136_v10 = vld [vmem:[#allocation126_spill] sm:$0xff] }
 0x84e   : > { %17816 = vmatmul.mubr.msk.f32.gmra.mrb[50].mxu1 %vm1500_vm1, %v24130_v53 }
 0x84f   : > { %17818 = vmatprep.mubr.msk.f32.mxu1 %vm1500_vm1, %v24131_v21 }
 0x852   : > { %17819 = vmatmul.mubr.msk.f32.gmra.mrb[52].mxu1 %vm1500_vm1, %v24132_v43 }
 0x853   : > { %17821 = vmatprep.mubr.msk.f32.mxu1 %vm1500_vm1, %v24133_v56  ;;  %v22910_v56 = vld [vmem:[#allocation2 + $0x209] sm:$0xff] }
 0x856   : > { %17822 = vmatmul.mubr.msk.f32.gmra.mrb[54].mxu1 %vm1500_vm1, %v24134_v50 }
 0x857   : > { %17824 = vmatprep.mubr.msk.f32.mxu1 %vm1500_vm1, %v24135_v62  ;;  %v22914_v62 = vld [vmem:[#allocation2 + $0x211] sm:$0xff] }
 0x85a   : > { %17825 = vmatmul.mubr.msk.f32.gmra.mrb[56].mxu1 %vm1500_vm1, %v22678_v2 }
 0x85b   : > { %17827 = vmatprep.mubr.msk.f32.mxu1 %vm1500_vm1, %v24136_v10 }
 0x85e   : > { %17828 = vmatmul.mubr.msk.f32.gmra.mrb[58].mxu1 %vm1500_vm1, %v22686_v4 }
 0x85f   : > { %17830 = vmatprep.mubr.msk.f32.mxu1 %vm1500_vm1, %v22690_v41  ;;  %v14985_v41 = vld [vmem:[%s23464_s3 + $0xd0] sm:$0x3f] }
 0x862   : > { %17831 = vmatmul.mubr.msk.f32.gmra.mrb[60].mxu1 %vm1500_vm1, %v22694_v23 }
 0x863   : > { %17833 = vmatprep.mubr.msk.f32.mxu1 %vm1500_vm1, %v22910_v56 }
 0x866   : > { %17834 = vmatmul.mubr.msk.f32.gmra.mrb[62].mxu1 %vm1500_vm1, %v22914_v62 }
 0x867   : > { %17838 = vmatprep.mubr.msk.f32.mxu1 %vm1500_vm1, %v22380_v18  ;;  %v11727_v18 = vld [vmem:[#allocation2 + $0x227] sm:$0xff] }
 0x86a   : > { %17839 = vmatmul.mubr.msk.f32.vlgmr.msra.gmra.mrb[32].mxu1 %vm1500_vm1, %v22390_v45  ;;  %v11728_v45 = vld [vmem:[#allocation2 + $0x22f] sm:$0xff] }
 0x86b   : > { %17841 = vmatprep.mubr.msk.f32.mxu1 %vm1500_vm1, %v22394_v61  ;;  %17887 = vmatpush3.msk.msra.mxu1 %vm1769_vm2, %v14951_v30  ;;  %v12087_v61 = vld [vmem:[#allocation2 + $0x48] sm:$0xff] }
 0x86c   : > { %17936 = vmatprep.subr.msk.mxu1 %vm1769_vm2, %v14985_v41 }
 0x86e   : > { %17842 = vmatmul.mubr.msk.f32.gmra.mrb[34].mxu1 %vm1500_vm1, %v22404_v35  ;;  %v15021_v35 = vld [vmem:[%s23466_s5 + $0x10] sm:$0x3f] }
 0x86f   : > { %17844 = vmatprep.mubr.msk.f32.mxu1 %vm1500_vm1, %v22408_v44  ;;  %17986 = vmatprep.subr.msk.mxu0 %vm1769_vm2, %v15021_v35  ;;  %v12088_v44 = vld [vmem:[#allocation2 + $0x50] sm:$0xff] }
 0x870   : > { %17987 = vmatpush3.msk.msra.mxu0 %vm1769_vm2, %v15021_v35 }
 0x872   : > { %17845 = vmatmul.mubr.msk.f32.gmra.mrb[36].mxu1 %vm1500_vm1, %v22418_v12  ;;  %v12089_v12 = vld [vmem:[#allocation2 + $0x68] sm:$0xff] }
 0x873   : > { %17847 = vmatprep.mubr.msk.f32.mxu1 %vm1500_vm1, %v22422_v28  ;;  %v12090_v28 = vld [vmem:[#allocation2 + $0x70] sm:$0xff] }
 0x876   : > { %17848 = vmatmul.mubr.msk.f32.gmra.mrb[38].mxu1 %vm1500_vm1, %v22432_v7  ;;  %v12091_v7 = vld [vmem:[#allocation2 + $0x88] sm:$0xff] }
 0x877   : > { %17850 = vmatprep.mubr.msk.f32.mxu1 %vm1500_vm1, %v22436_v38  ;;  %v12092_v38 = vld [vmem:[#allocation2 + $0x90] sm:$0xff] }
 0x87a   : > { %17851 = vmatmul.mubr.msk.f32.gmra.mrb[40].mxu1 %vm1500_vm1, %v22446_v40  ;;  %v12093_v40 = vld [vmem:[#allocation2 + $0xa8] sm:$0xff] }
 0x87b   : > { %17853 = vmatprep.mubr.msk.f32.mxu1 %vm1500_vm1, %v22450_v47  ;;  %v12094_v47 = vld [vmem:[#allocation2 + $0xb0] sm:$0xff] }
 0x87e   : > { %17854 = vmatmul.mubr.msk.f32.gmra.mrb[42].mxu1 %vm1500_vm1, %v22460_v32  ;;  %v12095_v32 = vld [vmem:[#allocation2 + $0xc8] sm:$0xff] }
 0x87f   : > { %17856 = vmatprep.mubr.msk.f32.mxu1 %vm1500_vm1, %v22464_v8  ;;  %v12096_v8 = vld [vmem:[#allocation2 + $0xd0] sm:$0xff] }
 0x882   : > { %17857 = vmatmul.mubr.msk.f32.gmra.mrb[44].mxu1 %vm1500_vm1, %v22474_v59  ;;  %v12097_v59 = vld [vmem:[#allocation2 + $0xe8] sm:$0xff] }
 0x883   : > { %17859 = vmatprep.mubr.msk.f32.mxu1 %vm1500_vm1, %v22478_v17  ;;  %v12098_v17 = vld [vmem:[#allocation2 + $0xf0] sm:$0xff] }
 0x886   : > { %17860 = vmatmul.mubr.msk.f32.gmra.mrb[46].mxu1 %vm1500_vm1, %v22488_v48  ;;  %v12099_v48 = vld [vmem:[#allocation2 + $0x108] sm:$0xff] }
 0x887   : > { %17862 = vmatprep.mubr.msk.f32.mxu1 %vm1500_vm1, %v22492_v27  ;;  %v12100_v27 = vld [vmem:[#allocation2 + $0x110] sm:$0xff] }
 0x88a   : > { %17863 = vmatmul.mubr.msk.f32.gmra.mrb[48].mxu1 %vm1500_vm1, %v22502_v20  ;;  %v12101_v20 = vld [vmem:[#allocation2 + $0x128] sm:$0xff] }
 0x88b   : > { %17865 = vmatprep.mubr.msk.f32.mxu1 %vm1500_vm1, %v22506_v54  ;;  %v12102_v54 = vld [vmem:[#allocation2 + $0x130] sm:$0xff] }
 0x88e   : > { %17866 = vmatmul.mubr.msk.f32.gmra.mrb[50].mxu1 %vm1500_vm1, %v22516_v51  ;;  %v12103_v51 = vld [vmem:[#allocation2 + $0x148] sm:$0xff] }
 0x88f   : > { %17868 = vmatprep.mubr.msk.f32.mxu1 %vm1500_vm1, %v22520_v34  ;;  %v12104_v34 = vld [vmem:[#allocation2 + $0x150] sm:$0xff] }
 0x892   : > { %17869 = vmatmul.mubr.msk.f32.gmra.mrb[52].mxu1 %vm1500_vm1, %v22530_v22  ;;  %v12105_v22 = vld [vmem:[#allocation2 + $0x168] sm:$0xff] }
 0x893   : > { %17871 = vmatprep.mubr.msk.f32.mxu1 %vm1500_vm1, %v22534_v36  ;;  %v24142_v36 = vld [vmem:[#allocation35_spill] sm:$0xff] }
 0x896   : > { %17872 = vmatmul.mubr.msk.f32.gmra.mrb[54].mxu1 %vm1500_vm1, %v22544_v52  ;;  %v24143_v52 = vld [vmem:[#allocation122_spill] sm:$0xff] }
 0x897   : > { %17874 = vmatprep.mubr.msk.f32.mxu1 %vm1500_vm1, %v22548_v5  ;;  %v24144_v5 = vld [vmem:[#allocation124_spill] sm:$0xff] }
 0x89a   : > { %17875 = vmatmul.mubr.msk.f32.gmra.mrb[56].mxu1 %vm1500_vm1, %v22555_v9  ;;  %v24145_v9 = vld [vmem:[#allocation130_spill] sm:$0xff] }
 0x89b   : > { %17877 = vmatprep.mubr.msk.f32.mxu1 %vm1500_vm1, %v22559_v0  ;;  %v12507_v0 = vld [vmem:[#allocation2 + $0x229] sm:$0xff] }
 0x89e   : > { %17878 = vmatmul.mubr.msk.f32.gmra.mrb[58].mxu1 %vm1500_vm1, %v22563_v37  ;;  %v12508_v37 = vld [vmem:[#allocation2 + $0x231] sm:$0xff] }
 0x89f   : > { %17880 = vmatprep.mubr.msk.f32.mxu1 %vm1500_vm1, %v22764_v58 }
 0x8a2   : > { %17881 = vmatmul.mubr.msk.f32.gmra.mrb[60].mxu1 %vm1500_vm1, %v22768_v39 }
 0x8a3   : > { %17883 = vmatprep.mubr.msk.f32.mxu1 %vm1500_vm1, %v11727_v18 }
 0x8a6   : > { %17884 = vmatmul.mubr.msk.f32.gmra.mrb[62].mxu1 %vm1500_vm1, %v11728_v45 }
 0x8a7   : > { %17888 = vmatprep.mubr.msk.f32.mxu1 %vm1500_vm1, %v12087_v61 }
 0x8aa   : > { %17889 = vmatmul.mubr.msk.f32.vlgmr.msra.gmra.mrb[32].mxu1 %vm1500_vm1, %v12088_v44 }
 0x8ab   : > { %17891 = vmatprep.mubr.msk.f32.mxu1 %vm1500_vm1, %v12089_v12  ;;  %17937 = vmatpush3.msk.msra.mxu1 %vm1769_vm2, %v14985_v41 }
 0x8ae   : > { %17892 = vmatmul.mubr.msk.f32.gmra.mrb[34].mxu1 %vm1500_vm1, %v12090_v28 }
 0x8af   : > { %17894 = vmatprep.mubr.msk.f32.mxu1 %vm1500_vm1, %v12091_v7 }
 0x8b2   : > { %17895 = vmatmul.mubr.msk.f32.gmra.mrb[36].mxu1 %vm1500_vm1, %v12092_v38 }
 0x8b3   : > { %17897 = vmatprep.mubr.msk.f32.mxu1 %vm1500_vm1, %v12093_v40 }
 0x8b6   : > { %17898 = vmatmul.mubr.msk.f32.gmra.mrb[38].mxu1 %vm1500_vm1, %v12094_v47 }
 0x8b7   : > { %17900 = vmatprep.mubr.msk.f32.mxu1 %vm1500_vm1, %v12095_v32 }
 0x8ba   : > { %17901 = vmatmul.mubr.msk.f32.gmra.mrb[40].mxu1 %vm1500_vm1, %v12096_v8 }
 0x8bb   : > { %17903 = vmatprep.mubr.msk.f32.mxu1 %vm1500_vm1, %v12097_v59 }
 0x8be   : > { %17904 = vmatmul.mubr.msk.f32.gmra.mrb[42].mxu1 %vm1500_vm1, %v12098_v17 }
 0x8bf   : > { %17906 = vmatprep.mubr.msk.f32.mxu1 %vm1500_vm1, %v12099_v48 }
 0x8c2   : > { %17907 = vmatmul.mubr.msk.f32.gmra.mrb[44].mxu1 %vm1500_vm1, %v12100_v27 }
 0x8c3   : > { %17909 = vmatprep.mubr.msk.f32.mxu1 %vm1500_vm1, %v12101_v20 }
 0x8c6   : > { %17910 = vmatmul.mubr.msk.f32.gmra.mrb[46].mxu1 %vm1500_vm1, %v12102_v54 }
 0x8c7   : > { %17912 = vmatprep.mubr.msk.f32.mxu1 %vm1500_vm1, %v12103_v51 }
 0x8ca   : > { %17913 = vmatmul.mubr.msk.f32.gmra.mrb[48].mxu1 %vm1500_vm1, %v12104_v34 }
 0x8cb   : > { %17915 = vmatprep.mubr.msk.f32.mxu1 %vm1500_vm1, %v12105_v22 }
 0x8ce   : > { %17916 = vmatmul.mubr.msk.f32.gmra.mrb[50].mxu1 %vm1500_vm1, %v22287_v11  ;;  %v12117_v11 = vld [vmem:[#allocation2 + $0x228] sm:$0xff] }
 0x8cf   : > { %17918 = vmatprep.mubr.msk.f32.mxu1 %vm1500_vm1, %v22294_v33  ;;  %v12118_v33 = vld [vmem:[#allocation2 + $0x230] sm:$0xff] }
 0x8d2   : > { %17919 = vmatmul.mubr.msk.f32.gmra.mrb[52].mxu1 %vm1500_vm1, %v22305_v6  ;;  %v24137_v6 = vld [vmem:[#allocation129_spill] sm:$0xff] }
 0x8d3   : > { %17921 = vmatprep.mubr.msk.f32.mxu1 %vm1500_vm1, %v22310_v31  ;;  %v24138_v31 = vld [vmem:[#allocation131_spill] sm:$0xff] }
 0x8d6   : > { %17922 = vmatmul.mubr.msk.f32.gmra.mrb[54].mxu1 %vm1500_vm1, %v22317_v42  ;;  %v24139_v42 = vld [vmem:[#allocation133_spill] sm:$0xff] }
 0x8d7   : > { %17924 = vmatprep.mubr.msk.f32.mxu1 %vm1500_vm1, %v22322_v15  ;;  %v24140_v15 = vld [vmem:[#allocation21_spill] sm:$0xff] }
 0x8da   : > { %17925 = vmatmul.mubr.msk.f32.gmra.mrb[56].mxu1 %vm1500_vm1, %v22331_v55  ;;  %v24141_v55 = vld [vmem:[#allocation24_spill] sm:$0xff] }
 0x8db   : > { %17927 = vmatprep.mubr.msk.f32.mxu1 %vm1500_vm1, %v24109_v14 }
 0x8de   : > { %17928 = vmatmul.mubr.msk.f32.gmra.mrb[58].mxu1 %vm1500_vm1, %v24110_v24 }
 0x8df   : > { %17930 = vmatprep.mubr.msk.f32.mxu1 %vm1500_vm1, %v22837_v3 }
 0x8e2   : > { %17931 = vmatmul.mubr.msk.f32.gmra.mrb[60].mxu1 %vm1500_vm1, %v22841_v13 }
 0x8e3   : > { %17933 = vmatprep.mubr.msk.f32.mxu1 %vm1500_vm1, %v12117_v11 }
 0x8e6   : > { %17934 = vmatmul.mubr.msk.f32.gmra.mrb[62].mxu1 %vm1500_vm1, %v12118_v33 }
 0x8e7   : > { %17938 = vmatprep.mubr.msk.f32.mxu1 %vm1500_vm1, %v24113_v26 }
 0x8ea   : > { %17939 = vmatmul.mubr.msk.f32.vlgmr.msra.gmra.mrb[32].mxu1 %vm1500_vm1, %v24114_v63 }
 0x8eb   : > { %17941 = vmatprep.mubr.msk.f32.mxu1 %vm1500_vm1, %v24115_v57 }
 0x8ee   : > { %17942 = vmatmul.mubr.msk.f32.gmra.mrb[34].mxu1 %vm1500_vm1, %v24116_v19 }
 0x8ef   : > { %17944 = vmatprep.mubr.msk.f32.mxu1 %vm1500_vm1, %v24117_v25 }
 0x8f2   : > { %17945 = vmatmul.mubr.msk.f32.gmra.mrb[36].mxu1 %vm1500_vm1, %v24118_v46 }
 0x8f3   : > { %17947 = vmatprep.mubr.msk.f32.mxu1 %vm1500_vm1, %v24119_v49 }
 0x8f6   : > { %17948 = vmatmul.mubr.msk.f32.gmra.mrb[38].mxu1 %vm1500_vm1, %v24120_v1 }
 0x8f7   : > { %17950 = vmatprep.mubr.msk.f32.mxu1 %vm1500_vm1, %v24121_v60 }
 0x8fa   : > { %17951 = vmatmul.mubr.msk.f32.gmra.mrb[40].mxu1 %vm1500_vm1, %v24122_v29 }
 0x8fb   : > { %17953 = vmatprep.mubr.msk.f32.mxu1 %vm1500_vm1, %v24137_v6 }
 0x8fe   : > { %17954 = vmatmul.mubr.msk.f32.gmra.mrb[42].mxu1 %vm1500_vm1, %v24138_v31 }
 0x8ff   : > { %17956 = vmatprep.mubr.msk.f32.mxu1 %vm1500_vm1, %v24139_v42 }
 0x902   : > { %17957 = vmatmul.mubr.msk.f32.gmra.mrb[44].mxu1 %vm1500_vm1, %v24140_v15 }
 0x903   : > { %17959 = vmatprep.mubr.msk.f32.mxu1 %vm1500_vm1, %v24141_v55 }
 0x906   : > { %17960 = vmatmul.mubr.msk.f32.gmra.mrb[46].mxu1 %vm1500_vm1, %v24128_v16 }
 0x907   : > { %17962 = vmatprep.mubr.msk.f32.mxu1 %vm1500_vm1, %v24142_v36 }
 0x90a   : > { %17963 = vmatmul.mubr.msk.f32.gmra.mrb[48].mxu1 %vm1500_vm1, %v24130_v53 }
 0x90b   : > { %17965 = vmatprep.mubr.msk.f32.mxu1 %vm1500_vm1, %v24131_v21 }
 0x90e   : > { %17966 = vmatmul.mubr.msk.f32.gmra.mrb[50].mxu1 %vm1500_vm1, %v24132_v43 }
 0x90f   : > { %17968 = vmatprep.mubr.msk.f32.mxu1 %vm1500_vm1, %v24143_v52 }
 0x912   : > { %17969 = vmatmul.mubr.msk.f32.gmra.mrb[52].mxu1 %vm1500_vm1, %v24134_v50 }
 0x913   : > { %17971 = vmatprep.mubr.msk.f32.mxu1 %vm1500_vm1, %v24144_v5 }
 0x916   : > { %17972 = vmatmul.mubr.msk.f32.gmra.mrb[54].mxu1 %vm1500_vm1, %v22678_v2 }
 0x917   : > { %17974 = vmatprep.mubr.msk.f32.mxu1 %vm1500_vm1, %v24136_v10 }
 0x91a   : > { %17975 = vmatmul.mubr.msk.f32.gmra.mrb[56].mxu1 %vm1500_vm1, %v22686_v4  ;;  %v15055_v4 = vld [vmem:[%s23466_s5 + $0x18] sm:$0x3f] }
 0x91b   : > { %17977 = vmatprep.mubr.msk.f32.mxu1 %vm1500_vm1, %v24145_v9  ;;  %18036 = vmatprep.subr.msk.mxu0 %vm1769_vm2, %v15055_v4 }
 0x91e   : > { %17978 = vmatmul.mubr.msk.f32.gmra.mrb[58].mxu1 %vm1500_vm1, %v22694_v23  ;;  %v23103_v23 = vld [vmem:[%s23465_s4 + $0x2] ss:$0 sm:$0xff] }
 0x91f   : > { %17980 = vmatprep.mubr.msk.f32.mxu1 %vm1500_vm1, %v22910_v56 }
 0x922   : > { %17981 = vmatmul.mubr.msk.f32.gmra.mrb[60].mxu1 %vm1500_vm1, %v22914_v62 }
 0x923   : > { %17983 = vmatprep.mubr.msk.f32.mxu1 %vm1500_vm1, %v12507_v0 }
 0x926   : > { %17984 = vmatmul.mubr.msk.f32.gmra.mrb[62].mxu1 %vm1500_vm1, %v12508_v37 }
 0x9bd   : > { %v17940_v41 = vpop.f32.mrb[32].mxu1 }
 0x9be   : > { %v12876_v2 = vadd.f32 %v17940_v41, %v23103_v23  ;;  %v12676_v58 = vpop.f32.mrb[33].mxu1 }
 0x9bf   : > { %v12875_v39 = vadd.f32 %v23103_v23, %v12676_v58 }
 0x9c0   : > { %v12908_v3 = vmax.f32 %v12876_v2, 0.0 }
 0x9c1   : > { %v12907_v14 = vmax.f32 %v12875_v39, 0.0  ;;  %v17943_v24 = vpop.f32.mrb[34].mxu1 }
 0x9c2   : > { %v12878_v13 = vadd.f32 %v17943_v24, %v23103_v23  ;;  %v12686_v30 = vpop.f32.mrb[35].mxu1 }
 0x9c3   : > { %v12877_v26 = vadd.f32 %v23103_v23, %v12686_v30  ;;  %17988 = vmatprep.mubr.msk.f32.mxu0 %vm1500_vm1, %v12907_v14 }
 0x9c4   : > { %17989 = vmatmul.mubr.msk.f32.vlgmr.msra.gmra.mrb[172].mxu0 %vm1500_vm1, %v12908_v3  ;;  %v12910_v19 = vmax.f32 %v12878_v13, 0.0 }
 0x9c5   : > { %v12909_v63 = vmax.f32 %v12877_v26, 0.0  ;;  %v17946_v57 = vpop.f32.mrb[36].mxu1  ;;  %18037 = vmatpush3.msk.msra.mxu0 %vm1769_vm2, %v15055_v4 }
 0x9c6   : > { %v12880_v25 = vadd.f32 %v17946_v57, %v23103_v23  ;;  %v12696_v46 = vpop.f32.mrb[37].mxu1 }
 0x9c7   : > { %v12879_v49 = vadd.f32 %v23103_v23, %v12696_v46  ;;  %17991 = vmatprep.mubr.msk.f32.mxu0 %vm1500_vm1, %v12909_v63 }
 0x9c8   : > { %17992 = vmatmul.mubr.msk.f32.gmra.mrb[174].mxu0 %vm1500_vm1, %v12910_v19  ;;  %v12912_v29 = vmax.f32 %v12880_v25, 0.0 }
 0x9c9   : > { %v12911_v1 = vmax.f32 %v12879_v49, 0.0  ;;  %v17949_v60 = vpop.f32.mrb[38].mxu1 }
 0x9ca   : > { %v12882_v21 = vadd.f32 %v17949_v60, %v23103_v23  ;;  %v12706_v43 = vpop.f32.mrb[39].mxu1 }
 0x9cb   : > { %v12881_v56 = vadd.f32 %v23103_v23, %v12706_v43  ;;  %17994 = vmatprep.mubr.msk.f32.mxu0 %vm1500_vm1, %v12911_v1 }
 0x9cc   : > { %17995 = vmatmul.mubr.msk.f32.gmra.mrb[176].mxu0 %vm1500_vm1, %v12912_v29  ;;  %v12914_v16 = vmax.f32 %v12882_v21, 0.0 }
 0x9cd   : > { %v12913_v50 = vmax.f32 %v12881_v56, 0.0  ;;  %v17952_v62 = vpop.f32.mrb[40].mxu1 }
 0x9ce   : > { %v12884_v10 = vadd.f32 %v17952_v62, %v23103_v23  ;;  %v12716_v53 = vpop.f32.mrb[41].mxu1 }
 0x9cf   : > { %v12883_v18 = vadd.f32 %v23103_v23, %v12716_v53  ;;  %17997 = vmatprep.mubr.msk.f32.mxu0 %vm1500_vm1, %v12913_v50 }
 0x9d0   : > { %17998 = vmatmul.mubr.msk.f32.gmra.mrb[178].mxu0 %vm1500_vm1, %v12914_v16  ;;  %v12916_v35 = vmax.f32 %v12884_v10, 0.0  ;;  %v23166_v10 = vld [vmem:[%s23463_s2 + $0x3] ss:$0 sm:$0xff] }
 0x9d1   : > { %v12915_v45 = vmax.f32 %v12883_v18, 0.0  ;;  %v17955_v61 = vpop.f32.mrb[42].mxu1 }
 0x9d2   : > { %v12886_v44 = vadd.f32 %v17955_v61, %v23103_v23  ;;  %v12726_v12 = vpop.f32.mrb[43].mxu1 }
 0x9d3   : > { %v12885_v28 = vadd.f32 %v23103_v23, %v12726_v12  ;;  %18000 = vmatprep.mubr.msk.f32.mxu0 %vm1500_vm1, %v12915_v45 }
 0x9d4   : > { %18001 = vmatmul.mubr.msk.f32.gmra.mrb[180].mxu0 %vm1500_vm1, %v12916_v35  ;;  %v12918_v40 = vmax.f32 %v12886_v44, 0.0  ;;  %v24146_v44 = vld [vmem:[#allocation71_spill] sm:$0xff] }
 0x9d5   : > { %v12917_v7 = vmax.f32 %v12885_v28, 0.0  ;;  %v17958_v38 = vpop.f32.mrb[44].mxu1  ;;  %v1310_v12 = vadd.f32 %v23166_v10, %v24146_v44 }
 0x9d6   : > { %v12888_v47 = vadd.f32 %v17958_v38, %v23103_v23  ;;  %v12736_v32 = vpop.f32.mrb[45].mxu1  ;;  %v24147_v38 = vld [vmem:[#allocation70_spill] sm:$0xff] }
 0x9d7   : > { %v12887_v8 = vadd.f32 %v23103_v23, %v12736_v32  ;;  %18003 = vmatprep.mubr.msk.f32.mxu0 %vm1500_vm1, %v12917_v7  ;;  %v1468_v32 = vmax.f32 %v1310_v12, 0.0 }
 0x9d8   : > { %18004 = vmatmul.mubr.msk.f32.gmra.mrb[182].mxu0 %vm1500_vm1, %v12918_v40  ;;  %v12920_v48 = vmax.f32 %v12888_v47, 0.0  ;;  %v1315_v40 = vadd.f32 %v24147_v38, %v23166_v10 }
 0x9d9   : > { %v12919_v59 = vmax.f32 %v12887_v8, 0.0  ;;  %v17961_v17 = vpop.f32.mrb[46].mxu1  ;;  %v24148_v8 = vld [vmem:[#allocation73_spill] sm:$0xff] }
 0x9da   : > { %v12890_v27 = vadd.f32 %v17961_v17, %v23103_v23  ;;  %v12746_v20 = vpop.f32.mrb[47].mxu1  ;;  %v24149_v17 = vld [vmem:[#allocation72_spill] sm:$0xff] }
 0x9db   : > { %v12889_v54 = vadd.f32 %v23103_v23, %v12746_v20  ;;  %18006 = vmatprep.mubr.msk.f32.mxu0 %vm1500_vm1, %v12919_v59  ;;  %v1320_v59 = vadd.f32 %v23166_v10, %v24148_v8  ;;  %v24150_v20 = vld [vmem:[#allocation75_spill] sm:$0xff]  ;;  %v24169_v8 = vld [vmem:[#allocation106_spill] sm:$0xff] }
 0x9dc   : > { %18007 = vmatmul.mubr.msk.f32.gmra.mrb[184].mxu0 %vm1500_vm1, %v12920_v48  ;;  %v12922_v22 = vmax.f32 %v12890_v27, 0.0  ;;  %v1325_v48 = vadd.f32 %v24149_v17, %v23166_v10  ;;  %v24170_v17 = vld [vmem:[#allocation109_spill] sm:$0xff] }
 0x9dd   : > { %v12921_v51 = vmax.f32 %v12889_v54, 0.0  ;;  %v17964_v34 = vpop.f32.mrb[48].mxu1  ;;  %v1470_v27 = vmax.f32 %v1320_v59, 0.0  ;;  %v1330_v54 = vadd.f32 %v23166_v10, %v24150_v20  ;;  %v1425_v59 = vadd.f32 %v24169_v8, %v23166_v10  ;;  %v24171_v20 = vld [vmem:[#allocation108_spill] sm:$0xff] }
 0x9de   : > { %v12892_v11 = vadd.f32 %v17964_v34, %v23103_v23  ;;  %v12756_v33 = vpop.f32.mrb[49].mxu1  ;;  %v24151_v34 = vld [vmem:[#allocation74_spill] sm:$0xff] }
 0x9df   : > { %v12891_v6 = vadd.f32 %v23103_v23, %v12756_v33  ;;  %18009 = vmatprep.mubr.msk.f32.mxu0 %vm1500_vm1, %v12921_v51  ;;  %v1471_v51 = vmax.f32 %v1325_v48, 0.0  ;;  %v24152_v33 = vld [vmem:[#allocation77_spill] sm:$0xff]  ;;  %v1430_v48 = vadd.f32 %v23166_v10, %v24170_v17 }
 0x9e0   : > { %18010 = vmatmul.mubr.msk.f32.gmra.mrb[186].mxu0 %vm1500_vm1, %v12922_v22  ;;  %v12924_v15 = vmax.f32 %v12892_v11, 0.0  ;;  %v1335_v22 = vadd.f32 %v24151_v34, %v23166_v10  ;;  %v1472_v11 = vmax.f32 %v1330_v54, 0.0  ;;  %v1435_v54 = vadd.f32 %v24171_v20, %v23166_v10  ;;  %v24172_v34 = vld [vmem:[#allocation111_spill] sm:$0xff] }
 0x9e1   : > { %v12923_v31 = vmax.f32 %v12891_v6, 0.0  ;;  %v17967_v42 = vpop.f32.mrb[50].mxu1  ;;  %v1340_v6 = vadd.f32 %v23166_v10, %v24152_v33  ;;  %v24173_v33 = vld [vmem:[#allocation110_spill] sm:$0xff] }
 0x9e2   : > { %v12894_v55 = vadd.f32 %v17967_v42, %v23103_v23  ;;  %v12766_v36 = vpop.f32.mrb[51].mxu1  ;;  %v24153_v42 = vld [vmem:[#allocation76_spill] sm:$0xff] }
 0x9e3   : > { %v12893_v52 = vadd.f32 %v23103_v23, %v12766_v36  ;;  %18012 = vmatprep.mubr.msk.f32.mxu0 %vm1500_vm1, %v12923_v31  ;;  %v1473_v31 = vmax.f32 %v1335_v22, 0.0  ;;  %v24154_v36 = vld [vmem:[#allocation81_spill] sm:$0xff]  ;;  %v1440_v22 = vadd.f32 %v23166_v10, %v24172_v34  ;;  %v19066_v34 = vld [vmem:[%s19269_s15 + $0x48] sm:$0xff] }
 0x9e4   : > { %18013 = vmatmul.mubr.msk.f32.gmra.mrb[188].mxu0 %vm1500_vm1, %v12924_v15  ;;  %v12926_v0 = vmax.f32 %v12894_v55, 0.0  ;;  %v1345_v15 = vadd.f32 %v24153_v42, %v23166_v10  ;;  %v1474_v55 = vmax.f32 %v1340_v6, 0.0  ;;  %v1445_v6 = vadd.f32 %v24173_v33, %v23166_v10  ;;  %v24174_v42 = vld [vmem:[#allocation113_spill] sm:$0xff] }
 0x9e5   : > { %v12925_v5 = vmax.f32 %v12893_v52, 0.0  ;;  %v17970_v9 = vpop.f32.mrb[52].mxu1  ;;  %v1350_v52 = vadd.f32 %v23166_v10, %v24154_v36  ;;  %v24175_v36 = vld [vmem:[#allocation112_spill] sm:$0xff] }
 0x9e6   : > { %v12896_v37 = vadd.f32 %v17970_v9, %v23103_v23  ;;  %v12776_v4 = vpop.f32.mrb[53].mxu1  ;;  %v24155_v9 = vld [vmem:[#allocation79_spill] sm:$0xff] }
 0x9e7   : > { %v12895_v41 = vadd.f32 %v23103_v23, %v12776_v4  ;;  %18015 = vmatprep.mubr.msk.f32.mxu0 %vm1500_vm1, %v12925_v5  ;;  %v1475_v5 = vmax.f32 %v1345_v15, 0.0  ;;  %v24156_v4 = vld [vmem:[#allocation85_spill] sm:$0xff]  ;;  %v1450_v15 = vadd.f32 %v23166_v10, %v24174_v42 }
 0x9e8   : > { %18016 = vmatmul.mubr.msk.f32.gmra.mrb[190].mxu0 %vm1500_vm1, %v12926_v0  ;;  %v12928_v39 = vmax.f32 %v12896_v37, 0.0  ;;  %v1355_v0 = vadd.f32 %v24155_v9, %v23166_v10  ;;  %v1476_v37 = vmax.f32 %v1350_v52, 0.0  ;;  %v1455_v52 = vadd.f32 %v24175_v36, %v23166_v10  ;;  %v24176_v9 = vld [vmem:[#allocation115_spill] sm:$0xff] }
 0x9e9   : > { %v12927_v2 = vmax.f32 %v12895_v41, 0.0  ;;  %v17973_v58 = vpop.f32.mrb[54].mxu1  ;;  %v1360_v41 = vadd.f32 %v23166_v10, %v24156_v4  ;;  %v24177_v4 = vld [vmem:[#allocation114_spill] sm:$0xff] }
 0x9ea   : > { %v12898_v14 = vadd.f32 %v17973_v58, %v23103_v23  ;;  %v12786_v24 = vpop.f32.mrb[55].mxu1  ;;  %v24157_v58 = vld [vmem:[#allocation83_spill] sm:$0xff] }
 0x9eb   : > { %v12897_v3 = vadd.f32 %v23103_v23, %v12786_v24  ;;  %18018 = vmatprep.mubr.msk.f32.mxu0 %vm1500_vm1, %v12927_v2  ;;  %v1477_v2 = vmax.f32 %v1355_v0, 0.0  ;;  %v24158_v24 = vld [vmem:[#allocation89_spill] sm:$0xff]  ;;  %v1460_v0 = vadd.f32 %v23166_v10, %v24176_v9  ;;  %v19069_v9 = vld [vmem:[%s19269_s15 + $0x50] sm:$0xff] }
 0x9ec   : > { %18019 = vmatmul.mubr.msk.f32.gmra.mrb[192].mxu0 %vm1500_vm1, %v12928_v39  ;;  %v12930_v26 = vmax.f32 %v12898_v14, 0.0  ;;  %v1365_v39 = vadd.f32 %v24157_v58, %v23166_v10  ;;  %v1478_v14 = vmax.f32 %v1360_v41, 0.0  ;;  %v1465_v41 = vadd.f32 %v24177_v4, %v23166_v10 }
 0x9ed   : > { %v12929_v13 = vmax.f32 %v12897_v3, 0.0  ;;  %v17976_v30 = vpop.f32.mrb[56].mxu1  ;;  %v1370_v3 = vadd.f32 %v23166_v10, %v24158_v24 }
 0x9ee   : > { %v12900_v63 = vadd.f32 %v17976_v30, %v23103_v23  ;;  %v12796_v57 = vpop.f32.mrb[57].mxu1  ;;  %v24159_v30 = vld [vmem:[#allocation87_spill] sm:$0xff]  ;;  %v1499_v58 = vmax.f32 %v1465_v41, 0.0 }
 0x9ef   : > { %v12899_v19 = vadd.f32 %v23103_v23, %v12796_v57  ;;  %18021 = vmatprep.mubr.msk.f32.mxu0 %vm1500_vm1, %v12929_v13  ;;  %v1479_v13 = vmax.f32 %v1365_v39, 0.0  ;;  %v24160_v57 = vld [vmem:[#allocation93_spill] sm:$0xff]  ;;  %v23275_v39 = vld [vmem:[%s23467_s6] ss:$0 sm:$0xff] }
 0x9f0   : > { %18022 = vmatmul.mubr.msk.f32.gmra.mrb[194].mxu0 %vm1500_vm1, %v12930_v26  ;;  %v12932_v49 = vmax.f32 %v12900_v63, 0.0  ;;  %v1375_v26 = vadd.f32 %v24159_v30, %v23166_v10  ;;  %v1480_v63 = vmax.f32 %v1370_v3, 0.0 }
 0x9f1   : > { %v12931_v25 = vmax.f32 %v12899_v19, 0.0  ;;  %v17979_v46 = vpop.f32.mrb[58].mxu1  ;;  %v1380_v19 = vadd.f32 %v23166_v10, %v24160_v57 }
 0x9f2   : > { %v12902_v1 = vadd.f32 %v17979_v46, %v23103_v23  ;;  %v12806_v60 = vpop.f32.mrb[59].mxu1  ;;  %v24161_v46 = vld [vmem:[#allocation91_spill] sm:$0xff] }
 0x9f3   : > { %v12901_v29 = vadd.f32 %v23103_v23, %v12806_v60  ;;  %18024 = vmatprep.mubr.msk.f32.mxu0 %vm1500_vm1, %v12931_v25  ;;  %v1481_v25 = vmax.f32 %v1375_v26, 0.0  ;;  %v24162_v60 = vld [vmem:[#allocation97_spill] sm:$0xff]  ;;  %v19059_v26 = vld [vmem:[%s19269_s15] sm:$0xff] }
 0x9f4   : > { %18025 = vmatmul.mubr.msk.f32.gmra.mrb[196].mxu0 %vm1500_vm1, %v12932_v49  ;;  %v12934_v56 = vmax.f32 %v12902_v1, 0.0  ;;  %v1385_v49 = vadd.f32 %v24161_v46, %v23166_v10  ;;  %v1482_v1 = vmax.f32 %v1380_v19, 0.0 }
 0x9f5   : > { %v12933_v21 = vmax.f32 %v12901_v29, 0.0  ;;  %v17982_v43 = vpop.f32.mrb[60].mxu1  ;;  %v1390_v29 = vadd.f32 %v23166_v10, %v24162_v60  ;;  %v19060_v60 = vld [vmem:[%s19269_s15 + $0x18] sm:$0xff] }
 0x9f6   : > { %v12904_v50 = vadd.f32 %v17982_v43, %v23103_v23  ;;  %v12816_v62 = vpop.f32.mrb[61].mxu1  ;;  %v24163_v43 = vld [vmem:[#allocation95_spill] sm:$0xff] }
 0x9f7   : > { %v12903_v16 = vadd.f32 %v23103_v23, %v12816_v62  ;;  %18027 = vmatprep.mubr.msk.f32.mxu0 %vm1500_vm1, %v12933_v21  ;;  %v1483_v21 = vmax.f32 %v1385_v49, 0.0  ;;  %v24164_v62 = vld [vmem:[#allocation101_spill] sm:$0xff] }
 0x9f8   : > { %18028 = vmatmul.mubr.msk.f32.gmra.mrb[198].mxu0 %vm1500_vm1, %v12934_v56  ;;  %v12936_v45 = vmax.f32 %v12904_v50, 0.0  ;;  %v1395_v56 = vadd.f32 %v24163_v43, %v23166_v10  ;;  %v1484_v50 = vmax.f32 %v1390_v29, 0.0 }
 0x9f9   : > { %v12935_v53 = vmax.f32 %v12903_v16, 0.0  ;;  %v17985_v18 = vpop.f32.mrb[62].mxu1  ;;  %v1400_v16 = vadd.f32 %v23166_v10, %v24164_v62 }
 0x9fa   : > { %v12906_v61 = vadd.f32 %v17985_v18, %v23103_v23  ;;  %v12826_v35 = vpop.f32.mrb[63].mxu1  ;;  %v24165_v18 = vld [vmem:[#allocation99_spill] sm:$0xff] }
 0x9fb   : > { %v12905_v28 = vadd.f32 %v23103_v23, %v12826_v35  ;;  %18030 = vmatprep.mubr.msk.f32.mxu0 %vm1500_vm1, %v12935_v53  ;;  %v1469_v23 = vmax.f32 %v1315_v40, 0.0  ;;  %v1485_v53 = vmax.f32 %v1395_v56, 0.0  ;;  %v24166_v35 = vld [vmem:[#allocation105_spill] sm:$0xff]  ;;  %v24168_v40 = vld [vmem:[#allocation107_spill] sm:$0xff] }
 0x9fc   : > { %18031 = vmatmul.mubr.msk.f32.gmra.mrb[200].mxu0 %vm1500_vm1, %v12936_v45  ;;  %v12938_v47 = vmax.f32 %v12906_v61, 0.0  ;;  %v1405_v45 = vadd.f32 %v24165_v18, %v23166_v10  ;;  %v1486_v61 = vmax.f32 %v1400_v16, 0.0  ;;  %v1410_v44 = vadd.f32 %v23166_v10, %v24166_v35  ;;  %v19063_v35 = vld [vmem:[%s19269_s15 + $0x20] sm:$0xff] }
 0x9fd   : > { %v12937_v7 = vmax.f32 %v12905_v28, 0.0  ;;  %v24167_v28 = vld [vmem:[#allocation103_spill] sm:$0xff] }
 0x9fe   : > { %v1487_v12 = vmax.f32 %v1405_v45, 0.0  ;;  %v1488_v38 = vmax.f32 %v1410_v44, 0.0  ;;  %v19062_v45 = vld [vmem:[%s19269_s15 + $0x28] sm:$0xff] }
 0x9ff   : > { %18033 = vmatprep.mubr.msk.f32.mxu0 %vm1500_vm1, %v12937_v7  ;;  %v1415_v7 = vadd.f32 %v24167_v28, %v23166_v10 }
 0xa00   : > { %18034 = vmatmul.mubr.msk.f32.gmra.mrb[202].mxu0 %vm1500_vm1, %v12938_v47  ;;  %v1420_v47 = vadd.f32 %v23166_v10, %v24168_v40 }
 0xa01   : > { %18038 = vmatprep.mubr.msk.f32.mxu0 %vm1500_vm1, %v1468_v32  ;;  %v1489_v32 = vmax.f32 %v1415_v7, 0.0 }
 0xa04   : > { %18039 = vmatmul.mubr.msk.f32.vlgmr.msra.gmra.mrb[172].mxu0 %vm1500_vm1, %v1469_v23  ;;  %v1490_v23 = vmax.f32 %v1420_v47, 0.0 }
 0xa05   : > { %18041 = vmatprep.mubr.msk.f32.mxu0 %vm1500_vm1, %v1470_v27  ;;  %v1491_v27 = vmax.f32 %v1425_v59, 0.0  ;;  %v19065_v59 = vld [vmem:[%s19269_s15 + $0x30] sm:$0xff] }
 0xa08   : > { %18042 = vmatmul.mubr.msk.f32.gmra.mrb[174].mxu0 %vm1500_vm1, %v1471_v51  ;;  %v1492_v51 = vmax.f32 %v1430_v48, 0.0 }
 0xa09   : > { %18044 = vmatprep.mubr.msk.f32.mxu0 %vm1500_vm1, %v1472_v11  ;;  %v1493_v11 = vmax.f32 %v1435_v54, 0.0 }
 0xa0c   : > { %18045 = vmatmul.mubr.msk.f32.gmra.mrb[176].mxu0 %vm1500_vm1, %v1473_v31  ;;  %v1494_v31 = vmax.f32 %v1440_v22, 0.0 }
 0xa0d   : > { %18047 = vmatprep.mubr.msk.f32.mxu0 %vm1500_vm1, %v1474_v55  ;;  %v1495_v55 = vmax.f32 %v1445_v6, 0.0 }
 0xa10   : > { %18048 = vmatmul.mubr.msk.f32.gmra.mrb[178].mxu0 %vm1500_vm1, %v1475_v5  ;;  %v1496_v5 = vmax.f32 %v1450_v15, 0.0 }
 0xa11   : > { %18050 = vmatprep.mubr.msk.f32.mxu0 %vm1500_vm1, %v1476_v37  ;;  %v1497_v37 = vmax.f32 %v1455_v52, 0.0  ;;  %v19068_v52 = vld [vmem:[%s19269_s15 + $0x58] sm:$0xff] }
 0xa14   : > { %18051 = vmatmul.mubr.msk.f32.gmra.mrb[180].mxu0 %vm1500_vm1, %v1477_v2  ;;  %v1498_v2 = vmax.f32 %v1460_v0, 0.0 }
 0xa15   : > { %18053 = vmatprep.mubr.msk.f32.mxu0 %vm1500_vm1, %v1478_v14 }
 0xa18   : > { %18054 = vmatmul.mubr.msk.f32.gmra.mrb[182].mxu0 %vm1500_vm1, %v1479_v13  ;;  %v19058_v13 = vld [vmem:[%s19269_s15 + $0x8] sm:$0xff] }
 0xa19   : > { %18056 = vmatprep.mubr.msk.f32.mxu0 %vm1500_vm1, %v1480_v63 }
 0xa1c   : > { %18057 = vmatmul.mubr.msk.f32.gmra.mrb[184].mxu0 %vm1500_vm1, %v1481_v25 }
 0xa1d   : > { %18059 = vmatprep.mubr.msk.f32.mxu0 %vm1500_vm1, %v1482_v1 }
 0xa20   : > { %18060 = vmatmul.mubr.msk.f32.gmra.mrb[186].mxu0 %vm1500_vm1, %v1483_v21  ;;  %v19061_v21 = vld [vmem:[%s19269_s15 + $0x10] sm:$0xff] }
 0xa21   : > { %18062 = vmatprep.mubr.msk.f32.mxu0 %vm1500_vm1, %v1484_v50 }
 0xa24   : > { %18063 = vmatmul.mubr.msk.f32.gmra.mrb[188].mxu0 %vm1500_vm1, %v1485_v53 }
 0xa25   : > { %18065 = vmatprep.mubr.msk.f32.mxu0 %vm1500_vm1, %v1486_v61 }
 0xa28   : > { %18066 = vmatmul.mubr.msk.f32.gmra.mrb[190].mxu0 %vm1500_vm1, %v1487_v12 }
 0xa29   : > { %18068 = vmatprep.mubr.msk.f32.mxu0 %vm1500_vm1, %v1488_v38 }
 0xa2c   : > { %18069 = vmatmul.mubr.msk.f32.gmra.mrb[192].mxu0 %vm1500_vm1, %v1489_v32  ;;  %v19064_v32 = vld [vmem:[%s19269_s15 + $0x38] sm:$0xff] }
 0xa2d   : > { %18071 = vmatprep.mubr.msk.f32.mxu0 %vm1500_vm1, %v1490_v23 }
 0xa30   : > { %18072 = vmatmul.mubr.msk.f32.gmra.mrb[194].mxu0 %vm1500_vm1, %v1491_v27 }
 0xa31   : > { %18074 = vmatprep.mubr.msk.f32.mxu0 %vm1500_vm1, %v1492_v51 }
 0xa34   : > { %18075 = vmatmul.mubr.msk.f32.gmra.mrb[196].mxu0 %vm1500_vm1, %v1493_v11  ;;  %v19067_v11 = vld [vmem:[%s19269_s15 + $0x40] sm:$0xff] }
 0xa35   : > { %18077 = vmatprep.mubr.msk.f32.mxu0 %vm1500_vm1, %v1494_v31 }
 0xa38   : > { %18078 = vmatmul.mubr.msk.f32.gmra.mrb[198].mxu0 %vm1500_vm1, %v1495_v55 }
 0xa39   : > { %18080 = vmatprep.mubr.msk.f32.mxu0 %vm1500_vm1, %v1496_v5 }
 0xa3c   : > { %18081 = vmatmul.mubr.msk.f32.gmra.mrb[200].mxu0 %vm1500_vm1, %v1497_v37 }
 0xa3d   : > { %18083 = vmatprep.mubr.msk.f32.mxu0 %vm1500_vm1, %v1498_v2 }
 0xa40   : > { %18084 = vmatmul.mubr.msk.f32.gmra.mrb[202].mxu0 %vm1500_vm1, %v1499_v58 }
 0xad7   : > { %v18040_v14 = vpop.f32.mrb[172].mxu0 }
 0xad8   : > { %v13663_v10 = vadd.f32 %v18040_v14, %v23275_v39  ;;  %v13464_v24 = vpop.f32.mrb[173].mxu0 }
 0xad9   : > { %v13662_v3 = vadd.f32 %v23275_v39, %v13464_v24 }
 0xada   : > { %v13695_v30 = vadd.f32 %v19058_v13, %v13663_v10  ;;  %v19070_v10 = vld [vmem:[%s19269_s15 + $0x68] sm:$0xff] }
 0xadb   : > { %v13694_v63 = vadd.f32 %v19059_v26, %v13662_v3  ;;  %v18043_v57 = vpop.f32.mrb[174].mxu0  ;;  %v19071_v3 = vld [vmem:[%s19269_s15 + $0x60] sm:$0xff] }
 0xadc   : > { %v13727_v19 = vmax.f32 %v13695_v30, 0.0  ;;  %v13665_v25 = vadd.f32 %v18043_v57, %v23275_v39  ;;  %v13474_v46 = vpop.f32.mrb[175].mxu0 }
 0xadd   : > { %v13726_v49 = vmax.f32 %v13694_v63, 0.0  ;;  %v13664_v1 = vadd.f32 %v23275_v39, %v13474_v46  ;;  %v19072_v46 = vld [vmem:[%s19269_s15 + $0x78] sm:$0xff] }
 0xade   : > { %13759 = vst.msk [vmem:[%s23285_s18 + $0x8] sm:$0xff] %vm324_vm0, %v13727_v19  ;;  %v13697_v29 = vadd.f32 %v19060_v60, %v13665_v25 }
 0xadf   : > { %13758 = vst.msk [vmem:[%s23285_s18] sm:$0xff] %vm324_vm0, %v13726_v49  ;;  %v13696_v43 = vadd.f32 %v19061_v21, %v13664_v1  ;;  %v18046_v56 = vpop.f32.mrb[176].mxu0  ;;  %v19073_v1 = vld [vmem:[%s19269_s15 + $0x70] sm:$0xff] }
 0xae0   : > { %v13729_v50 = vmax.f32 %v13697_v29, 0.0  ;;  %v13667_v62 = vadd.f32 %v18046_v56, %v23275_v39  ;;  %v13484_v16 = vpop.f32.mrb[177].mxu0 }
 0xae1   : > { %v13728_v53 = vmax.f32 %v13696_v43, 0.0  ;;  %v13666_v18 = vadd.f32 %v23275_v39, %v13484_v16  ;;  %v19074_v16 = vld [vmem:[%s19269_s15 + $0x88] sm:$0xff] }
 0xae2   : > { %13761 = vst.msk [vmem:[%s23285_s18 + $0x18] sm:$0xff] %vm324_vm0, %v13729_v50  ;;  %v13699_v61 = vadd.f32 %v19062_v45, %v13667_v62 }
 0xae3   : > { %13760 = vst.msk [vmem:[%s23285_s18 + $0x10] sm:$0xff] %vm324_vm0, %v13728_v53  ;;  %v13698_v44 = vadd.f32 %v19063_v35, %v13666_v18  ;;  %v18049_v12 = vpop.f32.mrb[178].mxu0  ;;  %v19075_v18 = vld [vmem:[%s19269_s15 + $0x80] sm:$0xff] }
 0xae4   : > { %v13731_v28 = vmax.f32 %v13699_v61, 0.0  ;;  %v13669_v7 = vadd.f32 %v18049_v12, %v23275_v39  ;;  %v13494_v38 = vpop.f32.mrb[179].mxu0 }
 0xae5   : > { %v13730_v40 = vmax.f32 %v13698_v44, 0.0  ;;  %v13668_v47 = vadd.f32 %v23275_v39, %v13494_v38  ;;  %v19076_v38 = vld [vmem:[%s19269_s15 + $0x98] sm:$0xff] }
 0xae6   : > { %13763 = vst.msk [vmem:[%s23285_s18 + $0x28] sm:$0xff] %vm324_vm0, %v13731_v28  ;;  %v13701_v8 = vadd.f32 %v19064_v32, %v13669_v7 }
 0xae7   : > { %13762 = vst.msk [vmem:[%s23285_s18 + $0x20] sm:$0xff] %vm324_vm0, %v13730_v40  ;;  %v13700_v23 = vadd.f32 %v19065_v59, %v13668_v47  ;;  %v18052_v17 = vpop.f32.mrb[180].mxu0  ;;  %v19077_v47 = vld [vmem:[%s19269_s15 + $0x90] sm:$0xff] }
 0xae8   : > { %v13733_v48 = vmax.f32 %v13701_v8, 0.0  ;;  %v13671_v27 = vadd.f32 %v18052_v17, %v23275_v39  ;;  %v13504_v20 = vpop.f32.mrb[181].mxu0 }
 0xae9   : > { %v13732_v54 = vmax.f32 %v13700_v23, 0.0  ;;  %v13670_v51 = vadd.f32 %v23275_v39, %v13504_v20  ;;  %v19078_v20 = vld [vmem:[%s19269_s15 + $0xa8] sm:$0xff] }
 0xaea   : > { %13765 = vst.msk [vmem:[%s23285_s18 + $0x38] sm:$0xff] %vm324_vm0, %v13733_v48  ;;  %v13703_v22 = vadd.f32 %v19066_v34, %v13671_v27 }
 0xaeb   : > { %13764 = vst.msk [vmem:[%s23285_s18 + $0x30] sm:$0xff] %vm324_vm0, %v13732_v54  ;;  %v13702_v33 = vadd.f32 %v19067_v11, %v13670_v51  ;;  %v18055_v6 = vpop.f32.mrb[182].mxu0  ;;  %v19079_v51 = vld [vmem:[%s19269_s15 + $0xa0] sm:$0xff] }
 0xaec   : > { %v13735_v31 = vmax.f32 %v13703_v22, 0.0  ;;  %v13673_v42 = vadd.f32 %v18055_v6, %v23275_v39  ;;  %v13514_v15 = vpop.f32.mrb[183].mxu0 }
 0xaed   : > { %v13734_v55 = vmax.f32 %v13702_v33, 0.0  ;;  %v13672_v36 = vadd.f32 %v23275_v39, %v13514_v15  ;;  %v19080_v15 = vld [vmem:[%s19269_s15 + $0xb8] sm:$0xff] }
 0xaee   : > { %13767 = vst.msk [vmem:[%s23285_s18 + $0x48] sm:$0xff] %vm324_vm0, %v13735_v31  ;;  %v13705_v5 = vadd.f32 %v19068_v52, %v13673_v42 }
 0xaef   : > { %13766 = vst.msk [vmem:[%s23285_s18 + $0x40] sm:$0xff] %vm324_vm0, %v13734_v55  ;;  %v13704_v0 = vadd.f32 %v19069_v9, %v13672_v36  ;;  %v18058_v37 = vpop.f32.mrb[184].mxu0  ;;  %v19081_v36 = vld [vmem:[%s19269_s15 + $0xb0] sm:$0xff] }
 0xaf0   : > { %v13737_v4 = vmax.f32 %v13705_v5, 0.0  ;;  %v13675_v41 = vadd.f32 %v18058_v37, %v23275_v39  ;;  %v13524_v2 = vpop.f32.mrb[185].mxu0 }
 0xaf1   : > { %v13736_v58 = vmax.f32 %v13704_v0, 0.0  ;;  %v13674_v14 = vadd.f32 %v23275_v39, %v13524_v2  ;;  %v19082_v2 = vld [vmem:[%s19269_s15 + $0xc8] sm:$0xff] }
 0xaf2   : > { %13769 = vst.msk [vmem:[%s23285_s18 + $0x58] sm:$0xff] %vm324_vm0, %v13737_v4  ;;  %v13707_v24 = vadd.f32 %v19070_v10, %v13675_v41 }
 0xaf3   : > { %13768 = vst.msk [vmem:[%s23285_s18 + $0x50] sm:$0xff] %vm324_vm0, %v13736_v58  ;;  %v13706_v13 = vadd.f32 %v19071_v3, %v13674_v14  ;;  %v18061_v30 = vpop.f32.mrb[186].mxu0  ;;  %v19083_v14 = vld [vmem:[%s19269_s15 + $0xc0] sm:$0xff] }
 0xaf4   : > { %v13739_v26 = vmax.f32 %v13707_v24, 0.0  ;;  %v13677_v63 = vadd.f32 %v18061_v30, %v23275_v39  ;;  %v13534_v57 = vpop.f32.mrb[187].mxu0 }
 0xaf5   : > { %v13738_v19 = vmax.f32 %v13706_v13, 0.0  ;;  %v13676_v25 = vadd.f32 %v23275_v39, %v13534_v57  ;;  %v19084_v57 = vld [vmem:[%s19269_s15 + $0xd8] sm:$0xff] }
 0xaf6   : > { %13771 = vst.msk [vmem:[%s23285_s18 + $0x68] sm:$0xff] %vm324_vm0, %v13739_v26  ;;  %v13709_v49 = vadd.f32 %v19072_v46, %v13677_v63 }
 0xaf7   : > { %13770 = vst.msk [vmem:[%s23285_s18 + $0x60] sm:$0xff] %vm324_vm0, %v13738_v19  ;;  %v13708_v60 = vadd.f32 %v19073_v1, %v13676_v25  ;;  %v18064_v29 = vpop.f32.mrb[188].mxu0  ;;  %v19085_v25 = vld [vmem:[%s19269_s15 + $0xd0] sm:$0xff] }
 0xaf8   : > { %v13741_v21 = vmax.f32 %v13709_v49, 0.0  ;;  %v13679_v43 = vadd.f32 %v18064_v29, %v23275_v39  ;;  %v13544_v56 = vpop.f32.mrb[189].mxu0 }
 0xaf9   : > { %v13740_v50 = vmax.f32 %v13708_v60, 0.0  ;;  %v13678_v62 = vadd.f32 %v23275_v39, %v13544_v56  ;;  %v19086_v56 = vld [vmem:[%s19269_s15 + $0xe8] sm:$0xff] }
 0xafa   : > { %13773 = vst.msk [vmem:[%s23285_s18 + $0x78] sm:$0xff] %vm324_vm0, %v13741_v21  ;;  %v13711_v53 = vadd.f32 %v19074_v16, %v13679_v43 }
 0xafb   : > { %13772 = vst.msk [vmem:[%s23285_s18 + $0x70] sm:$0xff] %vm324_vm0, %v13740_v50  ;;  %v13710_v45 = vadd.f32 %v19075_v18, %v13678_v62  ;;  %v18067_v61 = vpop.f32.mrb[190].mxu0  ;;  %v19087_v62 = vld [vmem:[%s19269_s15 + $0xe0] sm:$0xff] }
 0xafc   : > { %v13743_v35 = vmax.f32 %v13711_v53, 0.0  ;;  %v13681_v44 = vadd.f32 %v18067_v61, %v23275_v39  ;;  %v13554_v12 = vpop.f32.mrb[191].mxu0 }
 0xafd   : > { %v13742_v28 = vmax.f32 %v13710_v45, 0.0  ;;  %v13680_v7 = vadd.f32 %v23275_v39, %v13554_v12  ;;  %v19088_v12 = vld [vmem:[%s19269_s15 + $0xf8] sm:$0xff] }
 0xafe   : > { %13775 = vst.msk [vmem:[%s23285_s18 + $0x88] sm:$0xff] %vm324_vm0, %v13743_v35  ;;  %v13713_v40 = vadd.f32 %v19076_v38, %v13681_v44 }
 0xaff   : > { %13774 = vst.msk [vmem:[%s23285_s18 + $0x80] sm:$0xff] %vm324_vm0, %v13742_v28  ;;  %v13712_v32 = vadd.f32 %v19077_v47, %v13680_v7  ;;  %v18070_v8 = vpop.f32.mrb[192].mxu0  ;;  %v19089_v7 = vld [vmem:[%s19269_s15 + $0xf0] sm:$0xff]  ;;  %s19090_s15 = scalar_lea.vmem %s23412_s20, 4096 }
 0xb00   : > { %v13745_v59 = vmax.f32 %v13713_v40, 0.0  ;;  %v13683_v23 = vadd.f32 %v18070_v8, %v23275_v39  ;;  %v13564_v17 = vpop.f32.mrb[193].mxu0  ;;  %p19091_p11 = scmp.ne.s32.totalorder %s23412_s20, %s19090_s15  ;;  %p19098_p1 = scmp.lt.s32.totalorder %s19096_s9, %s19090_s15 }
 0xb01   : > { %v13744_v48 = vmax.f32 %v13712_v32, 0.0  ;;  %v13682_v27 = vadd.f32 %v23275_v39, %v13564_v17 }
 0xb02   : > { %13777 = vst.msk [vmem:[%s23285_s18 + $0x98] sm:$0xff] %vm324_vm0, %v13745_v59  ;;  %v13715_v54 = vadd.f32 %v19078_v20, %v13683_v23  ;;  %p19092_p12 = pnand %p19091_p11, %p19236_p5  ;;  %p19099_p2 = por %p19098_p1, %p19097_p0 }
 0xb03   : > { %13776 = vst.msk [vmem:[%s23285_s18 + $0x90] sm:$0xff] %vm324_vm0, %v13744_v48  ;;  %v13714_v34 = vadd.f32 %v19079_v51, %v13682_v27  ;;  %v18073_v22 = vpop.f32.mrb[194].mxu0 }
 0xb04   : > { %v13747_v11 = vmax.f32 %v13715_v54, 0.0  ;;  %v13685_v33 = vadd.f32 %v18073_v22, %v23275_v39  ;;  %v13574_v6 = vpop.f32.mrb[195].mxu0  ;;  %p19093_p13 = pneg %p19092_p12 }
 0xb05   : > { %v13746_v31 = vmax.f32 %v13714_v34, 0.0  ;;  %v13684_v42 = vadd.f32 %v23275_v39, %v13574_v6 }
 0xb06   : > { %13779 = vst.msk [vmem:[%s23285_s18 + $0xa8] sm:$0xff] %vm324_vm0, %v13747_v11  ;;  %v13717_v55 = vadd.f32 %v19080_v15, %v13685_v33  ;;  %p19100_p3 = pnand %p19099_p2, %p19093_p13 }
 0xb07   : > { %13778 = vst.msk [vmem:[%s23285_s18 + $0xa0] sm:$0xff] %vm324_vm0, %v13746_v31  ;;  %v13716_v52 = vadd.f32 %v19081_v36, %v13684_v42  ;;  %v18076_v5 = vpop.f32.mrb[196].mxu0 }
 0xb08   : > { %v13749_v9 = vmax.f32 %v13717_v55, 0.0  ;;  %v13687_v0 = vadd.f32 %v18076_v5, %v23275_v39  ;;  %v13584_v37 = vpop.f32.mrb[197].mxu0 }
 0xb09   : > { %v13748_v4 = vmax.f32 %v13716_v52, 0.0  ;;  %v13686_v41 = vadd.f32 %v23275_v39, %v13584_v37 }
 0xb0a   : > { %13781 = vst.msk [vmem:[%s23285_s18 + $0xb8] sm:$0xff] %vm324_vm0, %v13749_v9  ;;  %v13719_v58 = vadd.f32 %v19082_v2, %v13687_v0 }
 0xb0b   : > { %13780 = vst.msk [vmem:[%s23285_s18 + $0xb0] sm:$0xff] %vm324_vm0, %v13748_v4  ;;  %v13718_v10 = vadd.f32 %v19083_v14, %v13686_v41  ;;  %v18079_v24 = vpop.f32.mrb[198].mxu0 }
 0xb0c   : > { %v13751_v3 = vmax.f32 %v13719_v58, 0.0  ;;  %v13689_v13 = vadd.f32 %v18079_v24, %v23275_v39  ;;  %v13594_v30 = vpop.f32.mrb[199].mxu0 }
 0xb0d   : > { %v13750_v26 = vmax.f32 %v13718_v10, 0.0  ;;  %v13688_v63 = vadd.f32 %v23275_v39, %v13594_v30 }
 0xb0e   : > { %13783 = vst.msk [vmem:[%s23285_s18 + $0xc8] sm:$0xff] %vm324_vm0, %v13751_v3  ;;  %v13721_v19 = vadd.f32 %v19084_v57, %v13689_v13 }
 0xb0f   : > { %13782 = vst.msk [vmem:[%s23285_s18 + $0xc0] sm:$0xff] %vm324_vm0, %v13750_v26  ;;  %v13720_v46 = vadd.f32 %v19085_v25, %v13688_v63  ;;  %v18082_v49 = vpop.f32.mrb[200].mxu0 }
 0xb10   : > { %v13753_v1 = vmax.f32 %v13721_v19, 0.0  ;;  %v13691_v60 = vadd.f32 %v18082_v49, %v23275_v39  ;;  %v13604_v29 = vpop.f32.mrb[201].mxu0 }
 0xb11   : > { %v13752_v21 = vmax.f32 %v13720_v46, 0.0  ;;  %v13690_v43 = vadd.f32 %v23275_v39, %v13604_v29 }
 0xb12   : > { %13785 = vst.msk [vmem:[%s23285_s18 + $0xd8] sm:$0xff] %vm324_vm0, %v13753_v1  ;;  %v13723_v50 = vadd.f32 %v19086_v56, %v13691_v60 }
 0xb13   : > { %13784 = vst.msk [vmem:[%s23285_s18 + $0xd0] sm:$0xff] %vm324_vm0, %v13752_v21  ;;  %v13722_v16 = vadd.f32 %v19087_v62, %v13690_v43  ;;  %v18085_v53 = vpop.f32.mrb[202].mxu0 }
 0xb14   : > { %v13755_v18 = vmax.f32 %v13723_v50, 0.0  ;;  %v13693_v45 = vadd.f32 %v18085_v53, %v23275_v39  ;;  %v13614_v61 = vpop.f32.mrb[203].mxu0 }
 0xb15   : > { %v13754_v35 = vmax.f32 %v13722_v16, 0.0  ;;  %v13692_v44 = vadd.f32 %v23275_v39, %v13614_v61 }
 0xb16   : > { %13787 = vst.msk [vmem:[%s23285_s18 + $0xe8] sm:$0xff] %vm324_vm0, %v13755_v18  ;;  %v13725_v28 = vadd.f32 %v19088_v12, %v13693_v45 }
 0xb17   : > { %13786 = vst.msk [vmem:[%s23285_s18 + $0xe0] sm:$0xff] %vm324_vm0, %v13754_v35  ;;  %v13724_v38 = vadd.f32 %v19089_v7, %v13692_v44 }
 0xb18   : > { %v13757_v40 = vmax.f32 %v13725_v28, 0.0 }
 0xb19   : > { %v13756_v39 = vmax.f32 %v13724_v38, 0.0 }
 0xb1a   : > { %13789 = vst.msk [vmem:[%s23285_s18 + $0xf8] sm:$0xff] %vm324_vm0, %v13757_v40 }
 0xb1b   : > { %13788 = vst.msk [vmem:[%s23285_s18 + $0xf0] sm:$0xff] %vm324_vm0, %v13756_v39 }
 0xb1c   : > { %19103 = shalt.err (!%p19100_p3)
}
 0xb1d   : > { %s19104_s13 = scalar_lea.hbm %s23410_s23, 4096  ;;  %s19108_s17 = scalar_lea.hbm %s23468_s7, 8192 }
 0xb1e   : > { %p19105_p4 = scmp.ne.s32.totalorder %s23410_s23, %s19104_s13  ;;  %p19109_p9 = scmp.lt.u32.totalorder %s23410_s23, %s23468_s7 }
 0xb1f   : > { %p19110_p10 = scmp.lt.u32.totalorder %s19108_s17, %s19104_s13  ;;  %p19112_p12 = scmp.lt.u32.totalorder %s19104_s13, %s23410_s23 }
 0xb20   : > { %p19106_p7 = pnand %p19105_p4, %p19236_p5 }
 0xb21   : > { %p19111_p11 = por %p19110_p10, %p19109_p9 }
 0xb22   : > { %p19107_p8 = pneg %p19106_p7 }
 0xb23   : > { %p19113_p13 = por %p19112_p12, %p19111_p11 }
 0xb25   : > { %p19114_p0 = pnand %p19113_p13, %p19107_p8 }
 0xb27   : > { %19117 = shalt.err (!%p19114_p0)
}
 0xb28   : > { %s19156_s21 = smov 128   ;;  %s19157_s22 = smov 8  }
 0xb29   : > { %19016 = dma.vmem_to_hbm [thread:$0]  (%p19236_p5), %s23412_s20, 4096, %s23410_s23, %s23420_s28, %s19156_s21, %s19156_s21, %s19157_s22  }
 0xb2a PF: > { %p19022_p1 = scmp.ge.s32.totalorder %s19152_s27, 2  ;;  %s13819_s15 = sand.u32 1, %s19140_s24  }
 0xb2b   : > { %s13820_s29 = scalar_lea.sflag [#allocation4], %s13819_s15 }
 0xb2c   : > { %p19019_p2 = pnand %p19022_p1, %p19240_p6 }
 0xb2e   : > { %19135 = dma.done.wait (!%p19019_p2), %s13820_s29, 4096  }
 0xb2f   : > { %19137 = vsyncadd (!%p19019_p2), %s13820_s29, 4294963200  ;;  %p17_p3 = scmp.ge.s32.totalorder %s19223_s30, 4   ;;  %s24178_s24 = smov %s19144_s25 }
 0xb30   : > { %s24179_s25 = smov %s19148_s26  ;;  %s24180_s26 = smov %s19234_s10 }
 0xb31   : > { %s24181_s27 = smov %s19223_s30  ;;  %19 = sbr.rel (!%p17_p3) target bundleno = 3 (0x3), region = 122 }
 0xb38   :  { %13825 = vsyncpa [#allocation4], 1 }
 0xb39   :  { %13827 = vsyncpa [#allocation4 + $0x1], 1 }

</bundles_post_ra>
